<compile_context>
chip_gen: v7x
topology: tpu7x:2x2x1
jax: 0.10.0
libtpu: 0.0.40
codegen_flags: <defaults>
</compile_context>

<pallas_src>
import functools

import jax
import jax.numpy as jnp
from jax.experimental import pallas as pl
from jax.experimental.pallas import tpu as pltpu

_DIMS = [(768, 512), (512, 512), (512, 512), (512, 256)]
_D_IN = 768
_D_OUT = 256


def _gelu_exact_f32(x_f32):
    # PyTorch nn.GELU() default: exact erf-based GELU, computed in f32 on the VPU.
    return 0.5 * x_f32 * (1.0 + jax.lax.erf(x_f32 * jnp.float32(0.7071067811865476)))


def mlp256_kernel(x_ref, w1_ref, b1_ref, w2_ref, b2_ref, w3_ref, b3_ref,
                  w4_ref, b4_ref, o_ref):
    """Fused 4-layer MLP over one [tm, 768] row tile; all weights resident in VMEM."""
    f32 = jnp.float32

    # Layer 1: [tm,768] @ [768,512], f32 accumulation on the MXU; bias + exact GELU in f32,
    # result cast straight back to the weight dtype (bf16 on the fast path).
    h = jnp.dot(x_ref[...], w1_ref[...], preferred_element_type=f32)
    h = _gelu_exact_f32(h + b1_ref[...].astype(f32)).astype(w2_ref.dtype)
    # TODO(synk): Dropout(p=0.1) omitted (inference/eval semantics: identity).

    # Layer 2: [tm,512] @ [512,512]
    h = jnp.dot(h, w2_ref[...], preferred_element_type=f32)
    h = _gelu_exact_f32(h + b2_ref[...].astype(f32)).astype(w3_ref.dtype)

    # Layer 3: [tm,512] @ [512,512]
    h = jnp.dot(h, w3_ref[...], preferred_element_type=f32)
    h = _gelu_exact_f32(h + b3_ref[...].astype(f32)).astype(w4_ref.dtype)

    # Layer 4: [tm,512] @ [512,256]
    y = jnp.dot(h, w4_ref[...], preferred_element_type=f32) + b4_ref[...].astype(f32)
    o_ref[...] = y.astype(o_ref.dtype)


def _choose_tm(n_rows):
    """Largest row tile in {1024, 512, 256} that still leaves >= 2 grid steps.

    v7x has 2 TensorCores per chip; the "parallel" row axis only helps if the grid can
    actually be split, so avoid collapsing the grid to a single step for mid-sized N.
    """
    for tm in (1024, 512, 256):
        if pl.cdiv(n_rows, tm) >= 2:
            return tm
    return 256


def _vmem_limit_bytes(tm, x_dtype, param_bytes):
    """Right-sized VMEM request (v7x has only 64 MiB per TC)."""
    db = jnp.dtype(x_dtype).itemsize
    x_tiles = 2 * tm * _D_IN * db            # double-buffered input row tile
    o_tiles = 2 * tm * _D_OUT * db           # double-buffered output tile
    h_scratch = 2 * tm * 512 * 4             # f32 inter-layer temporaries
    need = 2 * param_bytes + x_tiles + o_tiles + h_scratch
    need = int(need * 1.5)                   # headroom for compiler scratch / spill
    return min(max(need, 16 * 1024 * 1024), 48 * 1024 * 1024)


@functools.partial(jax.jit, static_argnames=("tm", "vmem_limit_bytes"))
def _mlp256_call(x, params, *, tm, vmem_limit_bytes):
    (w1, b1, w2, b2, w3, b3, w4, b4) = params
    n_rows, d_in = x.shape
    assert d_in == _D_IN

    dt_bytes = jnp.dtype(x.dtype).itemsize
    param_bytes = sum(int(p.size) * jnp.dtype(p.dtype).itemsize
                      for p in (w1, b1, w2, b2, w3, b3, w4, b4))
    cost = pl.CostEstimate(
        flops=2 * n_rows * sum(fi * fo for fi, fo in _DIMS),
        transcendentals=3 * n_rows * 512,                  # one erf per hidden activation
        bytes_accessed=n_rows * (_D_IN + _D_OUT) * dt_bytes + param_bytes,
    )

    def resident(arr):
        # Constant index_map -> one HBM->VMEM DMA; the block stays resident across the grid.
        return pl.BlockSpec(arr.shape, lambda i: (0, 0))

    return pl.pallas_call(
        mlp256_kernel,
        out_shape=jax.ShapeDtypeStruct((n_rows, _D_OUT), x.dtype),
        grid_spec=pltpu.PrefetchScalarGridSpec(
            num_scalar_prefetch=0,
            grid=(pl.cdiv(n_rows, tm),),                   # ragged last tile is clipped
            in_specs=[
                pl.BlockSpec((tm, _D_IN), lambda i: (i, 0)),   # x row tile (pipelined)
                resident(w1), resident(b1),                    # layer 1
                resident(w2), resident(b2),                    # layer 2
                resident(w3), resident(b3),                    # layer 3
                resident(w4), resident(b4),                    # layer 4
            ],
            out_specs=pl.BlockSpec((tm, _D_OUT), lambda i: (i, 0)),
        ),
        compiler_params=pltpu.CompilerParams(
            dimension_semantics=("parallel",),             # megacore-shardable row axis
            vmem_limit_bytes=vmem_limit_bytes,
        ),
        cost_estimate=cost,
    )(x, w1, b1, w2, b2, w3, b3, w4, b4)


def mlp256(x, params, *, tm=None):
    """MLP256 forward.

    Rows are independent, so the ragged last tile is handled entirely by Pallas block
    clipping -- no wrapper-side pad or slice and therefore no extra HBM pass over x.
    """
    n_rows = x.shape[0]
    if tm is None:
        tm = _choose_tm(n_rows)
    param_bytes = sum(int(p.size) * jnp.dtype(p.dtype).itemsize for p in params)
    vmem = _vmem_limit_bytes(tm, x.dtype, param_bytes)
    return _mlp256_call(x, tuple(params), tm=tm, vmem_limit_bytes=vmem)


def init_params(key):
    """Deterministic nn.Linear-style init; weights stored as [in, out] (transposed)."""
    params = []
    for idx, (fan_in, fan_out) in enumerate(_DIMS):
        kw, kb = jax.random.split(jax.random.fold_in(key, idx))
        bound = 1.0 / jnp.sqrt(fan_in)
        w = jax.random.uniform(kw, (fan_in, fan_out), jnp.float32, -bound, bound)
        b = jax.random.uniform(kb, (1, fan_out), jnp.float32, -bound, bound)
        params.extend([w, b])
    return tuple(params)


def mlp256_ref(x, params):
    (w1, b1, w2, b2, w3, b3, w4, b4) = params
    h = jax.nn.gelu(x @ w1 + b1, approximate=False)
    h = jax.nn.gelu(h @ w2 + b2, approximate=False)
    h = jax.nn.gelu(h @ w3 + b3, approximate=False)
    return h @ w4 + b4


if __name__ == "__main__":
    key = jax.random.PRNGKey(0)
    kx, kp = jax.random.split(key)

    N = 300  # deliberately not a multiple of the tile (or of 8): exercises ragged tiles
    x = jax.random.normal(kx, (N, 768), jnp.float32)
    params = init_params(kp)
    y_ref = mlp256_ref(x, params)

    # f32 path (matches the PyTorch module numerics up to TPU default matmul precision).
    y = jax.block_until_ready(mlp256(x, params))
    assert y.shape == (N, 256)
    assert jnp.allclose(y, y_ref, atol=2e-4, rtol=2e-4), "f32 mismatch vs pure-JAX reference"

    # bf16 weights/activations (production fast path on v6e/v7x): bf16 MXU operands,
    # f32 accumulation, f32 exact-erf GELU, bf16 inter-layer activations.
    x_bf16 = x.astype(jnp.bfloat16)
    params_bf16 = jax.tree_util.tree_map(lambda a: a.astype(jnp.bfloat16), params)
    y_bf16 = jax.block_until_ready(mlp256(x_bf16, params_bf16))
    y_bf16_f32 = y_bf16.astype(jnp.float32)
    rel_err = float(jnp.max(jnp.abs(y_bf16_f32 - y_ref)) / (jnp.max(jnp.abs(y_ref)) + 1e-6))
    assert y_bf16.shape == (N, 256)
    assert bool(jnp.all(jnp.isfinite(y_bf16_f32))) and rel_err < 0.1, "bf16 path diverged"

    print("KERNEL_OK")
</pallas_src>

<mosaic_0001>
module attributes {stable_mosaic.version = 11 : i64} {
  func.func @mlp256_kernel(%arg0: i32, %arg1: memref<256x768xf32, #tpu.memory_space<vmem>>, %arg2: memref<768x512xf32, #tpu.memory_space<vmem>>, %arg3: memref<1x512xf32, #tpu.memory_space<vmem>>, %arg4: memref<512x512xf32, #tpu.memory_space<vmem>>, %arg5: memref<1x512xf32, #tpu.memory_space<vmem>>, %arg6: memref<512x512xf32, #tpu.memory_space<vmem>>, %arg7: memref<1x512xf32, #tpu.memory_space<vmem>>, %arg8: memref<512x256xf32, #tpu.memory_space<vmem>>, %arg9: memref<1x256xf32, #tpu.memory_space<vmem>>, %arg10: memref<256x256xf32, #tpu.memory_space<vmem>>) attributes {dimension_semantics = [#tpu.dimension_semantics<parallel>], iteration_bounds = array<i64: 2>, scalar_prefetch = 0 : i64, scratch_operands = 0 : i64, tpu.core_type = #tpu.core_type<tc>, window_params = [{transform_indices = @transform_0, window_bounds = array<i64: 256, 768>}, {pipeline_mode = #tpu.pipeline_mode<synchronous>, transform_indices = @transform_1, window_bounds = array<i64: 768, 512>}, {pipeline_mode = #tpu.pipeline_mode<synchronous>, transform_indices = @transform_2, window_bounds = array<i64: 1, 512>}, {pipeline_mode = #tpu.pipeline_mode<synchronous>, transform_indices = @transform_3, window_bounds = array<i64: 512, 512>}, {pipeline_mode = #tpu.pipeline_mode<synchronous>, transform_indices = @transform_4, window_bounds = array<i64: 1, 512>}, {pipeline_mode = #tpu.pipeline_mode<synchronous>, transform_indices = @transform_5, window_bounds = array<i64: 512, 512>}, {pipeline_mode = #tpu.pipeline_mode<synchronous>, transform_indices = @transform_6, window_bounds = array<i64: 1, 512>}, {pipeline_mode = #tpu.pipeline_mode<synchronous>, transform_indices = @transform_7, window_bounds = array<i64: 512, 256>}, {pipeline_mode = #tpu.pipeline_mode<synchronous>, transform_indices = @transform_8, window_bounds = array<i64: 1, 256>}, {transform_indices = @transform_9, window_bounds = array<i64: 256, 256>}]} {
    %c0 = arith.constant 0 : index
    %c0_0 = arith.constant 0 : index
    %0 = vector.load %arg1[%c0, %c0_0] : memref<256x768xf32, #tpu.memory_space<vmem>>, vector<256x768xf32>
    %c0_1 = arith.constant 0 : index
    %c0_2 = arith.constant 0 : index
    %1 = vector.load %arg2[%c0_1, %c0_2] : memref<768x512xf32, #tpu.memory_space<vmem>>, vector<768x512xf32>
    %cst = arith.constant dense<0.000000e+00> : vector<256x512xf32>
    %2 = tpu.matmul %0, %1, %cst {dimension_numbers = #tpu.dot_dimension_numbers<[1], [0], [0], [1], [0, 0, 1, 1], [], []>} : vector<256x768xf32>, vector<768x512xf32>, vector<256x512xf32> -> vector<256x512xf32>
    %c0_3 = arith.constant 0 : index
    %c0_4 = arith.constant 0 : index
    %3 = vector.load %arg3[%c0_3, %c0_4] : memref<1x512xf32, #tpu.memory_space<vmem>>, vector<1x512xf32>
    %4 = vector.broadcast %3 : vector<1x512xf32> to vector<256x512xf32>
    %5 = arith.addf %2, %4 : vector<256x512xf32>
    %cst_5 = arith.constant 5.000000e-01 : f32
    %6 = vector.broadcast %cst_5 : f32 to vector<256x512xf32>
    %7 = arith.mulf %6, %5 : vector<256x512xf32>
    %cst_6 = arith.constant 0.707106769 : f32
    %8 = vector.broadcast %cst_6 : f32 to vector<256x512xf32>
    %9 = arith.mulf %5, %8 : vector<256x512xf32>
    %10 = math.erf %9 : vector<256x512xf32>
    %cst_7 = arith.constant 1.000000e+00 : f32
    %11 = vector.broadcast %cst_7 : f32 to vector<256x512xf32>
    %12 = arith.addf %11, %10 : vector<256x512xf32>
    %13 = arith.mulf %7, %12 : vector<256x512xf32>
    %c0_8 = arith.constant 0 : index
    %c0_9 = arith.constant 0 : index
    %14 = vector.load %arg4[%c0_8, %c0_9] : memref<512x512xf32, #tpu.memory_space<vmem>>, vector<512x512xf32>
    %cst_10 = arith.constant dense<0.000000e+00> : vector<256x512xf32>
    %15 = tpu.matmul %13, %14, %cst_10 {dimension_numbers = #tpu.dot_dimension_numbers<[1], [0], [0], [1], [0, 0, 1, 1], [], []>} : vector<256x512xf32>, vector<512x512xf32>, vector<256x512xf32> -> vector<256x512xf32>
    %c0_11 = arith.constant 0 : index
    %c0_12 = arith.constant 0 : index
    %16 = vector.load %arg5[%c0_11, %c0_12] : memref<1x512xf32, #tpu.memory_space<vmem>>, vector<1x512xf32>
    %17 = vector.broadcast %16 : vector<1x512xf32> to vector<256x512xf32>
    %18 = arith.addf %15, %17 : vector<256x512xf32>
    %cst_13 = arith.constant 5.000000e-01 : f32
    %19 = vector.broadcast %cst_13 : f32 to vector<256x512xf32>
    %20 = arith.mulf %19, %18 : vector<256x512xf32>
    %cst_14 = arith.constant 0.707106769 : f32
    %21 = vector.broadcast %cst_14 : f32 to vector<256x512xf32>
    %22 = arith.mulf %18, %21 : vector<256x512xf32>
    %23 = math.erf %22 : vector<256x512xf32>
    %cst_15 = arith.constant 1.000000e+00 : f32
    %24 = vector.broadcast %cst_15 : f32 to vector<256x512xf32>
    %25 = arith.addf %24, %23 : vector<256x512xf32>
    %26 = arith.mulf %20, %25 : vector<256x512xf32>
    %c0_16 = arith.constant 0 : index
    %c0_17 = arith.constant 0 : index
    %27 = vector.load %arg6[%c0_16, %c0_17] : memref<512x512xf32, #tpu.memory_space<vmem>>, vector<512x512xf32>
    %cst_18 = arith.constant dense<0.000000e+00> : vector<256x512xf32>
    %28 = tpu.matmul %26, %27, %cst_18 {dimension_numbers = #tpu.dot_dimension_numbers<[1], [0], [0], [1], [0, 0, 1, 1], [], []>} : vector<256x512xf32>, vector<512x512xf32>, vector<256x512xf32> -> vector<256x512xf32>
    %c0_19 = arith.constant 0 : index
    %c0_20 = arith.constant 0 : index
    %29 = vector.load %arg7[%c0_19, %c0_20] : memref<1x512xf32, #tpu.memory_space<vmem>>, vector<1x512xf32>
    %30 = vector.broadcast %29 : vector<1x512xf32> to vector<256x512xf32>
    %31 = arith.addf %28, %30 : vector<256x512xf32>
    %cst_21 = arith.constant 5.000000e-01 : f32
    %32 = vector.broadcast %cst_21 : f32 to vector<256x512xf32>
    %33 = arith.mulf %32, %31 : vector<256x512xf32>
    %cst_22 = arith.constant 0.707106769 : f32
    %34 = vector.broadcast %cst_22 : f32 to vector<256x512xf32>
    %35 = arith.mulf %31, %34 : vector<256x512xf32>
    %36 = math.erf %35 : vector<256x512xf32>
    %cst_23 = arith.constant 1.000000e+00 : f32
    %37 = vector.broadcast %cst_23 : f32 to vector<256x512xf32>
    %38 = arith.addf %37, %36 : vector<256x512xf32>
    %39 = arith.mulf %33, %38 : vector<256x512xf32>
    %c0_24 = arith.constant 0 : index
    %c0_25 = arith.constant 0 : index
    %40 = vector.load %arg8[%c0_24, %c0_25] : memref<512x256xf32, #tpu.memory_space<vmem>>, vector<512x256xf32>
    %cst_26 = arith.constant dense<0.000000e+00> : vector<256x256xf32>
    %41 = tpu.matmul %39, %40, %cst_26 {dimension_numbers = #tpu.dot_dimension_numbers<[1], [0], [0], [1], [0, 0, 1, 1], [], []>} : vector<256x512xf32>, vector<512x256xf32>, vector<256x256xf32> -> vector<256x256xf32>
    %c0_27 = arith.constant 0 : index
    %c0_28 = arith.constant 0 : index
    %42 = vector.load %arg9[%c0_27, %c0_28] : memref<1x256xf32, #tpu.memory_space<vmem>>, vector<1x256xf32>
    %43 = vector.broadcast %42 : vector<1x256xf32> to vector<256x256xf32>
    %44 = arith.addf %41, %43 : vector<256x256xf32>
    %c0_29 = arith.constant 0 : index
    %c0_30 = arith.constant 0 : index
    %45 = vector.load %arg10[%c0_29, %c0_30] : memref<256x256xf32, #tpu.memory_space<vmem>>, vector<256x256xf32>
    tpu.vector_store %arg10[%c0_29, %c0_30], %44 {strides = array<i32>} : memref<256x256xf32, #tpu.memory_space<vmem>>, vector<256x256xf32>,
    return
  }
  func.func @transform_0(%arg0: i32) -> (i32, i32) {
    %c0_i32 = arith.constant 0 : i32
    %c0_i32_0 = arith.constant 0 : i32
    return %arg0, %c0_i32 : i32, i32
  }
  func.func @transform_1(%arg0: i32) -> (i32, i32) {
    %c0_i32 = arith.constant 0 : i32
    %c0_i32_0 = arith.constant 0 : i32
    %c0_i32_1 = arith.constant 0 : i32
    return %c0_i32, %c0_i32_0 : i32, i32
  }
  func.func @transform_2(%arg0: i32) -> (i32, i32) {
    %c0_i32 = arith.constant 0 : i32
    %c0_i32_0 = arith.constant 0 : i32
    %c0_i32_1 = arith.constant 0 : i32
    return %c0_i32, %c0_i32_0 : i32, i32
  }
  func.func @transform_3(%arg0: i32) -> (i32, i32) {
    %c0_i32 = arith.constant 0 : i32
    %c0_i32_0 = arith.constant 0 : i32
    %c0_i32_1 = arith.constant 0 : i32
    return %c0_i32, %c0_i32_0 : i32, i32
  }
  func.func @transform_4(%arg0: i32) -> (i32, i32) {
    %c0_i32 = arith.constant 0 : i32
    %c0_i32_0 = arith.constant 0 : i32
    %c0_i32_1 = arith.constant 0 : i32
    return %c0_i32, %c0_i32_0 : i32, i32
  }
  func.func @transform_5(%arg0: i32) -> (i32, i32) {
    %c0_i32 = arith.constant 0 : i32
    %c0_i32_0 = arith.constant 0 : i32
    %c0_i32_1 = arith.constant 0 : i32
    return %c0_i32, %c0_i32_0 : i32, i32
  }
  func.func @transform_6(%arg0: i32) -> (i32, i32) {
    %c0_i32 = arith.constant 0 : i32
    %c0_i32_0 = arith.constant 0 : i32
    %c0_i32_1 = arith.constant 0 : i32
    return %c0_i32, %c0_i32_0 : i32, i32
  }
  func.func @transform_7(%arg0: i32) -> (i32, i32) {
    %c0_i32 = arith.constant 0 : i32
    %c0_i32_0 = arith.constant 0 : i32
    %c0_i32_1 = arith.constant 0 : i32
    return %c0_i32, %c0_i32_0 : i32, i32
  }
  func.func @transform_8(%arg0: i32) -> (i32, i32) {
    %c0_i32 = arith.constant 0 : i32
    %c0_i32_0 = arith.constant 0 : i32
    %c0_i32_1 = arith.constant 0 : i32
    return %c0_i32, %c0_i32_0 : i32, i32
  }
  func.func @transform_9(%arg0: i32) -> (i32, i32) {
    %c0_i32 = arith.constant 0 : i32
    %c0_i32_0 = arith.constant 0 : i32
    return %arg0, %c0_i32 : i32, i32
  }
}

</mosaic_0001>

<bundles_post_ra>
// kernel: _mlp256_call.1
= control target key start
LH: loop header
LB: loop body
LE: loop exit
PB: predicated region body
PF: predicated region fallthrough
CT: control target
= control target key end

     0   :  { %s16226_s0 = inlined_call_operand.hbm [shape: f32[300,768], index: 0, kind: input, shape index: {}]   ;;  %s16227_s1 = inlined_call_operand.hbm [shape: f32[768,512], index: 1, kind: input, shape index: {}]   ;;  %s16228_s2 = inlined_call_operand.hbm [shape: f32[1,512], index: 2, kind: input, shape index: {}]   ;;  %s16229_s3 = inlined_call_operand.hbm [shape: f32[512,512], index: 3, kind: input, shape index: {}]   ;;  %s16230_s4 = inlined_call_operand.hbm [shape: f32[1,512], index: 4, kind: input, shape index: {}]   ;;  %s16231_s5 = inlined_call_operand.hbm [shape: f32[512,512], index: 5, kind: input, shape index: {}]   ;;  %s16232_s6 = inlined_call_operand.hbm [shape: f32[1,512], index: 6, kind: input, shape index: {}]   ;;  %s16233_s7 = inlined_call_operand.hbm [shape: f32[512,256], index: 7, kind: input, shape index: {}]   ;;  %s16234_s8 = inlined_call_operand.hbm [shape: f32[1,256], index: 8, kind: input, shape index: {}]   ;;  %s16235_s9 = inlined_call_operand.hbm [shape: f32[300,256], index: 9, kind: output, shape index: {}]  }
   0x1   :  { %16282 = sst [smem:[#allocation80_spill]] %s16227_s1 }
   0x2   :  { %16283 = sst [smem:[#allocation81_spill]] %s16229_s3 }
   0x3   :  { %16284 = sst [smem:[#allocation82_spill]] %s16235_s9 }
   0x4   :  { %14 = vsyncpa [#allocation3], 0 }
   0x5   :  { %16 = vsyncpa [#allocation3 + $0x1], 0 }
   0x6   :  { %17 = vsyncpa [#allocation6], 0 }
   0x7   :  { %18 = vsyncpa [#allocation9], 0 }
   0x8   :  { %19 = vsyncpa [#allocation12], 0 }
   0x9   :  { %20 = vsyncpa [#allocation15], 0 }
   0xa   :  { %21 = vsyncpa [#allocation4], 0 }
   0xb   :  { %23 = vsyncpa [#allocation4 + $0x1], 0  ;;  %s11574_s30 = smov 0   ;;  %s11576_s10 = smov 0  }
   0xc   :  { %s11578_s11 = smov 0   ;;  %s11580_s12 = smov 0  }
   0xd LB: > { %16285 = sst [smem:[#allocation24_spill]] %s11492_s30  ;;  %s11595_s13 = sadd.s32 4294967295, %s11504_s12   ;;  %s11504_s12 = sphi %s11580_s12, %s16609_s12   ;;  %s11500_s11 = sphi %s11578_s11, %s16613_s11   ;;  %s11496_s10 = sphi %s11576_s10, %s16612_s10   ;;  %s11492_s30 = sphi %s11574_s30, %s16611_s30  }
   0xe   : > { %16286 = sst [smem:[#allocation25_spill]] %s11595_s13  ;;  %s8040_s14 = sadd.s32 4294967294, %s11504_s12  }
   0xf   : > { %s11599_s15 = sadd.s32 1, %s11504_s12   ;;  %s36_s16 = sadd.s32 1, %s11500_s11 }
  0x10   : > { %16287 = sst [smem:[#allocation26_spill]] %s11599_s15  ;;  %s33_s17 = ssub.s32 %s11504_s12, %s11599_s15 }
  0x11   : > { %p43_p0 = scmp.ne.s32.totalorder %s11500_s11, %s11496_s10  ;;  %p34_p1 = scmp.eq.s32.totalorder %s33_s17, 0 }
  0x12   : > { %p44_p2 = scmp.eq.s32.totalorder %s11504_s12, 0  ;;  %p49_p3 = scmp.ne.s32.totalorder %s11496_s10, %s11492_s30 }
  0x13   : > { %p16238_p4 = scmp.eq.s32.totalorder %s11595_s13, 0  ;;  %p241_p7 = scmp.eq.s32.totalorder %s11595_s13, 1 }
  0x14   : > { %s11611_s18 = scalar_select %p34_p1, %s11500_s11, %s36_s16  }
  0x15   : > { %p11613_p5 = por %p44_p2, %p43_p0  ;;  %p11619_p6 = por %p16238_p4, %p49_p3 }
  0x16   : > { %16288 = sst [smem:[#allocation27_spill]] %s11611_s18  ;;  %p247_p8 = scmp.eq.s32.totalorder %s8040_s14, 1 }
  0x17   : > { %s16289_s19 = scalar_select %p11613_p5, 1, 0 }
  0x18   : > { %s16290_s20 = scalar_select %p11619_p6, 1, 0 }
  0x19   : > { %p8041_p9 = scmp.ge.s32.totalorder %s11504_s12, 1  ;;  %p254_p10 = scmp.lt.s32.totalorder %s11504_s12, 3 }
  0x1a   : > { %p11626_p11 = por %p241_p7, %p43_p0  ;;  %p11630_p12 = por %p247_p8, %p49_p3 }
  0x1b   : > { %p11634_p13 = pnand %p8041_p9, %p254_p10  ;;  %s11506_s24 = smov [#allocation5]  }
  0x1c   : > { %s16291_s21 = scalar_select %p11626_p11, 1, 0 }
  0x1d   : > { %s16293_s22 = scalar_select %p11630_p12, 1, 0 }
  0x1e   : > { %16292 = sst [smem:[#allocation28_spill]] %s16291_s21  ;;  %p10167_p1 = pneg %p11634_p13 }
  0x1f   : > { %16294 = sst [smem:[#allocation29_spill]] %s16293_s22  ;;  %s266_s25 = sshll.u32 %s11506_s24, 4  ;;  %s267_s25 = int_to_ptr.vmem [resolvable:$true] %s266_s25 }
  0x20   : > { %s16295_s23 = scalar_select %p11634_p13, 1, 0 }
  0x21   : > { %p11642_p2 = pnand %p10167_p1, %p16238_p4  ;;  %s11507_s27 = smov [#allocation8]  }
  0x22   : > { %s290_s28 = sshll.u32 %s11507_s27, 4  ;;  %s16297_s1 = sld [smem:[#allocation80_spill]]  ;;  %s11646_s28 = int_to_ptr.vmem [resolvable:$true] %s290_s28 }
  0x23   : > { %p11656_p3 = pneg %p11642_p2 }
  0x28   : > { %s11170_s16 = scalar_lea.hbm %s16297_s1, 49152 }
  0x29   : > { %p11171_p0 = scmp.ne.s32.totalorder %s16297_s1, %s11170_s16  ;;  %p11177_p9 = scmp.lt.u32.totalorder %s11170_s16, %s16297_s1 }
  0x2b   : > { %p11173_p7 = pnand %p11656_p3, %p11171_p0 }
  0x2d   : > { %p11174_p8 = pneg %p11173_p7 }
  0x2f   : > { %p11179_p10 = pnand %p11177_p9, %p11174_p8 }
  0x31   : > { %11182 = shalt.err (!%p11179_p10)
}
  0x32   : > { %s11183_s29 = scalar_lea.vmem %s267_s25, 49152  ;;  %p11191_p11 = scmp.lt.s32.totalorder %s267_s25, %s267_s25 }
  0x33   : > { %p11184_p1 = scmp.ne.s32.totalorder %s267_s25, %s11183_s29  ;;  %p11192_p6 = scmp.lt.s32.totalorder %s11183_s29, %s11183_s29 }
  0x35   : > { %p11186_p4 = pnand %p11184_p1, %p11656_p3  ;;  %p11193_p13 = por %p11192_p6, %p11191_p11 }
  0x37   : > { %p11187_p12 = pneg %p11186_p4 }
  0x39   : > { %p11194_p5 = pnand %p11193_p13, %p11187_p12 }
  0x3b   : > { %11197 = shalt.err (!%p11194_p5)
}
  0x3c   : > { %s11508_s18 = smov 512   ;;  %s11509_s14 = smov 32  }
  0x3d   : > { %10170 = dma.hbm_to_vmem [thread:$0]  (!%p11642_p2), %s16297_s1, 49152, %s267_s25, [#allocation6], %s11508_s18, %s11508_s18, %s11509_s14  }
  0x3e   : > { %s16299_s3 = sld [smem:[#allocation81_spill]] }
  0x44   : > { %s11198_s22 = scalar_lea.hbm %s16299_s3, 32768 }
  0x45   : > { %p11199_p4 = scmp.ne.s32.totalorder %s16299_s3, %s11198_s22  ;;  %p11205_p11 = scmp.lt.u32.totalorder %s11198_s22, %s16299_s3 }
  0x47   : > { %p11201_p5 = pnand %p11199_p4, %p11656_p3 }
  0x49   : > { %p11202_p6 = pneg %p11201_p5 }
  0x4b   : > { %p11207_p12 = pnand %p11205_p11, %p11202_p6 }
  0x4d   : > { %11210 = shalt.err (!%p11207_p12)
}
  0x4e   : > { %s11211_s25 = scalar_lea.vmem %s11646_s28, 32768  ;;  %p11219_p8 = scmp.lt.s32.totalorder %s11646_s28, %s11646_s28 }
  0x4f   : > { %p11212_p13 = scmp.ne.s32.totalorder %s11646_s28, %s11211_s25  ;;  %p11220_p9 = scmp.lt.s32.totalorder %s11211_s25, %s11211_s25 }
  0x51   : > { %p11214_p0 = pnand %p11212_p13, %p11656_p3  ;;  %p11221_p10 = por %p11220_p9, %p11219_p8 }
  0x53   : > { %p11215_p7 = pneg %p11214_p0 }
  0x55   : > { %p11222_p1 = pnand %p11221_p10, %p11215_p7 }
  0x57   : > { %11225 = shalt.err (!%p11222_p1)
}
  0x58   : > { %10176 = dma.hbm_to_vmem [thread:$0]  (!%p11642_p2), %s16299_s3, 32768, %s11646_s28, [#allocation9], %s11508_s18, %s11508_s18, %s11509_s14  }
  0x59   : > { %s11510_s21 = smov [#allocation11]   ;;  %s11511_s15 = smov [#allocation14]  }
  0x5a   : > { %s314_s22 = sshll.u32 %s11510_s21, 4  ;;  %s338_s16 = sshll.u32 %s11511_s15, 4  ;;  %s315_s22 = int_to_ptr.vmem [resolvable:$true] %s314_s22  ;;  %s339_s16 = int_to_ptr.vmem [resolvable:$true] %s338_s16 }
  0x5b   : > { %s11226_s29 = scalar_lea.hbm %s16231_s5, 32768 }
  0x5c   : > { %p11227_p4 = scmp.ne.s32.totalorder %s16231_s5, %s11226_s29  ;;  %p11233_p11 = scmp.lt.u32.totalorder %s11226_s29, %s16231_s5 }
  0x5e   : > { %p11229_p5 = pnand %p11227_p4, %p11656_p3 }
  0x60   : > { %p11230_p6 = pneg %p11229_p5 }
  0x62   : > { %p11235_p12 = pnand %p11233_p11, %p11230_p6 }
  0x64   : > { %11238 = shalt.err (!%p11235_p12)
}
  0x65   : > { %s11239_s28 = scalar_lea.vmem %s315_s22, 32768  ;;  %p11247_p8 = scmp.lt.s32.totalorder %s315_s22, %s315_s22 }
  0x66   : > { %p11240_p13 = scmp.ne.s32.totalorder %s315_s22, %s11239_s28  ;;  %p11248_p9 = scmp.lt.s32.totalorder %s11239_s28, %s11239_s28 }
  0x68   : > { %p11242_p0 = pnand %p11240_p13, %p11656_p3  ;;  %p11249_p10 = por %p11248_p9, %p11247_p8 }
  0x6a   : > { %p11243_p7 = pneg %p11242_p0 }
  0x6c   : > { %p11250_p1 = pnand %p11249_p10, %p11243_p7 }
  0x6e   : > { %11253 = shalt.err (!%p11250_p1)
}
  0x6f   : > { %10182 = dma.hbm_to_vmem [thread:$0]  (!%p11642_p2), %s16231_s5, 32768, %s315_s22, [#allocation12], %s11508_s18, %s11508_s18, %s11509_s14  }
  0x70   : > { %s11254_s15 = scalar_lea.hbm %s16233_s7, 16384 }
  0x71   : > { %p11255_p4 = scmp.ne.s32.totalorder %s16233_s7, %s11254_s15  ;;  %p11261_p11 = scmp.lt.u32.totalorder %s11254_s15, %s16233_s7 }
  0x73   : > { %p11257_p5 = pnand %p11255_p4, %p11656_p3 }
  0x75   : > { %p11258_p6 = pneg %p11257_p5 }
  0x77   : > { %p11263_p12 = pnand %p11261_p11, %p11258_p6 }
  0x79   : > { %11266 = shalt.err (!%p11263_p12)
}
  0x7a   : > { %s11267_s9 = scalar_lea.vmem %s339_s16, 16384  ;;  %p11275_p8 = scmp.lt.s32.totalorder %s339_s16, %s339_s16 }
  0x7b   : > { %p11268_p13 = scmp.ne.s32.totalorder %s339_s16, %s11267_s9  ;;  %p11276_p9 = scmp.lt.s32.totalorder %s11267_s9, %s11267_s9 }
  0x7d   : > { %p11270_p0 = pnand %p11268_p13, %p11656_p3  ;;  %p11277_p10 = por %p11276_p9, %p11275_p8 }
  0x7f   : > { %p11271_p7 = pneg %p11270_p0 }
  0x81   : > { %p11278_p1 = pnand %p11277_p10, %p11271_p7 }
  0x83   : > { %11281 = shalt.err (!%p11278_p1)
}
  0x84   : > { %s11512_s18 = smov 256   ;;  %s11513_s14 = smov 16  }
  0x85   : > { %10188 = dma.hbm_to_vmem [thread:$0]  (!%p11642_p2), %s16233_s7, 16384, %s339_s16, [#allocation15], %s11512_s18, %s11512_s18, %s11513_s14  }
  0x86   : > { %s11514_s1 = smov [#allocation7]   ;;  %s11515_s30 = smov [#allocation10]  }
  0x87   : > { %s280_s13 = sshll.u32 %s11514_s1, 4  ;;  %s304_s21 = sshll.u32 %s11515_s30, 4  ;;  %s281_s13 = int_to_ptr.vmem [resolvable:$true] %s280_s13  ;;  %s305_s21 = int_to_ptr.vmem [resolvable:$true] %s304_s21 }
  0x88   : > { %s11282_s27 = scalar_lea.hbm %s16228_s2, 64 }
  0x89   : > { %p11283_p4 = scmp.ne.s32.totalorder %s16228_s2, %s11282_s27  ;;  %p11289_p11 = scmp.lt.u32.totalorder %s11282_s27, %s16228_s2 }
  0x8b   : > { %p11285_p5 = pnand %p11283_p4, %p11656_p3 }
  0x8d   : > { %p11286_p6 = pneg %p11285_p5 }
  0x8f   : > { %p11291_p12 = pnand %p11289_p11, %p11286_p6 }
  0x91   : > { %11294 = shalt.err (!%p11291_p12)
}
  0x92   : > { %s11295_s16 = scalar_lea.vmem %s281_s13, 64  ;;  %p11303_p8 = scmp.lt.s32.totalorder %s281_s13, %s281_s13 }
  0x93   : > { %p11296_p13 = scmp.ne.s32.totalorder %s281_s13, %s11295_s16  ;;  %p11304_p9 = scmp.lt.s32.totalorder %s11295_s16, %s11295_s16 }
  0x95   : > { %p11298_p0 = pnand %p11296_p13, %p11656_p3  ;;  %p11305_p10 = por %p11304_p9, %p11303_p8 }
  0x97   : > { %p11299_p7 = pneg %p11298_p0 }
  0x99   : > { %p11306_p1 = pnand %p11305_p10, %p11299_p7 }
  0x9b   : > { %11309 = shalt.err (!%p11306_p1)
}
  0x9c   : > { %10173 = dma.hbm_to_vmem [thread:$0]  (!%p11642_p2), %s16228_s2, 64, %s281_s13, [#allocation6]  }
  0x9d   : > { %s11310_s28 = scalar_lea.hbm %s16230_s4, 64 }
  0x9e   : > { %p11311_p4 = scmp.ne.s32.totalorder %s16230_s4, %s11310_s28  ;;  %p11317_p11 = scmp.lt.u32.totalorder %s11310_s28, %s16230_s4 }
  0xa0   : > { %p11313_p5 = pnand %p11311_p4, %p11656_p3 }
  0xa2   : > { %p11314_p6 = pneg %p11313_p5 }
  0xa4   : > { %p11319_p12 = pnand %p11317_p11, %p11314_p6 }
  0xa6   : > { %11322 = shalt.err (!%p11319_p12)
}
  0xa7   : > { %s11323_s27 = scalar_lea.vmem %s305_s21, 64  ;;  %p11331_p8 = scmp.lt.s32.totalorder %s305_s21, %s305_s21 }
  0xa8   : > { %p11324_p13 = scmp.ne.s32.totalorder %s305_s21, %s11323_s27  ;;  %p11332_p9 = scmp.lt.s32.totalorder %s11323_s27, %s11323_s27 }
  0xaa   : > { %p11326_p0 = pnand %p11324_p13, %p11656_p3  ;;  %p11333_p10 = por %p11332_p9, %p11331_p8 }
  0xac   : > { %p11327_p7 = pneg %p11326_p0 }
  0xae   : > { %p11334_p1 = pnand %p11333_p10, %p11327_p7 }
  0xb0   : > { %11337 = shalt.err (!%p11334_p1)
}
  0xb1   : > { %10179 = dma.hbm_to_vmem [thread:$0]  (!%p11642_p2), %s16230_s4, 64, %s305_s21, [#allocation9]  }
  0xb2   : > { %s11516_s25 = smov [#allocation13]   ;;  %s11517_s16 = smov [#allocation16]  }
  0xb3   : > { %s328_s9 = sshll.u32 %s11516_s25, 4  ;;  %s352_s18 = sshll.u32 %s11517_s16, 4  ;;  %s329_s9 = int_to_ptr.vmem [resolvable:$true] %s328_s9  ;;  %s353_s18 = int_to_ptr.vmem [resolvable:$true] %s352_s18 }
  0xb4   : > { %s11338_s22 = scalar_lea.hbm %s16232_s6, 64 }
  0xb5   : > { %p11339_p4 = scmp.ne.s32.totalorder %s16232_s6, %s11338_s22  ;;  %p11345_p11 = scmp.lt.u32.totalorder %s11338_s22, %s16232_s6 }
  0xb7   : > { %p11341_p5 = pnand %p11339_p4, %p11656_p3 }
  0xb9   : > { %p11342_p6 = pneg %p11341_p5 }
  0xbb   : > { %p11347_p12 = pnand %p11345_p11, %p11342_p6 }
  0xbd   : > { %11350 = shalt.err (!%p11347_p12)
}
  0xbe   : > { %s11351_s21 = scalar_lea.vmem %s329_s9, 64  ;;  %p11359_p8 = scmp.lt.s32.totalorder %s329_s9, %s329_s9 }
  0xbf   : > { %p11352_p13 = scmp.ne.s32.totalorder %s329_s9, %s11351_s21  ;;  %p11360_p9 = scmp.lt.s32.totalorder %s11351_s21, %s11351_s21 }
  0xc1   : > { %p11354_p0 = pnand %p11352_p13, %p11656_p3  ;;  %p11361_p10 = por %p11360_p9, %p11359_p8 }
  0xc3   : > { %p11355_p7 = pneg %p11354_p0 }
  0xc5   : > { %p11362_p1 = pnand %p11361_p10, %p11355_p7 }
  0xc7   : > { %11365 = shalt.err (!%p11362_p1)
}
  0xc8   : > { %10185 = dma.hbm_to_vmem [thread:$0]  (!%p11642_p2), %s16232_s6, 64, %s329_s9, [#allocation12]  }
  0xc9   : > { %s11366_s25 = scalar_lea.hbm %s16234_s8, 32 }
  0xca   : > { %p11367_p4 = scmp.ne.s32.totalorder %s16234_s8, %s11366_s25  ;;  %p11373_p11 = scmp.lt.u32.totalorder %s11366_s25, %s16234_s8 }
  0xcc   : > { %p11369_p5 = pnand %p11367_p4, %p11656_p3 }
  0xce   : > { %p11370_p6 = pneg %p11369_p5 }
  0xd0   : > { %p11375_p12 = pnand %p11373_p11, %p11370_p6 }
  0xd2   : > { %11378 = shalt.err (!%p11375_p12)
}
  0xd3   : > { %s11379_s28 = scalar_lea.vmem %s353_s18, 32  ;;  %p11387_p8 = scmp.lt.s32.totalorder %s353_s18, %s353_s18 }
  0xd4   : > { %p11380_p13 = scmp.ne.s32.totalorder %s353_s18, %s11379_s28  ;;  %p11388_p9 = scmp.lt.s32.totalorder %s11379_s28, %s11379_s28 }
  0xd6   : > { %p11382_p0 = pnand %p11380_p13, %p11656_p3  ;;  %p11389_p10 = por %p11388_p9, %p11387_p8 }
  0xd8   : > { %p11383_p7 = pneg %p11382_p0 }
  0xda   : > { %p11390_p1 = pnand %p11389_p10, %p11383_p7 }
  0xdc   : > { %11393 = shalt.err (!%p11390_p1)
}
  0xdd   : > { %10191 = dma.hbm_to_vmem [thread:$0]  (!%p11642_p2), %s16234_s8, 32, %s353_s18, [#allocation15]  }
  0xde   : > { %p8050_p4 = scmp.ge.s32.totalorder %s11504_s12, 2 }
  0xdf   : > { %p16300_p5 = scmp.ne.s32.totalorder (!%p8050_p4), %s16289_s19, 0 }
  0xe0   : > { %359 = sbr.rel (%p8050_p4) target bundleno = 267 (0x10b), region = 48 }
  0xe7   : > { %362 = sbr.rel (!%p16300_p5) target bundleno = 267 (0x10b), region = 52  ;;  %s363_s24 = sand.u32 (%p16300_p5), 1, %s11500_s11  }
  0xe8   : > { %s8051_s30 = sshll.u32 (%p16300_p5), %s11504_s12, 5  ;;  %s10130_s15 = smul.u32 (%p16300_p5), 1536, %s363_s24 }
  0xe9   : > { %s369_s21 = ssub.s32 (%p16300_p5), 38, %s8051_s30  ;;  %s11822_s17 = scalar_lea.sflag (%p16300_p5), [#allocation3], %s363_s24 }
  0xea   : > { %p370_p3 = scmp.lt.s32.totalorder (%p16300_p5), %s369_s21, 32  ;;  %s367_s27 = scalar_lea.vmem (%p16300_p5), [#allocation2], %s10130_s15 }
  0xee   : > { %s16615_s21 = smov (!%p370_p3, %s369_s21), 32 }
  0xef   : > { %s11819_s26 = smul.u32 768, %s16615_s21 }
  0xf1   : > { %s375_s18 = ssub.s32 24576, %s11819_s26 }
  0xf2   : > { %376 = vsyncadd %s11822_s17, %s375_s18  ;;  %p8054_p2 = scmp.ne.s32.totalorder %s11819_s26, 0  ;;  %s10131_s19 = smul.u32 24576, %s11504_s12 }
  0xf3   : > { %s382_s13 = sshll.u32 %s367_s27, 4  ;;  %s11398_s28 = scalar_lea.hbm %s16226_s0, 29184  ;;  %s11832_s13 = int_to_ptr.vmem [resolvable:$true] %s382_s13 }
  0xf4   : > { %s11830_s16 = scalar_lea.hbm %s16226_s0, %s10131_s19 }
  0xf5   : > { %s11394_s14 = scalar_lea.hbm %s11830_s16, %s11819_s26  ;;  %p11399_p13 = scmp.lt.u32.totalorder %s11830_s16, %s16226_s0 }
  0xf6   : > { %p11395_p6 = scmp.ne.s32.totalorder %s11830_s16, %s11394_s14  ;;  %p11400_p0 = scmp.lt.u32.totalorder %s11398_s28, %s11394_s14 }
  0xf7   : > { %p11402_p8 = scmp.lt.u32.totalorder %s11394_s14, %s11830_s16 }
  0xf8   : > { %p11396_p11 = pnand %p11395_p6, %p8054_p2  ;;  %p11401_p7 = por %p11400_p0, %p11399_p13 }
  0xfa   : > { %p11397_p12 = pneg %p11396_p11  ;;  %p11403_p9 = por %p11402_p8, %p11401_p7 }
  0xfc   : > { %p11404_p10 = pnand %p11403_p9, %p11397_p12 }
  0xfe   : > { %11407 = shalt.err (!%p11404_p10)
}
  0xff   : > { %s11408_s24 = scalar_lea.vmem %s11832_s13, %s11819_s26  ;;  %s11518_s30 = smov [#allocation2]  }
 0x100   : > { %p11409_p1 = scmp.ne.s32.totalorder %s11832_s13, %s11408_s24  ;;  %s11412_s15 = sshll.u32 %s11518_s30, 4  ;;  %s11413_s15 = int_to_ptr.vmem [resolvable:$false] %s11412_s15 }
 0x101   : > { %s11414_s21 = scalar_lea.vmem %s11413_s15, 49152  ;;  %p11415_p6 = scmp.lt.s32.totalorder %s11832_s13, %s11413_s15 }
 0x102   : > { %p11410_p5 = pnand %p11409_p1, %p8054_p2  ;;  %p11416_p11 = scmp.lt.s32.totalorder %s11414_s21, %s11408_s24 }
 0x104   : > { %p11411_p3 = pneg %p11410_p5  ;;  %p11417_p13 = por %p11416_p11, %p11415_p6 }
 0x106   : > { %p11418_p0 = pnand %p11417_p13, %p11411_p3 }
 0x108   : > { %11421 = shalt.err (!%p11418_p0)
}
 0x109   : > { %s11519_s18 = smov 768   ;;  %s11520_s27 = smov 48  }
 0x10a   : > { %388 = dma.hbm_to_vmem [thread:$0]  (%p8054_p2), %s11830_s16, %s11819_s26, %s11832_s13, %s11822_s17, %s11519_s18, %s11519_s18, %s11520_s27  }
 0x10b PF: > { %p16301_p12 = scmp.ne.s32.totalorder %s16295_s23, 0 }
 0x10d   : > { %394 = sbr.rel (%p16301_p12) target bundleno = 2145 (0x861), region = 56 }
 0x114   : > { %s11862_s19 = sand.u32 1, %s11496_s10   ;;  %p16302_p7 = scmp.ne.s32.totalorder %s16290_s20, 0 }
 0x115   : > { %s10132_s29 = smul.u32 1536, %s11862_s19  ;;  %s397_s25 = scalar_lea.sflag [#allocation3], %s11862_s19 }
 0x117   : > { %s11866_s14 = scalar_lea.vmem [#allocation2], %s10132_s29 }
 0x118   : > { %11467 = dma.done.wait (%p16302_p7), %s397_s25, 24576  }
 0x119   : > { %11469 = vsyncadd (%p16302_p7), %s397_s25, 4294942720  ;;  %s16303_s26 = sld [smem:[#allocation25_spill]] }
 0x11f   : > { %p16304_p2 = scmp.eq.s32.totalorder %s16303_s26, 0 }
 0x121   : > { %11471 = dma.done.wait (%p16304_p2), [#allocation6], 49216   ;;  %p16305_p8 = pmov %p16304_p2 }
 0x122   : > { %p16306_p9 = pmov %p16304_p2 }
 0x123   : > { %11473 = vsyncadd (%p16305_p8), [#allocation6], 4294918080 }
 0x124   : > { %11475 = dma.done.wait (%p16306_p9), [#allocation9], 32832   ;;  %p16307_p10 = pmov %p16304_p2 }
 0x125   : > { %p16308_p1 = pmov %p16304_p2 }
 0x126   : > { %11477 = vsyncadd (%p16307_p10), [#allocation9], 4294934464 }
 0x127   : > { %11479 = dma.done.wait (%p16308_p1), [#allocation12], 32832   ;;  %p16309_p5 = pmov %p16308_p1 }
 0x128   : > { %p16310_p3 = pmov %p16308_p1 }
 0x129   : > { %11481 = vsyncadd (%p16309_p5), [#allocation12], 4294934464 }
 0x12a   : > { %11483 = dma.done.wait (%p16310_p3), [#allocation15], 16416   ;;  %p16311_p6 = pmov %p16308_p1 }
 0x12b   : > { %v672_v0 = vld [vmem:[#allocation5 + $0x8] sm:$0xff]  ;;  %v671_v5 = vld [vmem:[#allocation5] sm:$0xff]  ;;  %s8067_s20 = sshll.u32 %s11862_s19, 9  ;;  %s7870_s17 = scalar_lea.sflag [#allocation4], %s11862_s19 }
 0x12c   : > { %11485 = vsyncadd (%p16311_p6), [#allocation15], 4294950880  ;;  %v676_v1 = vld [vmem:[#allocation5 + $0x28] sm:$0xff]  ;;  %v675_v6 = vld [vmem:[#allocation5 + $0x20] sm:$0xff]  ;;  %s16035_s23 = scalar_lea.vmem [#allocation17], %s8067_s20  ;;  %s16602_s13 = sld [smem:[#allocation28_spill]] }
 0x12d   : > { %v800_v2 = vld [vmem:[#allocation5 + $0x408] sm:$0xff]  ;;  %v8082_v3 = vpack.c.bf16 %v676_v1, %v672_v0  ;;  %v8084_v8 = vpack.c.bf16 %v675_v6, %v671_v5  ;;  %v799_v9 = vld [vmem:[#allocation5 + $0x400] sm:$0xff] }
 0x12e   : > { %v804_v4 = vld [vmem:[#allocation5 + $0x428] sm:$0xff]  ;;  %v803_v10 = vld [vmem:[#allocation5 + $0x420] sm:$0xff] }
 0x12f   : > { %v8146_v7 = vpack.c.bf16 %v804_v4, %v800_v2  ;;  %v680_v11 = vld [vmem:[#allocation5 + $0x48] sm:$0xff]  ;;  %8083 = vmatprep.subr.bf16.mxu1 %v8082_v3  ;;  %v8148_v12 = vpack.c.bf16 %v803_v10, %v799_v9  ;;  %v679_v18 = vld [vmem:[#allocation5 + $0x40] sm:$0xff] }
 0x130   : > { %v684_v13 = vld [vmem:[#allocation5 + $0x68] sm:$0xff]  ;;  %8085 = vmatpush1.bf16.msra.mxu1 %v8084_v8  ;;  %v683_v19 = vld [vmem:[#allocation5 + $0x60] sm:$0xff] }
 0x131   : > { %v808_v14 = vld [vmem:[#allocation5 + $0x448] sm:$0xff]  ;;  %8147 = vmatprep.subr.bf16.mxu0 %v8146_v7  ;;  %v8086_v16 = vpack.c.bf16 %v684_v13, %v680_v11  ;;  %v807_v20 = vld [vmem:[#allocation5 + $0x440] sm:$0xff]  ;;  %v8088_v21 = vpack.c.bf16 %v683_v19, %v679_v18 }
 0x132   : > { %v812_v15 = vld [vmem:[#allocation5 + $0x468] sm:$0xff]  ;;  %8149 = vmatpush1.bf16.msra.mxu0 %v8148_v12  ;;  %v811_v22 = vld [vmem:[#allocation5 + $0x460] sm:$0xff]  ;;  %p16603_p11 = scmp.ne.s32.totalorder %s16602_s13, 0 }
 0x133   : > { %v8150_v17 = vpack.c.bf16 %v812_v15, %v808_v14  ;;  %v688_v23 = vld [vmem:[#allocation5 + $0x88] sm:$0xff]  ;;  %8087 = vmatprep.subr.bf16.mxu1 %v8086_v16  ;;  %v8152_v25 = vpack.c.bf16 %v811_v22, %v807_v20  ;;  %v687_v29 = vld [vmem:[#allocation5 + $0x80] sm:$0xff]  ;;  %s16604_s16 = sld [smem:[#allocation25_spill]] (%p16603_p11) }
 0x134   : > { %v692_v24 = vld [vmem:[#allocation5 + $0xa8] sm:$0xff]  ;;  %v691_v31 = vld [vmem:[#allocation5 + $0xa0] sm:$0xff]  ;;  %8089 = vmatpush1.bf16.msra.mxu1 %v8088_v21 }
 0x135   : > { %8151 = vmatprep.subr.bf16.mxu0 %v8150_v17  ;;  %v8090_v26 = vpack.c.bf16 %v692_v24, %v688_v23  ;;  %v816_v27 = vld [vmem:[#allocation5 + $0x488] sm:$0xff]  ;;  %v815_v32 = vld [vmem:[#allocation5 + $0x480] sm:$0xff]  ;;  %v8092_v34 = vpack.c.bf16 %v691_v31, %v687_v29 }
 0x136   : > { %v820_v28 = vld [vmem:[#allocation5 + $0x4a8] sm:$0xff]  ;;  %v819_v33 = vld [vmem:[#allocation5 + $0x4a0] sm:$0xff]  ;;  %8153 = vmatpush1.bf16.msra.mxu0 %v8152_v25 }
 0x137   : > { %v8154_v30 = vpack.c.bf16 %v820_v28, %v816_v27  ;;  %v696_v35 = vld [vmem:[#allocation5 + $0xc8] sm:$0xff]  ;;  %8091 = vmatprep.subr.bf16.mxu1 %v8090_v26  ;;  %v8156_v38 = vpack.c.bf16 %v819_v33, %v815_v32  ;;  %v695_v41 = vld [vmem:[#allocation5 + $0xc0] sm:$0xff] }
 0x138   : > { %v700_v36 = vld [vmem:[#allocation5 + $0xe8] sm:$0xff]  ;;  %v699_v42 = vld [vmem:[#allocation5 + $0xe0] sm:$0xff]  ;;  %8093 = vmatpush1.bf16.msra.mxu1 %v8092_v34 }
 0x139   : > { %v824_v37 = vld [vmem:[#allocation5 + $0x4c8] sm:$0xff]  ;;  %v8094_v39 = vpack.c.bf16 %v700_v36, %v696_v35  ;;  %8155 = vmatprep.subr.bf16.mxu0 %v8154_v30  ;;  %v823_v44 = vld [vmem:[#allocation5 + $0x4c0] sm:$0xff]  ;;  %v8096_v50 = vpack.c.bf16 %v699_v42, %v695_v41  ;;  %s8069_s3 = sshll.u32 (%p16603_p11), %s16604_s16, 5 }
 0x13a   : > { %v828_v40 = vld [vmem:[#allocation5 + $0x4e8] sm:$0xff]  ;;  %v827_v45 = vld [vmem:[#allocation5 + $0x4e0] sm:$0xff]  ;;  %8157 = vmatpush1.bf16.msra.mxu0 %v8156_v38  ;;  %s7878_s22 = ssub.s32 (%p16603_p11), 38, %s8069_s3 }
 0x13b   : > { %v8158_v43 = vpack.c.bf16 %v828_v40, %v824_v37  ;;  %v704_v46 = vld [vmem:[#allocation5 + $0x108] sm:$0xff]  ;;  %8095 = vmatprep.subr.bf16.mxu1 %v8094_v39  ;;  %v8160_v51 = vpack.c.bf16 %v827_v45, %v823_v44  ;;  %v703_v53 = vld [vmem:[#allocation5 + $0x100] sm:$0xff]  ;;  %p7879_p13 = scmp.lt.s32.totalorder (%p16603_p11), %s7878_s22, 32 }
 0x13c   : > { %v708_v47 = vld [vmem:[#allocation5 + $0x128] sm:$0xff]  ;;  %v707_v54 = vld [vmem:[#allocation5 + $0x120] sm:$0xff]  ;;  %8097 = vmatpush1.bf16.msra.mxu1 %v8096_v50 }
 0x13d   : > { %v832_v48 = vld [vmem:[#allocation5 + $0x508] sm:$0xff]  ;;  %v8098_v52 = vpack.c.bf16 %v708_v47, %v704_v46  ;;  %v831_v55 = vld [vmem:[#allocation5 + $0x500] sm:$0xff]  ;;  %8159 = vmatprep.subr.bf16.mxu0 %v8158_v43  ;;  %v8100_v62 = vpack.c.bf16 %v707_v54, %v703_v53 }
 0x13e   : > { %v836_v49 = vld [vmem:[#allocation5 + $0x528] sm:$0xff]  ;;  %v835_v57 = vld [vmem:[#allocation5 + $0x520] sm:$0xff]  ;;  %8161 = vmatpush1.bf16.msra.mxu0 %v8160_v51 }
 0x13f   : > { %v8162_v56 = vpack.c.bf16 %v836_v49, %v832_v48  ;;  %v712_v58 = vld [vmem:[#allocation5 + $0x148] sm:$0xff]  ;;  %8099 = vmatprep.subr.bf16.mxu1 %v8098_v52  ;;  %v8164_v63 = vpack.c.bf16 %v835_v57, %v831_v55  ;;  %v711_v1 = vld [vmem:[#allocation5 + $0x140] sm:$0xff] }
 0x140   : > { %v716_v59 = vld [vmem:[#allocation5 + $0x168] sm:$0xff]  ;;  %v715_v2 = vld [vmem:[#allocation5 + $0x160] sm:$0xff]  ;;  %8101 = vmatpush1.bf16.msra.mxu1 %v8100_v62 }
 0x141   : > { %v840_v60 = vld [vmem:[#allocation5 + $0x548] sm:$0xff]  ;;  %v8102_v0 = vpack.c.bf16 %v716_v59, %v712_v58  ;;  %v839_v3 = vld [vmem:[#allocation5 + $0x540] sm:$0xff]  ;;  %8163 = vmatprep.subr.bf16.mxu0 %v8162_v56  ;;  %v8104_v10 = vpack.c.bf16 %v715_v2, %v711_v1 }
 0x142   : > { %v844_v61 = vld [vmem:[#allocation5 + $0x568] sm:$0xff]  ;;  %v843_v5 = vld [vmem:[#allocation5 + $0x560] sm:$0xff]  ;;  %8165 = vmatpush1.bf16.msra.mxu0 %v8164_v63 }
 0x143   : > { %v8166_v4 = vpack.c.bf16 %v844_v61, %v840_v60  ;;  %v720_v6 = vld [vmem:[#allocation5 + $0x188] sm:$0xff]  ;;  %8103 = vmatprep.subr.bf16.mxu1 %v8102_v0  ;;  %v8168_v11 = vpack.c.bf16 %v843_v5, %v839_v3  ;;  %v719_v13 = vld [vmem:[#allocation5 + $0x180] sm:$0xff] }
 0x144   : > { %v724_v7 = vld [vmem:[#allocation5 + $0x1a8] sm:$0xff]  ;;  %v723_v14 = vld [vmem:[#allocation5 + $0x1a0] sm:$0xff]  ;;  %8105 = vmatpush1.bf16.msra.mxu1 %v8104_v10 }
 0x145   : > { %v848_v8 = vld [vmem:[#allocation5 + $0x588] sm:$0xff]  ;;  %v8106_v12 = vpack.c.bf16 %v724_v7, %v720_v6  ;;  %v847_v15 = vld [vmem:[#allocation5 + $0x580] sm:$0xff]  ;;  %8167 = vmatprep.subr.bf16.mxu0 %v8166_v4  ;;  %v8108_v22 = vpack.c.bf16 %v723_v14, %v719_v13 }
 0x146   : > { %v852_v9 = vld [vmem:[#allocation5 + $0x5a8] sm:$0xff]  ;;  %v851_v17 = vld [vmem:[#allocation5 + $0x5a0] sm:$0xff]  ;;  %8169 = vmatpush1.bf16.msra.mxu0 %v8168_v11 }
 0x147   : > { %v8170_v16 = vpack.c.bf16 %v852_v9, %v848_v8  ;;  %v728_v18 = vld [vmem:[#allocation5 + $0x1c8] sm:$0xff]  ;;  %8107 = vmatprep.subr.bf16.mxu1 %v8106_v12  ;;  %v8172_v23 = vpack.c.bf16 %v851_v17, %v847_v15  ;;  %v727_v25 = vld [vmem:[#allocation5 + $0x1c0] sm:$0xff] }
 0x148   : > { %v732_v19 = vld [vmem:[#allocation5 + $0x1e8] sm:$0xff]  ;;  %v731_v26 = vld [vmem:[#allocation5 + $0x1e0] sm:$0xff]  ;;  %8109 = vmatpush1.bf16.msra.mxu1 %v8108_v22 }
 0x149   : > { %v856_v20 = vld [vmem:[#allocation5 + $0x5c8] sm:$0xff]  ;;  %v8110_v24 = vpack.c.bf16 %v732_v19, %v728_v18  ;;  %v855_v27 = vld [vmem:[#allocation5 + $0x5c0] sm:$0xff]  ;;  %8171 = vmatprep.subr.bf16.mxu0 %v8170_v16  ;;  %v8112_v34 = vpack.c.bf16 %v731_v26, %v727_v25  ;;  %v482_v19 = vld [vmem:[%s11866_s14 + $0x18] sm:$0xff] }
 0x14a   : > { %v860_v21 = vld [vmem:[#allocation5 + $0x5e8] sm:$0xff]  ;;  %v859_v29 = vld [vmem:[#allocation5 + $0x5e0] sm:$0xff]  ;;  %8173 = vmatpush1.bf16.msra.mxu0 %v8172_v23  ;;  %1398 = vmatprep.mubr.f32.mxu0 %v482_v19  ;;  %v485_v19 = vld [vmem:[%s11866_s14 + $0x30] sm:$0xff] }
 0x14b   : > { %v8174_v28 = vpack.c.bf16 %v860_v21, %v856_v20  ;;  %v736_v30 = vld [vmem:[#allocation5 + $0x208] sm:$0xff]  ;;  %8111 = vmatprep.subr.bf16.mxu1 %v8110_v24  ;;  %v8176_v35 = vpack.c.bf16 %v859_v29, %v855_v27  ;;  %v735_v37 = vld [vmem:[#allocation5 + $0x200] sm:$0xff] }
 0x14c   : > { %v740_v31 = vld [vmem:[#allocation5 + $0x228] sm:$0xff]  ;;  %v739_v38 = vld [vmem:[#allocation5 + $0x220] sm:$0xff]  ;;  %8113 = vmatpush1.bf16.msra.mxu1 %v8112_v34 }
 0x14d   : > { %v864_v32 = vld [vmem:[#allocation5 + $0x608] sm:$0xff]  ;;  %v8114_v36 = vpack.c.bf16 %v740_v31, %v736_v30  ;;  %v863_v39 = vld [vmem:[#allocation5 + $0x600] sm:$0xff]  ;;  %8175 = vmatprep.subr.bf16.mxu0 %v8174_v28  ;;  %v8116_v46 = vpack.c.bf16 %v739_v38, %v735_v37 }
 0x14e   : > { %v868_v33 = vld [vmem:[#allocation5 + $0x628] sm:$0xff]  ;;  %v867_v41 = vld [vmem:[#allocation5 + $0x620] sm:$0xff]  ;;  %8177 = vmatpush1.bf16.msra.mxu0 %v8176_v35 }
 0x14f   : > { %v8178_v40 = vpack.c.bf16 %v868_v33, %v864_v32  ;;  %v744_v42 = vld [vmem:[#allocation5 + $0x248] sm:$0xff]  ;;  %8115 = vmatprep.subr.bf16.mxu1 %v8114_v36  ;;  %v8180_v47 = vpack.c.bf16 %v867_v41, %v863_v39  ;;  %v743_v49 = vld [vmem:[#allocation5 + $0x240] sm:$0xff] }
 0x150   : > { %v748_v43 = vld [vmem:[#allocation5 + $0x268] sm:$0xff]  ;;  %v747_v50 = vld [vmem:[#allocation5 + $0x260] sm:$0xff]  ;;  %8117 = vmatpush1.bf16.msra.mxu1 %v8116_v46 }
 0x151   : > { %v872_v44 = vld [vmem:[#allocation5 + $0x648] sm:$0xff]  ;;  %v8118_v48 = vpack.c.bf16 %v748_v43, %v744_v42  ;;  %v871_v51 = vld [vmem:[#allocation5 + $0x640] sm:$0xff]  ;;  %8179 = vmatprep.subr.bf16.mxu0 %v8178_v40  ;;  %v8120_v58 = vpack.c.bf16 %v747_v50, %v743_v49 }
 0x152   : > { %v876_v45 = vld [vmem:[#allocation5 + $0x668] sm:$0xff]  ;;  %v875_v53 = vld [vmem:[#allocation5 + $0x660] sm:$0xff]  ;;  %8181 = vmatpush1.bf16.msra.mxu0 %v8180_v47 }
 0x153   : > { %v8182_v52 = vpack.c.bf16 %v876_v45, %v872_v44  ;;  %v752_v54 = vld [vmem:[#allocation5 + $0x288] sm:$0xff]  ;;  %8119 = vmatprep.subr.bf16.mxu1 %v8118_v48  ;;  %v8184_v59 = vpack.c.bf16 %v875_v53, %v871_v51  ;;  %v751_v61 = vld [vmem:[#allocation5 + $0x280] sm:$0xff] }
 0x154   : > { %v756_v55 = vld [vmem:[#allocation5 + $0x2a8] sm:$0xff]  ;;  %v755_v62 = vld [vmem:[#allocation5 + $0x2a0] sm:$0xff]  ;;  %8121 = vmatpush1.bf16.msra.mxu1 %v8120_v58 }
 0x155   : > { %v880_v56 = vld [vmem:[#allocation5 + $0x688] sm:$0xff]  ;;  %v8122_v60 = vpack.c.bf16 %v756_v55, %v752_v54  ;;  %v879_v63 = vld [vmem:[#allocation5 + $0x680] sm:$0xff]  ;;  %8183 = vmatprep.subr.bf16.mxu0 %v8182_v52  ;;  %v8124_v6 = vpack.c.bf16 %v755_v62, %v751_v61 }
 0x156   : > { %v884_v57 = vld [vmem:[#allocation5 + $0x6a8] sm:$0xff]  ;;  %v883_v1 = vld [vmem:[#allocation5 + $0x6a0] sm:$0xff]  ;;  %8185 = vmatpush1.bf16.msra.mxu0 %v8184_v59 }
 0x157   : > { %v8186_v0 = vpack.c.bf16 %v884_v57, %v880_v56  ;;  %v760_v2 = vld [vmem:[#allocation5 + $0x2c8] sm:$0xff]  ;;  %v759_v7 = vld [vmem:[#allocation5 + $0x2c0] sm:$0xff]  ;;  %8123 = vmatprep.subr.bf16.mxu1 %v8122_v60  ;;  %v8188_v8 = vpack.c.bf16 %v883_v1, %v879_v63  ;;  %v678_v1 = vld [vmem:[#allocation5 + $0x38] sm:$0xff] }
 0x158   : > { %v764_v3 = vld [vmem:[#allocation5 + $0x2e8] sm:$0xff]  ;;  %v763_v10 = vld [vmem:[#allocation5 + $0x2e0] sm:$0xff]  ;;  %8125 = vmatpush1.bf16.msra.mxu1 %v8124_v6  ;;  %v677_v6 = vld [vmem:[#allocation5 + $0x30] sm:$0xff] }
 0x159   : > { %v888_v4 = vld [vmem:[#allocation5 + $0x6c8] sm:$0xff]  ;;  %v8126_v9 = vpack.c.bf16 %v764_v3, %v760_v2  ;;  %v887_v11 = vld [vmem:[#allocation5 + $0x6c0] sm:$0xff]  ;;  %8187 = vmatprep.subr.bf16.mxu0 %v8186_v0  ;;  %v8128_v20 = vpack.c.bf16 %v763_v10, %v759_v7  ;;  %v674_v0 = vld [vmem:[#allocation5 + $0x18] sm:$0xff] }
 0x15a   : > { %v892_v5 = vld [vmem:[#allocation5 + $0x6e8] sm:$0xff]  ;;  %v891_v12 = vld [vmem:[#allocation5 + $0x6e0] sm:$0xff]  ;;  %8189 = vmatpush1.bf16.msra.mxu0 %v8188_v8  ;;  %v682_v7 = vld [vmem:[#allocation5 + $0x58] sm:$0xff] }
 0x15b   : > { %v8190_v13 = vpack.c.bf16 %v892_v5, %v888_v4  ;;  %v768_v14 = vld [vmem:[#allocation5 + $0x308] sm:$0xff]  ;;  %8127 = vmatprep.subr.bf16.mxu1 %v8126_v9  ;;  %v8192_v21 = vpack.c.bf16 %v891_v12, %v887_v11  ;;  %v767_v23 = vld [vmem:[#allocation5 + $0x300] sm:$0xff]  ;;  %v8274_v4 = vpack.c.bf16 %v678_v1, %v674_v0  ;;  %v673_v5 = vld [vmem:[#allocation5 + $0x10] sm:$0xff] }
 0x15c   : > { %v772_v15 = vld [vmem:[#allocation5 + $0x328] sm:$0xff]  ;;  %v771_v24 = vld [vmem:[#allocation5 + $0x320] sm:$0xff]  ;;  %8129 = vmatpush1.bf16.msra.mxu1 %v8128_v20  ;;  %v686_v8 = vld [vmem:[#allocation5 + $0x78] sm:$0xff]  ;;  %v8276_v10 = vpack.c.bf16 %v677_v6, %v673_v5 }
 0x15d   : > { %v480_v16 = vld [vmem:[%s11866_s14 + $0x8] sm:$0xff]  ;;  %v8130_v22 = vpack.c.bf16 %v772_v15, %v768_v14  ;;  %v895_v25 = vld [vmem:[#allocation5 + $0x700] sm:$0xff]  ;;  %8191 = vmatprep.subr.bf16.mxu0 %v8190_v13  ;;  %v8132_v32 = vpack.c.bf16 %v771_v24, %v767_v23  ;;  %v481_v11 = vld [vmem:[%s11866_s14 + $0x10] sm:$0xff]  ;;  %v8278_v14 = vpack.c.bf16 %v686_v8, %v682_v7 }
 0x15e   : > { %v896_v17 = vld [vmem:[#allocation5 + $0x708] sm:$0xff]  ;;  %1141 = vmatprep.mubr.f32.mxu1 %v480_v16  ;;  %v899_v27 = vld [vmem:[#allocation5 + $0x720] sm:$0xff]  ;;  %8193 = vmatpush1.bf16.msra.mxu0 %v8192_v21  ;;  %v486_v12 = vld [vmem:[%s11866_s14 + $0x38] sm:$0xff] }
 0x15f   : > { %v900_v18 = vld [vmem:[#allocation5 + $0x728] sm:$0xff]  ;;  %8131 = vmatprep.subr.bf16.mxu1 %v8130_v22  ;;  %v8196_v33 = vpack.c.bf16 %v899_v27, %v895_v25  ;;  %v775_v35 = vld [vmem:[#allocation5 + $0x340] sm:$0xff]  ;;  %v681_v15 = vld [vmem:[#allocation5 + $0x50] sm:$0xff] }
 0x160   : > { %v8194_v26 = vpack.c.bf16 %v900_v18, %v896_v17  ;;  %v776_v28 = vld [vmem:[#allocation5 + $0x348] sm:$0xff]  ;;  %v779_v36 = vld [vmem:[#allocation5 + $0x360] sm:$0xff]  ;;  %8133 = vmatpush1.bf16.msra.mxu1 %v8132_v32  ;;  %v685_v16 = vld [vmem:[#allocation5 + $0x70] sm:$0xff] }
 0x161   : > { %v780_v29 = vld [vmem:[#allocation5 + $0x368] sm:$0xff]  ;;  %v903_v37 = vld [vmem:[#allocation5 + $0x740] sm:$0xff]  ;;  %v8136_v44 = vpack.c.bf16 %v779_v36, %v775_v35  ;;  %v690_v17 = vld [vmem:[#allocation5 + $0x98] sm:$0xff]  ;;  %v8280_v22 = vpack.c.bf16 %v685_v16, %v681_v15 }
 0x162   : > { %v904_v30 = vld [vmem:[#allocation5 + $0x748] sm:$0xff]  ;;  %v8134_v34 = vpack.c.bf16 %v780_v29, %v776_v28  ;;  %8195 = vmatprep.subr.bf16.mxu0 %v8194_v26  ;;  %v907_v39 = vld [vmem:[#allocation5 + $0x760] sm:$0xff]  ;;  %v694_v18 = vld [vmem:[#allocation5 + $0xb8] sm:$0xff] }
 0x163   : > { %v908_v31 = vld [vmem:[#allocation5 + $0x768] sm:$0xff]  ;;  %8197 = vmatpush1.bf16.msra.mxu0 %v8196_v33  ;;  %v8200_v45 = vpack.c.bf16 %v907_v39, %v903_v37  ;;  %v783_v47 = vld [vmem:[#allocation5 + $0x380] sm:$0xff]  ;;  %v494_v23 = vld [vmem:[%s11866_s14 + $0x78] sm:$0xff]  ;;  %v8282_v24 = vpack.c.bf16 %v694_v18, %v690_v17 }
 0x164   : > { %v8198_v38 = vpack.c.bf16 %v908_v31, %v904_v30  ;;  %v784_v40 = vld [vmem:[#allocation5 + $0x388] sm:$0xff]  ;;  %8135 = vmatprep.subr.bf16.mxu1 %v8134_v34  ;;  %v787_v48 = vld [vmem:[#allocation5 + $0x3a0] sm:$0xff]  ;;  %v689_v25 = vld [vmem:[#allocation5 + $0x90] sm:$0xff] }
 0x165   : > { %v788_v41 = vld [vmem:[#allocation5 + $0x3a8] sm:$0xff]  ;;  %v911_v49 = vld [vmem:[#allocation5 + $0x780] sm:$0xff]  ;;  %8137 = vmatpush1.bf16.msra.mxu1 %v8136_v44  ;;  %v8140_v56 = vpack.c.bf16 %v787_v48, %v783_v47  ;;  %v693_v26 = vld [vmem:[#allocation5 + $0xb0] sm:$0xff] }
 0x166   : > { %v912_v42 = vld [vmem:[#allocation5 + $0x788] sm:$0xff]  ;;  %v8138_v46 = vpack.c.bf16 %v788_v41, %v784_v40  ;;  %8199 = vmatprep.subr.bf16.mxu0 %v8198_v38  ;;  %v915_v51 = vld [vmem:[#allocation5 + $0x7a0] sm:$0xff]  ;;  %v698_v27 = vld [vmem:[#allocation5 + $0xd8] sm:$0xff]  ;;  %v8284_v33 = vpack.c.bf16 %v693_v26, %v689_v25 }
 0x167   : > { %v916_v43 = vld [vmem:[#allocation5 + $0x7a8] sm:$0xff]  ;;  %8201 = vmatpush1.bf16.msra.mxu0 %v8200_v45  ;;  %v8204_v57 = vpack.c.bf16 %v915_v51, %v911_v49  ;;  %v791_v59 = vld [vmem:[#allocation5 + $0x3c0] sm:$0xff]  ;;  %v702_v28 = vld [vmem:[#allocation5 + $0xf8] sm:$0xff] }
 0x168   : > { %v8202_v50 = vpack.c.bf16 %v916_v43, %v912_v42  ;;  %v792_v52 = vld [vmem:[#allocation5 + $0x3c8] sm:$0xff]  ;;  %8139 = vmatprep.subr.bf16.mxu1 %v8138_v46  ;;  %v795_v60 = vld [vmem:[#allocation5 + $0x3e0] sm:$0xff]  ;;  %v493_v30 = vld [vmem:[%s11866_s14 + $0x70] sm:$0xff]  ;;  %v8286_v35 = vpack.c.bf16 %v702_v28, %v698_v27 }
 0x169   : > { %v796_v53 = vld [vmem:[#allocation5 + $0x3e8] sm:$0xff]  ;;  %v919_v61 = vld [vmem:[#allocation5 + $0x7c0] sm:$0xff]  ;;  %8141 = vmatpush1.bf16.msra.mxu1 %v8140_v56  ;;  %v8144_v2 = vpack.c.bf16 %v795_v60, %v791_v59  ;;  %v498_v31 = vld [vmem:[%s11866_s14 + $0x98] sm:$0xff] }
 0x16a   : > { %v920_v54 = vld [vmem:[#allocation5 + $0x7c8] sm:$0xff]  ;;  %v8142_v58 = vpack.c.bf16 %v796_v53, %v792_v52  ;;  %8203 = vmatprep.subr.bf16.mxu0 %v8202_v50  ;;  %v923_v63 = vld [vmem:[#allocation5 + $0x7e0] sm:$0xff]  ;;  %v497_v34 = vld [vmem:[%s11866_s14 + $0x90] sm:$0xff] }
 0x16b   : > { %v924_v55 = vld [vmem:[#allocation5 + $0x7e8] sm:$0xff]  ;;  %8205 = vmatpush1.bf16.msra.mxu0 %v8204_v57  ;;  %v8208_v3 = vpack.c.bf16 %v923_v63, %v919_v61  ;;  %v479_v9 = vld [vmem:[%s11866_s14] sm:$0xff]  ;;  %v697_v36 = vld [vmem:[#allocation5 + $0xd0] sm:$0xff] }
 0x16c   : > { %v8206_v62 = vpack.c.bf16 %v924_v55, %v920_v54  ;;  %8143 = vmatprep.subr.bf16.mxu1 %v8142_v58  ;;  %v488_v13 = vld [vmem:[%s11866_s14 + $0x48] sm:$0xff]  ;;  %v487_v20 = vld [vmem:[%s11866_s14 + $0x40] sm:$0xff]  ;;  %v701_v37 = vld [vmem:[#allocation5 + $0xf0] sm:$0xff] }
 0x16d   : > { %8145 = vmatpush1.bf16.msra.mxu1 %v8144_v2  ;;  %v492_v21 = vld [vmem:[%s11866_s14 + $0x68] sm:$0xff]  ;;  %v491_v29 = vld [vmem:[%s11866_s14 + $0x60] sm:$0xff]  ;;  %v706_v39 = vld [vmem:[#allocation5 + $0x118] sm:$0xff]  ;;  %v8288_v45 = vpack.c.bf16 %v701_v37, %v697_v36 }
 0x16e   : > { %8207 = vmatprep.subr.bf16.mxu0 %v8206_v62  ;;  %8275 = vmatprep.subr.bf16.mxu1 %v8274_v4  ;;  %v500_v32 = vld [vmem:[%s11866_s14 + $0xa8] sm:$0xff]  ;;  %v499_v38 = vld [vmem:[%s11866_s14 + $0xa0] sm:$0xff]  ;;  %v710_v40 = vld [vmem:[#allocation5 + $0x138] sm:$0xff] }
 0x16f   : > { %8209 = vmatpush1.bf16.msra.mxu0 %v8208_v3  ;;  %v504_v41 = vld [vmem:[%s11866_s14 + $0xc8] sm:$0xff]  ;;  %v506_v44 = vld [vmem:[%s11866_s14 + $0xd8] sm:$0xff]  ;;  %v927_v47 = vld [vmem:[#allocation5 + $0x800] sm:$0xff]  ;;  %v8290_v50 = vpack.c.bf16 %v710_v40, %v706_v39 }
 0x170   : > { %1142 = vmatmul.mubr.f32.vlgmr.msra.gmra.mrb[0].mxu1 %v479_v9  ;;  %v928_v42 = vld [vmem:[#allocation5 + $0x808] sm:$0xff]  ;;  %v931_v48 = vld [vmem:[#allocation5 + $0x820] sm:$0xff]  ;;  %v705_v51 = vld [vmem:[#allocation5 + $0x110] sm:$0xff] }
 0x171   : > { %8277 = vmatpush1.bf16.msra.mxu1 %v8276_v10  ;;  %1147 = vmatprep.mubr.f32.mxu1 %v486_v12  ;;  %v932_v43 = vld [vmem:[#allocation5 + $0x828] sm:$0xff]  ;;  %v503_v49 = vld [vmem:[%s11866_s14 + $0xc0] sm:$0xff]  ;;  %v709_v52 = vld [vmem:[#allocation5 + $0x130] sm:$0xff]  ;;  %v8212_v53 = vpack.c.bf16 %v931_v48, %v927_v47 }
 0x172   : > { %1399 = vmatmul.mubr.f32.vlgmr.msra.gmra.mrb[0].mxu0 %v481_v11  ;;  %8279 = vmatprep.subr.bf16.mxu1 %v8278_v14  ;;  %v8210_v46 = vpack.c.bf16 %v932_v43, %v928_v42  ;;  %v505_v54 = vld [vmem:[%s11866_s14 + $0xd0] sm:$0xff]  ;;  %v714_v55 = vld [vmem:[#allocation5 + $0x158] sm:$0xff]  ;;  %v936_v57 = vld [vmem:[#allocation5 + $0x848] sm:$0xff]  ;;  %v8292_v62 = vpack.c.bf16 %v709_v52, %v705_v51 }
 0x173   : > { %1404 = vmatprep.mubr.f32.mxu0 %v488_v13  ;;  %v718_v56 = vld [vmem:[#allocation5 + $0x178] sm:$0xff]  ;;  %v940_v58 = vld [vmem:[#allocation5 + $0x868] sm:$0xff]  ;;  %v935_v59 = vld [vmem:[#allocation5 + $0x840] sm:$0xff] }
 0x174   : > { %1148 = vmatmul.mubr.f32.gmra.mrb[2].mxu1 %v485_v19  ;;  %8211 = vmatprep.subr.bf16.mxu0 %v8210_v46  ;;  %v11909_v60 = vld [vmem:[%s11866_s14 + $0xf8] sm:$0xff]  ;;  %v512_v61 = vld [vmem:[%s11866_s14 + $0x108] sm:$0xff]  ;;  %v8214_v63 = vpack.c.bf16 %v940_v58, %v936_v57  ;;  %v939_v0 = vld [vmem:[#allocation5 + $0x860] sm:$0xff]  ;;  %v8294_v2 = vpack.c.bf16 %v718_v56, %v714_v55 }
 0x175   : > { %1153 = vmatprep.mubr.f32.mxu1 %v492_v21  ;;  %8281 = vmatpush1.bf16.msra.mxu1 %v8280_v22  ;;  %v11913_v1 = vld [vmem:[%s11866_s14 + $0xf0] sm:$0xff]  ;;  %v8216_v5 = vpack.c.bf16 %v939_v0, %v935_v59  ;;  %v944_v6 = vld [vmem:[#allocation5 + $0x888] sm:$0xff]  ;;  %v511_v7 = vld [vmem:[%s11866_s14 + $0x100] sm:$0xff] }
 0x176   : > { %1405 = vmatmul.mubr.f32.gmra.mrb[2].mxu0 %v487_v20  ;;  %8283 = vmatprep.subr.bf16.mxu1 %v8282_v24  ;;  %v713_v3 = vld [vmem:[#allocation5 + $0x150] sm:$0xff]  ;;  %v722_v8 = vld [vmem:[#allocation5 + $0x198] sm:$0xff]  ;;  %v948_v10 = vld [vmem:[#allocation5 + $0x8a8] sm:$0xff] }
 0x177   : > { %1410 = vmatprep.mubr.f32.mxu0 %v494_v23  ;;  %v717_v4 = vld [vmem:[#allocation5 + $0x170] sm:$0xff]  ;;  %8213 = vmatpush1.bf16.msra.mxu0 %v8212_v53  ;;  %v726_v9 = vld [vmem:[#allocation5 + $0x1b8] sm:$0xff]  ;;  %v11918_v11 = vld [vmem:[%s11866_s14 + $0x128] sm:$0xff]  ;;  %v8218_v12 = vpack.c.bf16 %v948_v10, %v944_v6 }
 0x178   : > { %1154 = vmatmul.mubr.f32.gmra.mrb[4].mxu1 %v491_v29  ;;  %8215 = vmatprep.subr.bf16.mxu0 %v8214_v63  ;;  %v943_v13 = vld [vmem:[#allocation5 + $0x880] sm:$0xff]  ;;  %v518_v15 = vld [vmem:[%s11866_s14 + $0x138] sm:$0xff]  ;;  %v8296_v16 = vpack.c.bf16 %v717_v4, %v713_v3  ;;  %v721_v17 = vld [vmem:[#allocation5 + $0x190] sm:$0xff]  ;;  %v8298_v19 = vpack.c.bf16 %v726_v9, %v722_v8 }
 0x179   : > { %1159 = vmatprep.mubr.f32.mxu1 %v498_v31  ;;  %8285 = vmatpush1.bf16.msra.mxu1 %v8284_v33  ;;  %v947_v14 = vld [vmem:[#allocation5 + $0x8a0] sm:$0xff]  ;;  %v725_v18 = vld [vmem:[#allocation5 + $0x1b0] sm:$0xff]  ;;  %v730_v20 = vld [vmem:[#allocation5 + $0x1d8] sm:$0xff] }
 0x17a   : > { %1411 = vmatmul.mubr.f32.gmra.mrb[4].mxu0 %v493_v30  ;;  %8287 = vmatprep.subr.bf16.mxu1 %v8286_v35  ;;  %v734_v21 = vld [vmem:[#allocation5 + $0x1f8] sm:$0xff]  ;;  %v8220_v22 = vpack.c.bf16 %v947_v14, %v943_v13  ;;  %v952_v23 = vld [vmem:[#allocation5 + $0x8c8] sm:$0xff]  ;;  %v951_v25 = vld [vmem:[#allocation5 + $0x8c0] sm:$0xff] }
 0x17b   : > { %1416 = vmatprep.mubr.f32.mxu0 %v500_v32  ;;  %8217 = vmatpush1.bf16.msra.mxu0 %v8216_v5  ;;  %v956_v24 = vld [vmem:[#allocation5 + $0x8e8] sm:$0xff]  ;;  %v955_v26 = vld [vmem:[#allocation5 + $0x8e0] sm:$0xff]  ;;  %v517_v28 = vld [vmem:[%s11866_s14 + $0x130] sm:$0xff]  ;;  %v8300_v32 = vpack.c.bf16 %v725_v18, %v721_v17  ;;  %v8302_v35 = vpack.c.bf16 %v734_v21, %v730_v20 }
 0x17c   : > { %1160 = vmatmul.mubr.f32.gmra.mrb[6].mxu1 %v497_v34  ;;  %8219 = vmatprep.subr.bf16.mxu0 %v8218_v12  ;;  %v11924_v27 = vld [vmem:[%s11866_s14 + $0x120] sm:$0xff]  ;;  %v11928_v29 = vld [vmem:[%s11866_s14 + $0x158] sm:$0xff]  ;;  %v8222_v30 = vpack.c.bf16 %v956_v24, %v952_v23  ;;  %v524_v31 = vld [vmem:[%s11866_s14 + $0x168] sm:$0xff]  ;;  %v8224_v39 = vpack.c.bf16 %v955_v26, %v951_v25 }
 0x17d   : > { %1165 = vmatprep.mubr.f32.mxu1 %v504_v41  ;;  %8289 = vmatpush1.bf16.msra.mxu1 %v8288_v45  ;;  %v960_v33 = vld [vmem:[#allocation5 + $0x908] sm:$0xff]  ;;  %v729_v36 = vld [vmem:[#allocation5 + $0x1d0] sm:$0xff]  ;;  %v742_v40 = vld [vmem:[#allocation5 + $0x238] sm:$0xff] }
 0x17e   : > { %1417 = vmatmul.mubr.f32.gmra.mrb[6].mxu0 %v499_v38  ;;  %8291 = vmatprep.subr.bf16.mxu1 %v8290_v50  ;;  %v964_v34 = vld [vmem:[#allocation5 + $0x928] sm:$0xff]  ;;  %v733_v37 = vld [vmem:[#allocation5 + $0x1f0] sm:$0xff]  ;;  %v738_v38 = vld [vmem:[#allocation5 + $0x218] sm:$0xff] }
 0x17f   : > { %1422 = vmatprep.mubr.f32.mxu0 %v506_v44  ;;  %8221 = vmatpush1.bf16.msra.mxu0 %v8220_v22  ;;  %v8226_v41 = vpack.c.bf16 %v964_v34, %v960_v33  ;;  %v959_v42 = vld [vmem:[#allocation5 + $0x900] sm:$0xff]  ;;  %v11934_v44 = vld [vmem:[%s11866_s14 + $0x150] sm:$0xff]  ;;  %v11938_v46 = vld [vmem:[%s11866_s14 + $0x188] sm:$0xff]  ;;  %v8304_v48 = vpack.c.bf16 %v733_v37, %v729_v36  ;;  %v8306_v51 = vpack.c.bf16 %v742_v40, %v738_v38 }
 0x180   : > { %1166 = vmatmul.mubr.f32.gmra.mrb[8].mxu1 %v503_v49  ;;  %8223 = vmatprep.subr.bf16.mxu0 %v8222_v30  ;;  %v963_v43 = vld [vmem:[#allocation5 + $0x920] sm:$0xff]  ;;  %v530_v47 = vld [vmem:[%s11866_s14 + $0x198] sm:$0xff]  ;;  %v968_v49 = vld [vmem:[#allocation5 + $0x948] sm:$0xff] }
 0x181   : > { %1171 = vmatprep.mubr.f32.mxu1 %v11909_v60  ;;  %8293 = vmatpush1.bf16.msra.mxu1 %v8292_v62  ;;  %v523_v45 = vld [vmem:[%s11866_s14 + $0x160] sm:$0xff]  ;;  %v972_v50 = vld [vmem:[#allocation5 + $0x968] sm:$0xff]  ;;  %v737_v52 = vld [vmem:[#allocation5 + $0x210] sm:$0xff]  ;;  %v8228_v55 = vpack.c.bf16 %v963_v43, %v959_v42 }
 0x182   : > { %1423 = vmatmul.mubr.f32.gmra.mrb[8].mxu0 %v505_v54  ;;  %8295 = vmatprep.subr.bf16.mxu1 %v8294_v2  ;;  %v741_v53 = vld [vmem:[#allocation5 + $0x230] sm:$0xff]  ;;  %v746_v54 = vld [vmem:[#allocation5 + $0x258] sm:$0xff]  ;;  %v8230_v57 = vpack.c.bf16 %v972_v50, %v968_v49  ;;  %v967_v58 = vld [vmem:[#allocation5 + $0x940] sm:$0xff] }
 0x183   : > { %1428 = vmatprep.mubr.f32.mxu0 %v512_v61  ;;  %8225 = vmatpush1.bf16.msra.mxu0 %v8224_v39  ;;  %v750_v56 = vld [vmem:[#allocation5 + $0x278] sm:$0xff]  ;;  %v971_v59 = vld [vmem:[#allocation5 + $0x960] sm:$0xff]  ;;  %v976_v62 = vld [vmem:[#allocation5 + $0x988] sm:$0xff]  ;;  %v8308_v4 = vpack.c.bf16 %v741_v53, %v737_v52 }
 0x184   : > { %1172 = vmatmul.mubr.f32.gmra.mrb[10].mxu1 %v11913_v1  ;;  %8227 = vmatprep.subr.bf16.mxu0 %v8226_v41  ;;  %v11944_v61 = vld [vmem:[%s11866_s14 + $0x180] sm:$0xff]  ;;  %v980_v63 = vld [vmem:[#allocation5 + $0x9a8] sm:$0xff]  ;;  %v529_v0 = vld [vmem:[%s11866_s14 + $0x190] sm:$0xff]  ;;  %v8310_v5 = vpack.c.bf16 %v750_v56, %v746_v54  ;;  %v8232_v9 = vpack.c.bf16 %v971_v59, %v967_v58 }
 0x185   : > { %1177 = vmatprep.mubr.f32.mxu1 %v11918_v11  ;;  %8297 = vmatpush1.bf16.msra.mxu1 %v8296_v16  ;;  %v11948_v2 = vld [vmem:[%s11866_s14 + $0x1b8] sm:$0xff]  ;;  %v536_v3 = vld [vmem:[%s11866_s14 + $0x1c8] sm:$0xff]  ;;  %v745_v6 = vld [vmem:[#allocation5 + $0x250] sm:$0xff]  ;;  %v8234_v12 = vpack.c.bf16 %v980_v63, %v976_v62 }
 0x186   : > { %1429 = vmatmul.mubr.f32.gmra.mrb[10].mxu0 %v511_v7  ;;  %8299 = vmatprep.subr.bf16.mxu1 %v8298_v19  ;;  %v749_v7 = vld [vmem:[#allocation5 + $0x270] sm:$0xff]  ;;  %v754_v8 = vld [vmem:[#allocation5 + $0x298] sm:$0xff]  ;;  %v975_v13 = vld [vmem:[#allocation5 + $0x980] sm:$0xff] }
 0x187   : > { %1434 = vmatprep.mubr.f32.mxu0 %v518_v15  ;;  %8229 = vmatpush1.bf16.msra.mxu0 %v8228_v55  ;;  %v758_v10 = vld [vmem:[#allocation5 + $0x2b8] sm:$0xff]  ;;  %v979_v14 = vld [vmem:[#allocation5 + $0x9a0] sm:$0xff]  ;;  %v11954_v15 = vld [vmem:[%s11866_s14 + $0x1b0] sm:$0xff]  ;;  %v8312_v21 = vpack.c.bf16 %v749_v7, %v745_v6 }
 0x188   : > { %1178 = vmatmul.mubr.f32.gmra.mrb[12].mxu1 %v11924_v27  ;;  %8231 = vmatprep.subr.bf16.mxu0 %v8230_v57  ;;  %v984_v16 = vld [vmem:[#allocation5 + $0x9c8] sm:$0xff]  ;;  %v535_v18 = vld [vmem:[%s11866_s14 + $0x1c0] sm:$0xff]  ;;  %v542_v20 = vld [vmem:[%s11866_s14 + $0x1f8] sm:$0xff]  ;;  %v8314_v22 = vpack.c.bf16 %v758_v10, %v754_v8  ;;  %v8236_v26 = vpack.c.bf16 %v979_v14, %v975_v13 }
 0x189   : > { %1183 = vmatprep.mubr.f32.mxu1 %v11928_v29  ;;  %8301 = vmatpush1.bf16.msra.mxu1 %v8300_v32  ;;  %v988_v17 = vld [vmem:[#allocation5 + $0x9e8] sm:$0xff]  ;;  %v753_v23 = vld [vmem:[#allocation5 + $0x290] sm:$0xff]  ;;  %v762_v25 = vld [vmem:[#allocation5 + $0x2d8] sm:$0xff] }
 0x18a   : > { %1435 = vmatmul.mubr.f32.gmra.mrb[12].mxu0 %v517_v28  ;;  %8303 = vmatprep.subr.bf16.mxu1 %v8302_v35  ;;  %v11958_v19 = vld [vmem:[%s11866_s14 + $0x1e8] sm:$0xff]  ;;  %v757_v24 = vld [vmem:[#allocation5 + $0x2b0] sm:$0xff]  ;;  %v766_v28 = vld [vmem:[#allocation5 + $0x2f8] sm:$0xff]  ;;  %v8238_v30 = vpack.c.bf16 %v988_v17, %v984_v16 }
 0x18b   : > { %1440 = vmatprep.mubr.f32.mxu0 %v524_v31  ;;  %8233 = vmatpush1.bf16.msra.mxu0 %v8232_v9  ;;  %v983_v31 = vld [vmem:[#allocation5 + $0x9c0] sm:$0xff]  ;;  %v992_v34 = vld [vmem:[#allocation5 + $0xa08] sm:$0xff]  ;;  %v541_v36 = vld [vmem:[%s11866_s14 + $0x1f0] sm:$0xff]  ;;  %v8316_v39 = vpack.c.bf16 %v757_v24, %v753_v23  ;;  %v8318_v40 = vpack.c.bf16 %v766_v28, %v762_v25 }
 0x18c   : > { %1184 = vmatmul.mubr.f32.gmra.mrb[14].mxu1 %v11934_v44  ;;  %8235 = vmatprep.subr.bf16.mxu0 %v8234_v12  ;;  %v987_v32 = vld [vmem:[#allocation5 + $0x9e0] sm:$0xff]  ;;  %v996_v35 = vld [vmem:[#allocation5 + $0xa28] sm:$0xff]  ;;  %v11968_v37 = vld [vmem:[%s11866_s14 + $0x218] sm:$0xff] }
 0x18d   : > { %1189 = vmatprep.mubr.f32.mxu1 %v11938_v46  ;;  %8305 = vmatpush1.bf16.msra.mxu1 %v8304_v48  ;;  %v11964_v33 = vld [vmem:[%s11866_s14 + $0x1e0] sm:$0xff]  ;;  %v548_v38 = vld [vmem:[%s11866_s14 + $0x228] sm:$0xff]  ;;  %v761_v41 = vld [vmem:[#allocation5 + $0x2d0] sm:$0xff]  ;;  %v8240_v43 = vpack.c.bf16 %v987_v32, %v983_v31 }
 0x18e   : > { %1441 = vmatmul.mubr.f32.gmra.mrb[14].mxu0 %v523_v45  ;;  %8307 = vmatprep.subr.bf16.mxu1 %v8306_v51  ;;  %v765_v42 = vld [vmem:[#allocation5 + $0x2f0] sm:$0xff]  ;;  %v770_v45 = vld [vmem:[#allocation5 + $0x318] sm:$0xff]  ;;  %v991_v49 = vld [vmem:[#allocation5 + $0xa00] sm:$0xff] }
 0x18f   : > { %1446 = vmatprep.mubr.f32.mxu0 %v530_v47  ;;  %8237 = vmatpush1.bf16.msra.mxu0 %v8236_v26  ;;  %v8242_v47 = vpack.c.bf16 %v996_v35, %v992_v34  ;;  %v774_v48 = vld [vmem:[#allocation5 + $0x338] sm:$0xff]  ;;  %v995_v50 = vld [vmem:[#allocation5 + $0xa20] sm:$0xff]  ;;  %v11974_v51 = vld [vmem:[%s11866_s14 + $0x210] sm:$0xff]  ;;  %v8320_v57 = vpack.c.bf16 %v765_v42, %v761_v41 }
 0x190   : > { %1190 = vmatmul.mubr.f32.gmra.mrb[16].mxu1 %v11944_v61  ;;  %8239 = vmatprep.subr.bf16.mxu0 %v8238_v30  ;;  %v1000_v52 = vld [vmem:[#allocation5 + $0xa48] sm:$0xff]  ;;  %v547_v54 = vld [vmem:[%s11866_s14 + $0x220] sm:$0xff]  ;;  %v554_v56 = vld [vmem:[%s11866_s14 + $0x258] sm:$0xff]  ;;  %v8322_v58 = vpack.c.bf16 %v774_v48, %v770_v45  ;;  %v8244_v59 = vpack.c.bf16 %v995_v50, %v991_v49 }
 0x191   : > { %1195 = vmatprep.mubr.f32.mxu1 %v11948_v2  ;;  %8309 = vmatpush1.bf16.msra.mxu1 %v8308_v4  ;;  %v1004_v53 = vld [vmem:[#allocation5 + $0xa68] sm:$0xff]  ;;  %v769_v62 = vld [vmem:[#allocation5 + $0x310] sm:$0xff]  ;;  %v1003_v4 = vld [vmem:[#allocation5 + $0xa60] sm:$0xff] }
 0x192   : > { %1447 = vmatmul.mubr.f32.gmra.mrb[16].mxu0 %v529_v0  ;;  %8311 = vmatprep.subr.bf16.mxu1 %v8310_v5  ;;  %v11978_v55 = vld [vmem:[%s11866_s14 + $0x248] sm:$0xff]  ;;  %v773_v63 = vld [vmem:[#allocation5 + $0x330] sm:$0xff]  ;;  %v999_v0 = vld [vmem:[#allocation5 + $0xa40] sm:$0xff] }
 0x193   : > { %1452 = vmatprep.mubr.f32.mxu0 %v536_v3  ;;  %8241 = vmatpush1.bf16.msra.mxu0 %v8240_v43  ;;  %v8246_v3 = vpack.c.bf16 %v1004_v53, %v1000_v52  ;;  %v778_v5 = vld [vmem:[#allocation5 + $0x358] sm:$0xff]  ;;  %v11984_v7 = vld [vmem:[%s11866_s14 + $0x240] sm:$0xff]  ;;  %v1008_v8 = vld [vmem:[#allocation5 + $0xa88] sm:$0xff]  ;;  %v8324_v13 = vpack.c.bf16 %v773_v63, %v769_v62  ;;  %v8248_v16 = vpack.c.bf16 %v1003_v4, %v999_v0 }
 0x194   : > { %1196 = vmatmul.mubr.f32.gmra.mrb[18].mxu1 %v11954_v15  ;;  %8243 = vmatprep.subr.bf16.mxu0 %v8242_v47  ;;  %v782_v6 = vld [vmem:[#allocation5 + $0x378] sm:$0xff]  ;;  %v1012_v9 = vld [vmem:[#allocation5 + $0xaa8] sm:$0xff]  ;;  %v553_v10 = vld [vmem:[%s11866_s14 + $0x250] sm:$0xff] }
 0x195   : > { %1201 = vmatprep.mubr.f32.mxu1 %v11958_v19  ;;  %8313 = vmatpush1.bf16.msra.mxu1 %v8312_v21  ;;  %v11988_v12 = vld [vmem:[%s11866_s14 + $0x278] sm:$0xff]  ;;  %v560_v14 = vld [vmem:[%s11866_s14 + $0x288] sm:$0xff]  ;;  %v8326_v17 = vpack.c.bf16 %v782_v6, %v778_v5  ;;  %v11993_v21 = vld [vmem:[%s11866_s14 + $0x270] sm:$0xff] }
 0x196   : > { %1453 = vmatmul.mubr.f32.gmra.mrb[18].mxu0 %v535_v18  ;;  %8315 = vmatprep.subr.bf16.mxu1 %v8314_v22  ;;  %v777_v18 = vld [vmem:[#allocation5 + $0x350] sm:$0xff]  ;;  %v8250_v22 = vpack.c.bf16 %v1012_v9, %v1008_v8  ;;  %v1007_v23 = vld [vmem:[#allocation5 + $0xa80] sm:$0xff]  ;;  %v1016_v25 = vld [vmem:[#allocation5 + $0xac8] sm:$0xff] }
 0x197   : > { %1458 = vmatprep.mubr.f32.mxu0 %v542_v20  ;;  %8245 = vmatpush1.bf16.msra.mxu0 %v8244_v59  ;;  %v781_v20 = vld [vmem:[#allocation5 + $0x370] sm:$0xff]  ;;  %v1011_v24 = vld [vmem:[#allocation5 + $0xaa0] sm:$0xff]  ;;  %v1020_v26 = vld [vmem:[#allocation5 + $0xae8] sm:$0xff] }
 0x198   : > { %1202 = vmatmul.mubr.f32.gmra.mrb[20].mxu1 %v11964_v33  ;;  %8247 = vmatprep.subr.bf16.mxu0 %v8246_v3  ;;  %v786_v28 = vld [vmem:[#allocation5 + $0x398] sm:$0xff]  ;;  %v559_v30 = vld [vmem:[%s11866_s14 + $0x280] sm:$0xff]  ;;  %v11998_v31 = vld [vmem:[%s11866_s14 + $0x2a8] sm:$0xff]  ;;  %v8328_v32 = vpack.c.bf16 %v781_v20, %v777_v18  ;;  %v8254_v41 = vpack.c.bf16 %v1020_v26, %v1016_v25 }
 0x199   : > { %1207 = vmatprep.mubr.f32.mxu1 %v11968_v37  ;;  %8317 = vmatpush1.bf16.msra.mxu1 %v8316_v39  ;;  %v790_v34 = vld [vmem:[#allocation5 + $0x3b8] sm:$0xff]  ;;  %v785_v39 = vld [vmem:[#allocation5 + $0x390] sm:$0xff]  ;;  %v1015_v42 = vld [vmem:[#allocation5 + $0xac0] sm:$0xff] }
 0x19a   : > { %1459 = vmatmul.mubr.f32.gmra.mrb[20].mxu0 %v541_v36  ;;  %8319 = vmatprep.subr.bf16.mxu1 %v8318_v40  ;;  %v566_v35 = vld [vmem:[%s11866_s14 + $0x2b8] sm:$0xff]  ;;  %v8252_v36 = vpack.c.bf16 %v1011_v24, %v1007_v23  ;;  %v789_v40 = vld [vmem:[#allocation5 + $0x3b0] sm:$0xff]  ;;  %v1019_v43 = vld [vmem:[#allocation5 + $0xae0] sm:$0xff] }
 0x19b   : > { %1464 = vmatprep.mubr.f32.mxu0 %v548_v38  ;;  %8249 = vmatpush1.bf16.msra.mxu0 %v8248_v16  ;;  %v8330_v38 = vpack.c.bf16 %v790_v34, %v786_v28  ;;  %v12004_v45 = vld [vmem:[%s11866_s14 + $0x2a0] sm:$0xff]  ;;  %v1024_v47 = vld [vmem:[#allocation5 + $0xb08] sm:$0xff]  ;;  %v565_v49 = vld [vmem:[%s11866_s14 + $0x2b0] sm:$0xff]  ;;  %v8332_v52 = vpack.c.bf16 %v789_v40, %v785_v39 }
 0x19c   : > { %1208 = vmatmul.mubr.f32.gmra.mrb[22].mxu1 %v11974_v51  ;;  %8251 = vmatprep.subr.bf16.mxu0 %v8250_v22  ;;  %v1028_v48 = vld [vmem:[#allocation5 + $0xb28] sm:$0xff]  ;;  %v12008_v50 = vld [vmem:[%s11866_s14 + $0x2d8] sm:$0xff]  ;;  %v1027_v59 = vld [vmem:[#allocation5 + $0xb20] sm:$0xff] }
 0x19d   : > { %1213 = vmatprep.mubr.f32.mxu1 %v11978_v55  ;;  %8321 = vmatpush1.bf16.msra.mxu1 %v8320_v57  ;;  %v572_v53 = vld [vmem:[%s11866_s14 + $0x2e8] sm:$0xff]  ;;  %v1023_v57 = vld [vmem:[#allocation5 + $0xb00] sm:$0xff]  ;;  %v794_v62 = vld [vmem:[#allocation5 + $0x3d8] sm:$0xff] }
 0x19e   : > { %1465 = vmatmul.mubr.f32.gmra.mrb[22].mxu0 %v547_v54  ;;  %8323 = vmatprep.subr.bf16.mxu1 %v8322_v58  ;;  %v12012_v54 = vld [vmem:[%s11866_s14 + $0x2d0] sm:$0xff]  ;;  %v8258_v58 = vpack.c.bf16 %v1028_v48, %v1024_v47  ;;  %v798_v63 = vld [vmem:[#allocation5 + $0x3f8] sm:$0xff]  ;;  %v1032_v0 = vld [vmem:[#allocation5 + $0xb48] sm:$0xff] }
 0x19f   : > { %1470 = vmatprep.mubr.f32.mxu0 %v554_v56  ;;  %8253 = vmatpush1.bf16.msra.mxu0 %v8252_v36  ;;  %v8256_v56 = vpack.c.bf16 %v1019_v43, %v1015_v42  ;;  %v1036_v3 = vld [vmem:[#allocation5 + $0xb68] sm:$0xff]  ;;  %v8334_v4 = vpack.c.bf16 %v798_v63, %v794_v62  ;;  %v793_v5 = vld [vmem:[#allocation5 + $0x3d0] sm:$0xff]  ;;  %v571_v6 = vld [vmem:[%s11866_s14 + $0x2e0] sm:$0xff] }
 0x1a0   : > { %1214 = vmatmul.mubr.f32.gmra.mrb[24].mxu1 %v11984_v7  ;;  %8255 = vmatprep.subr.bf16.mxu0 %v8254_v41  ;;  %v12018_v8 = vld [vmem:[%s11866_s14 + $0x308] sm:$0xff]  ;;  %v797_v9 = vld [vmem:[#allocation5 + $0x3f0] sm:$0xff]  ;;  %v12023_v16 = vld [vmem:[%s11866_s14 + $0x300] sm:$0xff] }
 0x1a1   : > { %1219 = vmatprep.mubr.f32.mxu1 %v11988_v12  ;;  %8325 = vmatpush1.bf16.msra.mxu1 %v8324_v13  ;;  %v8260_v13 = vpack.c.bf16 %v1027_v59, %v1023_v57  ;;  %v1031_v18 = vld [vmem:[#allocation5 + $0xb40] sm:$0xff]  ;;  %v1040_v22 = vld [vmem:[#allocation5 + $0xb88] sm:$0xff]  ;;  %v802_v24 = vld [vmem:[#allocation5 + $0x418] sm:$0xff] }
 0x1a2   : > { %1471 = vmatmul.mubr.f32.gmra.mrb[24].mxu0 %v553_v10  ;;  %8327 = vmatprep.subr.bf16.mxu1 %v8326_v17  ;;  %v578_v10 = vld [vmem:[%s11866_s14 + $0x318] sm:$0xff]  ;;  %v8262_v17 = vpack.c.bf16 %v1036_v3, %v1032_v0  ;;  %v1035_v20 = vld [vmem:[#allocation5 + $0xb60] sm:$0xff]  ;;  %v1044_v23 = vld [vmem:[#allocation5 + $0xba8] sm:$0xff] }
 0x1a3   : > { %1476 = vmatprep.mubr.f32.mxu0 %v560_v14  ;;  %8257 = vmatpush1.bf16.msra.mxu0 %v8256_v56  ;;  %v8336_v14 = vpack.c.bf16 %v797_v9, %v793_v5  ;;  %v577_v25 = vld [vmem:[%s11866_s14 + $0x310] sm:$0xff]  ;;  %v12028_v26 = vld [vmem:[%s11866_s14 + $0x338] sm:$0xff]  ;;  %v1039_v36 = vld [vmem:[#allocation5 + $0xb80] sm:$0xff] }
 0x1a4   : > { %1220 = vmatmul.mubr.f32.gmra.mrb[26].mxu1 %v11993_v21  ;;  %8259 = vmatprep.subr.bf16.mxu0 %v8258_v58  ;;  %v806_v28 = vld [vmem:[#allocation5 + $0x438] sm:$0xff]  ;;  %v12034_v39 = vld [vmem:[%s11866_s14 + $0x330] sm:$0xff]  ;;  %v1048_v40 = vld [vmem:[#allocation5 + $0xbc8] sm:$0xff] }
 0x1a5   : > { %1225 = vmatprep.mubr.f32.mxu1 %v11998_v31  ;;  %8329 = vmatpush1.bf16.msra.mxu1 %v8328_v32  ;;  %v8264_v32 = vpack.c.bf16 %v1035_v20, %v1031_v18  ;;  %v8338_v34 = vpack.c.bf16 %v806_v28, %v802_v24  ;;  %v1052_v41 = vld [vmem:[#allocation5 + $0xbe8] sm:$0xff]  ;;  %v583_v42 = vld [vmem:[%s11866_s14 + $0x340] sm:$0xff]  ;;  %v590_v47 = vld [vmem:[%s11866_s14 + $0x378] sm:$0xff] }
 0x1a6   : > { %1477 = vmatmul.mubr.f32.gmra.mrb[26].mxu0 %v559_v30  ;;  %8331 = vmatprep.subr.bf16.mxu1 %v8330_v38  ;;  %v584_v30 = vld [vmem:[%s11866_s14 + $0x348] sm:$0xff]  ;;  %v1043_v38 = vld [vmem:[#allocation5 + $0xba0] sm:$0xff]  ;;  %v589_v57 = vld [vmem:[%s11866_s14 + $0x370] sm:$0xff] }
 0x1a7   : > { %1482 = vmatprep.mubr.f32.mxu0 %v566_v35  ;;  %8261 = vmatpush1.bf16.msra.mxu0 %v8260_v13  ;;  %v8266_v35 = vpack.c.bf16 %v1044_v23, %v1040_v22  ;;  %v12038_v43 = vld [vmem:[%s11866_s14 + $0x368] sm:$0xff]  ;;  %v8268_v48 = vpack.c.bf16 %v1043_v38, %v1039_v36  ;;  %v12044_v56 = vld [vmem:[%s11866_s14 + $0x360] sm:$0xff]  ;;  %v12048_v58 = vld [vmem:[%s11866_s14 + $0x398] sm:$0xff] }
 0x1a8   : > { %1226 = vmatmul.mubr.f32.gmra.mrb[28].mxu1 %v12004_v45  ;;  %8263 = vmatprep.subr.bf16.mxu0 %v8262_v17  ;;  %v596_v59 = vld [vmem:[%s11866_s14 + $0x3a8] sm:$0xff]  ;;  %v12054_v63 = vld [vmem:[%s11866_s14 + $0x390] sm:$0xff]  ;;  %v595_v0 = vld [vmem:[%s11866_s14 + $0x3a0] sm:$0xff] }
 0x1a9   : > { %1231 = vmatprep.mubr.f32.mxu1 %v12008_v50  ;;  %8333 = vmatpush1.bf16.msra.mxu1 %v8332_v52  ;;  %v1047_v52 = vld [vmem:[#allocation5 + $0xbc0] sm:$0xff]  ;;  %v12058_v3 = vld [vmem:[%s11866_s14 + $0x3c8] sm:$0xff]  ;;  %v12068_v9 = vld [vmem:[%s11866_s14 + $0x3f8] sm:$0xff] }
 0x1aa   : > { %1483 = vmatmul.mubr.f32.gmra.mrb[28].mxu0 %v565_v49  ;;  %8335 = vmatprep.subr.bf16.mxu1 %v8334_v4  ;;  %v8270_v49 = vpack.c.bf16 %v1052_v41, %v1048_v40  ;;  %v602_v4 = vld [vmem:[%s11866_s14 + $0x3d8] sm:$0xff]  ;;  %v12064_v5 = vld [vmem:[%s11866_s14 + $0x3c0] sm:$0xff]  ;;  %v12074_v13 = vld [vmem:[%s11866_s14 + $0x3f0] sm:$0xff] }
 0x1ab   : > { %1488 = vmatprep.mubr.f32.mxu0 %v572_v53  ;;  %8265 = vmatpush1.bf16.msra.mxu0 %v8264_v32  ;;  %v1051_v53 = vld [vmem:[#allocation5 + $0xbe0] sm:$0xff]  ;;  %v12078_v17 = vld [vmem:[%s11866_s14 + $0x428] sm:$0xff]  ;;  %v614_v18 = vld [vmem:[%s11866_s14 + $0x438] sm:$0xff] }
 0x1ac   : > { %1232 = vmatmul.mubr.f32.gmra.mrb[30].mxu1 %v12012_v54  ;;  %8267 = vmatprep.subr.bf16.mxu0 %v8266_v35  ;;  %v8272_v62 = vpack.c.bf16 %v1051_v53, %v1047_v52  ;;  %v12084_v20 = vld [vmem:[%s11866_s14 + $0x420] sm:$0xff]  ;;  %v613_v22 = vld [vmem:[%s11866_s14 + $0x430] sm:$0xff]  ;;  %v12088_v23 = vld [vmem:[%s11866_s14 + $0x458] sm:$0xff] }
 0x1ad   : > { %1237 = vmatprep.mubr.f32.mxu1 %v12018_v8  ;;  %8337 = vmatpush1.bf16.msra.mxu1 %v8336_v14  ;;  %v607_v14 = vld [vmem:[%s11866_s14 + $0x400] sm:$0xff]  ;;  %v620_v24 = vld [vmem:[%s11866_s14 + $0x468] sm:$0xff]  ;;  %v626_v32 = vld [vmem:[%s11866_s14 + $0x498] sm:$0xff] }
 0x1ae   : > { %1489 = vmatmul.mubr.f32.gmra.mrb[30].mxu0 %v571_v6  ;;  %8339 = vmatprep.subr.bf16.mxu1 %v8338_v34  ;;  %v601_v6 = vld [vmem:[%s11866_s14 + $0x3d0] sm:$0xff]  ;;  %v619_v28 = vld [vmem:[%s11866_s14 + $0x460] sm:$0xff]  ;;  %v12108_v36 = vld [vmem:[%s11866_s14 + $0x4b8] sm:$0xff] }
 0x1af   : > { %1494 = vmatprep.mubr.f32.mxu0 %v578_v10  ;;  %8269 = vmatpush1.bf16.msra.mxu0 %v8268_v48  ;;  %v608_v10 = vld [vmem:[%s11866_s14 + $0x408] sm:$0xff]  ;;  %v12104_v34 = vld [vmem:[%s11866_s14 + $0x480] sm:$0xff]  ;;  %v625_v35 = vld [vmem:[%s11866_s14 + $0x490] sm:$0xff] }
 0x1b0   : > { %1238 = vmatmul.mubr.f32.gmra.mrb[32].mxu1 %v12023_v16  ;;  %8271 = vmatprep.subr.bf16.mxu0 %v8270_v49  ;;  %v632_v38 = vld [vmem:[%s11866_s14 + $0x4c8] sm:$0xff]  ;;  %v12114_v40 = vld [vmem:[%s11866_s14 + $0x4b0] sm:$0xff]  ;;  %v631_v41 = vld [vmem:[%s11866_s14 + $0x4c0] sm:$0xff] }
 0x1b1   : > { %1243 = vmatprep.mubr.f32.mxu1 %v12028_v26  ;;  %v12124_v48 = vld [vmem:[%s11866_s14 + $0x4e0] sm:$0xff]  ;;  %v637_v49 = vld [vmem:[%s11866_s14 + $0x4f0] sm:$0xff]  ;;  %v12128_v52 = vld [vmem:[%s11866_s14 + $0x518] sm:$0xff] }
 0x1b2   : > { %1495 = vmatmul.mubr.f32.gmra.mrb[32].mxu0 %v577_v25  ;;  %v12094_v25 = vld [vmem:[%s11866_s14 + $0x450] sm:$0xff]  ;;  %v644_v53 = vld [vmem:[%s11866_s14 + $0x528] sm:$0xff] }
 0x1b3   : > { %1500 = vmatprep.mubr.f32.mxu0 %v584_v30  ;;  %8273 = vmatpush1.bf16.msra.mxu0 %v8272_v62  ;;  %v12098_v30 = vld [vmem:[%s11866_s14 + $0x488] sm:$0xff] }
 0x1b4   : > { %1244 = vmatmul.mubr.f32.gmra.mrb[34].mxu1 %v12034_v39  ;;  %v12138_v62 = vld [vmem:[%s11866_s14 + $0x548] sm:$0xff] }
 0x1b5   : > { %1249 = vmatprep.mubr.f32.mxu1 %v12038_v43  ;;  %16312 = vst [vmem:[#allocation30_spill] sm:$0xff] %v12138_v62 }
 0x1b6   : > { %1501 = vmatmul.mubr.f32.gmra.mrb[34].mxu0 %v583_v42  ;;  %v12118_v42 = vld [vmem:[%s11866_s14 + $0x4e8] sm:$0xff] }
 0x1b7   : > { %1506 = vmatprep.mubr.f32.mxu0 %v590_v47  ;;  %v638_v47 = vld [vmem:[%s11866_s14 + $0x4f8] sm:$0xff] }
 0x1b8   : > { %1250 = vmatmul.mubr.f32.gmra.mrb[36].mxu1 %v12044_v56 }
 0x1b9   : > { %1255 = vmatprep.mubr.f32.mxu1 %v12048_v58 }
 0x1ba   : > { %1507 = vmatmul.mubr.f32.gmra.mrb[36].mxu0 %v589_v57  ;;  %v12134_v57 = vld [vmem:[%s11866_s14 + $0x510] sm:$0xff] }
 0x1bb   : > { %1512 = vmatprep.mubr.f32.mxu0 %v596_v59  ;;  %v643_v59 = vld [vmem:[%s11866_s14 + $0x520] sm:$0xff] }
 0x1bc   : > { %1256 = vmatmul.mubr.f32.gmra.mrb[38].mxu1 %v12054_v63 }
 0x1bd   : > { %1261 = vmatprep.mubr.f32.mxu1 %v12058_v3 }
 0x1be   : > { %1513 = vmatmul.mubr.f32.gmra.mrb[38].mxu0 %v595_v0  ;;  %v650_v0 = vld [vmem:[%s11866_s14 + $0x558] sm:$0xff] }
 0x1bf   : > { %1518 = vmatprep.mubr.f32.mxu0 %v602_v4  ;;  %v12144_v4 = vld [vmem:[%s11866_s14 + $0x540] sm:$0xff] }
 0x1c0   : > { %1262 = vmatmul.mubr.f32.gmra.mrb[40].mxu1 %v12064_v5  ;;  %16313 = vst [vmem:[#allocation31_spill] sm:$0xff] %v12144_v4 }
 0x1c1   : > { %1267 = vmatprep.mubr.f32.mxu1 %v12068_v9 }
 0x1c2   : > { %1519 = vmatmul.mubr.f32.gmra.mrb[40].mxu0 %v601_v6  ;;  %v649_v6 = vld [vmem:[%s11866_s14 + $0x550] sm:$0xff] }
 0x1c3   : > { %1524 = vmatprep.mubr.f32.mxu0 %v608_v10  ;;  %v12148_v10 = vld [vmem:[%s11866_s14 + $0x578] sm:$0xff] }
 0x1c4   : > { %1268 = vmatmul.mubr.f32.gmra.mrb[42].mxu1 %v12074_v13  ;;  %16314 = vst [vmem:[#allocation32_spill] sm:$0xff] %v12148_v10 }
 0x1c5   : > { %1273 = vmatprep.mubr.f32.mxu1 %v12078_v17 }
 0x1c6   : > { %1525 = vmatmul.mubr.f32.gmra.mrb[42].mxu0 %v607_v14  ;;  %v656_v14 = vld [vmem:[%s11866_s14 + $0x588] sm:$0xff] }
 0x1c7   : > { %1530 = vmatprep.mubr.f32.mxu0 %v614_v18  ;;  %v12154_v18 = vld [vmem:[%s11866_s14 + $0x570] sm:$0xff] }
 0x1c8   : > { %1274 = vmatmul.mubr.f32.gmra.mrb[44].mxu1 %v12084_v20  ;;  %16315 = vst [vmem:[#allocation33_spill] sm:$0xff] %v12154_v18 }
 0x1c9   : > { %1279 = vmatprep.mubr.f32.mxu1 %v12088_v23 }
 0x1ca   : > { %1531 = vmatmul.mubr.f32.gmra.mrb[44].mxu0 %v613_v22  ;;  %v655_v22 = vld [vmem:[%s11866_s14 + $0x580] sm:$0xff] }
 0x1cb   : > { %1536 = vmatprep.mubr.f32.mxu0 %v620_v24  ;;  %v12158_v24 = vld [vmem:[%s11866_s14 + $0x5a8] sm:$0xff] }
 0x1cc   : > { %1280 = vmatmul.mubr.f32.gmra.mrb[46].mxu1 %v12094_v25  ;;  %16316 = vst [vmem:[#allocation34_spill] sm:$0xff] %v12158_v24 }
 0x1cd   : > { %1285 = vmatprep.mubr.f32.mxu1 %v12098_v30 }
 0x1ce   : > { %1537 = vmatmul.mubr.f32.gmra.mrb[46].mxu0 %v619_v28  ;;  %v662_v28 = vld [vmem:[%s11866_s14 + $0x5b8] sm:$0xff] }
 0x1cf   : > { %1542 = vmatprep.mubr.f32.mxu0 %v626_v32  ;;  %v12164_v32 = vld [vmem:[%s11866_s14 + $0x5a0] sm:$0xff] }
 0x1d0   : > { %1286 = vmatmul.mubr.f32.gmra.mrb[48].mxu1 %v12104_v34  ;;  %16317 = vst [vmem:[#allocation35_spill] sm:$0xff] %v12164_v32 }
 0x1d1   : > { %1291 = vmatprep.mubr.f32.mxu1 %v12108_v36 }
 0x1d2   : > { %1543 = vmatmul.mubr.f32.gmra.mrb[48].mxu0 %v625_v35  ;;  %v661_v35 = vld [vmem:[%s11866_s14 + $0x5b0] sm:$0xff] }
 0x1d3   : > { %1548 = vmatprep.mubr.f32.mxu0 %v632_v38  ;;  %v12168_v38 = vld [vmem:[%s11866_s14 + $0x5d8] sm:$0xff] }
 0x1d4   : > { %1292 = vmatmul.mubr.f32.gmra.mrb[50].mxu1 %v12114_v40  ;;  %16318 = vst [vmem:[#allocation36_spill] sm:$0xff] %v12168_v38 }
 0x1d5   : > { %1297 = vmatprep.mubr.f32.mxu1 %v12118_v42 }
 0x1d6   : > { %1549 = vmatmul.mubr.f32.gmra.mrb[50].mxu0 %v631_v41  ;;  %v668_v41 = vld [vmem:[%s11866_s14 + $0x5e8] sm:$0xff] }
 0x1d7   : > { %1554 = vmatprep.mubr.f32.mxu0 %v638_v47  ;;  %v12174_v47 = vld [vmem:[%s11866_s14 + $0x5d0] sm:$0xff] }
 0x1d8   : > { %1298 = vmatmul.mubr.f32.gmra.mrb[52].mxu1 %v12124_v48  ;;  %16319 = vst [vmem:[#allocation37_spill] sm:$0xff] %v12174_v47 }
 0x1d9   : > { %1303 = vmatprep.mubr.f32.mxu1 %v12128_v52 }
 0x1da   : > { %1555 = vmatmul.mubr.f32.gmra.mrb[52].mxu0 %v637_v49  ;;  %v667_v49 = vld [vmem:[%s11866_s14 + $0x5e0] sm:$0xff] }
 0x1db   : > { %1560 = vmatprep.mubr.f32.mxu0 %v644_v53  ;;  %v801_v53 = vld [vmem:[#allocation5 + $0x410] sm:$0xff] }
 0x1dc   : > { %1304 = vmatmul.mubr.f32.gmra.mrb[54].mxu1 %v12134_v57 }
 0x1dd   : > { %1309 = vmatprep.mubr.f32.mxu1 %v12138_v62  ;;  %v830_v62 = vld [vmem:[#allocation5 + $0x4f8] sm:$0xff] }
 0x1de   : > { %1561 = vmatmul.mubr.f32.gmra.mrb[54].mxu0 %v643_v59  ;;  %v805_v59 = vld [vmem:[#allocation5 + $0x430] sm:$0xff] }
 0x1df   : > { %1566 = vmatprep.mubr.f32.mxu0 %v650_v0  ;;  %v484_v0 = vld [vmem:[%s11866_s14 + $0x28] sm:$0xff] }
 0x1e0   : > { %1310 = vmatmul.mubr.f32.gmra.mrb[56].mxu1 %v12144_v4  ;;  %v11032_v4 = vld [vmem:[%s11866_s14 + $0x30] sm:$0xff] }
 0x1e1   : > { %1315 = vmatprep.mubr.f32.mxu1 %v12148_v10  ;;  %v818_v10 = vld [vmem:[#allocation5 + $0x498] sm:$0xff] }
 0x1e2   : > { %1567 = vmatmul.mubr.f32.gmra.mrb[56].mxu0 %v649_v6  ;;  %v810_v6 = vld [vmem:[#allocation5 + $0x458] sm:$0xff] }
 0x1e3   : > { %1572 = vmatprep.mubr.f32.mxu0 %v656_v14  ;;  %v814_v14 = vld [vmem:[#allocation5 + $0x478] sm:$0xff] }
 0x1e4   : > { %1316 = vmatmul.mubr.f32.gmra.mrb[58].mxu1 %v12154_v18  ;;  %v11030_v18 = vld [vmem:[%s11866_s14] sm:$0xff] }
 0x1e5   : > { %1321 = vmatprep.mubr.f32.mxu1 %v12158_v24  ;;  %v813_v24 = vld [vmem:[#allocation5 + $0x470] sm:$0xff] }
 0x1e6   : > { %1573 = vmatmul.mubr.f32.gmra.mrb[58].mxu0 %v655_v22  ;;  %v11029_v22 = vld [vmem:[%s11866_s14 + $0x8] sm:$0xff] }
 0x1e7   : > { %1578 = vmatprep.mubr.f32.mxu0 %v662_v28  ;;  %v8340_v28 = vpack.c.bf16 %v805_v59, %v801_v53  ;;  %v489_v53 = vld [vmem:[%s11866_s14 + $0x50] sm:$0xff] }
 0x1e8   : > { %1322 = vmatmul.mubr.f32.gmra.mrb[60].mxu1 %v12164_v32  ;;  %v809_v32 = vld [vmem:[#allocation5 + $0x450] sm:$0xff] }
 0x1e9   : > { %1327 = vmatprep.mubr.f32.mxu1 %v12168_v38  ;;  %v490_v38 = vld [vmem:[%s11866_s14 + $0x58] sm:$0xff]  ;;  %v8344_v59 = vpack.c.bf16 %v813_v24, %v809_v32 }
 0x1ea   : > { %1579 = vmatmul.mubr.f32.gmra.mrb[60].mxu0 %v661_v35  ;;  %v483_v35 = vld [vmem:[%s11866_s14 + $0x20] sm:$0xff]  ;;  %v502_v32 = vld [vmem:[%s11866_s14 + $0xb8] sm:$0xff] }
 0x1eb   : > { %1584 = vmatprep.mubr.f32.mxu0 %v668_v41  ;;  %v8342_v41 = vpack.c.bf16 %v814_v14, %v810_v6  ;;  %v817_v14 = vld [vmem:[#allocation5 + $0x490] sm:$0xff] }
 0x1ec   : > { %1328 = vmatmul.mubr.f32.gmra.mrb[62].mxu1 %v12174_v47  ;;  %v822_v47 = vld [vmem:[#allocation5 + $0x4b8] sm:$0xff] }
 0x1ed   : > { %1912 = vmatprep.mubr.f32.mxu1 %v11029_v22  ;;  %v8346_v6 = vpack.c.bf16 %v822_v47, %v818_v10  ;;  %v821_v22 = vld [vmem:[#allocation5 + $0x4b0] sm:$0xff] }
 0x1ee   : > { %1585 = vmatmul.mubr.f32.gmra.mrb[62].mxu0 %v667_v49  ;;  %v11031_v49 = vld [vmem:[%s11866_s14 + $0x38] sm:$0xff]  ;;  %v8348_v24 = vpack.c.bf16 %v821_v22, %v817_v14  ;;  %v825_v47 = vld [vmem:[#allocation5 + $0x4d0] sm:$0xff]  ;;  %v508_v14 = vld [vmem:[%s11866_s14 + $0xe8] sm:$0xff] }
 0x1ef   : > { %1655 = vmatprep.mubr.f32.mxu0 %v484_v0  ;;  %v496_v0 = vld [vmem:[%s11866_s14 + $0x88] sm:$0xff]  ;;  %v837_v22 = vld [vmem:[#allocation5 + $0x530] sm:$0xff] }
 0x1f0   : > { %1913 = vmatmul.mubr.f32.vlgmr.msra.gmra.mrb[64].mxu1 %v11030_v18  ;;  %v826_v18 = vld [vmem:[#allocation5 + $0x4d8] sm:$0xff] }
 0x1f1   : > { %8341 = vmatpush1.bf16.msra.mxu1 %v8340_v28  ;;  %1918 = vmatprep.mubr.f32.mxu1 %v11031_v49  ;;  %v11033_v28 = vld [vmem:[%s11866_s14 + $0x68] sm:$0xff]  ;;  %v8350_v10 = vpack.c.bf16 %v830_v62, %v826_v18  ;;  %v838_v49 = vld [vmem:[#allocation5 + $0x538] sm:$0xff]  ;;  %v11036_v18 = vld [vmem:[%s11866_s14 + $0x90] sm:$0xff] }
 0x1f2   : > { %1656 = vmatmul.mubr.f32.vlgmr.msra.gmra.mrb[0].mxu0 %v483_v35  ;;  %8343 = vmatprep.subr.bf16.mxu1 %v8342_v41  ;;  %v829_v35 = vld [vmem:[#allocation5 + $0x4f0] sm:$0xff]  ;;  %v11034_v41 = vld [vmem:[%s11866_s14 + $0x60] sm:$0xff] }
 0x1f3   : > { %1661 = vmatprep.mubr.f32.mxu0 %v490_v38  ;;  %v495_v38 = vld [vmem:[%s11866_s14 + $0x80] sm:$0xff] }
 0x1f4   : > { %1919 = vmatmul.mubr.f32.gmra.mrb[66].mxu1 %v11032_v4  ;;  %v834_v4 = vld [vmem:[#allocation5 + $0x518] sm:$0xff] }
 0x1f5   : > { %1924 = vmatprep.mubr.f32.mxu1 %v11033_v28  ;;  %8345 = vmatpush1.bf16.msra.mxu1 %v8344_v59  ;;  %v8352_v59 = vpack.c.bf16 %v829_v35, %v825_v47  ;;  %v8354_v62 = vpack.c.bf16 %v838_v49, %v834_v4  ;;  %v842_v28 = vld [vmem:[#allocation5 + $0x558] sm:$0xff]  ;;  %v841_v35 = vld [vmem:[#allocation5 + $0x550] sm:$0xff]  ;;  %v11038_v49 = vld [vmem:[%s11866_s14 + $0xc0] sm:$0xff] }
 0x1f6   : > { %1662 = vmatmul.mubr.f32.gmra.mrb[2].mxu0 %v489_v53  ;;  %8347 = vmatprep.subr.bf16.mxu1 %v8346_v6  ;;  %v11035_v53 = vld [vmem:[%s11866_s14 + $0x98] sm:$0xff]  ;;  %v833_v6 = vld [vmem:[#allocation5 + $0x510] sm:$0xff] }
 0x1f7   : > { %1667 = vmatprep.mubr.f32.mxu0 %v496_v0  ;;  %v501_v0 = vld [vmem:[%s11866_s14 + $0xb0] sm:$0xff]  ;;  %v514_v47 = vld [vmem:[%s11866_s14 + $0x118] sm:$0xff] }
 0x1f8   : > { %1925 = vmatmul.mubr.f32.gmra.mrb[68].mxu1 %v11034_v41  ;;  %v846_v41 = vld [vmem:[#allocation5 + $0x578] sm:$0xff]  ;;  %v845_v4 = vld [vmem:[#allocation5 + $0x570] sm:$0xff] }
 0x1f9   : > { %1930 = vmatprep.mubr.f32.mxu1 %v11035_v53  ;;  %8349 = vmatpush1.bf16.msra.mxu1 %v8348_v24  ;;  %v8356_v24 = vpack.c.bf16 %v837_v22, %v833_v6  ;;  %v850_v53 = vld [vmem:[#allocation5 + $0x598] sm:$0xff]  ;;  %v853_v22 = vld [vmem:[#allocation5 + $0x5b0] sm:$0xff] }
 0x1fa   : > { %1668 = vmatmul.mubr.f32.gmra.mrb[4].mxu0 %v495_v38  ;;  %8351 = vmatprep.subr.bf16.mxu1 %v8350_v10  ;;  %v11037_v38 = vld [vmem:[%s11866_s14 + $0xc8] sm:$0xff]  ;;  %v8358_v10 = vpack.c.bf16 %v846_v41, %v842_v28  ;;  %v858_v28 = vld [vmem:[#allocation5 + $0x5d8] sm:$0xff] }
 0x1fb   : > { %1673 = vmatprep.mubr.f32.mxu0 %v502_v32  ;;  %v507_v32 = vld [vmem:[%s11866_s14 + $0xe0] sm:$0xff]  ;;  %v862_v41 = vld [vmem:[#allocation5 + $0x5f8] sm:$0xff] }
 0x1fc   : > { %1931 = vmatmul.mubr.f32.gmra.mrb[70].mxu1 %v11036_v18  ;;  %v854_v18 = vld [vmem:[#allocation5 + $0x5b8] sm:$0xff] }
 0x1fd   : > { %1936 = vmatprep.mubr.f32.mxu1 %v11037_v38  ;;  %8353 = vmatpush1.bf16.msra.mxu1 %v8352_v59  ;;  %v8360_v59 = vpack.c.bf16 %v845_v4, %v841_v35  ;;  %v8362_v6 = vpack.c.bf16 %v854_v18, %v850_v53  ;;  %v866_v35 = vld [vmem:[#allocation5 + $0x618] sm:$0xff]  ;;  %v865_v18 = vld [vmem:[#allocation5 + $0x610] sm:$0xff] }
 0x1fe   : > { %1674 = vmatmul.mubr.f32.gmra.mrb[6].mxu0 %v501_v0  ;;  %8355 = vmatprep.subr.bf16.mxu1 %v8354_v62  ;;  %v513_v0 = vld [vmem:[%s11866_s14 + $0x110] sm:$0xff] }
 0x1ff   : > { %1679 = vmatprep.mubr.f32.mxu0 %v508_v14  ;;  %v520_v14 = vld [vmem:[%s11866_s14 + $0x148] sm:$0xff]  ;;  %v849_v62 = vld [vmem:[#allocation5 + $0x590] sm:$0xff] }
 0x200   : > { %1937 = vmatmul.mubr.f32.gmra.mrb[72].mxu1 %v11038_v49  ;;  %v8364_v38 = vpack.c.bf16 %v853_v22, %v849_v62  ;;  %v532_v49 = vld [vmem:[%s11866_s14 + $0x1a8] sm:$0xff]  ;;  %v873_v22 = vld [vmem:[#allocation5 + $0x650] sm:$0xff] }
 0x201   : > { %1942 = vmatprep.mubr.f32.mxu1 %v11909_v60  ;;  %8357 = vmatpush1.bf16.msra.mxu1 %v8356_v24  ;;  %v519_v60 = vld [vmem:[%s11866_s14 + $0x140] sm:$0xff]  ;;  %v8366_v24 = vpack.c.bf16 %v862_v41, %v858_v28  ;;  %v877_v28 = vld [vmem:[#allocation5 + $0x670] sm:$0xff]  ;;  %v882_v41 = vld [vmem:[#allocation5 + $0x698] sm:$0xff] }
 0x202   : > { %1680 = vmatmul.mubr.f32.gmra.mrb[8].mxu0 %v507_v32  ;;  %8359 = vmatprep.subr.bf16.mxu1 %v8358_v10  ;;  %v526_v32 = vld [vmem:[%s11866_s14 + $0x178] sm:$0xff]  ;;  %v861_v10 = vld [vmem:[#allocation5 + $0x5f0] sm:$0xff] }
 0x203   : > { %1685 = vmatprep.mubr.f32.mxu0 %v514_v47  ;;  %v857_v47 = vld [vmem:[#allocation5 + $0x5d0] sm:$0xff] }
 0x204   : > { %1943 = vmatmul.mubr.f32.gmra.mrb[74].mxu1 %v11913_v1  ;;  %v870_v1 = vld [vmem:[#allocation5 + $0x638] sm:$0xff]  ;;  %v8368_v4 = vpack.c.bf16 %v861_v10, %v857_v47  ;;  %v885_v47 = vld [vmem:[#allocation5 + $0x6b0] sm:$0xff] }
 0x205   : > { %1948 = vmatprep.mubr.f32.mxu1 %v11918_v11  ;;  %8361 = vmatpush1.bf16.msra.mxu1 %v8360_v59  ;;  %v525_v11 = vld [vmem:[%s11866_s14 + $0x170] sm:$0xff]  ;;  %v8370_v53 = vpack.c.bf16 %v870_v1, %v866_v35  ;;  %v874_v59 = vld [vmem:[#allocation5 + $0x658] sm:$0xff]  ;;  %v543_v35 = vld [vmem:[%s11866_s14 + $0x200] sm:$0xff] }
 0x206   : > { %1686 = vmatmul.mubr.f32.gmra.mrb[10].mxu0 %v513_v0  ;;  %8363 = vmatprep.subr.bf16.mxu1 %v8362_v6  ;;  %v869_v0 = vld [vmem:[#allocation5 + $0x630] sm:$0xff]  ;;  %v538_v6 = vld [vmem:[%s11866_s14 + $0x1d8] sm:$0xff] }
 0x207   : > { %1691 = vmatprep.mubr.f32.mxu0 %v520_v14  ;;  %v8372_v14 = vpack.c.bf16 %v869_v0, %v865_v18  ;;  %v890_v10 = vld [vmem:[#allocation5 + $0x6d8] sm:$0xff]  ;;  %v3260_v18 = vld [vmem:[#allocation8 + $0x8] sm:$0xff] }
 0x208   : > { %1949 = vmatmul.mubr.f32.gmra.mrb[76].mxu1 %v11924_v27  ;;  %v878_v27 = vld [vmem:[#allocation5 + $0x678] sm:$0xff]  ;;  %v3264_v0 = vld [vmem:[#allocation8 + $0x28] sm:$0xff] }
 0x209   : > { %1954 = vmatprep.mubr.f32.mxu1 %v11928_v29  ;;  %8365 = vmatpush1.bf16.msra.mxu1 %v8364_v38  ;;  %v531_v29 = vld [vmem:[%s11866_s14 + $0x1a0] sm:$0xff]  ;;  %v8374_v62 = vpack.c.bf16 %v878_v27, %v874_v59  ;;  %v544_v38 = vld [vmem:[%s11866_s14 + $0x208] sm:$0xff]  ;;  %v8466_v59 = vpack.c.bf16 %v3264_v0, %v3260_v18  ;;  %v561_v0 = vld [vmem:[%s11866_s14 + $0x290] sm:$0xff] }
 0x20a   : > { %1692 = vmatmul.mubr.f32.gmra.mrb[12].mxu0 %v519_v60  ;;  %8367 = vmatprep.subr.bf16.mxu1 %v8366_v24  ;;  %v8376_v60 = vpack.c.bf16 %v877_v28, %v873_v22  ;;  %v881_v24 = vld [vmem:[#allocation5 + $0x690] sm:$0xff]  ;;  %v3259_v27 = vld [vmem:[#allocation8] sm:$0xff] }
 0x20b   : > { %1697 = vmatprep.mubr.f32.mxu0 %v526_v32  ;;  %v8380_v1 = vpack.c.bf16 %v885_v47, %v881_v24  ;;  %v897_v22 = vld [vmem:[#allocation5 + $0x710] sm:$0xff]  ;;  %8467 = vmatprep.subr.bf16.mxu0 %v8466_v59  ;;  %v555_v24 = vld [vmem:[%s11866_s14 + $0x260] sm:$0xff]  ;;  %v568_v59 = vld [vmem:[%s11866_s14 + $0x2c8] sm:$0xff] }
 0x20c   : > { %1955 = vmatmul.mubr.f32.gmra.mrb[78].mxu1 %v11934_v44  ;;  %v886_v44 = vld [vmem:[#allocation5 + $0x6b8] sm:$0xff]  ;;  %v901_v28 = vld [vmem:[#allocation5 + $0x730] sm:$0xff]  ;;  %v3279_v18 = vld [vmem:[#allocation8 + $0xa0] sm:$0xff] }
 0x20d   : > { %1960 = vmatprep.mubr.f32.mxu1 %v11938_v46  ;;  %8369 = vmatpush1.bf16.msra.mxu1 %v8368_v4  ;;  %v537_v46 = vld [vmem:[%s11866_s14 + $0x1d0] sm:$0xff]  ;;  %v8378_v32 = vpack.c.bf16 %v886_v44, %v882_v41 }
 0x20e   : > { %1698 = vmatmul.mubr.f32.gmra.mrb[14].mxu0 %v525_v11  ;;  %8371 = vmatprep.subr.bf16.mxu1 %v8370_v53  ;;  %v889_v11 = vld [vmem:[#allocation5 + $0x6d0] sm:$0xff]  ;;  %v898_v53 = vld [vmem:[#allocation5 + $0x718] sm:$0xff] }
 0x20f   : > { %1703 = vmatprep.mubr.f32.mxu0 %v532_v49  ;;  %v893_v4 = vld [vmem:[#allocation5 + $0x6f0] sm:$0xff] }
 0x210   : > { %1961 = vmatmul.mubr.f32.gmra.mrb[80].mxu1 %v11944_v61  ;;  %v894_v61 = vld [vmem:[#allocation5 + $0x6f8] sm:$0xff]  ;;  %v3268_v44 = vld [vmem:[#allocation8 + $0x48] sm:$0xff] }
 0x211   : > { %1966 = vmatprep.mubr.f32.mxu1 %v11948_v2  ;;  %8373 = vmatpush1.bf16.msra.mxu1 %v8372_v14  ;;  %v550_v2 = vld [vmem:[%s11866_s14 + $0x238] sm:$0xff]  ;;  %v8382_v49 = vpack.c.bf16 %v894_v61, %v890_v10  ;;  %v8388_v61 = vpack.c.bf16 %v901_v28, %v897_v22  ;;  %v3283_v28 = vld [vmem:[#allocation8 + $0xc0] sm:$0xff] }
 0x212   : > { %1704 = vmatmul.mubr.f32.gmra.mrb[16].mxu0 %v531_v29  ;;  %8375 = vmatprep.subr.bf16.mxu1 %v8374_v62  ;;  %v549_v29 = vld [vmem:[%s11866_s14 + $0x230] sm:$0xff]  ;;  %v8384_v62 = vpack.c.bf16 %v893_v4, %v889_v11  ;;  %v562_v10 = vld [vmem:[%s11866_s14 + $0x298] sm:$0xff] }
 0x213   : > { %1709 = vmatprep.mubr.f32.mxu0 %v538_v6  ;;  %v556_v6 = vld [vmem:[%s11866_s14 + $0x268] sm:$0xff]  ;;  %v926_v22 = vld [vmem:[#allocation5 + $0x7f8] sm:$0xff] }
 0x214   : > { %1967 = vmatmul.mubr.f32.gmra.mrb[82].mxu1 %v11954_v15  ;;  %v902_v15 = vld [vmem:[#allocation5 + $0x738] sm:$0xff]  ;;  %v3276_v11 = vld [vmem:[#allocation8 + $0x88] sm:$0xff] }
 0x215   : > { %1972 = vmatprep.mubr.f32.mxu1 %v11958_v19  ;;  %8377 = vmatpush1.bf16.msra.mxu1 %v8376_v60  ;;  %v3263_v19 = vld [vmem:[#allocation8 + $0x20] sm:$0xff]  ;;  %v8386_v41 = vpack.c.bf16 %v902_v15, %v898_v53  ;;  %v910_v60 = vld [vmem:[#allocation5 + $0x778] sm:$0xff]  ;;  %v3280_v4 = vld [vmem:[#allocation8 + $0xa8] sm:$0xff] }
 0x216   : > { %1710 = vmatmul.mubr.f32.gmra.mrb[18].mxu0 %v537_v46  ;;  %8379 = vmatprep.subr.bf16.mxu1 %v8378_v32  ;;  %v8468_v14 = vpack.c.bf16 %v3263_v19, %v3259_v27  ;;  %v3272_v46 = vld [vmem:[#allocation8 + $0x68] sm:$0xff]  ;;  %v3271_v32 = vld [vmem:[#allocation8 + $0x60] sm:$0xff] }
 0x217   : > { %1715 = vmatprep.mubr.f32.mxu0 %v544_v38  ;;  %v3267_v38 = vld [vmem:[#allocation8 + $0x40] sm:$0xff]  ;;  %v913_v19 = vld [vmem:[#allocation5 + $0x790] sm:$0xff] }
 0x218   : > { %1973 = vmatmul.mubr.f32.gmra.mrb[84].mxu1 %v11964_v33  ;;  %v906_v33 = vld [vmem:[#allocation5 + $0x758] sm:$0xff]  ;;  %8469 = vmatpush1.bf16.msra.mxu0 %v8468_v14  ;;  %v8472_v47 = vpack.c.bf16 %v3271_v32, %v3267_v38  ;;  %v3275_v53 = vld [vmem:[#allocation8 + $0x80] sm:$0xff]  ;;  %v925_v38 = vld [vmem:[#allocation5 + $0x7f0] sm:$0xff] }
 0x219   : > { %1978 = vmatprep.mubr.f32.mxu1 %v11968_v37  ;;  %8381 = vmatpush1.bf16.msra.mxu1 %v8380_v1  ;;  %v8470_v37 = vpack.c.bf16 %v3272_v46, %v3268_v44  ;;  %v8390_v1 = vpack.c.bf16 %v910_v60, %v906_v33  ;;  %v8476_v15 = vpack.c.bf16 %v3279_v18, %v3275_v53  ;;  %v567_v33 = vld [vmem:[%s11866_s14 + $0x2c0] sm:$0xff]  ;;  %v574_v46 = vld [vmem:[%s11866_s14 + $0x2f8] sm:$0xff] }
 0x21a   : > { %1716 = vmatmul.mubr.f32.gmra.mrb[20].mxu0 %v543_v35  ;;  %8383 = vmatprep.subr.bf16.mxu1 %v8382_v49  ;;  %v905_v35 = vld [vmem:[#allocation5 + $0x750] sm:$0xff]  ;;  %v918_v49 = vld [vmem:[#allocation5 + $0x7b8] sm:$0xff]  ;;  %v3299_v53 = vld [vmem:[#allocation8 + $0x140] sm:$0xff] }
 0x21b   : > { %1721 = vmatprep.mubr.f32.mxu0 %v550_v2  ;;  %v909_v2 = vld [vmem:[#allocation5 + $0x770] sm:$0xff]  ;;  %8471 = vmatprep.subr.bf16.mxu0 %v8470_v37  ;;  %v3303_v18 = vld [vmem:[#allocation8 + $0x160] sm:$0xff] }
 0x21c   : > { %1979 = vmatmul.mubr.f32.gmra.mrb[86].mxu1 %v11974_v51  ;;  %v914_v51 = vld [vmem:[#allocation5 + $0x798] sm:$0xff]  ;;  %8473 = vmatpush1.bf16.msra.mxu0 %v8472_v47  ;;  %v8392_v27 = vpack.c.bf16 %v909_v2, %v905_v35  ;;  %v921_v37 = vld [vmem:[#allocation5 + $0x7d0] sm:$0xff]  ;;  %v3295_v35 = vld [vmem:[#allocation8 + $0x120] sm:$0xff] }
 0x21d   : > { %1984 = vmatprep.mubr.f32.mxu1 %v11978_v55  ;;  %8385 = vmatpush1.bf16.msra.mxu1 %v8384_v62  ;;  %v8474_v55 = vpack.c.bf16 %v3280_v4, %v3276_v11  ;;  %v8394_v14 = vpack.c.bf16 %v918_v49, %v914_v51  ;;  %v3288_v62 = vld [vmem:[#allocation8 + $0xe8] sm:$0xff]  ;;  %v8400_v51 = vpack.c.bf16 %v925_v38, %v921_v37 }
 0x21e   : > { %1722 = vmatmul.mubr.f32.gmra.mrb[22].mxu0 %v549_v29  ;;  %8387 = vmatprep.subr.bf16.mxu1 %v8386_v41  ;;  %v917_v29 = vld [vmem:[#allocation5 + $0x7b0] sm:$0xff]  ;;  %v3287_v41 = vld [vmem:[#allocation8 + $0xe0] sm:$0xff] }
 0x21f   : > { %1727 = vmatprep.mubr.f32.mxu0 %v556_v6  ;;  %8475 = vmatprep.subr.bf16.mxu0 %v8474_v55  ;;  %v3284_v6 = vld [vmem:[#allocation8 + $0xc8] sm:$0xff]  ;;  %v8480_v44 = vpack.c.bf16 %v3287_v41, %v3283_v28  ;;  %v8396_v60 = vpack.c.bf16 %v917_v29, %v913_v19  ;;  %v3307_v19 = vld [vmem:[#allocation8 + $0x180] sm:$0xff]  ;;  %v598_v41 = vld [vmem:[%s11866_s14 + $0x3b8] sm:$0xff] }
 0x220   : > { %1985 = vmatmul.mubr.f32.gmra.mrb[88].mxu1 %v11984_v7  ;;  %v922_v7 = vld [vmem:[#allocation5 + $0x7d8] sm:$0xff]  ;;  %8477 = vmatpush1.bf16.msra.mxu0 %v8476_v15  ;;  %v3296_v47 = vld [vmem:[#allocation8 + $0x128] sm:$0xff]  ;;  %v3311_v29 = vld [vmem:[#allocation8 + $0x1a0] sm:$0xff] }
 0x221   : > { %1990 = vmatprep.mubr.f32.mxu1 %v11988_v12  ;;  %8389 = vmatpush1.bf16.msra.mxu1 %v8388_v61  ;;  %v8478_v12 = vpack.c.bf16 %v3288_v62, %v3284_v6  ;;  %v8398_v32 = vpack.c.bf16 %v926_v22, %v922_v7  ;;  %v3291_v61 = vld [vmem:[#allocation8 + $0x100] sm:$0xff]  ;;  %v3304_v49 = vld [vmem:[#allocation8 + $0x168] sm:$0xff]  ;;  %v586_v15 = vld [vmem:[%s11866_s14 + $0x358] sm:$0xff] }
 0x222   : > { %1728 = vmatmul.mubr.f32.gmra.mrb[24].mxu0 %v555_v24  ;;  %8391 = vmatprep.subr.bf16.mxu1 %v8390_v1  ;;  %v3292_v24 = vld [vmem:[#allocation8 + $0x108] sm:$0xff]  ;;  %v8484_v2 = vpack.c.bf16 %v3295_v35, %v3291_v61  ;;  %v3315_v22 = vld [vmem:[#allocation8 + $0x1c0] sm:$0xff] }
 0x223   : > { %1733 = vmatprep.mubr.f32.mxu0 %v562_v10  ;;  %8479 = vmatprep.subr.bf16.mxu0 %v8478_v12  ;;  %v934_v10 = vld [vmem:[#allocation5 + $0x838] sm:$0xff]  ;;  %v573_v1 = vld [vmem:[%s11866_s14 + $0x2f0] sm:$0xff]  ;;  %v580_v11 = vld [vmem:[%s11866_s14 + $0x328] sm:$0xff] }
 0x224   : > { %1991 = vmatmul.mubr.f32.gmra.mrb[90].mxu1 %v11993_v21  ;;  %v930_v21 = vld [vmem:[#allocation5 + $0x818] sm:$0xff]  ;;  %8481 = vmatpush1.bf16.msra.mxu0 %v8480_v44  ;;  %v592_v7 = vld [vmem:[%s11866_s14 + $0x388] sm:$0xff] }
 0x225   : > { %1996 = vmatprep.mubr.f32.mxu1 %v11998_v31  ;;  %8393 = vmatpush1.bf16.msra.mxu1 %v8392_v27  ;;  %v8482_v31 = vpack.c.bf16 %v3296_v47, %v3292_v24  ;;  %v8402_v4 = vpack.c.bf16 %v934_v10, %v930_v21  ;;  %v3312_v27 = vld [vmem:[#allocation8 + $0x1a8] sm:$0xff]  ;;  %v3319_v12 = vld [vmem:[#allocation8 + $0x1e0] sm:$0xff] }
 0x226   : > { %1734 = vmatmul.mubr.f32.gmra.mrb[26].mxu0 %v561_v0  ;;  %8395 = vmatprep.subr.bf16.mxu1 %v8394_v14  ;;  %v579_v0 = vld [vmem:[%s11866_s14 + $0x320] sm:$0xff]  ;;  %v585_v14 = vld [vmem:[%s11866_s14 + $0x350] sm:$0xff]  ;;  %v8496_v28 = vpack.c.bf16 %v3319_v12, %v3315_v22  ;;  %v604_v38 = vld [vmem:[%s11866_s14 + $0x3e8] sm:$0xff] }
 0x227   : > { %1739 = vmatprep.mubr.f32.mxu0 %v568_v59  ;;  %8483 = vmatprep.subr.bf16.mxu0 %v8482_v31  ;;  %v3308_v59 = vld [vmem:[#allocation8 + $0x188] sm:$0xff]  ;;  %v3331_v24 = vld [vmem:[#allocation8 + $0x240] sm:$0xff]  ;;  %v610_v31 = vld [vmem:[%s11866_s14 + $0x418] sm:$0xff] }
 0x228   : > { %1997 = vmatmul.mubr.f32.gmra.mrb[92].mxu1 %v12004_v45  ;;  %v3300_v45 = vld [vmem:[#allocation8 + $0x148] sm:$0xff]  ;;  %8485 = vmatpush1.bf16.msra.mxu0 %v8484_v2  ;;  %v3335_v47 = vld [vmem:[#allocation8 + $0x260] sm:$0xff] }
 0x229   : > { %2002 = vmatprep.mubr.f32.mxu1 %v12008_v50  ;;  %8397 = vmatpush1.bf16.msra.mxu1 %v8396_v60  ;;  %v8486_v55 = vpack.c.bf16 %v3304_v49, %v3300_v45  ;;  %v8488_v50 = vpack.c.bf16 %v3303_v18, %v3299_v53  ;;  %v3316_v6 = vld [vmem:[#allocation8 + $0x1c8] sm:$0xff]  ;;  %v3327_v60 = vld [vmem:[#allocation8 + $0x220] sm:$0xff]  ;;  %v8504_v10 = vpack.c.bf16 %v3335_v47, %v3331_v24 }
 0x22a   : > { %1740 = vmatmul.mubr.f32.gmra.mrb[28].mxu0 %v567_v33  ;;  %8399 = vmatprep.subr.bf16.mxu1 %v8398_v32  ;;  %v3320_v62 = vld [vmem:[#allocation8 + $0x1e8] sm:$0xff]  ;;  %v3339_v2 = vld [vmem:[#allocation8 + $0x280] sm:$0xff] }
 0x22b   : > { %1745 = vmatprep.mubr.f32.mxu0 %v574_v46  ;;  %8487 = vmatprep.subr.bf16.mxu0 %v8486_v55  ;;  %v3324_v33 = vld [vmem:[#allocation8 + $0x208] sm:$0xff]  ;;  %v3323_v46 = vld [vmem:[#allocation8 + $0x200] sm:$0xff] }
 0x22c   : > { %2003 = vmatmul.mubr.f32.gmra.mrb[94].mxu1 %v12012_v54  ;;  %8489 = vmatpush1.bf16.msra.mxu0 %v8488_v50  ;;  %v8490_v54 = vpack.c.bf16 %v3312_v27, %v3308_v59  ;;  %v3328_v44 = vld [vmem:[#allocation8 + $0x228] sm:$0xff]  ;;  %v8500_v37 = vpack.c.bf16 %v3327_v60, %v3323_v46  ;;  %v3347_v53 = vld [vmem:[#allocation8 + $0x2c0] sm:$0xff] }
 0x22d   : > { %2008 = vmatprep.mubr.f32.mxu1 %v12018_v8  ;;  %8401 = vmatpush1.bf16.msra.mxu1 %v8400_v51  ;;  %v8492_v8 = vpack.c.bf16 %v3311_v29, %v3307_v19  ;;  %v3332_v32 = vld [vmem:[#allocation8 + $0x248] sm:$0xff]  ;;  %v3351_v18 = vld [vmem:[#allocation8 + $0x2e0] sm:$0xff] }
 0x22e   : > { %1746 = vmatmul.mubr.f32.gmra.mrb[30].mxu0 %v573_v1  ;;  %8403 = vmatprep.subr.bf16.mxu1 %v8402_v4  ;;  %v3336_v21 = vld [vmem:[#allocation8 + $0x268] sm:$0xff]  ;;  %v3343_v1 = vld [vmem:[#allocation8 + $0x2a0] sm:$0xff] }
 0x22f   : > { %1751 = vmatprep.mubr.f32.mxu0 %v580_v11  ;;  %8491 = vmatprep.subr.bf16.mxu0 %v8490_v54  ;;  %v3340_v61 = vld [vmem:[#allocation8 + $0x288] sm:$0xff]  ;;  %v8508_v51 = vpack.c.bf16 %v3343_v1, %v3339_v2  ;;  %v615_v50 = vld [vmem:[%s11866_s14 + $0x440] sm:$0xff] }
 0x230   : > { %2009 = vmatmul.mubr.f32.gmra.mrb[96].mxu1 %v12023_v16  ;;  %8493 = vmatpush1.bf16.msra.mxu0 %v8492_v8  ;;  %v8494_v16 = vpack.c.bf16 %v3320_v62, %v3316_v6  ;;  %v3344_v35 = vld [vmem:[#allocation8 + $0x2a8] sm:$0xff]  ;;  %v3355_v19 = vld [vmem:[#allocation8 + $0x300] sm:$0xff] }
 0x231   : > { %2014 = vmatprep.mubr.f32.mxu1 %v12028_v26  ;;  %v591_v26 = vld [vmem:[%s11866_s14 + $0x380] sm:$0xff]  ;;  %v616_v4 = vld [vmem:[%s11866_s14 + $0x448] sm:$0xff]  ;;  %v621_v8 = vld [vmem:[%s11866_s14 + $0x470] sm:$0xff] }
 0x232   : > { %1752 = vmatmul.mubr.f32.gmra.mrb[32].mxu0 %v579_v0  ;;  %8495 = vmatprep.subr.bf16.mxu0 %v8494_v16  ;;  %v3348_v45 = vld [vmem:[#allocation8 + $0x2c8] sm:$0xff]  ;;  %v3359_v29 = vld [vmem:[#allocation8 + $0x320] sm:$0xff] }
 0x233   : > { %1757 = vmatprep.mubr.f32.mxu0 %v586_v15  ;;  %v3352_v49 = vld [vmem:[#allocation8 + $0x2e8] sm:$0xff]  ;;  %v622_v15 = vld [vmem:[%s11866_s14 + $0x478] sm:$0xff]  ;;  %v3363_v22 = vld [vmem:[#allocation8 + $0x340] sm:$0xff] }
 0x234   : > { %2015 = vmatmul.mubr.f32.gmra.mrb[98].mxu1 %v12034_v39  ;;  %8497 = vmatpush1.bf16.msra.mxu0 %v8496_v28  ;;  %v8498_v39 = vpack.c.bf16 %v3328_v44, %v3324_v33  ;;  %v3356_v59 = vld [vmem:[#allocation8 + $0x308] sm:$0xff]  ;;  %v3367_v12 = vld [vmem:[#allocation8 + $0x360] sm:$0xff] }
 0x235   : > { %2020 = vmatprep.mubr.f32.mxu1 %v12038_v43  ;;  %v597_v43 = vld [vmem:[%s11866_s14 + $0x3b0] sm:$0xff]  ;;  %v627_v28 = vld [vmem:[%s11866_s14 + $0x4a0] sm:$0xff] }
 0x236   : > { %1758 = vmatmul.mubr.f32.gmra.mrb[34].mxu0 %v585_v14  ;;  %8499 = vmatprep.subr.bf16.mxu0 %v8498_v39  ;;  %v3360_v27 = vld [vmem:[#allocation8 + $0x328] sm:$0xff]  ;;  %v3371_v46 = vld [vmem:[#allocation8 + $0x380] sm:$0xff] }
 0x237   : > { %1763 = vmatprep.mubr.f32.mxu0 %v592_v7  ;;  %v628_v7 = vld [vmem:[%s11866_s14 + $0x4a8] sm:$0xff] }
 0x238   : > { %2021 = vmatmul.mubr.f32.gmra.mrb[100].mxu1 %v12044_v56  ;;  %8501 = vmatpush1.bf16.msra.mxu0 %v8500_v37  ;;  %v8502_v56 = vpack.c.bf16 %v3336_v21, %v3332_v32  ;;  %v3364_v6 = vld [vmem:[#allocation8 + $0x348] sm:$0xff]  ;;  %v3375_v60 = vld [vmem:[#allocation8 + $0x3a0] sm:$0xff] }
 0x239   : > { %2026 = vmatprep.mubr.f32.mxu1 %v12048_v58  ;;  %v603_v58 = vld [vmem:[%s11866_s14 + $0x3e0] sm:$0xff]  ;;  %v3368_v62 = vld [vmem:[#allocation8 + $0x368] sm:$0xff] }
 0x23a   : > { %1764 = vmatmul.mubr.f32.gmra.mrb[36].mxu0 %v591_v26  ;;  %8503 = vmatprep.subr.bf16.mxu0 %v8502_v56  ;;  %v3372_v33 = vld [vmem:[#allocation8 + $0x388] sm:$0xff]  ;;  %v3379_v24 = vld [vmem:[#allocation8 + $0x3c0] sm:$0xff] }
 0x23b   : > { %1769 = vmatprep.mubr.f32.mxu0 %v598_v41  ;;  %v634_v41 = vld [vmem:[%s11866_s14 + $0x4d8] sm:$0xff]  ;;  %v3376_v44 = vld [vmem:[#allocation8 + $0x3a8] sm:$0xff] }
 0x23c   : > { %2027 = vmatmul.mubr.f32.gmra.mrb[102].mxu1 %v12054_v63  ;;  %8505 = vmatpush1.bf16.msra.mxu0 %v8504_v10  ;;  %v8506_v63 = vpack.c.bf16 %v3344_v35, %v3340_v61  ;;  %v633_v37 = vld [vmem:[%s11866_s14 + $0x4d0] sm:$0xff]  ;;  %v639_v10 = vld [vmem:[%s11866_s14 + $0x500] sm:$0xff]  ;;  %v652_v35 = vld [vmem:[%s11866_s14 + $0x568] sm:$0xff] }
 0x23d   : > { %2032 = vmatprep.mubr.f32.mxu1 %v12058_v3  ;;  %v609_v3 = vld [vmem:[%s11866_s14 + $0x410] sm:$0xff] }
 0x23e   : > { %1770 = vmatmul.mubr.f32.gmra.mrb[38].mxu0 %v597_v43  ;;  %8507 = vmatprep.subr.bf16.mxu0 %v8506_v63  ;;  %v3380_v32 = vld [vmem:[#allocation8 + $0x3c8] sm:$0xff] }
 0x23f   : > { %1775 = vmatprep.mubr.f32.mxu0 %v604_v38  ;;  %v640_v38 = vld [vmem:[%s11866_s14 + $0x508] sm:$0xff] }
 0x240   : > { %2033 = vmatmul.mubr.f32.gmra.mrb[104].mxu1 %v12064_v5  ;;  %8509 = vmatpush1.bf16.msra.mxu0 %v8508_v51  ;;  %v8510_v5 = vpack.c.bf16 %v3352_v49, %v3348_v45  ;;  %v3384_v21 = vld [vmem:[#allocation8 + $0x3e8] sm:$0xff] }
 0x241   : > { %2038 = vmatprep.mubr.f32.mxu1 %v12068_v9  ;;  %v8512_v9 = vpack.c.bf16 %v3351_v18, %v3347_v53  ;;  %v16320_v2 = vld [vmem:[#allocation30_spill] sm:$0xff]  ;;  %v16323_v53 = vld [vmem:[#allocation33_spill] sm:$0xff] }
 0x242   : > { %1776 = vmatmul.mubr.f32.gmra.mrb[40].mxu0 %v603_v58  ;;  %8511 = vmatprep.subr.bf16.mxu0 %v8510_v5  ;;  %v657_v45 = vld [vmem:[%s11866_s14 + $0x590] sm:$0xff]  ;;  %v664_v49 = vld [vmem:[%s11866_s14 + $0x5c8] sm:$0xff] }
 0x243   : > { %1781 = vmatprep.mubr.f32.mxu0 %v610_v31  ;;  %v12265_v11 = vpop.f32.mrb[0].mxu1  ;;  %v646_v31 = vld [vmem:[%s11866_s14 + $0x538] sm:$0xff]  ;;  %v16324_v18 = vld [vmem:[#allocation34_spill] sm:$0xff] }
 0x244   : > { %v12268_v55 = vpop.f32.mrb[1].mxu1  ;;  %2039 = vmatmul.mubr.f32.gmra.mrb[106].mxu1 %v12074_v13  ;;  %8513 = vmatpush1.bf16.msra.mxu0 %v8512_v9  ;;  %v8514_v13 = vpack.c.bf16 %v3360_v27, %v3356_v59  ;;  %v663_v9 = vld [vmem:[%s11866_s14 + $0x5c0] sm:$0xff]  ;;  %v16325_v27 = vld [vmem:[#allocation35_spill] sm:$0xff] }
 0x245   : > { %2044 = vmatprep.mubr.f32.mxu1 %v12078_v17  ;;  %v8516_v17 = vpack.c.bf16 %v3359_v29, %v3355_v19  ;;  %v669_v19 = vld [vmem:[%s11866_s14 + $0x5f0] sm:$0xff] }
 0x246   : > { %1782 = vmatmul.mubr.f32.gmra.mrb[42].mxu0 %v609_v3  ;;  %8515 = vmatprep.subr.bf16.mxu0 %v8514_v13  ;;  %v16321_v3 = vld [vmem:[#allocation31_spill] sm:$0xff]  ;;  %v16326_v13 = vld [vmem:[#allocation36_spill] sm:$0xff] }
 0x247   : > { %1787 = vmatprep.mubr.f32.mxu0 %v616_v4  ;;  %v12273_v0 = vpop.f32.mrb[2].mxu1  ;;  %v16322_v4 = vld [vmem:[#allocation32_spill] sm:$0xff]  ;;  %v929_v29 = vld [vmem:[#allocation5 + $0x810] sm:$0xff] }
 0x248   : > { %v12276_v54 = vpop.f32.mrb[3].mxu1  ;;  %2045 = vmatmul.mubr.f32.gmra.mrb[108].mxu1 %v12084_v20  ;;  %8517 = vmatpush1.bf16.msra.mxu0 %v8516_v17  ;;  %v8518_v20 = vpack.c.bf16 %v3368_v62, %v3364_v6  ;;  %v933_v17 = vld [vmem:[#allocation5 + $0x830] sm:$0xff]  ;;  %v942_v6 = vld [vmem:[#allocation5 + $0x878] sm:$0xff] }
 0x249   : > { %2050 = vmatprep.mubr.f32.mxu1 %v12088_v23  ;;  %v8520_v23 = vpack.c.bf16 %v3367_v12, %v3363_v22  ;;  %v11039_v22 = vld [vmem:[%s11866_s14 + $0x18] sm:$0xff]  ;;  %v8404_v12 = vpack.c.bf16 %v933_v17, %v929_v29 }
 0x24a   : > { %1788 = vmatmul.mubr.f32.gmra.mrb[44].mxu0 %v615_v50  ;;  %8519 = vmatprep.subr.bf16.mxu0 %v8518_v20  ;;  %v16327_v20 = vld [vmem:[#allocation37_spill] sm:$0xff]  ;;  %v974_v29 = vld [vmem:[#allocation5 + $0x978] sm:$0xff] }
 0x24b   : > { %1793 = vmatprep.mubr.f32.mxu0 %v622_v15  ;;  %v12281_v14 = vpop.f32.mrb[4].mxu1  ;;  %v670_v15 = vld [vmem:[%s11866_s14 + $0x5f8] sm:$0xff] }
 0x24c   : > { %v12284_v16 = vpop.f32.mrb[5].mxu1  ;;  %2051 = vmatmul.mubr.f32.gmra.mrb[110].mxu1 %v12094_v25  ;;  %8521 = vmatpush1.bf16.msra.mxu0 %v8520_v23  ;;  %v8522_v25 = vpack.c.bf16 %v3376_v44, %v3372_v33  ;;  %v946_v44 = vld [vmem:[#allocation5 + $0x898] sm:$0xff] }
 0x24d   : > { %2056 = vmatprep.mubr.f32.mxu1 %v12098_v30  ;;  %v8524_v30 = vpack.c.bf16 %v3375_v60, %v3371_v46  ;;  %v11040_v60 = vld [vmem:[%s11866_s14 + $0x10] sm:$0xff] }
 0x24e   : > { %1794 = vmatmul.mubr.f32.gmra.mrb[46].mxu0 %v621_v8  ;;  %8523 = vmatprep.subr.bf16.mxu0 %v8522_v25  ;;  %v950_v25 = vld [vmem:[#allocation5 + $0x8b8] sm:$0xff] }
 0x24f   : > { %1799 = vmatprep.mubr.f32.mxu0 %v628_v7  ;;  %v12289_v26 = vpop.f32.mrb[6].mxu1  ;;  %v938_v7 = vld [vmem:[#allocation5 + $0x858] sm:$0xff] }
 0x250   : > { %v12292_v39 = vpop.f32.mrb[7].mxu1  ;;  %2057 = vmatmul.mubr.f32.gmra.mrb[112].mxu1 %v12104_v34  ;;  %8525 = vmatpush1.bf16.msra.mxu0 %v8524_v30  ;;  %v8526_v34 = vpack.c.bf16 %v3384_v21, %v3380_v32  ;;  %v8406_v23 = vpack.c.bf16 %v942_v6, %v938_v7  ;;  %v11041_v30 = vld [vmem:[%s11866_s14 + $0x48] sm:$0xff]  ;;  %v945_v32 = vld [vmem:[#allocation5 + $0x890] sm:$0xff]  ;;  %v11046_v7 = vld [vmem:[%s11866_s14 + $0xa0] sm:$0xff] }
 0x251   : > { %2062 = vmatprep.mubr.f32.mxu1 %v12108_v36  ;;  %v3383_v36 = vld [vmem:[#allocation8 + $0x3e0] sm:$0xff]  ;;  %v949_v21 = vld [vmem:[#allocation5 + $0x8b0] sm:$0xff]  ;;  %v11047_v6 = vld [vmem:[%s11866_s14 + $0xd8] sm:$0xff] }
 0x252   : > { %1800 = vmatmul.mubr.f32.gmra.mrb[48].mxu0 %v627_v28  ;;  %v8528_v47 = vpack.c.bf16 %v3383_v36, %v3379_v24  ;;  %8527 = vmatprep.subr.bf16.mxu0 %v8526_v34  ;;  %v937_v28 = vld [vmem:[#allocation5 + $0x850] sm:$0xff]  ;;  %v954_v24 = vld [vmem:[#allocation5 + $0x8d8] sm:$0xff] }
 0x253   : > { %1805 = vmatprep.mubr.f32.mxu0 %v634_v41  ;;  %v12297_v43 = vpop.f32.mrb[8].mxu1  ;;  %v941_v41 = vld [vmem:[#allocation5 + $0x870] sm:$0xff]  ;;  %v958_v36 = vld [vmem:[#allocation5 + $0x8f8] sm:$0xff] }
 0x254   : > { %v12300_v56 = vpop.f32.mrb[9].mxu1  ;;  %2063 = vmatmul.mubr.f32.gmra.mrb[114].mxu1 %v12114_v40  ;;  %8529 = vmatpush1.bf16.msra.mxu0 %v8528_v47  ;;  %v645_v40 = vld [vmem:[%s11866_s14 + $0x530] sm:$0xff] }
 0x255   : > { %2068 = vmatprep.mubr.f32.mxu1 %v12118_v42 }
 0x256   : > { %1806 = vmatmul.mubr.f32.gmra.mrb[50].mxu0 %v633_v37  ;;  %v8408_v37 = vpack.c.bf16 %v941_v41, %v937_v28  ;;  %v978_v41 = vld [vmem:[#allocation5 + $0x998] sm:$0xff] }
 0x257   : > { %1811 = vmatprep.mubr.f32.mxu0 %v640_v38  ;;  %v12305_v58 = vpop.f32.mrb[10].mxu1  ;;  %v8410_v38 = vpack.c.bf16 %v950_v25, %v946_v44  ;;  %v982_v44 = vld [vmem:[#allocation5 + $0x9b8] sm:$0xff] }
 0x258   : > { %v12308_v61 = vpop.f32.mrb[11].mxu1  ;;  %2069 = vmatmul.mubr.f32.gmra.mrb[116].mxu1 %v12124_v48  ;;  %v651_v48 = vld [vmem:[%s11866_s14 + $0x560] sm:$0xff] }
 0x259   : > { %2074 = vmatprep.mubr.f32.mxu1 %v12128_v52  ;;  %v658_v52 = vld [vmem:[%s11866_s14 + $0x598] sm:$0xff] }
 0x25a   : > { %1812 = vmatmul.mubr.f32.gmra.mrb[52].mxu0 %v639_v10  ;;  %v11042_v10 = vld [vmem:[%s11866_s14 + $0x40] sm:$0xff] }
 0x25b   : > { %1817 = vmatprep.mubr.f32.mxu0 %v646_v31  ;;  %v12313_v42 = vpop.f32.mrb[12].mxu1  ;;  %v11043_v31 = vld [vmem:[%s11866_s14 + $0x78] sm:$0xff] }
 0x25c   : > { %v12316_v63 = vpop.f32.mrb[13].mxu1  ;;  %2075 = vmatmul.mubr.f32.gmra.mrb[118].mxu1 %v12134_v57 }
 0x25d   : > { %2080 = vmatprep.mubr.f32.mxu1 %v16320_v2  ;;  %v953_v2 = vld [vmem:[#allocation5 + $0x8d0] sm:$0xff] }
 0x25e   : > { %1818 = vmatmul.mubr.f32.gmra.mrb[54].mxu0 %v645_v40  ;;  %v8412_v40 = vpack.c.bf16 %v949_v21, %v945_v32  ;;  %v977_v32 = vld [vmem:[#allocation5 + $0x990] sm:$0xff] }
 0x25f   : > { %1823 = vmatprep.mubr.f32.mxu0 %v652_v35  ;;  %v12321_v1 = vpop.f32.mrb[14].mxu1  ;;  %v8414_v35 = vpack.c.bf16 %v958_v36, %v954_v24  ;;  %v981_v21 = vld [vmem:[#allocation5 + $0x9b0] sm:$0xff]  ;;  %v986_v36 = vld [vmem:[#allocation5 + $0x9d8] sm:$0xff] }
 0x260   : > { %v12324_v51 = vpop.f32.mrb[15].mxu1  ;;  %2081 = vmatmul.mubr.f32.gmra.mrb[120].mxu1 %v16321_v3  ;;  %v962_v3 = vld [vmem:[#allocation5 + $0x918] sm:$0xff] }
 0x261   : > { %2086 = vmatprep.mubr.f32.mxu1 %v16322_v4  ;;  %v966_v4 = vld [vmem:[#allocation5 + $0x938] sm:$0xff] }
 0x262   : > { %1824 = vmatmul.mubr.f32.gmra.mrb[56].mxu0 %v651_v48  ;;  %v957_v48 = vld [vmem:[#allocation5 + $0x8f0] sm:$0xff] }
 0x263   : > { %1829 = vmatprep.mubr.f32.mxu0 %v658_v52  ;;  %v12329_v57 = vpop.f32.mrb[16].mxu1 }
 0x264   : > { %v12332_v5 = vpop.f32.mrb[17].mxu1  ;;  %2087 = vmatmul.mubr.f32.gmra.mrb[122].mxu1 %v16323_v53  ;;  %v11045_v53 = vld [vmem:[%s11866_s14 + $0xa8] sm:$0xff] }
 0x265   : > { %2092 = vmatprep.mubr.f32.mxu1 %v16324_v18  ;;  %v8416_v18 = vpack.c.bf16 %v957_v48, %v953_v2  ;;  %v8428_v2 = vpack.c.bf16 %v981_v21, %v977_v32  ;;  %v1010_v21 = vld [vmem:[#allocation5 + $0xa98] sm:$0xff] }
 0x266   : > { %1830 = vmatmul.mubr.f32.gmra.mrb[58].mxu0 %v657_v45 }
 0x267   : > { %1835 = vmatprep.mubr.f32.mxu0 %v664_v49  ;;  %v12337_v50 = vpop.f32.mrb[18].mxu1  ;;  %v11044_v49 = vld [vmem:[%s11866_s14 + $0x70] sm:$0xff] }
 0x268   : > { %v12340_v59 = vpop.f32.mrb[19].mxu1  ;;  %2093 = vmatmul.mubr.f32.gmra.mrb[124].mxu1 %v16325_v27  ;;  %v965_v27 = vld [vmem:[#allocation5 + $0x930] sm:$0xff] }
 0x269   : > { %2098 = vmatprep.mubr.f32.mxu1 %v16326_v13 }
 0x26a   : > { %1836 = vmatmul.mubr.f32.gmra.mrb[60].mxu0 %v663_v9  ;;  %v8418_v9 = vpack.c.bf16 %v966_v4, %v962_v3  ;;  %v985_v3 = vld [vmem:[#allocation5 + $0x9d0] sm:$0xff] }
 0x26b   : > { %1841 = vmatprep.mubr.f32.mxu0 %v670_v15  ;;  %v12345_v8 = vpop.f32.mrb[20].mxu1  ;;  %v961_v15 = vld [vmem:[#allocation5 + $0x910] sm:$0xff] }
 0x26c   : > { %v12347_v62 = vpop.f32.mrb[21].mxu1  ;;  %2099 = vmatmul.mubr.f32.gmra.mrb[126].mxu1 %v16327_v20  ;;  %v8420_v20 = vpack.c.bf16 %v965_v27, %v961_v15  ;;  %v989_v4 = vld [vmem:[#allocation5 + $0x9f0] sm:$0xff]  ;;  %v11053_v27 = vld [vmem:[%s11866_s14 + $0x168] sm:$0xff] }
 0x26d   : > { %2169 = vmatprep.mubr.f32.mxu1 %v11039_v22  ;;  %v11052_v15 = vld [vmem:[%s11866_s14 + $0x130] sm:$0xff] }
 0x26e   : > { %1842 = vmatmul.mubr.f32.gmra.mrb[62].mxu0 %v669_v19  ;;  %v970_v19 = vld [vmem:[#allocation5 + $0x958] sm:$0xff] }
 0x26f   : > { %v12351_v33 = vpop.f32.mrb[22].mxu1  ;;  %v8422_v22 = vpack.c.bf16 %v974_v29, %v970_v19  ;;  %v8432_v19 = vpack.c.bf16 %v989_v4, %v985_v3  ;;  %v1009_v3 = vld [vmem:[#allocation5 + $0xa90] sm:$0xff] }
 0x270   : > { %v12353_v46 = vpop.f32.mrb[23].mxu1  ;;  %2170 = vmatmul.mubr.f32.vlgmr.msra.gmra.mrb[64].mxu1 %v11040_v60  ;;  %v11048_v60 = vld [vmem:[%s11866_s14 + $0xd0] sm:$0xff] }
 0x271   : > { %8405 = vmatpush1.bf16.msra.mxu1 %v8404_v12  ;;  %2175 = vmatprep.mubr.f32.mxu1 %v11041_v30  ;;  %v969_v12 = vld [vmem:[#allocation5 + $0x950] sm:$0xff]  ;;  %v11049_v30 = vld [vmem:[%s11866_s14 + $0x108] sm:$0xff] }
 0x272   : > { %8407 = vmatprep.subr.bf16.mxu1 %v8406_v23  ;;  %v973_v23 = vld [vmem:[#allocation5 + $0x970] sm:$0xff] }
 0x273   : > { %v12357_v34 = vpop.f32.mrb[24].mxu1  ;;  %v1013_v4 = vld [vmem:[#allocation5 + $0xab0] sm:$0xff] }
 0x274   : > { %v12359_v47 = vpop.f32.mrb[25].mxu1  ;;  %2176 = vmatmul.mubr.f32.gmra.mrb[66].mxu1 %v11042_v10  ;;  %v990_v10 = vld [vmem:[#allocation5 + $0x9f8] sm:$0xff] }
 0x275   : > { %2181 = vmatprep.mubr.f32.mxu1 %v11043_v31  ;;  %8409 = vmatpush1.bf16.msra.mxu1 %v8408_v37  ;;  %v8424_v37 = vpack.c.bf16 %v973_v23, %v969_v12  ;;  %v8430_v48 = vpack.c.bf16 %v990_v10, %v986_v36  ;;  %v1006_v12 = vld [vmem:[#allocation5 + $0xa78] sm:$0xff] }
 0x276   : > { %8411 = vmatprep.subr.bf16.mxu1 %v8410_v38  ;;  %v8426_v38 = vpack.c.bf16 %v982_v44, %v978_v41  ;;  %v11054_v41 = vld [vmem:[%s11866_s14 + $0x160] sm:$0xff]  ;;  %v11055_v44 = vld [vmem:[%s11866_s14 + $0x198] sm:$0xff] }
 0x277   : > { %v12363_v52 = vpop.f32.mrb[26].mxu1  ;;  %v1014_v36 = vld [vmem:[#allocation5 + $0xab8] sm:$0xff] }
 0x278   : > { %v12365_v45 = vpop.f32.mrb[27].mxu1  ;;  %2182 = vmatmul.mubr.f32.gmra.mrb[68].mxu1 %v11044_v49 }
 0x279   : > { %2187 = vmatprep.mubr.f32.mxu1 %v11045_v53  ;;  %8413 = vmatpush1.bf16.msra.mxu1 %v8412_v40  ;;  %v11050_v40 = vld [vmem:[%s11866_s14 + $0x100] sm:$0xff]  ;;  %v994_v53 = vld [vmem:[#allocation5 + $0xa18] sm:$0xff] }
 0x27a   : > { %8415 = vmatprep.subr.bf16.mxu1 %v8414_v35  ;;  %v11051_v35 = vld [vmem:[%s11866_s14 + $0x138] sm:$0xff] }
 0x27b   : > { %v12369_v13 = vpop.f32.mrb[28].mxu1 }
 0x27c   : > { %v12371_v17 = vpop.f32.mrb[29].mxu1  ;;  %2188 = vmatmul.mubr.f32.gmra.mrb[70].mxu1 %v11046_v7  ;;  %v993_v7 = vld [vmem:[#allocation5 + $0xa10] sm:$0xff] }
 0x27d   : > { %2193 = vmatprep.mubr.f32.mxu1 %v11047_v6  ;;  %8417 = vmatpush1.bf16.msra.mxu1 %v8416_v18  ;;  %v998_v18 = vld [vmem:[#allocation5 + $0xa38] sm:$0xff]  ;;  %v997_v6 = vld [vmem:[#allocation5 + $0xa30] sm:$0xff] }
 0x27e   : > { %8419 = vmatprep.subr.bf16.mxu1 %v8418_v9  ;;  %v8434_v29 = vpack.c.bf16 %v998_v18, %v994_v53  ;;  %v1018_v18 = vld [vmem:[#allocation5 + $0xad8] sm:$0xff] }
 0x27f   : > { %v12375_v28 = vpop.f32.mrb[30].mxu1 }
 0x280   : > { %v12377_v25 = vpop.f32.mrb[31].mxu1  ;;  %2194 = vmatmul.mubr.f32.gmra.mrb[72].mxu1 %v11048_v60  ;;  %v8436_v60 = vpack.c.bf16 %v997_v6, %v993_v7  ;;  %v8444_v7 = vpack.c.bf16 %v1013_v4, %v1009_v3  ;;  %v1038_v3 = vld [vmem:[#allocation5 + $0xb78] sm:$0xff] }
 0x281   : > { %2199 = vmatprep.mubr.f32.mxu1 %v11049_v30  ;;  %8421 = vmatpush1.bf16.msra.mxu1 %v8420_v20 }
 0x282   : > { %8423 = vmatprep.subr.bf16.mxu1 %v8422_v22  ;;  %v1002_v22 = vld [vmem:[#allocation5 + $0xa58] sm:$0xff] }
 0x283   : > { %v12381_v24 = vpop.f32.mrb[32].mxu1  ;;  %v8438_v30 = vpack.c.bf16 %v1006_v12, %v1002_v22  ;;  %v1017_v22 = vld [vmem:[#allocation5 + $0xad0] sm:$0xff] }
 0x284   : > { %v12383_v31 = vpop.f32.mrb[33].mxu1  ;;  %2200 = vmatmul.mubr.f32.gmra.mrb[74].mxu1 %v11050_v40  ;;  %v11056_v40 = vld [vmem:[%s11866_s14 + $0x190] sm:$0xff] }
 0x285   : > { %2205 = vmatprep.mubr.f32.mxu1 %v11051_v35  ;;  %8425 = vmatpush1.bf16.msra.mxu1 %v8424_v37  ;;  %v1001_v37 = vld [vmem:[#allocation5 + $0xa50] sm:$0xff]  ;;  %v11057_v35 = vld [vmem:[%s11866_s14 + $0x1c8] sm:$0xff] }
 0x286   : > { %8427 = vmatprep.subr.bf16.mxu1 %v8426_v38  ;;  %v1005_v38 = vld [vmem:[#allocation5 + $0xa70] sm:$0xff] }
 0x287   : > { %v12387_v49 = vpop.f32.mrb[34].mxu1  ;;  %v1021_v12 = vld [vmem:[#allocation5 + $0xaf0] sm:$0xff] }
 0x288   : > { %v12389_v9 = vpop.f32.mrb[35].mxu1  ;;  %2206 = vmatmul.mubr.f32.gmra.mrb[76].mxu1 %v11052_v15  ;;  %v1022_v15 = vld [vmem:[#allocation5 + $0xaf8] sm:$0xff] }
 0x289   : > { %2211 = vmatprep.mubr.f32.mxu1 %v11053_v27  ;;  %8429 = vmatpush1.bf16.msra.mxu1 %v8428_v2  ;;  %v8440_v2 = vpack.c.bf16 %v1005_v38, %v1001_v37  ;;  %v8446_v6 = vpack.c.bf16 %v1022_v15, %v1018_v18  ;;  %v11060_v37 = vld [vmem:[%s11866_s14 + $0x1f0] sm:$0xff]  ;;  %v11061_v38 = vld [vmem:[%s11866_s14 + $0x228] sm:$0xff]  ;;  %v11062_v18 = vld [vmem:[%s11866_s14 + $0x220] sm:$0xff] }
 0x28a   : > { %8431 = vmatprep.subr.bf16.mxu1 %v8430_v48  ;;  %v8442_v48 = vpack.c.bf16 %v1014_v36, %v1010_v21  ;;  %v8448_v21 = vpack.c.bf16 %v1021_v12, %v1017_v22  ;;  %v11063_v15 = vld [vmem:[%s11866_s14 + $0x258] sm:$0xff] }
 0x28b   : > { %v12393_v20 = vpop.f32.mrb[36].mxu1  ;;  %v1042_v12 = vld [vmem:[#allocation5 + $0xb98] sm:$0xff] }
 0x28c   : > { %v12395_v23 = vpop.f32.mrb[37].mxu1  ;;  %2212 = vmatmul.mubr.f32.gmra.mrb[78].mxu1 %v11054_v41 }
 0x28d   : > { %2217 = vmatprep.mubr.f32.mxu1 %v11055_v44  ;;  %8433 = vmatpush1.bf16.msra.mxu1 %v8432_v19  ;;  %v11058_v19 = vld [vmem:[%s11866_s14 + $0x1c0] sm:$0xff]  ;;  %v1026_v44 = vld [vmem:[#allocation5 + $0xb18] sm:$0xff] }
 0x28e   : > { %8435 = vmatprep.subr.bf16.mxu1 %v8434_v29  ;;  %v11059_v29 = vld [vmem:[%s11866_s14 + $0x1f8] sm:$0xff] }
 0x28f   : > { %v12399_v32 = vpop.f32.mrb[38].mxu1 }
 0x290   : > { %v12401_v10 = vpop.f32.mrb[39].mxu1  ;;  %2218 = vmatmul.mubr.f32.gmra.mrb[80].mxu1 %v11056_v40  ;;  %v1025_v40 = vld [vmem:[#allocation5 + $0xb10] sm:$0xff] }
 0x291   : > { %2223 = vmatprep.mubr.f32.mxu1 %v11057_v35  ;;  %8437 = vmatpush1.bf16.msra.mxu1 %v8436_v60  ;;  %v1030_v60 = vld [vmem:[#allocation5 + $0xb38] sm:$0xff]  ;;  %v1029_v35 = vld [vmem:[#allocation5 + $0xb30] sm:$0xff] }
 0x292   : > { %8439 = vmatprep.subr.bf16.mxu1 %v8438_v30  ;;  %v8450_v36 = vpack.c.bf16 %v1030_v60, %v1026_v44  ;;  %v1046_v44 = vld [vmem:[#allocation5 + $0xbb8] sm:$0xff] }
 0x293   : > { %v12405_v53 = vpop.f32.mrb[40].mxu1 }
 0x294   : > { %v12407_v27 = vpop.f32.mrb[41].mxu1  ;;  %2224 = vmatmul.mubr.f32.gmra.mrb[82].mxu1 %v11058_v19  ;;  %v8452_v19 = vpack.c.bf16 %v1029_v35, %v1025_v40  ;;  %v1045_v40 = vld [vmem:[#allocation5 + $0xbb0] sm:$0xff] }
 0x295   : > { %2229 = vmatprep.mubr.f32.mxu1 %v11059_v29  ;;  %8441 = vmatpush1.bf16.msra.mxu1 %v8440_v2 }
 0x296   : > { %8443 = vmatprep.subr.bf16.mxu1 %v8442_v48  ;;  %v1034_v48 = vld [vmem:[#allocation5 + $0xb58] sm:$0xff] }
 0x297   : > { %v12411_v41 = vpop.f32.mrb[42].mxu1  ;;  %v8454_v29 = vpack.c.bf16 %v1038_v3, %v1034_v48  ;;  %v1050_v48 = vld [vmem:[#allocation5 + $0xbd8] sm:$0xff] }
 0x298   : > { %v12413_v30 = vpop.f32.mrb[43].mxu1  ;;  %2230 = vmatmul.mubr.f32.gmra.mrb[84].mxu1 %v11060_v37  ;;  %v11064_v37 = vld [vmem:[%s11866_s14 + $0x250] sm:$0xff]  ;;  %v1054_v3 = vld [vmem:[#allocation5 + $0xbf8] sm:$0xff] }
 0x299   : > { %2235 = vmatprep.mubr.f32.mxu1 %v11061_v38  ;;  %8445 = vmatpush1.bf16.msra.mxu1 %v8444_v7  ;;  %v1033_v7 = vld [vmem:[#allocation5 + $0xb50] sm:$0xff]  ;;  %v11065_v38 = vld [vmem:[%s11866_s14 + $0x288] sm:$0xff] }
 0x29a   : > { %8447 = vmatprep.subr.bf16.mxu1 %v8446_v6  ;;  %v1037_v6 = vld [vmem:[#allocation5 + $0xb70] sm:$0xff] }
 0x29b   : > { %v12417_v2 = vpop.f32.mrb[44].mxu1 }
 0x29c   : > { %v12419_v4 = vpop.f32.mrb[45].mxu1  ;;  %2236 = vmatmul.mubr.f32.gmra.mrb[86].mxu1 %v11062_v18  ;;  %v8456_v18 = vpack.c.bf16 %v1037_v6, %v1033_v7  ;;  %v1053_v7 = vld [vmem:[#allocation5 + $0xbf0] sm:$0xff] }
 0x29d   : > { %2241 = vmatprep.mubr.f32.mxu1 %v11063_v15  ;;  %8449 = vmatpush1.bf16.msra.mxu1 %v8448_v21  ;;  %v8458_v21 = vpack.c.bf16 %v1046_v44, %v1042_v12  ;;  %v11068_v44 = vld [vmem:[%s11866_s14 + $0x2b0] sm:$0xff] }
 0x29e   : > { %8451 = vmatprep.subr.bf16.mxu1 %v8450_v36  ;;  %v1041_v36 = vld [vmem:[#allocation5 + $0xb90] sm:$0xff] }
 0x29f   : > { %v12423_v22 = vpop.f32.mrb[46].mxu1 }
 0x2a0   : > { %16328 = vst [vmem:[#allocation30_spill] sm:$0xff] %v12423_v22  ;;  %v12425_v60 = vpop.f32.mrb[47].mxu1  ;;  %2242 = vmatmul.mubr.f32.gmra.mrb[88].mxu1 %v11064_v37  ;;  %v11067_v22 = vld [vmem:[%s11866_s14 + $0x2b8] sm:$0xff]  ;;  %v8460_v37 = vpack.c.bf16 %v1045_v40, %v1041_v36 }
 0x2a1   : > { %16329 = vst [vmem:[#allocation31_spill] sm:$0xff] %v12425_v60  ;;  %2247 = vmatprep.mubr.f32.mxu1 %v11065_v38  ;;  %8453 = vmatpush1.bf16.msra.mxu1 %v8452_v19  ;;  %v11066_v60 = vld [vmem:[%s11866_s14 + $0x280] sm:$0xff]  ;;  %v8462_v19 = vpack.c.bf16 %v1054_v3, %v1050_v48  ;;  %v11069_v38 = vld [vmem:[%s11866_s14 + $0x2e8] sm:$0xff]  ;;  %v11071_v36 = vld [vmem:[%s11866_s14 + $0x318] sm:$0xff] }
 0x2a2   : > { %8455 = vmatprep.subr.bf16.mxu1 %v8454_v29  ;;  %v1049_v29 = vld [vmem:[#allocation5 + $0xbd0] sm:$0xff]  ;;  %v3262_v40 = vld [vmem:[#allocation8 + $0x18] sm:$0xff] }
 0x2a3   : > { %v12429_v35 = vpop.f32.mrb[48].mxu1  ;;  %v3266_v48 = vld [vmem:[#allocation8 + $0x38] sm:$0xff] }
 0x2a4   : > { %16330 = vst [vmem:[#allocation32_spill] sm:$0xff] %v12429_v35  ;;  %v12431_v15 = vpop.f32.mrb[49].mxu1  ;;  %2248 = vmatmul.mubr.f32.gmra.mrb[90].mxu1 %v11066_v60  ;;  %v8464_v60 = vpack.c.bf16 %v1053_v7, %v1049_v29  ;;  %v11073_v29 = vld [vmem:[%s11866_s14 + $0x348] sm:$0xff]  ;;  %v1057_v7 = vlaneseq }
 0x2a5   : > { %16331 = vst [vmem:[#allocation33_spill] sm:$0xff] %v12431_v15  ;;  %2253 = vmatprep.mubr.f32.mxu1 %v11067_v22  ;;  %8457 = vmatpush1.bf16.msra.mxu1 %v8456_v18 }
 0x2a6   : > { %8459 = vmatprep.subr.bf16.mxu1 %v8458_v21  ;;  %v11070_v21 = vld [vmem:[%s11866_s14 + $0x2e0] sm:$0xff] }
 0x2a7   : > { %v12435_v6 = vpop.f32.mrb[50].mxu1 }
 0x2a8   : > { %16332 = vst [vmem:[#allocation34_spill] sm:$0xff] %v12435_v6  ;;  %v12437_v12 = vpop.f32.mrb[51].mxu1  ;;  %2254 = vmatmul.mubr.f32.gmra.mrb[92].mxu1 %v11068_v44  ;;  %v8594_v44 = vpack.c.bf16 %v3266_v48, %v3262_v40  ;;  %v12459_v40 = vshrl.u32 %v1057_v7, 7  ;;  %v11091_v6 = vld [vmem:[%s11866_s14 + $0x4f8] sm:$0xff] }
 0x2a9   : > { %16333 = vst [vmem:[#allocation35_spill] sm:$0xff] %v12437_v12  ;;  %2259 = vmatprep.mubr.f32.mxu1 %v11069_v38  ;;  %8461 = vmatpush1.bf16.msra.mxu1 %v8460_v37 }
 0x2aa   : > { %8463 = vmatprep.subr.bf16.mxu1 %v8462_v19  ;;  %v11072_v19 = vld [vmem:[%s11866_s14 + $0x310] sm:$0xff]  ;;  %16340 = vst [vmem:[#allocation42_spill] sm:$0xff] %v12459_v40 }
 0x2ab   : > { %v12441_v22 = vpop.f32.mrb[52].mxu1 }
 0x2ac   : > { %16334 = vst [vmem:[#allocation36_spill] sm:$0xff] %v12441_v22  ;;  %v12443_v18 = vpop.f32.mrb[53].mxu1  ;;  %2260 = vmatmul.mubr.f32.gmra.mrb[94].mxu1 %v11070_v21  ;;  %v11084_v22 = vld [vmem:[%s11866_s14 + $0x430] sm:$0xff] }
 0x2ad   : > { %16335 = vst [vmem:[#allocation37_spill] sm:$0xff] %v12443_v18  ;;  %2265 = vmatprep.mubr.f32.mxu1 %v11071_v36  ;;  %8465 = vmatpush1.bf16.msra.mxu1 %v8464_v60  ;;  %v11074_v60 = vld [vmem:[%s11866_s14 + $0x340] sm:$0xff]  ;;  %v11075_v36 = vld [vmem:[%s11866_s14 + $0x378] sm:$0xff] }
 0x2ae   : > { %8595 = vmatprep.subr.bf16.mxu1 %v8594_v44  ;;  %v11077_v44 = vld [vmem:[%s11866_s14 + $0x3a8] sm:$0xff] }
 0x2af   : > { %v12447_v3 = vpop.f32.mrb[54].mxu1 }
 0x2b0   : > { %16336 = vst [vmem:[#allocation38_spill] sm:$0xff] %v12447_v3  ;;  %v12449_v37 = vpop.f32.mrb[55].mxu1  ;;  %2266 = vmatmul.mubr.f32.gmra.mrb[96].mxu1 %v11072_v19  ;;  %v11081_v3 = vld [vmem:[%s11866_s14 + $0x408] sm:$0xff] }
 0x2b1   : > { %16337 = vst [vmem:[#allocation39_spill] sm:$0xff] %v12449_v37  ;;  %2271 = vmatprep.mubr.f32.mxu1 %v11073_v29  ;;  %v11076_v37 = vld [vmem:[%s11866_s14 + $0x370] sm:$0xff]  ;;  %v12468_v29 = vsub.s32 0, %v12459_v40 }
 0x2b3   : > { %v12453_v38 = vpop.f32.mrb[56].mxu1  ;;  %16343 = vst [vmem:[#allocation45_spill] sm:$0xff] %v12468_v29 }
 0x2b4   : > { %16338 = vst [vmem:[#allocation40_spill] sm:$0xff] %v12453_v38  ;;  %v12455_v21 = vpop.f32.mrb[57].mxu1  ;;  %2272 = vmatmul.mubr.f32.gmra.mrb[98].mxu1 %v11074_v60  ;;  %v1055_v60 = vld [vmem:[#allocation7] sm:$0xf] }
 0x2b5   : > { %16339 = vst [vmem:[#allocation41_spill] sm:$0xff] %v12455_v21  ;;  %2277 = vmatprep.mubr.f32.mxu1 %v11075_v36  ;;  %v12473_v36 = vsub.s32 1, %v12459_v40  ;;  %v11080_v40 = vld [vmem:[%s11866_s14 + $0x3d0] sm:$0xff] }
 0x2b7   : > { %v12461_v48 = vpop.f32.mrb[58].mxu1  ;;  %16345 = vst [vmem:[#allocation47_spill] sm:$0xff] %v12473_v36  ;;  %v12485_v38 = vrot.slane %v1055_v60, %v12473_v36  ;;  %v11083_v36 = vld [vmem:[%s11866_s14 + $0x438] sm:$0xff] }
 0x2b8   : > { %16341 = vst [vmem:[#allocation43_spill] sm:$0xff] %v12461_v48  ;;  %v12463_v19 = vpop.f32.mrb[59].mxu1  ;;  %2278 = vmatmul.mubr.f32.gmra.mrb[100].mxu1 %v11076_v37  ;;  %v11078_v48 = vld [vmem:[%s11866_s14 + $0x3a0] sm:$0xff]  ;;  %v12480_v37 = vrot.slane %v1055_v60, %v12468_v29 }
 0x2b9   : > { %16342 = vst [vmem:[#allocation44_spill] sm:$0xff] %v12463_v19  ;;  %2283 = vmatprep.mubr.f32.mxu1 %v11077_v44  ;;  %v11079_v19 = vld [vmem:[%s11866_s14 + $0x3d8] sm:$0xff] }
 0x2bb   : > { %v12470_v21 = vpop.f32.mrb[60].mxu1 }
 0x2bc   : > { %16344 = vst [vmem:[#allocation46_spill] sm:$0xff] %v12470_v21  ;;  %v12475_v7 = vpop.f32.mrb[61].mxu1  ;;  %2284 = vmatmul.mubr.f32.gmra.mrb[102].mxu1 %v11078_v48  ;;  %v1144_v48 = vadd.f32 %v12265_v11, %v12480_v37  ;;  %v1152_v11 = vadd.f32 %v12276_v54, %v12485_v38 }
 0x2bd   : > { %16346 = vst [vmem:[#allocation48_spill] sm:$0xff] %v12475_v7  ;;  %2289 = vmatprep.mubr.f32.mxu1 %v11079_v19  ;;  %v1146_v19 = vadd.f32 %v12268_v55, %v12485_v38  ;;  %v11082_v7 = vld [vmem:[%s11866_s14 + $0x400] sm:$0xff] }
 0x2bf   : > { %v12482_v44 = vpop.f32.mrb[62].mxu1 }
 0x2c0   : > { %16347 = vst [vmem:[#allocation49_spill] sm:$0xff] %v12482_v44  ;;  %v12487_v21 = vpop.f32.mrb[63].mxu1  ;;  %2290 = vmatmul.mubr.f32.gmra.mrb[104].mxu1 %v11080_v40 }
 0x2c1   : > { %16348 = vst [vmem:[#allocation50_spill] sm:$0xff] %v12487_v21  ;;  %2295 = vmatprep.mubr.f32.mxu1 %v11081_v3  ;;  %v1150_v3 = vadd.f32 %v12273_v0, %v12480_v37  ;;  %v1156_v0 = vadd.f32 %v12281_v14, %v12480_v37 }
 0x2c4   : > { %2296 = vmatmul.mubr.f32.gmra.mrb[106].mxu1 %v11082_v7 }
 0x2c5   : > { %v1657_v29 = vpop.f32.mrb[0].mxu0  ;;  %2301 = vmatprep.mubr.f32.mxu1 %v11083_v36  ;;  %v11085_v36 = vld [vmem:[%s11866_s14 + $0x468] sm:$0xff] }
 0x2c6   : > { %v12496_v44 = vadd.f32 %v1657_v29, %v1144_v48  ;;  %v1659_v60 = vpop.f32.mrb[1].mxu0 }
 0x2c7   : > { %v9109_v21 = vadd.f32 %v1659_v60, %v1146_v19  ;;  %v1158_v19 = vadd.f32 %v12284_v16, %v12485_v38 }
 0x2c8   : > { %v2747_v40 = vmul.f32 0.70710677, %v12496_v44  ;;  %2302 = vmatmul.mubr.f32.gmra.mrb[108].mxu1 %v11084_v22 }
 0x2c9   : > { %v2748_v18 = vmul.f32 0.70710677, %v9109_v21  ;;  %v1663_v55 = vpop.f32.mrb[2].mxu0  ;;  %2307 = vmatprep.mubr.f32.mxu1 %v11085_v36  ;;  %v1168_v36 = vadd.f32 %v12297_v43, %v12480_v37  ;;  %v12542_v43 = vadd.f32 %v12313_v42, %v12480_v37  ;;  %v12560_v42 = vadd.f32 %v12329_v57, %v12480_v37 }
 0x2ca   : > { %10261 = verf.f32 %v2747_v40  ;;  %v12505_v29 = vadd.f32 %v1663_v55, %v1150_v3  ;;  %v1665_v7 = vpop.f32.mrb[3].mxu0  ;;  %v11086_v3 = vld [vmem:[%s11866_s14 + $0x460] sm:$0xff]  ;;  %v1162_v55 = vadd.f32 %v12289_v26, %v12480_v37  ;;  %v1176_v26 = vadd.f32 %v12308_v61, %v12485_v38 }
 0x2cb   : > { %10263 = verf.f32 %v2748_v18  ;;  %v12508_v48 = vadd.f32 %v1665_v7, %v1152_v11  ;;  %v11087_v11 = vld [vmem:[%s11866_s14 + $0x498] sm:$0xff]  ;;  %v1164_v7 = vadd.f32 %v12292_v39, %v12485_v38  ;;  %v12552_v61 = vadd.f32 %v12321_v1, %v12480_v37 }
 0x2cc   : > { %v2751_v54 = vmul.f32 0.70710677, %v12505_v29  ;;  %2308 = vmatmul.mubr.f32.gmra.mrb[110].mxu1 %v11086_v3  ;;  %v12569_v1 = vadd.f32 %v12337_v50, %v12480_v37  ;;  %v2619_v50 = vmul.f32 0.5, %v12496_v44  ;;  %v12596_v44 = vadd.f32 %v12351_v33, %v12480_v37  ;;  %v11093_v33 = vld [vmem:[%s11866_s14 + $0x528] sm:$0xff] }
 0x2cd   : > { %v2752_v22 = vmul.f32 0.70710677, %v12508_v48  ;;  %v1669_v60 = vpop.f32.mrb[4].mxu0  ;;  %2313 = vmatprep.mubr.f32.mxu1 %v11087_v11  ;;  %v2623_v35 = vmul.f32 0.5, %v12505_v29  ;;  %v12620_v29 = vadd.f32 %v12357_v34, %v12480_v37  ;;  %v11095_v34 = vld [vmem:[%s11866_s14 + $0x558] sm:$0xff] }
 0x2ce   : > { %10265 = verf.f32 %v2751_v54  ;;  %v12517_v40 = vadd.f32 %v1669_v60, %v1156_v0  ;;  %v1671_v18 = vpop.f32.mrb[5].mxu0  ;;  %v1170_v0 = vadd.f32 %v12300_v56, %v12485_v38  ;;  %v11088_v60 = vld [vmem:[%s11866_s14 + $0x490] sm:$0xff]  ;;  %v12546_v56 = vadd.f32 %v12316_v63, %v12485_v38 }
 0x2cf   : > { %10267 = verf.f32 %v2752_v22  ;;  %v12520_v14 = vadd.f32 %v1671_v18, %v1158_v19  ;;  %v1174_v19 = vadd.f32 %v12305_v58, %v12480_v37  ;;  %v11089_v18 = vld [vmem:[%s11866_s14 + $0x4c8] sm:$0xff] }
 0x2d0   : > { %v2755_v16 = vmul.f32 0.70710677, %v12517_v40  ;;  %2314 = vmatmul.mubr.f32.gmra.mrb[112].mxu1 %v11088_v60  ;;  %v11090_v60 = vld [vmem:[%s11866_s14 + $0x4c0] sm:$0xff] }
 0x2d1   : > { %v2756_v54 = vmul.f32 0.70710677, %v12520_v14  ;;  %v1675_v22 = vpop.f32.mrb[6].mxu0  ;;  %2319 = vmatprep.mubr.f32.mxu1 %v11089_v18 }
 0x2d2   : > { %10269 = verf.f32 %v2755_v16  ;;  %v12537_v3 = vadd.f32 %v1675_v22, %v1162_v55  ;;  %v1677_v39 = vpop.f32.mrb[7].mxu0  ;;  %v12556_v55 = vadd.f32 %v12324_v51, %v12485_v38 }
 0x2d3   : > { %10271 = verf.f32 %v2756_v54  ;;  %v12548_v58 = vadd.f32 %v1677_v39, %v1164_v7  ;;  %v12565_v7 = vadd.f32 %v12332_v5, %v12485_v38  ;;  %v2620_v39 = vmul.f32 0.5, %v9109_v21 }
 0x2d4   : > { %v10262_v11 = vpop.eup %10261  ;;  %v2759_v63 = vmul.f32 0.70710677, %v12537_v3  ;;  %2320 = vmatmul.mubr.f32.gmra.mrb[114].mxu1 %v11090_v60  ;;  %v12578_v5 = vadd.f32 %v12340_v59, %v12485_v38  ;;  %v12585_v21 = vadd.f32 %v12345_v8, %v12480_v37 }
 0x2d5   : > { %v10264_v16 = vpop.eup %10263  ;;  %v3003_v54 = vadd.f32 1.0, %v10262_v11  ;;  %v2760_v51 = vmul.f32 0.70710677, %v12548_v58  ;;  %v1681_v22 = vpop.f32.mrb[8].mxu0  ;;  %2325 = vmatprep.mubr.f32.mxu1 %v11091_v6 }
 0x2d6   : > { %v3004_v57 = vadd.f32 1.0, %v10264_v16  ;;  %10273 = verf.f32 %v2759_v63  ;;  %v12573_v18 = vadd.f32 %v1681_v22, %v1168_v36  ;;  %v1683_v12 = vpop.f32.mrb[9].mxu0  ;;  %v12589_v36 = vadd.f32 %v12347_v62, %v12485_v38  ;;  %v3388_v62 = vld [vmem:[#allocation8 + $0x408] sm:$0xff] }
 0x2d7   : > { %10275 = verf.f32 %v2760_v51  ;;  %v12581_v11 = vadd.f32 %v1683_v12, %v1170_v0  ;;  %v12598_v12 = vmul.f32 %v3003_v54, %v2619_v50  ;;  %v11092_v51 = vld [vmem:[%s11866_s14 + $0x4f0] sm:$0xff]  ;;  %v2624_v22 = vmul.f32 0.5, %v12508_v48  ;;  %v3387_v50 = vld [vmem:[#allocation8 + $0x400] sm:$0xff] }
 0x2d8   : > { %v10266_v15 = vpop.eup %10265  ;;  %v2763_v6 = vmul.f32 0.70710677, %v12573_v18  ;;  %v12592_v63 = vmul.f32 %v3004_v57, %v2620_v39  ;;  %2326 = vmatmul.mubr.f32.gmra.mrb[116].mxu1 %v11092_v51  ;;  %v3392_v54 = vld [vmem:[#allocation8 + $0x428] sm:$0xff] }
 0x2d9   : > { %v10268_v59 = vpop.eup %10267  ;;  %v3007_v0 = vadd.f32 1.0, %v10266_v15  ;;  %v2764_v8 = vmul.f32 0.70710677, %v12581_v11  ;;  %v1687_v16 = vpop.f32.mrb[10].mxu0  ;;  %2331 = vmatprep.mubr.f32.mxu1 %v11093_v33  ;;  %v3391_v15 = vld [vmem:[#allocation8 + $0x420] sm:$0xff]  ;;  %v8530_v48 = vpack.c.bf16 %v3392_v54, %v3388_v62 }
 0x2da   : > { %16349 = vst [vmem:[#allocation51_spill] sm:$0xff] %v12592_v63  ;;  %v3008_v60 = vadd.f32 1.0, %v10268_v59  ;;  %10277 = verf.f32 %v2763_v6  ;;  %v12603_v39 = vadd.f32 %v1687_v16, %v1174_v19  ;;  %v1689_v57 = vpop.f32.mrb[11].mxu0  ;;  %3601 = vmatprep.mubr.f32.mxu0 %v12592_v63  ;;  %v12613_v19 = vadd.f32 %v12353_v46, %v12485_v38 }
 0x2db   : > { %10279 = verf.f32 %v2764_v8  ;;  %v12608_v51 = vadd.f32 %v1689_v57, %v1176_v26  ;;  %3602 = vmatmul.mubr.f32.vlgmr.msra.gmra.mrb[64].mxu0 %v12598_v12  ;;  %v8532_v33 = vpack.c.bf16 %v3391_v15, %v3387_v50  ;;  %v11094_v57 = vld [vmem:[%s11866_s14 + $0x520] sm:$0xff]  ;;  %v12624_v54 = vmul.f32 %v3007_v0, %v2623_v35  ;;  %8531 = vmatprep.subr.bf16.mxu0 %v8530_v48 }
 0x2dc   : > { %v10270_v6 = vpop.eup %10269  ;;  %v2767_v59 = vmul.f32 0.70710677, %v12603_v39  ;;  %v12616_v16 = vmul.f32 %v3008_v60, %v2624_v22  ;;  %2332 = vmatmul.mubr.f32.gmra.mrb[118].mxu1 %v11094_v57  ;;  %v2628_v46 = vmul.f32 0.5, %v12520_v14  ;;  %v12634_v15 = vadd.f32 %v12359_v47, %v12485_v38 }
 0x2dd   : > { %v10272_v63 = vpop.eup %10271  ;;  %v3011_v26 = vadd.f32 1.0, %v10270_v6  ;;  %v2768_v8 = vmul.f32 0.70710677, %v12608_v51  ;;  %v1693_v62 = vpop.f32.mrb[12].mxu0  ;;  %2337 = vmatprep.mubr.f32.mxu1 %v11095_v34  ;;  %v2627_v35 = vmul.f32 0.5, %v12517_v40  ;;  %v12647_v0 = vadd.f32 %v12365_v45, %v12485_v38  ;;  %8533 = vmatpush1.bf16.msra.mxu0 %v8532_v33  ;;  %v3396_v45 = vld [vmem:[#allocation8 + $0x448] sm:$0xff] }
 0x2de   : > { %v3012_v22 = vadd.f32 1.0, %v10272_v63  ;;  %10281 = verf.f32 %v2767_v59  ;;  %v12628_v60 = vadd.f32 %v1693_v62, %v12542_v43  ;;  %v1695_v50 = vpop.f32.mrb[13].mxu0  ;;  %3607 = vmatprep.mubr.f32.mxu0 %v12616_v16  ;;  %v12643_v63 = vadd.f32 %v12363_v52, %v12480_v37  ;;  %v3395_v34 = vld [vmem:[#allocation8 + $0x440] sm:$0xff] }
 0x2df   : > { %10283 = verf.f32 %v2768_v8  ;;  %v12638_v14 = vadd.f32 %v1695_v50, %v12546_v56  ;;  %3608 = vmatmul.mubr.f32.gmra.mrb[66].mxu0 %v12624_v54  ;;  %v12654_v56 = vadd.f32 %v12369_v13, %v12480_v37  ;;  %v11096_v8 = vld [vmem:[%s11866_s14 + $0x550] sm:$0xff]  ;;  %v12658_v62 = vmul.f32 %v3011_v26, %v2627_v35  ;;  %v11097_v13 = vld [vmem:[%s11866_s14 + $0x588] sm:$0xff] }
 0x2e0   : > { %v10274_v43 = vpop.eup %10273  ;;  %v2771_v47 = vmul.f32 0.70710677, %v12628_v60  ;;  %v12650_v48 = vmul.f32 %v3012_v22, %v2628_v46  ;;  %2338 = vmatmul.mubr.f32.gmra.mrb[120].mxu1 %v11096_v8  ;;  %v2632_v57 = vmul.f32 0.5, %v12548_v58  ;;  %v3400_v50 = vld [vmem:[#allocation8 + $0x468] sm:$0xff]  ;;  %v2631_v26 = vmul.f32 0.5, %v12537_v3 }
 0x2e1   : > { %v10276_v40 = vpop.eup %10275  ;;  %v3015_v6 = vadd.f32 1.0, %v10274_v43  ;;  %v2772_v59 = vmul.f32 0.70710677, %v12638_v14  ;;  %v1699_v52 = vpop.f32.mrb[14].mxu0  ;;  %2343 = vmatprep.mubr.f32.mxu1 %v11097_v13  ;;  %v3399_v43 = vld [vmem:[#allocation8 + $0x460] sm:$0xff]  ;;  %v8534_v58 = vpack.c.bf16 %v3400_v50, %v3396_v45  ;;  %v12680_v3 = vadd.f32 %v12375_v28, %v12480_v37  ;;  %v11099_v28 = vld [vmem:[%s11866_s14 + $0x5b8] sm:$0xff] }
 0x2e2   : > { %v3016_v46 = vadd.f32 1.0, %v10276_v40  ;;  %10285 = verf.f32 %v2771_v47  ;;  %v12662_v33 = vadd.f32 %v1699_v52, %v12552_v61  ;;  %v1701_v22 = vpop.f32.mrb[15].mxu0  ;;  %3613 = vmatprep.mubr.f32.mxu0 %v12650_v48  ;;  %v12673_v47 = vadd.f32 %v12371_v17, %v12485_v38 }
 0x2e3   : > { %10287 = verf.f32 %v2772_v59  ;;  %v12668_v35 = vadd.f32 %v1701_v22, %v12556_v55  ;;  %3614 = vmatmul.mubr.f32.gmra.mrb[68].mxu0 %v12658_v62  ;;  %v8536_v8 = vpack.c.bf16 %v3399_v43, %v3395_v34  ;;  %v11098_v22 = vld [vmem:[%s11866_s14 + $0x580] sm:$0xff]  ;;  %v12684_v50 = vmul.f32 %v3015_v6, %v2631_v26  ;;  %8535 = vmatprep.subr.bf16.mxu0 %v8534_v58 }
 0x2e4   : > { %v10278_v61 = vpop.eup %10277  ;;  %v2775_v40 = vmul.f32 0.70710677, %v12662_v33  ;;  %v12676_v52 = vmul.f32 %v3016_v46, %v2632_v57  ;;  %2344 = vmatmul.mubr.f32.gmra.mrb[122].mxu1 %v11098_v22  ;;  %v2636_v17 = vmul.f32 0.5, %v12581_v11  ;;  %v12694_v43 = vadd.f32 %v12377_v25, %v12485_v38 }
 0x2e5   : > { %v10280_v13 = vpop.eup %10279  ;;  %v3019_v55 = vadd.f32 1.0, %v10278_v61  ;;  %v2776_v59 = vmul.f32 0.70710677, %v12668_v35  ;;  %v1705_v45 = vpop.f32.mrb[16].mxu0  ;;  %16350 = vst [vmem:[#allocation52_spill] sm:$0xff] %v12684_v50  ;;  %2349 = vmatprep.mubr.f32.mxu1 %v11099_v28  ;;  %v2635_v6 = vmul.f32 0.5, %v12573_v18  ;;  %v12703_v26 = vadd.f32 %v12381_v24, %v12480_v37  ;;  %8537 = vmatpush1.bf16.msra.mxu0 %v8536_v8 }
 0x2e6   : > { %v3020_v57 = vadd.f32 1.0, %v10280_v13  ;;  %10289 = verf.f32 %v2775_v40  ;;  %v12688_v46 = vadd.f32 %v1705_v45, %v12560_v42  ;;  %v1707_v34 = vpop.f32.mrb[17].mxu0  ;;  %3619 = vmatprep.mubr.f32.mxu0 %v12676_v52  ;;  %v12707_v58 = vadd.f32 %v12383_v31, %v12485_v38  ;;  %v3404_v31 = vld [vmem:[#allocation8 + $0x488] sm:$0xff]  ;;  %v3403_v28 = vld [vmem:[#allocation8 + $0x480] sm:$0xff] }
 0x2e7   : > { %10291 = verf.f32 %v2776_v59  ;;  %v12698_v11 = vadd.f32 %v1707_v34, %v12565_v7  ;;  %3620 = vmatmul.mubr.f32.gmra.mrb[70].mxu0 %v12684_v50  ;;  %v12714_v7 = vadd.f32 %v12387_v49, %v12480_v37  ;;  %v11100_v59 = vld [vmem:[%s11866_s14 + $0x5b0] sm:$0xff]  ;;  %v12718_v45 = vmul.f32 %v3019_v55, %v2635_v6  ;;  %v11101_v49 = vld [vmem:[%s11866_s14 + $0x5e8] sm:$0xff] }
 0x2e8   : > { %v10282_v42 = vpop.eup %10281  ;;  %v2779_v25 = vmul.f32 0.70710677, %v12688_v46  ;;  %v12710_v61 = vmul.f32 %v3020_v57, %v2636_v17  ;;  %2350 = vmatmul.mubr.f32.gmra.mrb[124].mxu1 %v11100_v59  ;;  %v2640_v22 = vmul.f32 0.5, %v12608_v51  ;;  %v3408_v34 = vld [vmem:[#allocation8 + $0x4a8] sm:$0xff]  ;;  %v2639_v59 = vmul.f32 0.5, %v12603_v39  ;;  %v12752_v50 = vld [vmem:[#allocation8 + $0x50] sm:$0xff] }
 0x2e9   : > { %v10284_v18 = vpop.eup %10283  ;;  %v3023_v40 = vadd.f32 1.0, %v10282_v42  ;;  %v2780_v13 = vmul.f32 0.70710677, %v12698_v11  ;;  %v1711_v24 = vpop.f32.mrb[18].mxu0  ;;  %16352 = vst [vmem:[#allocation54_spill] sm:$0xff] %v12718_v45  ;;  %2355 = vmatprep.mubr.f32.mxu1 %v11101_v49  ;;  %v3407_v42 = vld [vmem:[#allocation8 + $0x4a0] sm:$0xff]  ;;  %v8538_v51 = vpack.c.bf16 %v3408_v34, %v3404_v31  ;;  %v12733_v6 = vadd.f32 %v12389_v9, %v12485_v38 }
 0x2ea   : > { %16351 = vst [vmem:[#allocation53_spill] sm:$0xff] %v12710_v61  ;;  %v3024_v17 = vadd.f32 1.0, %v10284_v18  ;;  %10293 = verf.f32 %v2779_v25  ;;  %v12722_v8 = vadd.f32 %v1711_v24, %v12569_v1  ;;  %v1713_v57 = vpop.f32.mrb[19].mxu0  ;;  %3625 = vmatprep.mubr.f32.mxu0 %v12710_v61  ;;  %v3261_v24 = vld [vmem:[#allocation8 + $0x10] sm:$0xff]  ;;  %v8540_v39 = vpack.c.bf16 %v3407_v42, %v3403_v28  ;;  %v3270_v61 = vld [vmem:[#allocation8 + $0x58] sm:$0xff] }
 0x2eb   : > { %10295 = verf.f32 %v2780_v13  ;;  %v12728_v55 = vadd.f32 %v1713_v57, %v12578_v5  ;;  %3626 = vmatmul.mubr.f32.gmra.mrb[72].mxu0 %v12718_v45  ;;  %v3265_v49 = vld [vmem:[#allocation8 + $0x30] sm:$0xff]  ;;  %v12740_v5 = vadd.f32 %v12393_v20, %v12480_v37  ;;  %v11102_v45 = vld [vmem:[%s11866_s14 + $0x5e0] sm:$0xff]  ;;  %v12744_v9 = vmul.f32 %v3023_v40, %v2639_v59  ;;  %8539 = vmatprep.subr.bf16.mxu0 %v8538_v51 }
 0x2ec   : > { %v10286_v1 = vpop.eup %10285  ;;  %v2783_v25 = vmul.f32 0.70710677, %v12722_v8  ;;  %v12736_v18 = vmul.f32 %v3024_v17, %v2640_v22  ;;  %2356 = vmatmul.mubr.f32.gmra.mrb[126].mxu1 %v11102_v45  ;;  %v3274_v22 = vld [vmem:[#allocation8 + $0x78] sm:$0xff]  ;;  %v2644_v17 = vmul.f32 0.5, %v12638_v14  ;;  %v12754_v45 = vld [vmem:[#allocation8 + $0x70] sm:$0xff]  ;;  %v2643_v40 = vmul.f32 0.5, %v12628_v60  ;;  %8541 = vmatpush1.bf16.msra.mxu0 %v8540_v39 }
 0x2ed   : > { %v10288_v13 = vpop.eup %10287  ;;  %v3027_v57 = vadd.f32 1.0, %v10286_v1  ;;  %v2784_v31 = vmul.f32 0.70710677, %v12728_v55  ;;  %v1717_v34 = vpop.f32.mrb[20].mxu0  ;;  %16354 = vst [vmem:[#allocation56_spill] sm:$0xff] %v12744_v9  ;;  %v11103_v1 = vld [vmem:[%s11866_s14 + $0x28] sm:$0xff]  ;;  %v12763_v51 = vadd.f32 %v12395_v23, %v12485_v38  ;;  %v8600_v23 = vpack.c.bf16 %v12754_v45, %v12752_v50 }
 0x2ee   : > { %16353 = vst [vmem:[#allocation55_spill] sm:$0xff] %v12736_v18  ;;  %v3028_v28 = vadd.f32 1.0, %v10288_v13  ;;  %10297 = verf.f32 %v2783_v25  ;;  %v12748_v42 = vadd.f32 %v1717_v34, %v12585_v21  ;;  %v1719_v20 = vpop.f32.mrb[21].mxu0  ;;  %3631 = vmatprep.mubr.f32.mxu0 %v12736_v18  ;;  %2426 = vmatprep.mubr.f32.mxu1 %v11103_v1  ;;  %v8596_v21 = vpack.c.bf16 %v3265_v49, %v3261_v24  ;;  %v12768_v1 = vld [vmem:[#allocation8 + $0x98] sm:$0xff] }
 0x2ef   : > { %10299 = verf.f32 %v2784_v31  ;;  %v12758_v14 = vadd.f32 %v1719_v20, %v12589_v36  ;;  %3632 = vmatmul.mubr.f32.gmra.mrb[74].mxu0 %v12744_v9  ;;  %v8598_v34 = vpack.c.bf16 %v3274_v22, %v3270_v61  ;;  %v11104_v24 = vld [vmem:[%s11866_s14 + $0x20] sm:$0xff]  ;;  %v12772_v49 = vmul.f32 %v3027_v57, %v2643_v40 }
 0x2f0   : > { %v10290_v59 = vpop.eup %10289  ;;  %v2787_v25 = vmul.f32 0.70710677, %v12748_v42  ;;  %v12766_v13 = vmul.f32 %v3028_v28, %v2644_v17  ;;  %2427 = vmatmul.mubr.f32.vlgmr.msra.gmra.mrb[64].mxu1 %v11104_v24  ;;  %v3282_v9 = vld [vmem:[#allocation8 + $0xb8] sm:$0xff]  ;;  %v3412_v17 = vld [vmem:[#allocation8 + $0x4c8] sm:$0xff]  ;;  %v2648_v61 = vmul.f32 0.5, %v12668_v35  ;;  %v3411_v57 = vld [vmem:[#allocation8 + $0x4c0] sm:$0xff] }
 0x2f1   : > { %v10292_v60 = vpop.eup %10291  ;;  %v3031_v36 = vadd.f32 1.0, %v10290_v59  ;;  %v2788_v31 = vmul.f32 0.70710677, %v12758_v14  ;;  %v1723_v20 = vpop.f32.mrb[22].mxu0  ;;  %v11105_v59 = vld [vmem:[%s11866_s14 + $0x58] sm:$0xff]  ;;  %v3416_v24 = vld [vmem:[#allocation8 + $0x4e8] sm:$0xff]  ;;  %8597 = vmatpush1.bf16.msra.mxu1 %v8596_v21 }
 0x2f2   : > { %v3032_v22 = vadd.f32 1.0, %v10292_v60  ;;  %10301 = verf.f32 %v2787_v25  ;;  %v12778_v39 = vadd.f32 %v1723_v20, %v12596_v44  ;;  %v1725_v28 = vpop.f32.mrb[23].mxu0  ;;  %3637 = vmatprep.mubr.f32.mxu0 %v12766_v13  ;;  %2432 = vmatprep.mubr.f32.mxu1 %v11105_v59  ;;  %v3415_v40 = vld [vmem:[#allocation8 + $0x4e0] sm:$0xff]  ;;  %v2647_v18 = vmul.f32 0.5, %v12662_v33  ;;  %v12791_v20 = vld [vmem:[#allocation8 + $0x90] sm:$0xff] }
 0x2f3   : > { %10303 = verf.f32 %v2788_v31  ;;  %v12784_v50 = vadd.f32 %v1725_v28, %v12613_v19  ;;  %3638 = vmatmul.mubr.f32.gmra.mrb[76].mxu0 %v12772_v49  ;;  %v8542_v44 = vpack.c.bf16 %v3416_v24, %v3412_v17  ;;  %8599 = vmatprep.subr.bf16.mxu1 %v8598_v34  ;;  %v8602_v60 = vpack.c.bf16 %v3282_v9, %v12768_v1  ;;  %v3281_v33 = vld [vmem:[#allocation8 + $0xb0] sm:$0xff]  ;;  %v3286_v34 = vld [vmem:[#allocation8 + $0xd8] sm:$0xff] }
 0x2f4   : > { %v10294_v35 = vpop.eup %10293  ;;  %v2791_v45 = vmul.f32 0.70710677, %v12778_v39  ;;  %v12788_v25 = vmul.f32 %v3032_v22, %v2648_v61  ;;  %v8544_v31 = vpack.c.bf16 %v3415_v40, %v3411_v57  ;;  %v12795_v19 = vadd.f32 %v12399_v32, %v12480_v37  ;;  %v11106_v24 = vld [vmem:[%s11866_s14 + $0x50] sm:$0xff]  ;;  %v3290_v9 = vld [vmem:[#allocation8 + $0xf8] sm:$0xff]  ;;  %v11107_v40 = vld [vmem:[%s11866_s14 + $0x88] sm:$0xff] }
 0x2f5   : > { %v10296_v59 = vpop.eup %10295  ;;  %v3035_v21 = vadd.f32 1.0, %v10294_v35  ;;  %v2792_v17 = vmul.f32 0.70710677, %v12784_v50  ;;  %v1729_v28 = vpop.f32.mrb[24].mxu0  ;;  %2433 = vmatmul.mubr.f32.gmra.mrb[66].mxu1 %v11106_v24  ;;  %v12799_v61 = vmul.f32 %v3031_v36, %v2647_v18  ;;  %8543 = vmatprep.subr.bf16.mxu0 %v8542_v44  ;;  %v2652_v1 = vmul.f32 0.5, %v12698_v11  ;;  %v12807_v35 = vld [vmem:[#allocation8 + $0xd0] sm:$0xff] }
 0x2f6   : > { %v3036_v22 = vadd.f32 1.0, %v10296_v59  ;;  %10305 = verf.f32 %v2791_v45  ;;  %v12803_v57 = vadd.f32 %v1729_v28, %v12620_v29  ;;  %v1731_v32 = vpop.f32.mrb[25].mxu0  ;;  %3643 = vmatprep.mubr.f32.mxu0 %v12788_v25  ;;  %2438 = vmatprep.mubr.f32.mxu1 %v11107_v40  ;;  %v12809_v24 = vld [vmem:[#allocation8 + $0xf0] sm:$0xff]  ;;  %v2651_v18 = vmul.f32 0.5, %v12688_v46 }
 0x2f7   : > { %10307 = verf.f32 %v2792_v17  ;;  %v12813_v36 = vadd.f32 %v1731_v32, %v12634_v15  ;;  %3644 = vmatmul.mubr.f32.gmra.mrb[78].mxu0 %v12799_v61  ;;  %8601 = vmatpush1.bf16.msra.mxu1 %v8600_v23  ;;  %v8604_v29 = vpack.c.bf16 %v3281_v33, %v12791_v20  ;;  %v12819_v44 = vadd.f32 %v12401_v10, %v12485_v38  ;;  %v12824_v17 = vld [vmem:[#allocation8 + $0x118] sm:$0xff] }
 0x2f8   : > { %v10298_v11 = vpop.eup %10297  ;;  %v2795_v45 = vmul.f32 0.70710677, %v12803_v57  ;;  %v12822_v59 = vmul.f32 %v3036_v22, %v2652_v1  ;;  %8603 = vmatprep.subr.bf16.mxu1 %v8602_v60  ;;  %v8606_v46 = vpack.c.bf16 %v3290_v9, %v3286_v34  ;;  %8545 = vmatpush1.bf16.msra.mxu0 %v8544_v31  ;;  %v11108_v33 = vld [vmem:[%s11866_s14 + $0x80] sm:$0xff]  ;;  %v12828_v32 = vmul.f32 %v3035_v21, %v2651_v18  ;;  %v3420_v22 = vld [vmem:[#allocation8 + $0x508] sm:$0xff]  ;;  %v11109_v40 = vld [vmem:[%s11866_s14 + $0xb8] sm:$0xff] }
 0x2f9   : > { %v10300_v15 = vpop.eup %10299  ;;  %v3039_v28 = vadd.f32 1.0, %v10298_v11  ;;  %v2796_v23 = vmul.f32 0.70710677, %v12813_v36  ;;  %v1735_v20 = vpop.f32.mrb[26].mxu0  ;;  %2439 = vmatmul.mubr.f32.gmra.mrb[68].mxu1 %v11108_v33  ;;  %v8608_v10 = vpack.c.bf16 %v12809_v24, %v12807_v35  ;;  %v3298_v1 = vld [vmem:[#allocation8 + $0x138] sm:$0xff]  ;;  %v2656_v60 = vmul.f32 0.5, %v12728_v55 }
 0x2fa   : > { %v3040_v34 = vadd.f32 1.0, %v10300_v15  ;;  %10309 = verf.f32 %v2795_v45  ;;  %v12834_v31 = vadd.f32 %v1735_v20, %v12643_v63  ;;  %v1737_v9 = vpop.f32.mrb[27].mxu0  ;;  %3649 = vmatprep.mubr.f32.mxu0 %v12822_v59  ;;  %2444 = vmatprep.mubr.f32.mxu1 %v11109_v40  ;;  %v3424_v11 = vld [vmem:[#allocation8 + $0x528] sm:$0xff]  ;;  %v3419_v21 = vld [vmem:[#allocation8 + $0x500] sm:$0xff]  ;;  %v2655_v33 = vmul.f32 0.5, %v12722_v8  ;;  %v12847_v20 = vld [vmem:[#allocation8 + $0x110] sm:$0xff] }
 0x2fb   : > { %v3423_v18 = vld [vmem:[#allocation8 + $0x520] sm:$0xff]  ;;  %10311 = verf.f32 %v2796_v23  ;;  %v12840_v35 = vadd.f32 %v1737_v9, %v12647_v0  ;;  %3650 = vmatmul.mubr.f32.gmra.mrb[80].mxu0 %v12828_v32  ;;  %8605 = vmatpush1.bf16.msra.mxu1 %v8604_v29  ;;  %v8546_v63 = vpack.c.bf16 %v3424_v11, %v3420_v22  ;;  %v8610_v15 = vpack.c.bf16 %v3298_v1, %v12824_v17  ;;  %v3297_v8 = vld [vmem:[#allocation8 + $0x130] sm:$0xff]  ;;  %v3306_v17 = vld [vmem:[#allocation8 + $0x178] sm:$0xff] }
 0x2fc   : > { %v10302_v55 = vpop.eup %10301  ;;  %v2799_v24 = vmul.f32 0.70710677, %v12834_v31  ;;  %v12844_v45 = vmul.f32 %v3040_v34, %v2656_v60  ;;  %8607 = vmatprep.subr.bf16.mxu1 %v8606_v46  ;;  %v8548_v23 = vpack.c.bf16 %v3423_v18, %v3419_v21  ;;  %v12851_v0 = vadd.f32 %v12405_v53, %v12480_v37  ;;  %v11110_v11 = vld [vmem:[%s11866_s14 + $0xb0] sm:$0xff]  ;;  %v3302_v46 = vld [vmem:[#allocation8 + $0x158] sm:$0xff]  ;;  %v11111_v18 = vld [vmem:[%s11866_s14 + $0xe8] sm:$0xff] }
 0x2fd   : > { %v10304_v40 = vpop.eup %10303  ;;  %v3043_v29 = vadd.f32 1.0, %v10302_v55  ;;  %v2800_v22 = vmul.f32 0.70710677, %v12840_v35  ;;  %v1741_v9 = vpop.f32.mrb[28].mxu0  ;;  %2445 = vmatmul.mubr.f32.gmra.mrb[70].mxu1 %v11110_v11  ;;  %v12855_v60 = vmul.f32 %v3039_v28, %v2655_v33  ;;  %8547 = vmatprep.subr.bf16.mxu0 %v8546_v63  ;;  %v2660_v1 = vmul.f32 0.5, %v12758_v14  ;;  %v12863_v55 = vld [vmem:[#allocation8 + $0x150] sm:$0xff] }
 0x2fe   : > { %v3044_v34 = vadd.f32 1.0, %v10304_v40  ;;  %10313 = verf.f32 %v2799_v24  ;;  %v12859_v21 = vadd.f32 %v1741_v9, %v12654_v56  ;;  %v1743_v53 = vpop.f32.mrb[29].mxu0  ;;  %3655 = vmatprep.mubr.f32.mxu0 %v12844_v45  ;;  %2450 = vmatprep.mubr.f32.mxu1 %v11111_v18  ;;  %v12865_v11 = vld [vmem:[#allocation8 + $0x170] sm:$0xff]  ;;  %v2659_v28 = vmul.f32 0.5, %v12748_v42 }
 0x2ff   : > { %10315 = verf.f32 %v2800_v22  ;;  %v12869_v33 = vadd.f32 %v1743_v53, %v12673_v47  ;;  %3656 = vmatmul.mubr.f32.gmra.mrb[82].mxu0 %v12855_v60  ;;  %8609 = vmatpush1.bf16.msra.mxu1 %v8608_v10  ;;  %v8612_v56 = vpack.c.bf16 %v3297_v8, %v12847_v20  ;;  %v12875_v63 = vadd.f32 %v12407_v27, %v12485_v38  ;;  %v12880_v22 = vld [vmem:[#allocation8 + $0x198] sm:$0xff] }
 0x300   : > { %v10306_v14 = vpop.eup %10305  ;;  %v2803_v24 = vmul.f32 0.70710677, %v12859_v21  ;;  %v12878_v40 = vmul.f32 %v3044_v34, %v2660_v1  ;;  %8611 = vmatprep.subr.bf16.mxu1 %v8610_v15  ;;  %v8614_v42 = vpack.c.bf16 %v3306_v17, %v3302_v46  ;;  %8549 = vmatpush1.bf16.msra.mxu0 %v8548_v23  ;;  %v11112_v8 = vld [vmem:[%s11866_s14 + $0xe0] sm:$0xff]  ;;  %v12884_v53 = vmul.f32 %v3043_v29, %v2659_v28  ;;  %v3428_v34 = vld [vmem:[#allocation8 + $0x548] sm:$0xff]  ;;  %v11113_v18 = vld [vmem:[%s11866_s14 + $0x118] sm:$0xff] }
 0x301   : > { %v10308_v47 = vpop.eup %10307  ;;  %v3047_v9 = vadd.f32 1.0, %v10306_v14  ;;  %v2804_v10 = vmul.f32 0.70710677, %v12869_v33  ;;  %v1747_v20 = vpop.f32.mrb[30].mxu0  ;;  %2451 = vmatmul.mubr.f32.gmra.mrb[72].mxu1 %v11112_v8  ;;  %v8616_v27 = vpack.c.bf16 %v12865_v11, %v12863_v55  ;;  %v3314_v1 = vld [vmem:[#allocation8 + $0x1b8] sm:$0xff]  ;;  %v2664_v15 = vmul.f32 0.5, %v12784_v50 }
 0x302   : > { %v3048_v46 = vadd.f32 1.0, %v10308_v47  ;;  %10317 = verf.f32 %v2803_v24  ;;  %v12890_v23 = vadd.f32 %v1747_v20, %v12680_v3  ;;  %v1749_v17 = vpop.f32.mrb[31].mxu0  ;;  %3661 = vmatprep.mubr.f32.mxu0 %v12878_v40  ;;  %2456 = vmatprep.mubr.f32.mxu1 %v11113_v18  ;;  %v3432_v14 = vld [vmem:[#allocation8 + $0x568] sm:$0xff]  ;;  %v3427_v29 = vld [vmem:[#allocation8 + $0x540] sm:$0xff]  ;;  %v2663_v8 = vmul.f32 0.5, %v12778_v39  ;;  %v12903_v20 = vld [vmem:[#allocation8 + $0x190] sm:$0xff] }
 0x303   : > { %v3431_v28 = vld [vmem:[#allocation8 + $0x560] sm:$0xff]  ;;  %10319 = verf.f32 %v2804_v10  ;;  %v12896_v55 = vadd.f32 %v1749_v17, %v12694_v43  ;;  %3662 = vmatmul.mubr.f32.gmra.mrb[84].mxu0 %v12884_v53  ;;  %8613 = vmatpush1.bf16.msra.mxu1 %v8612_v56  ;;  %v8550_v3 = vpack.c.bf16 %v3432_v14, %v3428_v34  ;;  %v8618_v47 = vpack.c.bf16 %v3314_v1, %v12880_v22  ;;  %v3313_v39 = vld [vmem:[#allocation8 + $0x1b0] sm:$0xff]  ;;  %v3322_v22 = vld [vmem:[#allocation8 + $0x1f8] sm:$0xff] }
 0x304   : > { %v10310_v50 = vpop.eup %10309  ;;  %v2807_v11 = vmul.f32 0.70710677, %v12890_v23  ;;  %v12900_v24 = vmul.f32 %v3048_v46, %v2664_v15  ;;  %8615 = vmatprep.subr.bf16.mxu1 %v8614_v42  ;;  %v8552_v10 = vpack.c.bf16 %v3431_v28, %v3427_v29  ;;  %v12907_v43 = vadd.f32 %v12411_v41, %v12480_v37  ;;  %v11114_v14 = vld [vmem:[%s11866_s14 + $0x110] sm:$0xff]  ;;  %v3318_v42 = vld [vmem:[#allocation8 + $0x1d8] sm:$0xff]  ;;  %v11115_v28 = vld [vmem:[%s11866_s14 + $0x148] sm:$0xff] }
 0x305   : > { %v10312_v18 = vpop.eup %10311  ;;  %v3051_v56 = vadd.f32 1.0, %v10310_v50  ;;  %v2808_v34 = vmul.f32 0.70710677, %v12896_v55  ;;  %v1753_v17 = vpop.f32.mrb[32].mxu0  ;;  %2457 = vmatmul.mubr.f32.gmra.mrb[74].mxu1 %v11114_v14  ;;  %v12911_v15 = vmul.f32 %v3047_v9, %v2663_v8  ;;  %8551 = vmatprep.subr.bf16.mxu0 %v8550_v3  ;;  %v2668_v1 = vmul.f32 0.5, %v12813_v36  ;;  %v12919_v50 = vld [vmem:[#allocation8 + $0x1d0] sm:$0xff] }
 0x306   : > { %v3052_v46 = vadd.f32 1.0, %v10312_v18  ;;  %10321 = verf.f32 %v2807_v11  ;;  %v12915_v29 = vadd.f32 %v1753_v17, %v12703_v26  ;;  %v1755_v41 = vpop.f32.mrb[33].mxu0  ;;  %3667 = vmatprep.mubr.f32.mxu0 %v12900_v24  ;;  %2462 = vmatprep.mubr.f32.mxu1 %v11115_v28  ;;  %v12921_v14 = vld [vmem:[#allocation8 + $0x1f0] sm:$0xff]  ;;  %v2667_v9 = vmul.f32 0.5, %v12803_v57 }
 0x307   : > { %10323 = verf.f32 %v2808_v34  ;;  %v12925_v8 = vadd.f32 %v1755_v41, %v12707_v58  ;;  %3668 = vmatmul.mubr.f32.gmra.mrb[86].mxu0 %v12911_v15  ;;  %8617 = vmatpush1.bf16.msra.mxu1 %v8616_v27  ;;  %v8620_v26 = vpack.c.bf16 %v3313_v39, %v12903_v20  ;;  %v12931_v3 = vadd.f32 %v12413_v30, %v12485_v38  ;;  %v12936_v34 = vld [vmem:[#allocation8 + $0x218] sm:$0xff] }
 0x308   : > { %v10314_v36 = vpop.eup %10313  ;;  %v2811_v11 = vmul.f32 0.70710677, %v12915_v29  ;;  %v12934_v18 = vmul.f32 %v3052_v46, %v2668_v1  ;;  %8619 = vmatprep.subr.bf16.mxu1 %v8618_v47  ;;  %v8622_v57 = vpack.c.bf16 %v3322_v22, %v3318_v42  ;;  %8553 = vmatpush1.bf16.msra.mxu0 %v8552_v10  ;;  %v11116_v39 = vld [vmem:[%s11866_s14 + $0x140] sm:$0xff]  ;;  %v12940_v41 = vmul.f32 %v3051_v56, %v2667_v9  ;;  %v3436_v46 = vld [vmem:[#allocation8 + $0x588] sm:$0xff]  ;;  %v11117_v28 = vld [vmem:[%s11866_s14 + $0x178] sm:$0xff] }
 0x309   : > { %v10316_v58 = vpop.eup %10315  ;;  %v3055_v17 = vadd.f32 1.0, %v10314_v36  ;;  %v2812_v27 = vmul.f32 0.70710677, %v12925_v8  ;;  %v1759_v20 = vpop.f32.mrb[34].mxu0  ;;  %2463 = vmatmul.mubr.f32.gmra.mrb[76].mxu1 %v11116_v39  ;;  %v8624_v30 = vpack.c.bf16 %v12921_v14, %v12919_v50  ;;  %v3330_v1 = vld [vmem:[#allocation8 + $0x238] sm:$0xff]  ;;  %v2672_v47 = vmul.f32 0.5, %v12840_v35 }
 0x30a   : > { %v3056_v42 = vadd.f32 1.0, %v10316_v58  ;;  %10325 = verf.f32 %v2811_v11  ;;  %v12946_v10 = vadd.f32 %v1759_v20, %v12714_v7  ;;  %v1761_v22 = vpop.f32.mrb[35].mxu0  ;;  %3673 = vmatprep.mubr.f32.mxu0 %v12934_v18  ;;  %2468 = vmatprep.mubr.f32.mxu1 %v11117_v28  ;;  %v3440_v36 = vld [vmem:[#allocation8 + $0x5a8] sm:$0xff]  ;;  %v3435_v56 = vld [vmem:[#allocation8 + $0x580] sm:$0xff]  ;;  %v2671_v39 = vmul.f32 0.5, %v12834_v31  ;;  %v12959_v20 = vld [vmem:[#allocation8 + $0x210] sm:$0xff] }
 0x30b   : > { %v3439_v9 = vld [vmem:[#allocation8 + $0x5a0] sm:$0xff]  ;;  %10327 = verf.f32 %v2812_v27  ;;  %v12952_v50 = vadd.f32 %v1761_v22, %v12733_v6  ;;  %3674 = vmatmul.mubr.f32.gmra.mrb[88].mxu0 %v12940_v41  ;;  %8621 = vmatpush1.bf16.msra.mxu1 %v8620_v26  ;;  %v8554_v7 = vpack.c.bf16 %v3440_v36, %v3436_v46  ;;  %v8626_v58 = vpack.c.bf16 %v3330_v1, %v12936_v34  ;;  %v3329_v31 = vld [vmem:[#allocation8 + $0x230] sm:$0xff]  ;;  %v3338_v34 = vld [vmem:[#allocation8 + $0x278] sm:$0xff] }
 0x30c   : > { %v10318_v35 = vpop.eup %10317  ;;  %v2815_v14 = vmul.f32 0.70710677, %v12946_v10  ;;  %v12956_v11 = vmul.f32 %v3056_v42, %v2672_v47  ;;  %8623 = vmatprep.subr.bf16.mxu1 %v8622_v57  ;;  %v8556_v27 = vpack.c.bf16 %v3439_v9, %v3435_v56  ;;  %v12963_v6 = vadd.f32 %v12417_v2, %v12480_v37  ;;  %v11118_v36 = vld [vmem:[%s11866_s14 + $0x170] sm:$0xff]  ;;  %v3334_v57 = vld [vmem:[#allocation8 + $0x258] sm:$0xff]  ;;  %v11119_v9 = vld [vmem:[%s11866_s14 + $0x1a8] sm:$0xff] }
 0x30d   : > { %v10320_v28 = vpop.eup %10319  ;;  %v3059_v26 = vadd.f32 1.0, %v10318_v35  ;;  %v2816_v46 = vmul.f32 0.70710677, %v12952_v50  ;;  %v1765_v22 = vpop.f32.mrb[36].mxu0  ;;  %2469 = vmatmul.mubr.f32.gmra.mrb[78].mxu1 %v11118_v36  ;;  %v12967_v47 = vmul.f32 %v3055_v17, %v2671_v39  ;;  %8555 = vmatprep.subr.bf16.mxu0 %v8554_v7  ;;  %v2676_v1 = vmul.f32 0.5, %v12869_v33  ;;  %v12975_v35 = vld [vmem:[#allocation8 + $0x250] sm:$0xff] }
 0x30e   : > { %v3060_v42 = vadd.f32 1.0, %v10320_v28  ;;  %10329 = verf.f32 %v2815_v14  ;;  %v12971_v56 = vadd.f32 %v1765_v22, %v12740_v5  ;;  %v1767_v2 = vpop.f32.mrb[37].mxu0  ;;  %3679 = vmatprep.mubr.f32.mxu0 %v12956_v11  ;;  %2474 = vmatprep.mubr.f32.mxu1 %v11119_v9  ;;  %v12977_v36 = vld [vmem:[#allocation8 + $0x270] sm:$0xff]  ;;  %v2675_v17 = vmul.f32 0.5, %v12859_v21 }
 0x30f   : > { %10331 = verf.f32 %v2816_v46  ;;  %v12981_v39 = vadd.f32 %v1767_v2, %v12763_v51  ;;  %3680 = vmatmul.mubr.f32.gmra.mrb[90].mxu0 %v12967_v47  ;;  %8625 = vmatpush1.bf16.msra.mxu1 %v8624_v30  ;;  %v8628_v5 = vpack.c.bf16 %v3329_v31, %v12959_v20  ;;  %v12987_v7 = vadd.f32 %v12419_v4, %v12485_v38  ;;  %v12992_v46 = vld [vmem:[#allocation8 + $0x298] sm:$0xff] }
 0x310   : > { %v10322_v33 = vpop.eup %10321  ;;  %v2819_v14 = vmul.f32 0.70710677, %v12971_v56  ;;  %v12990_v28 = vmul.f32 %v3060_v42, %v2676_v1  ;;  %8627 = vmatprep.subr.bf16.mxu1 %v8626_v58  ;;  %v8630_v21 = vpack.c.bf16 %v3338_v34, %v3334_v57  ;;  %8557 = vmatpush1.bf16.msra.mxu0 %v8556_v27  ;;  %v11120_v31 = vld [vmem:[%s11866_s14 + $0x1a0] sm:$0xff]  ;;  %v12996_v2 = vmul.f32 %v3059_v26, %v2675_v17  ;;  %v3444_v42 = vld [vmem:[#allocation8 + $0x5c8] sm:$0xff]  ;;  %v11121_v9 = vld [vmem:[%s11866_s14 + $0x1d8] sm:$0xff] }
 0x311   : > { %v10324_v51 = vpop.eup %10323  ;;  %v3063_v22 = vadd.f32 1.0, %v10322_v33  ;;  %v2820_v30 = vmul.f32 0.70710677, %v12981_v39  ;;  %v1771_v20 = vpop.f32.mrb[38].mxu0  ;;  %2475 = vmatmul.mubr.f32.gmra.mrb[80].mxu1 %v11120_v31  ;;  %v8632_v4 = vpack.c.bf16 %v12977_v36, %v12975_v35  ;;  %v3346_v1 = vld [vmem:[#allocation8 + $0x2b8] sm:$0xff]  ;;  %v2680_v58 = vmul.f32 0.5, %v12896_v55 }
 0x312   : > { %16355 = vst [vmem:[#allocation57_spill] sm:$0xff] %v12996_v2  ;;  %v3064_v57 = vadd.f32 1.0, %v10324_v51  ;;  %10333 = verf.f32 %v2819_v14  ;;  %v13002_v27 = vadd.f32 %v1771_v20, %v12795_v19  ;;  %v1773_v34 = vpop.f32.mrb[39].mxu0  ;;  %3685 = vmatprep.mubr.f32.mxu0 %v12990_v28  ;;  %2480 = vmatprep.mubr.f32.mxu1 %v11121_v9  ;;  %v3448_v33 = vld [vmem:[#allocation8 + $0x5e8] sm:$0xff]  ;;  %v3443_v26 = vld [vmem:[#allocation8 + $0x5c0] sm:$0xff]  ;;  %v2679_v31 = vmul.f32 0.5, %v12890_v23 }
 0x313   : > { %v3447_v17 = vld [vmem:[#allocation8 + $0x5e0] sm:$0xff]  ;;  %10335 = verf.f32 %v2820_v30  ;;  %v13008_v35 = vadd.f32 %v1773_v34, %v12819_v44  ;;  %3686 = vmatmul.mubr.f32.gmra.mrb[92].mxu0 %v12996_v2  ;;  %8629 = vmatpush1.bf16.msra.mxu1 %v8628_v5  ;;  %v8558_v19 = vpack.c.bf16 %v3448_v33, %v3444_v42  ;;  %v8634_v51 = vpack.c.bf16 %v3346_v1, %v12992_v46  ;;  %v13015_v20 = vld [vmem:[#allocation8 + $0x290] sm:$0xff]  ;;  %v3354_v46 = vld [vmem:[#allocation8 + $0x2f8] sm:$0xff] }
 0x314   : > { %v10326_v55 = vpop.eup %10325  ;;  %v2823_v36 = vmul.f32 0.70710677, %v13002_v27  ;;  %v13012_v14 = vmul.f32 %v3064_v57, %v2680_v58  ;;  %8631 = vmatprep.subr.bf16.mxu1 %v8630_v21  ;;  %v3345_v23 = vld [vmem:[#allocation8 + $0x2b0] sm:$0xff]  ;;  %v8560_v30 = vpack.c.bf16 %v3447_v17, %v3443_v26  ;;  %v13023_v58 = vmul.f32 %v3063_v22, %v2679_v31  ;;  %v3350_v21 = vld [vmem:[#allocation8 + $0x2d8] sm:$0xff] }
 0x315   : > { %v10328_v9 = vpop.eup %10327  ;;  %v16356_v44 = vld [vmem:[#allocation30_spill] sm:$0xff]  ;;  %v3067_v5 = vadd.f32 1.0, %v10326_v55  ;;  %v2824_v42 = vmul.f32 0.70710677, %v13008_v35  ;;  %v1777_v33 = vpop.f32.mrb[40].mxu0  ;;  %8559 = vmatprep.subr.bf16.mxu0 %v8558_v19  ;;  %v2684_v1 = vmul.f32 0.5, %v12925_v8 }
 0x316   : > { %v13019_v34 = vadd.f32 %v16356_v44, %v12480_v37  ;;  %v11122_v2 = vld [vmem:[%s11866_s14 + $0x1d0] sm:$0xff]  ;;  %16357 = vst [vmem:[#allocation30_spill] sm:$0xff] %v13023_v58  ;;  %v3068_v57 = vadd.f32 1.0, %v10328_v9  ;;  %10337 = verf.f32 %v2823_v36  ;;  %v13027_v26 = vadd.f32 %v1777_v33, %v12851_v0  ;;  %v1779_v17 = vpop.f32.mrb[41].mxu0  ;;  %3691 = vmatprep.mubr.f32.mxu0 %v13012_v14  ;;  %v11123_v55 = vld [vmem:[%s11866_s14 + $0x208] sm:$0xff]  ;;  %8561 = vmatpush1.bf16.msra.mxu0 %v8560_v30 }
 0x317   : > { %2481 = vmatmul.mubr.f32.gmra.mrb[82].mxu1 %v11122_v2  ;;  %v13031_v44 = vld [vmem:[#allocation8 + $0x2d0] sm:$0xff]  ;;  %v2683_v22 = vmul.f32 0.5, %v12915_v29  ;;  %10339 = verf.f32 %v2824_v42  ;;  %v13037_v31 = vadd.f32 %v1779_v17, %v12875_v63  ;;  %3692 = vmatmul.mubr.f32.gmra.mrb[94].mxu0 %v13023_v58  ;;  %v8636_v0 = vpack.c.bf16 %v3345_v23, %v13015_v20  ;;  %v13048_v42 = vld [vmem:[#allocation8 + $0x318] sm:$0xff] }
 0x318   : > { %2486 = vmatprep.mubr.f32.mxu1 %v11123_v55  ;;  %v13033_v2 = vld [vmem:[#allocation8 + $0x2f0] sm:$0xff]  ;;  %8633 = vmatpush1.bf16.msra.mxu1 %v8632_v4  ;;  %v10330_v8 = vpop.eup %10329  ;;  %v2827_v9 = vmul.f32 0.70710677, %v13027_v26  ;;  %v13046_v33 = vmul.f32 %v3068_v57, %v2684_v1  ;;  %v8638_v29 = vpack.c.bf16 %v3354_v46, %v3350_v21  ;;  %v11124_v23 = vld [vmem:[%s11866_s14 + $0x200] sm:$0xff]  ;;  %v3452_v57 = vld [vmem:[#allocation8 + $0x608] sm:$0xff]  ;;  %v2687_v58 = vmul.f32 0.5, %v12946_v10 }
 0x319   : > { %v16358_v19 = vld [vmem:[#allocation31_spill] sm:$0xff]  ;;  %8635 = vmatprep.subr.bf16.mxu1 %v8634_v51  ;;  %v10332_v63 = vpop.eup %10331  ;;  %v3071_v17 = vadd.f32 1.0, %v10330_v8  ;;  %v2828_v4 = vmul.f32 0.70710677, %v13037_v31  ;;  %v1783_v20 = vpop.f32.mrb[42].mxu0  ;;  %v13052_v55 = vmul.f32 %v3067_v5, %v2683_v22  ;;  %v2688_v51 = vmul.f32 0.5, %v12952_v50 }
 0x31a   : > { %v13043_v36 = vadd.f32 %v16358_v19, %v12485_v38  ;;  %v8640_v19 = vpack.c.bf16 %v13033_v2, %v13031_v44  ;;  %v3362_v1 = vld [vmem:[#allocation8 + $0x338] sm:$0xff]  ;;  %v3072_v21 = vadd.f32 1.0, %v10332_v63  ;;  %10341 = verf.f32 %v2827_v9  ;;  %v1785_v46 = vpop.f32.mrb[43].mxu0  ;;  %3697 = vmatprep.mubr.f32.mxu0 %v13046_v33  ;;  %v3451_v5 = vld [vmem:[#allocation8 + $0x600] sm:$0xff]  ;;  %v3361_v10 = vld [vmem:[#allocation8 + $0x330] sm:$0xff] }
 0x31b   : > { %2487 = vmatmul.mubr.f32.gmra.mrb[84].mxu1 %v11124_v23  ;;  %16359 = vst [vmem:[#allocation31_spill] sm:$0xff] %v13052_v55  ;;  %v13058_v30 = vadd.f32 %v1783_v20, %v12907_v43  ;;  %v11125_v8 = vld [vmem:[%s11866_s14 + $0x238] sm:$0xff]  ;;  %v3456_v23 = vld [vmem:[#allocation8 + $0x628] sm:$0xff]  ;;  %v3455_v22 = vld [vmem:[#allocation8 + $0x620] sm:$0xff]  ;;  %10343 = verf.f32 %v2828_v4  ;;  %v13064_v44 = vadd.f32 %v1785_v46, %v12931_v3  ;;  %3698 = vmatmul.mubr.f32.gmra.mrb[96].mxu0 %v13052_v55 }
 0x31c   : > { %2492 = vmatprep.mubr.f32.mxu1 %v11125_v8  ;;  %8637 = vmatpush1.bf16.msra.mxu1 %v8636_v0  ;;  %v8562_v43 = vpack.c.bf16 %v3456_v23, %v3452_v57  ;;  %v10334_v50 = vpop.eup %10333  ;;  %v13068_v9 = vmul.f32 %v3072_v21, %v2688_v51  ;;  %v8642_v63 = vpack.c.bf16 %v3362_v1, %v13048_v42  ;;  %v13071_v20 = vld [vmem:[#allocation8 + $0x310] sm:$0xff]  ;;  %v16360_v3 = vld [vmem:[#allocation32_spill] sm:$0xff]  ;;  %v2692_v1 = vmul.f32 0.5, %v12981_v39 }
 0x31d   : > { %v2831_v2 = vmul.f32 0.70710677, %v13058_v30  ;;  %8639 = vmatprep.subr.bf16.mxu1 %v8638_v29  ;;  %v8564_v4 = vpack.c.bf16 %v3455_v22, %v3451_v5  ;;  %v10336_v8 = vpop.eup %10335  ;;  %v13075_v46 = vadd.f32 %v16360_v3, %v12480_v37  ;;  %v3075_v0 = vadd.f32 1.0, %v10334_v50  ;;  %v1789_v23 = vpop.f32.mrb[44].mxu0  ;;  %v11126_v55 = vld [vmem:[%s11866_s14 + $0x230] sm:$0xff]  ;;  %v3366_v29 = vld [vmem:[#allocation8 + $0x358] sm:$0xff] }
 0x31e   : > { %v2832_v57 = vmul.f32 0.70710677, %v13064_v44  ;;  %v13079_v51 = vmul.f32 %v3071_v17, %v2687_v58  ;;  %v3370_v42 = vld [vmem:[#allocation8 + $0x378] sm:$0xff]  ;;  %8563 = vmatprep.subr.bf16.mxu0 %v8562_v43  ;;  %v3076_v21 = vadd.f32 1.0, %v10336_v8  ;;  %v13083_v5 = vadd.f32 %v1789_v23, %v12963_v6  ;;  %v1791_v22 = vpop.f32.mrb[45].mxu0  ;;  %3703 = vmatprep.mubr.f32.mxu0 %v13068_v9  ;;  %v11127_v50 = vld [vmem:[%s11866_s14 + $0x268] sm:$0xff] }
 0x31f   : > { %2493 = vmatmul.mubr.f32.gmra.mrb[86].mxu1 %v11126_v55  ;;  %10345 = verf.f32 %v2831_v2  ;;  %v13087_v3 = vld [vmem:[#allocation8 + $0x350] sm:$0xff]  ;;  %v2691_v58 = vmul.f32 0.5, %v12971_v56  ;;  %v13093_v17 = vadd.f32 %v1791_v22, %v12987_v7  ;;  %v8644_v6 = vpack.c.bf16 %v3361_v10, %v13071_v20  ;;  %v16362_v43 = vld [vmem:[#allocation33_spill] sm:$0xff]  ;;  %8565 = vmatpush1.bf16.msra.mxu0 %v8564_v4 }
 0x320   : > { %16361 = vst [vmem:[#allocation32_spill] sm:$0xff] %v13079_v51  ;;  %2498 = vmatprep.mubr.f32.mxu1 %v11127_v50  ;;  %v13089_v55 = vld [vmem:[#allocation8 + $0x370] sm:$0xff]  ;;  %10347 = verf.f32 %v2832_v57  ;;  %3704 = vmatmul.mubr.f32.gmra.mrb[98].mxu0 %v13079_v51  ;;  %v10338_v39 = vpop.eup %10337  ;;  %v13099_v2 = vadd.f32 %v16362_v43, %v12485_v38  ;;  %v2835_v8 = vmul.f32 0.70710677, %v13083_v5  ;;  %v13102_v23 = vmul.f32 %v3076_v21, %v2692_v1  ;;  %v13104_v57 = vld [vmem:[#allocation8 + $0x398] sm:$0xff]  ;;  %v3460_v21 = vld [vmem:[#allocation8 + $0x648] sm:$0xff] }
 0x321   : > { %8641 = vmatpush1.bf16.msra.mxu1 %v8640_v19  ;;  %v8646_v56 = vpack.c.bf16 %v3370_v42, %v3366_v29  ;;  %v10340_v7 = vpop.eup %10339  ;;  %v3079_v22 = vadd.f32 1.0, %v10338_v39  ;;  %v2836_v19 = vmul.f32 0.70710677, %v13093_v17  ;;  %v1795_v20 = vpop.f32.mrb[46].mxu0  ;;  %v11128_v10 = vld [vmem:[%s11866_s14 + $0x260] sm:$0xff]  ;;  %v13108_v50 = vmul.f32 %v3075_v0, %v2691_v58  ;;  %v11129_v39 = vld [vmem:[%s11866_s14 + $0x298] sm:$0xff] }
 0x322   : > { %16363 = vst [vmem:[#allocation33_spill] sm:$0xff] %v13102_v23  ;;  %8643 = vmatprep.subr.bf16.mxu1 %v8642_v63  ;;  %v8648_v43 = vpack.c.bf16 %v13089_v55, %v13087_v3  ;;  %v3378_v1 = vld [vmem:[#allocation8 + $0x3b8] sm:$0xff]  ;;  %v2696_v63 = vmul.f32 0.5, %v13008_v35  ;;  %v3080_v29 = vadd.f32 1.0, %v10340_v7  ;;  %10349 = verf.f32 %v2835_v8  ;;  %v1797_v42 = vpop.f32.mrb[47].mxu0  ;;  %3709 = vmatprep.mubr.f32.mxu0 %v13102_v23  ;;  %v3459_v0 = vld [vmem:[#allocation8 + $0x640] sm:$0xff] }
 0x323   : > { %2499 = vmatmul.mubr.f32.gmra.mrb[88].mxu1 %v11128_v10  ;;  %16364 = vst [vmem:[#allocation58_spill] sm:$0xff] %v13108_v50  ;;  %v13114_v4 = vadd.f32 %v1795_v20, %v13019_v34  ;;  %v3464_v10 = vld [vmem:[#allocation8 + $0x668] sm:$0xff]  ;;  %v3463_v58 = vld [vmem:[#allocation8 + $0x660] sm:$0xff]  ;;  %v2695_v51 = vmul.f32 0.5, %v13002_v27  ;;  %10351 = verf.f32 %v2836_v19  ;;  %v13120_v3 = vadd.f32 %v1797_v42, %v13043_v36  ;;  %v3373_v20 = vld [vmem:[#allocation8 + $0x390] sm:$0xff] }
 0x324   : > { %2504 = vmatprep.mubr.f32.mxu1 %v11129_v39  ;;  %3710 = vmatmul.mubr.f32.gmra.mrb[100].mxu0 %v13108_v50  ;;  %v8566_v35 = vpack.c.bf16 %v3464_v10, %v3460_v21  ;;  %v10342_v34 = vpop.eup %10341  ;;  %v13124_v8 = vmul.f32 %v3080_v29, %v2696_v63  ;;  %v8650_v7 = vpack.c.bf16 %v3378_v1, %v13104_v57  ;;  %v3377_v39 = vld [vmem:[#allocation8 + $0x3b0] sm:$0xff]  ;;  %v3382_v63 = vld [vmem:[#allocation8 + $0x3d8] sm:$0xff]  ;;  %v2700_v57 = vmul.f32 0.5, %v13037_v31 }
 0x325   : > { %8645 = vmatpush1.bf16.msra.mxu1 %v8644_v6  ;;  %v2839_v55 = vmul.f32 0.70710677, %v13114_v4  ;;  %v8568_v27 = vpack.c.bf16 %v3463_v58, %v3459_v0  ;;  %v10344_v19 = vpop.eup %10343  ;;  %v16365_v36 = vld [vmem:[#allocation34_spill] sm:$0xff]  ;;  %v3083_v50 = vadd.f32 1.0, %v10342_v34  ;;  %v2840_v6 = vmul.f32 0.70710677, %v13120_v3 }
 0x326   : > { %8647 = vmatprep.subr.bf16.mxu1 %v8646_v56  ;;  %v1294_v42 = vadd.f32 %v16365_v36, %v12480_v37  ;;  %v1801_v21 = vpop.f32.mrb[48].mxu0  ;;  %v11130_v10 = vld [vmem:[%s11866_s14 + $0x290] sm:$0xff]  ;;  %v13131_v23 = vmul.f32 %v3079_v22, %v2695_v51  ;;  %v3386_v56 = vld [vmem:[#allocation8 + $0x3f8] sm:$0xff]  ;;  %8567 = vmatprep.subr.bf16.mxu0 %v8566_v35  ;;  %v3084_v1 = vadd.f32 1.0, %v10344_v19  ;;  %v11131_v58 = vld [vmem:[%s11866_s14 + $0x2c8] sm:$0xff]  ;;  %v2699_v51 = vmul.f32 0.5, %v13027_v26 }
 0x327   : > { %2505 = vmatmul.mubr.f32.gmra.mrb[90].mxu1 %v11130_v10  ;;  %10353 = verf.f32 %v2839_v55  ;;  %v13135_v29 = vadd.f32 %v1801_v21, %v13075_v46  ;;  %v1803_v0 = vpop.f32.mrb[49].mxu0  ;;  %3715 = vmatprep.mubr.f32.mxu0 %v13124_v8  ;;  %v13139_v34 = vld [vmem:[#allocation8 + $0x3d0] sm:$0xff]  ;;  %v8652_v46 = vpack.c.bf16 %v3377_v39, %v3373_v20  ;;  %v8654_v10 = vpack.c.bf16 %v3386_v56, %v3382_v63  ;;  %v3468_v39 = vld [vmem:[#allocation8 + $0x688] sm:$0xff] }
 0x328   : > { %2510 = vmatprep.mubr.f32.mxu1 %v11131_v58  ;;  %v13141_v36 = vld [vmem:[#allocation8 + $0x3f0] sm:$0xff]  ;;  %10355 = verf.f32 %v2840_v6  ;;  %v13145_v31 = vadd.f32 %v1803_v0, %v13099_v2  ;;  %3716 = vmatmul.mubr.f32.gmra.mrb[102].mxu0 %v13131_v23  ;;  %v13151_v21 = vmul.f32 %v3084_v1, %v2700_v57  ;;  %v11132_v58 = vld [vmem:[%s11866_s14 + $0x2c0] sm:$0xff]  ;;  %v2704_v57 = vmul.f32 0.5, %v13064_v44  ;;  %v3472_v56 = vld [vmem:[#allocation8 + $0x6a8] sm:$0xff] }
 0x329   : > { %8649 = vmatpush1.bf16.msra.mxu1 %v8648_v43  ;;  %v10346_v22 = vpop.eup %10345  ;;  %v16366_v35 = vld [vmem:[#allocation35_spill] sm:$0xff]  ;;  %v2843_v19 = vmul.f32 0.70710677, %v13135_v29  ;;  %8569 = vmatpush1.bf16.msra.mxu0 %v8568_v27  ;;  %v1807_v0 = vpop.f32.mrb[50].mxu0  ;;  %v13155_v43 = vmul.f32 %v3083_v50, %v2699_v51  ;;  %v8656_v20 = vpack.c.bf16 %v13141_v36, %v13139_v34  ;;  %v2703_v50 = vmul.f32 0.5, %v13058_v30  ;;  %v16367_v36 = vld [vmem:[#allocation36_spill] sm:$0xff] }
 0x32a   : > { %v1296_v55 = vadd.f32 %v16366_v35, %v12485_v38  ;;  %8651 = vmatprep.subr.bf16.mxu1 %v8650_v7  ;;  %v10348_v26 = vpop.eup %10347  ;;  %v3087_v6 = vadd.f32 1.0, %v10346_v22  ;;  %v2844_v2 = vmul.f32 0.70710677, %v13145_v31  ;;  %v13160_v7 = vadd.f32 %v1807_v0, %v1294_v42  ;;  %v1809_v27 = vpop.f32.mrb[51].mxu0  ;;  %3721 = vmatprep.mubr.f32.mxu0 %v13151_v21  ;;  %v11133_v63 = vld [vmem:[%s11866_s14 + $0x2f8] sm:$0xff]  ;;  %v3467_v22 = vld [vmem:[#allocation8 + $0x680] sm:$0xff] }
 0x32b   : > { %2511 = vmatmul.mubr.f32.gmra.mrb[92].mxu1 %v11132_v58  ;;  %v3088_v1 = vadd.f32 1.0, %v10348_v26  ;;  %10357 = verf.f32 %v2843_v19  ;;  %v3471_v35 = vld [vmem:[#allocation8 + $0x6a0] sm:$0xff]  ;;  %v8570_v44 = vpack.c.bf16 %v3472_v56, %v3468_v39  ;;  %v1300_v51 = vadd.f32 %v16367_v36, %v12480_v37  ;;  %v11134_v39 = vld [vmem:[%s11866_s14 + $0x2f0] sm:$0xff] }
 0x32c   : > { %2516 = vmatprep.mubr.f32.mxu1 %v11133_v63  ;;  %10359 = verf.f32 %v2844_v2  ;;  %v13165_v34 = vadd.f32 %v1809_v27, %v1296_v55  ;;  %3722 = vmatmul.mubr.f32.gmra.mrb[104].mxu0 %v13155_v43  ;;  %v10350_v42 = vpop.eup %10349  ;;  %v2847_v19 = vmul.f32 0.70710677, %v13160_v7  ;;  %v8572_v0 = vpack.c.bf16 %v3471_v35, %v3467_v22  ;;  %v16368_v2 = vld [vmem:[#allocation37_spill] sm:$0xff] }
 0x32d   : > { %8653 = vmatpush1.bf16.msra.mxu1 %v8652_v46  ;;  %v13171_v26 = vmul.f32 %v3088_v1, %v2704_v57  ;;  %v10352_v30 = vpop.eup %10351  ;;  %v1302_v55 = vadd.f32 %v16368_v2, %v12485_v38  ;;  %v3091_v58 = vadd.f32 1.0, %v10350_v42  ;;  %v1813_v46 = vpop.f32.mrb[52].mxu0  ;;  %v13177_v63 = vmul.f32 %v3087_v6, %v2703_v50  ;;  %8571 = vmatprep.subr.bf16.mxu0 %v8570_v44  ;;  %v11135_v22 = vld [vmem:[%s11866_s14 + $0x328] sm:$0xff]  ;;  %v3390_v6 = vld [vmem:[#allocation8 + $0x418] sm:$0xff] }
 0x32e   : > { %8655 = vmatprep.subr.bf16.mxu1 %v8654_v10  ;;  %v2848_v27 = vmul.f32 0.70710677, %v13165_v34  ;;  %v2708_v56 = vmul.f32 0.5, %v13093_v17  ;;  %v3092_v57 = vadd.f32 1.0, %v10352_v30  ;;  %10361 = verf.f32 %v2847_v19  ;;  %v1815_v1 = vpop.f32.mrb[53].mxu0  ;;  %v3394_v17 = vld [vmem:[#allocation8 + $0x438] sm:$0xff]  ;;  %8573 = vmatpush1.bf16.msra.mxu0 %v8572_v0 }
 0x32f   : > { %2517 = vmatmul.mubr.f32.gmra.mrb[94].mxu1 %v11134_v39  ;;  %16369 = vst [vmem:[#allocation34_spill] sm:$0xff] %v13177_v63  ;;  %v13180_v10 = vadd.f32 %v1813_v46, %v1300_v51  ;;  %3727 = vmatprep.mubr.f32.mxu0 %v13171_v26  ;;  %v2707_v35 = vmul.f32 0.5, %v13083_v5  ;;  %v13185_v42 = vadd.f32 %v1815_v1, %v1302_v55  ;;  %v16370_v44 = vld [vmem:[#allocation38_spill] sm:$0xff]  ;;  %v16371_v2 = vld [vmem:[#allocation39_spill] sm:$0xff]  ;;  %v11136_v39 = vld [vmem:[%s11866_s14 + $0x320] sm:$0xff] }
 0x330   : > { %2522 = vmatprep.mubr.f32.mxu1 %v11135_v22  ;;  %10363 = verf.f32 %v2848_v27  ;;  %3728 = vmatmul.mubr.f32.gmra.mrb[106].mxu0 %v13177_v63  ;;  %v1306_v36 = vadd.f32 %v16370_v44, %v12480_v37  ;;  %v13191_v19 = vmul.f32 %v3092_v57, %v2708_v56  ;;  %v8658_v30 = vpack.c.bf16 %v3394_v17, %v3390_v6  ;;  %v3476_v22 = vld [vmem:[#allocation8 + $0x6c8] sm:$0xff]  ;;  %v11137_v6 = vld [vmem:[%s11866_s14 + $0x358] sm:$0xff] }
 0x331   : > { %8657 = vmatpush1.bf16.msra.mxu1 %v8656_v20  ;;  %v10354_v50 = vpop.eup %10353  ;;  %v2851_v51 = vmul.f32 0.70710677, %v13180_v10  ;;  %v1308_v55 = vadd.f32 %v16371_v2, %v12485_v38  ;;  %v2852_v20 = vmul.f32 0.70710677, %v13185_v42  ;;  %v1819_v46 = vpop.f32.mrb[54].mxu0  ;;  %v13197_v1 = vmul.f32 %v3091_v58, %v2707_v35  ;;  %v3480_v17 = vld [vmem:[#allocation8 + $0x6e8] sm:$0xff] }
 0x332   : > { %v10356_v5 = vpop.eup %10355  ;;  %v3095_v27 = vadd.f32 1.0, %v10354_v50  ;;  %v2712_v44 = vmul.f32 0.5, %v13120_v3  ;;  %v13200_v0 = vadd.f32 %v1819_v46, %v1306_v36  ;;  %v1821_v57 = vpop.f32.mrb[55].mxu0  ;;  %3733 = vmatprep.mubr.f32.mxu0 %v13191_v19  ;;  %v3475_v50 = vld [vmem:[#allocation8 + $0x6c0] sm:$0xff]  ;;  %v2711_v63 = vmul.f32 0.5, %v13114_v4  ;;  %8659 = vmatprep.subr.bf16.mxu1 %v8658_v30  ;;  %v11138_v30 = vld [vmem:[%s11866_s14 + $0x350] sm:$0xff] }
 0x333   : > { %2523 = vmatmul.mubr.f32.gmra.mrb[96].mxu1 %v11136_v39  ;;  %16372 = vst [vmem:[#allocation35_spill] sm:$0xff] %v13197_v1  ;;  %v3096_v56 = vadd.f32 1.0, %v10356_v5  ;;  %10365 = verf.f32 %v2851_v51  ;;  %v3479_v2 = vld [vmem:[#allocation8 + $0x6e0] sm:$0xff]  ;;  %v13205_v58 = vadd.f32 %v1821_v57, %v1308_v55  ;;  %v8574_v3 = vpack.c.bf16 %v3480_v17, %v3476_v22 }
 0x334   : > { %2528 = vmatprep.mubr.f32.mxu1 %v11137_v6  ;;  %10367 = verf.f32 %v2852_v20  ;;  %3734 = vmatmul.mubr.f32.gmra.mrb[108].mxu0 %v13197_v1  ;;  %v16373_v36 = vld [vmem:[#allocation40_spill] sm:$0xff]  ;;  %v2855_v5 = vmul.f32 0.70710677, %v13200_v0  ;;  %v8576_v39 = vpack.c.bf16 %v3479_v2, %v3475_v50  ;;  %v16375_v4 = vld [vmem:[#allocation41_spill] sm:$0xff]  ;;  %v13217_v22 = vmul.f32 %v3095_v27, %v2711_v63 }
 0x335   : > { %v10358_v35 = vpop.eup %10357  ;;  %v1312_v51 = vadd.f32 %v16373_v36, %v12480_v37  ;;  %v13211_v46 = vmul.f32 %v3096_v56, %v2712_v44  ;;  %v1314_v20 = vadd.f32 %v16375_v4, %v12485_v38  ;;  %v2856_v57 = vmul.f32 0.70710677, %v13205_v58  ;;  %v1825_v1 = vpop.f32.mrb[56].mxu0  ;;  %8575 = vmatprep.subr.bf16.mxu0 %v8574_v3  ;;  %v11139_v50 = vld [vmem:[%s11866_s14 + $0x388] sm:$0xff] }
 0x336   : > { %v10360_v6 = vpop.eup %10359  ;;  %v3099_v55 = vadd.f32 1.0, %v10358_v35  ;;  %16376 = vst [vmem:[#allocation37_spill] sm:$0xff] %v13217_v22  ;;  %v2716_v17 = vmul.f32 0.5, %v13145_v31  ;;  %10369 = verf.f32 %v2855_v5  ;;  %v1827_v56 = vpop.f32.mrb[57].mxu0  ;;  %v2715_v2 = vmul.f32 0.5, %v13135_v29  ;;  %v16377_v31 = vld [vmem:[#allocation43_spill] sm:$0xff]  ;;  %8577 = vmatpush1.bf16.msra.mxu0 %v8576_v39 }
 0x337   : > { %16374 = vst [vmem:[#allocation36_spill] sm:$0xff] %v13211_v46  ;;  %2529 = vmatmul.mubr.f32.gmra.mrb[98].mxu1 %v11138_v30  ;;  %v3100_v36 = vadd.f32 1.0, %v10360_v6  ;;  %v13220_v44 = vadd.f32 %v1825_v1, %v1312_v51  ;;  %3739 = vmatprep.mubr.f32.mxu0 %v13211_v46  ;;  %10371 = verf.f32 %v2856_v57  ;;  %v13225_v35 = vadd.f32 %v1827_v56, %v1314_v20  ;;  %v16379_v5 = vld [vmem:[#allocation44_spill] sm:$0xff]  ;;  %v3484_v56 = vld [vmem:[#allocation8 + $0x708] sm:$0xff] }
 0x338   : > { %2534 = vmatprep.mubr.f32.mxu1 %v11139_v50  ;;  %3740 = vmatmul.mubr.f32.gmra.mrb[110].mxu0 %v13217_v22  ;;  %v10362_v63 = vpop.eup %10361  ;;  %v1318_v27 = vadd.f32 %v16377_v31, %v12480_v37  ;;  %v1320_v6 = vadd.f32 %v16379_v5, %v12485_v38  ;;  %v11140_v57 = vld [vmem:[%s11866_s14 + $0x380] sm:$0xff]  ;;  %v13237_v30 = vmul.f32 %v3099_v55, %v2715_v2  ;;  %v2720_v50 = vmul.f32 0.5, %v13165_v34 }
 0x339   : > { %v2859_v1 = vmul.f32 0.70710677, %v13220_v44  ;;  %v13231_v3 = vmul.f32 %v3100_v36, %v2716_v17  ;;  %v3103_v29 = vadd.f32 1.0, %v10362_v63  ;;  %v2860_v4 = vmul.f32 0.70710677, %v13225_v35  ;;  %v1831_v20 = vpop.f32.mrb[58].mxu0 }
 0x33a   : > { %v10364_v51 = vpop.eup %10363  ;;  %16380 = vst [vmem:[#allocation39_spill] sm:$0xff] %v13237_v30  ;;  %v13240_v17 = vadd.f32 %v1831_v20, %v1318_v27  ;;  %v1833_v39 = vpop.f32.mrb[59].mxu0  ;;  %v11141_v36 = vld [vmem:[%s11866_s14 + $0x3b8] sm:$0xff]  ;;  %v3488_v63 = vld [vmem:[#allocation8 + $0x728] sm:$0xff]  ;;  %v3483_v5 = vld [vmem:[#allocation8 + $0x700] sm:$0xff] }
 0x33b   : > { %16378 = vst [vmem:[#allocation38_spill] sm:$0xff] %v13231_v3  ;;  %2535 = vmatmul.mubr.f32.gmra.mrb[100].mxu1 %v11140_v57  ;;  %v3104_v31 = vadd.f32 1.0, %v10364_v51  ;;  %10373 = verf.f32 %v2859_v1  ;;  %3745 = vmatprep.mubr.f32.mxu0 %v13231_v3  ;;  %v3487_v22 = vld [vmem:[#allocation8 + $0x720] sm:$0xff]  ;;  %v2719_v57 = vmul.f32 0.5, %v13160_v7  ;;  %v13245_v55 = vadd.f32 %v1833_v39, %v1320_v6  ;;  %v16381_v27 = vld [vmem:[#allocation46_spill] sm:$0xff] }
 0x33c   : > { %2540 = vmatprep.mubr.f32.mxu1 %v11141_v36  ;;  %10375 = verf.f32 %v2860_v4  ;;  %3746 = vmatmul.mubr.f32.gmra.mrb[112].mxu0 %v13237_v30  ;;  %v8578_v34 = vpack.c.bf16 %v3488_v63, %v3484_v56  ;;  %v1324_v1 = vadd.f32 %v16381_v27, %v12480_v37  ;;  %v2863_v51 = vmul.f32 0.70710677, %v13240_v17  ;;  %v16382_v46 = vld [vmem:[#allocation48_spill] sm:$0xff]  ;;  %v11142_v30 = vld [vmem:[%s11866_s14 + $0x3b0] sm:$0xff] }
 0x33d   : > { %v10366_v2 = vpop.eup %10365  ;;  %v13251_v20 = vmul.f32 %v3104_v31, %v2720_v50  ;;  %v8580_v36 = vpack.c.bf16 %v3487_v22, %v3483_v5  ;;  %v1326_v7 = vadd.f32 %v16382_v46, %v12485_v38  ;;  %v2864_v6 = vmul.f32 0.70710677, %v13245_v55  ;;  %v1837_v39 = vpop.f32.mrb[60].mxu0  ;;  %v11143_v31 = vld [vmem:[%s11866_s14 + $0x3e8] sm:$0xff] }
 0x33e   : > { %v10368_v3 = vpop.eup %10367  ;;  %v3107_v4 = vadd.f32 1.0, %v10366_v2  ;;  %v13257_v56 = vmul.f32 %v3103_v29, %v2719_v57  ;;  %8579 = vmatprep.subr.bf16.mxu0 %v8578_v34  ;;  %v2724_v63 = vmul.f32 0.5, %v13185_v42  ;;  %10377 = verf.f32 %v2863_v51  ;;  %v1839_v22 = vpop.f32.mrb[61].mxu0  ;;  %v16383_v42 = vld [vmem:[#allocation49_spill] sm:$0xff]  ;;  %v16385_v2 = vld [vmem:[#allocation50_spill] sm:$0xff] }
 0x33f   : > { %2541 = vmatmul.mubr.f32.gmra.mrb[102].mxu1 %v11142_v30  ;;  %v3108_v27 = vadd.f32 1.0, %v10368_v3  ;;  %v13260_v50 = vadd.f32 %v1837_v39, %v1324_v1  ;;  %3751 = vmatprep.mubr.f32.mxu0 %v13251_v20  ;;  %v2723_v46 = vmul.f32 0.5, %v13180_v10  ;;  %10379 = verf.f32 %v2864_v6  ;;  %v11144_v6 = vld [vmem:[%s11866_s14 + $0x3e0] sm:$0xff] }
 0x340   : > { %2546 = vmatprep.mubr.f32.mxu1 %v11143_v31  ;;  %v13265_v5 = vadd.f32 %v1839_v22, %v1326_v7  ;;  %3752 = vmatmul.mubr.f32.gmra.mrb[114].mxu0 %v13257_v56  ;;  %v10370_v29 = vpop.eup %10369  ;;  %v1330_v3 = vadd.f32 %v16383_v42, %v12480_v37  ;;  %v1332_v1 = vadd.f32 %v16385_v2, %v12485_v38  ;;  %v3492_v22 = vld [vmem:[#allocation8 + $0x748] sm:$0xff]  ;;  %v2728_v37 = vmul.f32 0.5, %v13205_v58  ;;  %v3495_v42 = vld [vmem:[#allocation8 + $0x760] sm:$0xff] }
 0x341   : > { %v2867_v30 = vmul.f32 0.70710677, %v13260_v50  ;;  %v13271_v57 = vmul.f32 %v3108_v27, %v2724_v63  ;;  %8581 = vmatpush1.bf16.msra.mxu0 %v8580_v36  ;;  %v10372_v34 = vpop.eup %10371  ;;  %v3111_v10 = vadd.f32 1.0, %v10370_v29  ;;  %v1843_v7 = vpop.f32.mrb[62].mxu0  ;;  %v13277_v39 = vmul.f32 %v3107_v4, %v2723_v46  ;;  %v11145_v27 = vld [vmem:[%s11866_s14 + $0x418] sm:$0xff]  ;;  %v3496_v38 = vld [vmem:[#allocation8 + $0x768] sm:$0xff] }
 0x342   : > { %v2868_v51 = vmul.f32 0.70710677, %v13265_v5  ;;  %v3112_v31 = vadd.f32 1.0, %v10372_v34  ;;  %v13280_v63 = vadd.f32 %v1843_v7, %v1330_v3  ;;  %v1845_v36 = vpop.f32.mrb[63].mxu0  ;;  %v3491_v29 = vld [vmem:[#allocation8 + $0x740] sm:$0xff]  ;;  %v2727_v2 = vmul.f32 0.5, %v13200_v0 }
 0x343   : > { %16384 = vst [vmem:[#allocation40_spill] sm:$0xff] %v13271_v57  ;;  %2547 = vmatmul.mubr.f32.gmra.mrb[104].mxu1 %v11144_v6  ;;  %10381 = verf.f32 %v2867_v30  ;;  %3757 = vmatprep.mubr.f32.mxu0 %v13271_v57  ;;  %v13285_v4 = vadd.f32 %v1845_v36, %v1332_v1  ;;  %v8582_v58 = vpack.c.bf16 %v3496_v38, %v3492_v22  ;;  %v11146_v57 = vld [vmem:[%s11866_s14 + $0x410] sm:$0xff]  ;;  %v2732_v1 = vmul.f32 0.5, %v13225_v35  ;;  %v11147_v22 = vld [vmem:[%s11866_s14 + $0x448] sm:$0xff]  ;;  %v11148_v35 = vld [vmem:[%s11866_s14 + $0x440] sm:$0xff] }
 0x344   : > { %2552 = vmatprep.mubr.f32.mxu1 %v11145_v27  ;;  %10383 = verf.f32 %v2868_v51  ;;  %3758 = vmatmul.mubr.f32.gmra.mrb[116].mxu0 %v13277_v39  ;;  %v2871_v3 = vmul.f32 0.70710677, %v13280_v63  ;;  %v13289_v30 = vmul.f32 %v3112_v31, %v2728_v37  ;;  %v8584_v34 = vpack.c.bf16 %v3495_v42, %v3491_v29 }
 0x345   : > { %v10374_v46 = vpop.eup %10373  ;;  %v2872_v27 = vmul.f32 0.70710677, %v13285_v4  ;;  %v13293_v0 = vmul.f32 %v3111_v10, %v2727_v2  ;;  %8583 = vmatprep.subr.bf16.mxu0 %v8582_v58  ;;  %v2731_v37 = vmul.f32 0.5, %v13220_v44  ;;  %v2736_v29 = vmul.f32 0.5, %v13245_v55  ;;  %v11149_v44 = vld [vmem:[%s11866_s14 + $0x478] sm:$0xff] }
 0x346   : > { %v10376_v7 = vpop.eup %10375  ;;  %v3115_v6 = vadd.f32 1.0, %v10374_v46  ;;  %10385 = verf.f32 %v2871_v3  ;;  %3763 = vmatprep.mubr.f32.mxu0 %v13289_v30  ;;  %8585 = vmatpush1.bf16.msra.mxu0 %v8584_v34  ;;  %v2735_v2 = vmul.f32 0.5, %v13240_v17  ;;  %v2740_v55 = vmul.f32 0.5, %v13265_v5 }
 0x347   : > { %2553 = vmatmul.mubr.f32.gmra.mrb[106].mxu1 %v11146_v57  ;;  %v3116_v51 = vadd.f32 1.0, %v10376_v7  ;;  %10387 = verf.f32 %v2872_v27  ;;  %v11150_v7 = vld [vmem:[%s11866_s14 + $0x470] sm:$0xff]  ;;  %v2739_v17 = vmul.f32 0.5, %v13260_v50  ;;  %v2744_v50 = vmul.f32 0.5, %v13285_v4 }
 0x348   : > { %2558 = vmatprep.mubr.f32.mxu1 %v11147_v22  ;;  %3764 = vmatmul.mubr.f32.gmra.mrb[118].mxu0 %v13293_v0  ;;  %v10378_v31 = vpop.eup %10377  ;;  %v13303_v38 = vmul.f32 %v3115_v6, %v2731_v37  ;;  %v3500_v37 = vld [vmem:[#allocation8 + $0x788] sm:$0xff] }
 0x349   : > { %v13300_v57 = vmul.f32 %v3116_v51, %v2732_v1  ;;  %v10380_v10 = vpop.eup %10379  ;;  %v3119_v36 = vadd.f32 1.0, %v10378_v31  ;;  %v11151_v1 = vld [vmem:[%s11866_s14 + $0x4a8] sm:$0xff]  ;;  %v11154_v4 = vld [vmem:[%s11866_s14 + $0x4d0] sm:$0xff] }
 0x34a   : > { %v3120_v42 = vadd.f32 1.0, %v10380_v10  ;;  %v3504_v31 = vld [vmem:[#allocation8 + $0x7a8] sm:$0xff] }
 0x34b   : > { %2559 = vmatmul.mubr.f32.gmra.mrb[108].mxu1 %v11148_v35  ;;  %3769 = vmatprep.mubr.f32.mxu0 %v13300_v57  ;;  %v13313_v6 = vmul.f32 %v3119_v36, %v2735_v2  ;;  %v11152_v35 = vld [vmem:[%s11866_s14 + $0x4a0] sm:$0xff] }
 0x34c   : > { %2564 = vmatprep.mubr.f32.mxu1 %v11149_v44  ;;  %3770 = vmatmul.mubr.f32.gmra.mrb[120].mxu0 %v13303_v38  ;;  %v13310_v46 = vmul.f32 %v3120_v42, %v2736_v29  ;;  %v8586_v29 = vpack.c.bf16 %v3504_v31, %v3500_v37  ;;  %v3499_v42 = vld [vmem:[#allocation8 + $0x780] sm:$0xff] }
 0x34d   : > { %v10382_v58 = vpop.eup %10381  ;;  %v3503_v44 = vld [vmem:[#allocation8 + $0x7a0] sm:$0xff] }
 0x34e   : > { %v10384_v3 = vpop.eup %10383  ;;  %v3123_v34 = vadd.f32 1.0, %v10382_v58  ;;  %3775 = vmatprep.mubr.f32.mxu0 %v13310_v46  ;;  %v11153_v58 = vld [vmem:[%s11866_s14 + $0x4d8] sm:$0xff]  ;;  %8587 = vmatprep.subr.bf16.mxu0 %v8586_v29  ;;  %v3511_v37 = vld [vmem:[#allocation8 + $0x7e0] sm:$0xff] }
 0x34f   : > { %2565 = vmatmul.mubr.f32.gmra.mrb[110].mxu1 %v11150_v7  ;;  %v3124_v27 = vadd.f32 1.0, %v10384_v3  ;;  %v8588_v3 = vpack.c.bf16 %v3503_v44, %v3499_v42  ;;  %v2743_v7 = vmul.f32 0.5, %v13280_v63  ;;  %v11155_v63 = vld [vmem:[%s11866_s14 + $0x508] sm:$0xff]  ;;  %v11160_v42 = vld [vmem:[%s11866_s14 + $0x560] sm:$0xff]  ;;  %v11161_v44 = vld [vmem:[%s11866_s14 + $0x598] sm:$0xff] }
 0x350   : > { %2570 = vmatprep.mubr.f32.mxu1 %v11151_v1  ;;  %3776 = vmatmul.mubr.f32.gmra.mrb[122].mxu0 %v13313_v6  ;;  %v10386_v51 = vpop.eup %10385  ;;  %v13323_v5 = vmul.f32 %v3123_v34, %v2739_v17  ;;  %v11159_v29 = vld [vmem:[%s11866_s14 + $0x568] sm:$0xff] }
 0x351   : > { %v13320_v22 = vmul.f32 %v3124_v27, %v2740_v55  ;;  %v10388_v10 = vpop.eup %10387  ;;  %v3127_v36 = vadd.f32 1.0, %v10386_v51  ;;  %8589 = vmatpush1.bf16.msra.mxu0 %v8588_v3  ;;  %v3508_v55 = vld [vmem:[#allocation8 + $0x7c8] sm:$0xff]  ;;  %v3507_v51 = vld [vmem:[#allocation8 + $0x7c0] sm:$0xff]  ;;  %v11165_v3 = vld [vmem:[%s11866_s14 + $0x5f8] sm:$0xff] }
 0x352   : > { %v3128_v2 = vadd.f32 1.0, %v10388_v10  ;;  %v3512_v27 = vld [vmem:[#allocation8 + $0x7e8] sm:$0xff]  ;;  %v8592_v31 = vpack.c.bf16 %v3511_v37, %v3507_v51  ;;  %v11156_v10 = vld [vmem:[%s11866_s14 + $0x500] sm:$0xff]  ;;  %v16386_v51 = vld [vmem:[#allocation51_spill] sm:$0xff] }
 0x353   : > { %2571 = vmatmul.mubr.f32.gmra.mrb[112].mxu1 %v11152_v35  ;;  %3781 = vmatprep.mubr.f32.mxu0 %v13320_v22  ;;  %v13333_v1 = vmul.f32 %v3127_v36, %v2743_v7  ;;  %v8590_v17 = vpack.c.bf16 %v3512_v27, %v3508_v55  ;;  %v11157_v36 = vld [vmem:[%s11866_s14 + $0x538] sm:$0xff]  ;;  %v11158_v35 = vld [vmem:[%s11866_s14 + $0x530] sm:$0xff] }
 0x354   : > { %2576 = vmatprep.mubr.f32.mxu1 %v11153_v58  ;;  %3782 = vmatmul.mubr.f32.gmra.mrb[124].mxu0 %v13323_v5  ;;  %v13330_v34 = vmul.f32 %v3128_v2, %v2744_v50  ;;  %v11162_v50 = vld [vmem:[%s11866_s14 + $0x590] sm:$0xff]  ;;  %v11163_v2 = vld [vmem:[%s11866_s14 + $0x5c8] sm:$0xff]  ;;  %v11164_v58 = vld [vmem:[%s11866_s14 + $0x5c0] sm:$0xff] }
 0x355   : > { %8591 = vmatprep.subr.bf16.mxu0 %v8590_v17  ;;  %v3389_v7 = vld [vmem:[#allocation8 + $0x410] sm:$0xff]  ;;  %v3398_v27 = vld [vmem:[#allocation8 + $0x458] sm:$0xff] }
 0x356   : > { %3787 = vmatprep.mubr.f32.mxu0 %v13330_v34  ;;  %8593 = vmatpush1.bf16.msra.mxu0 %v8592_v31  ;;  %v3393_v55 = vld [vmem:[#allocation8 + $0x430] sm:$0xff] }
 0x357   : > { %2577 = vmatmul.mubr.f32.gmra.mrb[114].mxu1 %v11154_v4  ;;  %v3402_v4 = vld [vmem:[#allocation8 + $0x478] sm:$0xff]  ;;  %v11166_v17 = vld [vmem:[%s11866_s14 + $0x5f0] sm:$0xff]  ;;  %v8660_v37 = vpack.c.bf16 %v3393_v55, %v3389_v7 }
 0x358   : > { %2582 = vmatprep.mubr.f32.mxu1 %v11155_v63  ;;  %3788 = vmatmul.mubr.f32.gmra.mrb[126].mxu0 %v13333_v1  ;;  %v8662_v63 = vpack.c.bf16 %v3402_v4, %v3398_v27  ;;  %v3397_v31 = vld [vmem:[#allocation8 + $0x450] sm:$0xff]  ;;  %v3422_v27 = vld [vmem:[#allocation8 + $0x518] sm:$0xff] }
 0x359   : > { %v3413_v55 = vld [vmem:[#allocation8 + $0x4d0] sm:$0xff] }
 0x35b   : > { %2583 = vmatmul.mubr.f32.gmra.mrb[116].mxu1 %v11156_v10  ;;  %v3401_v10 = vld [vmem:[#allocation8 + $0x470] sm:$0xff] }
 0x35c   : > { %2588 = vmatprep.mubr.f32.mxu1 %v11157_v36  ;;  %v3406_v36 = vld [vmem:[#allocation8 + $0x498] sm:$0xff] }
 0x35f   : > { %2589 = vmatmul.mubr.f32.gmra.mrb[118].mxu1 %v11158_v35  ;;  %v3410_v35 = vld [vmem:[#allocation8 + $0x4b8] sm:$0xff] }
 0x360   : > { %2594 = vmatprep.mubr.f32.mxu1 %v11159_v29  ;;  %v8664_v29 = vpack.c.bf16 %v3401_v10, %v3397_v31  ;;  %v16388_v31 = vld [vmem:[#allocation53_spill] sm:$0xff] }
 0x363   : > { %2595 = vmatmul.mubr.f32.gmra.mrb[120].mxu1 %v11160_v42  ;;  %v8666_v42 = vpack.c.bf16 %v3410_v35, %v3406_v36  ;;  %v3429_v35 = vld [vmem:[#allocation8 + $0x550] sm:$0xff] }
 0x364   : > { %2600 = vmatprep.mubr.f32.mxu1 %v11161_v44  ;;  %v3405_v44 = vld [vmem:[#allocation8 + $0x490] sm:$0xff] }
 0x367   : > { %2601 = vmatmul.mubr.f32.gmra.mrb[122].mxu1 %v11162_v50  ;;  %v3409_v50 = vld [vmem:[#allocation8 + $0x4b0] sm:$0xff] }
 0x368   : > { %2606 = vmatprep.mubr.f32.mxu1 %v11163_v2  ;;  %v3414_v2 = vld [vmem:[#allocation8 + $0x4d8] sm:$0xff] }
 0x36b   : > { %2607 = vmatmul.mubr.f32.gmra.mrb[124].mxu1 %v11164_v58  ;;  %v3418_v58 = vld [vmem:[#allocation8 + $0x4f8] sm:$0xff] }
 0x36c   : > { %2612 = vmatprep.mubr.f32.mxu1 %v11165_v3  ;;  %v8668_v3 = vpack.c.bf16 %v3409_v50, %v3405_v44  ;;  %v8670_v7 = vpack.c.bf16 %v3418_v58, %v3414_v2  ;;  %v16390_v44 = vld [vmem:[#allocation55_spill] sm:$0xff] }
 0x36d   : > { %v3437_v58 = vld [vmem:[#allocation8 + $0x590] sm:$0xff] }
 0x36f   : > { %2613 = vmatmul.mubr.f32.gmra.mrb[126].mxu1 %v11166_v17 }
 0x370   : > { %4115 = vmatprep.mubr.f32.mxu1 %v16386_v51  ;;  %v3421_v51 = vld [vmem:[#allocation8 + $0x510] sm:$0xff] }
 0x373   : > { %4116 = vmatmul.mubr.f32.vlgmr.msra.gmra.mrb[128].mxu1 %v12598_v12  ;;  %v3417_v12 = vld [vmem:[#allocation8 + $0x4f0] sm:$0xff] }
 0x374   : > { %4121 = vmatprep.mubr.f32.mxu1 %v12616_v16  ;;  %8661 = vmatpush1.bf16.msra.mxu1 %v8660_v37  ;;  %v3426_v16 = vld [vmem:[#allocation8 + $0x538] sm:$0xff]  ;;  %v8672_v4 = vpack.c.bf16 %v3417_v12, %v3413_v55 }
 0x375   : > { %8663 = vmatprep.subr.bf16.mxu1 %v8662_v63  ;;  %v8674_v17 = vpack.c.bf16 %v3426_v16, %v3422_v27  ;;  %v3430_v37 = vld [vmem:[#allocation8 + $0x558] sm:$0xff] }
 0x376   : > { %v16387_v63 = vld [vmem:[#allocation52_spill] sm:$0xff] }
 0x377   : > { %4122 = vmatmul.mubr.f32.gmra.mrb[130].mxu1 %v12624_v54  ;;  %v3425_v54 = vld [vmem:[#allocation8 + $0x530] sm:$0xff]  ;;  %v3450_v55 = vld [vmem:[#allocation8 + $0x5f8] sm:$0xff] }
 0x378   : > { %4127 = vmatprep.mubr.f32.mxu1 %v12650_v48  ;;  %8665 = vmatpush1.bf16.msra.mxu1 %v8664_v29  ;;  %v3434_v48 = vld [vmem:[#allocation8 + $0x578] sm:$0xff]  ;;  %v8676_v10 = vpack.c.bf16 %v3425_v54, %v3421_v51 }
 0x379   : > { %8667 = vmatprep.subr.bf16.mxu1 %v8666_v42  ;;  %v8678_v36 = vpack.c.bf16 %v3434_v48, %v3430_v37  ;;  %v3438_v29 = vld [vmem:[#allocation8 + $0x598] sm:$0xff]  ;;  %v16389_v42 = vld [vmem:[#allocation54_spill] sm:$0xff] }
 0x37a   : > { %v16391_v12 = vld [vmem:[#allocation56_spill] sm:$0xff] }
 0x37b   : > { %4128 = vmatmul.mubr.f32.gmra.mrb[132].mxu1 %v12658_v62  ;;  %v3433_v62 = vld [vmem:[#allocation8 + $0x570] sm:$0xff]  ;;  %v3454_v51 = vld [vmem:[#allocation8 + $0x618] sm:$0xff] }
 0x37c   : > { %4133 = vmatprep.mubr.f32.mxu1 %v12676_v52  ;;  %8669 = vmatpush1.bf16.msra.mxu1 %v8668_v3  ;;  %v3442_v52 = vld [vmem:[#allocation8 + $0x5b8] sm:$0xff]  ;;  %v8680_v50 = vpack.c.bf16 %v3433_v62, %v3429_v35  ;;  %v3441_v3 = vld [vmem:[#allocation8 + $0x5b0] sm:$0xff] }
 0x37d   : > { %8671 = vmatprep.subr.bf16.mxu1 %v8670_v7  ;;  %v8682_v2 = vpack.c.bf16 %v3442_v52, %v3438_v29  ;;  %v3446_v7 = vld [vmem:[#allocation8 + $0x5d8] sm:$0xff]  ;;  %v8684_v27 = vpack.c.bf16 %v3441_v3, %v3437_v58  ;;  %v3461_v62 = vld [vmem:[#allocation8 + $0x650] sm:$0xff] }
 0x37e   : > { %v8686_v16 = vpack.c.bf16 %v3450_v55, %v3446_v7  ;;  %v3458_v54 = vld [vmem:[#allocation8 + $0x638] sm:$0xff]  ;;  %v3477_v3 = vld [vmem:[#allocation8 + $0x6d0] sm:$0xff] }
 0x37f   : > { %4134 = vmatmul.mubr.f32.gmra.mrb[134].mxu1 %v16387_v63  ;;  %v8690_v48 = vpack.c.bf16 %v3458_v54, %v3454_v51  ;;  %v3453_v63 = vld [vmem:[#allocation8 + $0x610] sm:$0xff]  ;;  %v3470_v29 = vld [vmem:[#allocation8 + $0x698] sm:$0xff] }
 0x380   : > { %4139 = vmatprep.mubr.f32.mxu1 %v16388_v31  ;;  %8673 = vmatpush1.bf16.msra.mxu1 %v8672_v4  ;;  %v3445_v4 = vld [vmem:[#allocation8 + $0x5d0] sm:$0xff]  ;;  %v3486_v7 = vld [vmem:[#allocation8 + $0x718] sm:$0xff] }
 0x381   : > { %8675 = vmatprep.subr.bf16.mxu1 %v8674_v17  ;;  %v3449_v17 = vld [vmem:[#allocation8 + $0x5f0] sm:$0xff]  ;;  %v3502_v54 = vld [vmem:[#allocation8 + $0x798] sm:$0xff] }
 0x382   : > { %v8688_v37 = vpack.c.bf16 %v3449_v17, %v3445_v4  ;;  %v3457_v31 = vld [vmem:[#allocation8 + $0x630] sm:$0xff] }
 0x383   : > { %4140 = vmatmul.mubr.f32.gmra.mrb[136].mxu1 %v16389_v42  ;;  %v3493_v51 = vld [vmem:[#allocation8 + $0x750] sm:$0xff] }
 0x384   : > { %4145 = vmatprep.mubr.f32.mxu1 %v16390_v44  ;;  %8677 = vmatpush1.bf16.msra.mxu1 %v8676_v10  ;;  %v3462_v10 = vld [vmem:[#allocation8 + $0x658] sm:$0xff]  ;;  %v3469_v44 = vld [vmem:[#allocation8 + $0x690] sm:$0xff] }
 0x385   : > { %8679 = vmatprep.subr.bf16.mxu1 %v8678_v36  ;;  %v8692_v36 = vpack.c.bf16 %v3457_v31, %v3453_v63  ;;  %v3501_v63 = vld [vmem:[#allocation8 + $0x790] sm:$0xff]  ;;  %v3510_v31 = vld [vmem:[#allocation8 + $0x7d8] sm:$0xff] }
 0x387   : > { %4146 = vmatmul.mubr.f32.gmra.mrb[138].mxu1 %v16391_v12 }
 0x388   : > { %4151 = vmatprep.mubr.f32.mxu1 %v12766_v13  ;;  %8681 = vmatpush1.bf16.msra.mxu1 %v8680_v50  ;;  %v3466_v13 = vld [vmem:[#allocation8 + $0x678] sm:$0xff] }
 0x389   : > { %8683 = vmatprep.subr.bf16.mxu1 %v8682_v2  ;;  %v8694_v35 = vpack.c.bf16 %v3466_v13, %v3462_v10  ;;  %v3478_v50 = vld [vmem:[#allocation8 + $0x6d8] sm:$0xff] }
 0x38b   : > { %4152 = vmatmul.mubr.f32.gmra.mrb[140].mxu1 %v12772_v49  ;;  %v3465_v49 = vld [vmem:[#allocation8 + $0x670] sm:$0xff] }
 0x38c   : > { %4157 = vmatprep.mubr.f32.mxu1 %v12788_v25  ;;  %8685 = vmatpush1.bf16.msra.mxu1 %v8684_v27  ;;  %v3474_v25 = vld [vmem:[#allocation8 + $0x6b8] sm:$0xff]  ;;  %v8696_v52 = vpack.c.bf16 %v3465_v49, %v3461_v62  ;;  %v3485_v27 = vld [vmem:[#allocation8 + $0x710] sm:$0xff]  ;;  %v16396_v49 = vld [vmem:[#allocation33_spill] sm:$0xff] }
 0x38d   : > { %8687 = vmatprep.subr.bf16.mxu1 %v8686_v16  ;;  %v8698_v42 = vpack.c.bf16 %v3474_v25, %v3470_v29  ;;  %v3494_v16 = vld [vmem:[#allocation8 + $0x758] sm:$0xff]  ;;  %v16393_v62 = vld [vmem:[#allocation30_spill] sm:$0xff] }
 0x38e   : > { %v16397_v29 = vld [vmem:[#allocation58_spill] sm:$0xff] }
 0x38f   : > { %4158 = vmatmul.mubr.f32.gmra.mrb[142].mxu1 %v12799_v61  ;;  %v3473_v61 = vld [vmem:[#allocation8 + $0x6b0] sm:$0xff] }
 0x390   : > { %4163 = vmatprep.mubr.f32.mxu1 %v12822_v59  ;;  %8689 = vmatpush1.bf16.msra.mxu1 %v8688_v37  ;;  %v3482_v59 = vld [vmem:[#allocation8 + $0x6f8] sm:$0xff]  ;;  %v8700_v2 = vpack.c.bf16 %v3473_v61, %v3469_v44  ;;  %v16400_v61 = vld [vmem:[#allocation34_spill] sm:$0xff] }
 0x391   : > { %8691 = vmatprep.subr.bf16.mxu1 %v8690_v48  ;;  %v8702_v58 = vpack.c.bf16 %v3482_v59, %v3478_v50 }
 0x393   : > { %4164 = vmatmul.mubr.f32.gmra.mrb[144].mxu1 %v12828_v32  ;;  %v3481_v32 = vld [vmem:[#allocation8 + $0x6f0] sm:$0xff] }
 0x394   : > { %4169 = vmatprep.mubr.f32.mxu1 %v12844_v45  ;;  %8693 = vmatpush1.bf16.msra.mxu1 %v8692_v36  ;;  %v3490_v45 = vld [vmem:[#allocation8 + $0x738] sm:$0xff]  ;;  %v8704_v55 = vpack.c.bf16 %v3481_v32, %v3477_v3  ;;  %v3509_v36 = vld [vmem:[#allocation8 + $0x7d0] sm:$0xff] }
 0x395   : > { %8695 = vmatprep.subr.bf16.mxu1 %v8694_v35  ;;  %v8706_v12 = vpack.c.bf16 %v3490_v45, %v3486_v7  ;;  %v16392_v35 = vld [vmem:[#allocation57_spill] sm:$0xff]  ;;  %v16402_v32 = vld [vmem:[#allocation36_spill] sm:$0xff] }
 0x397   : > { %4170 = vmatmul.mubr.f32.gmra.mrb[146].mxu1 %v12855_v60  ;;  %v3489_v60 = vld [vmem:[#allocation8 + $0x730] sm:$0xff] }
 0x398   : > { %4175 = vmatprep.mubr.f32.mxu1 %v12878_v40  ;;  %8697 = vmatpush1.bf16.msra.mxu1 %v8696_v52  ;;  %v3498_v40 = vld [vmem:[#allocation8 + $0x778] sm:$0xff]  ;;  %v8708_v4 = vpack.c.bf16 %v3489_v60, %v3485_v27  ;;  %v16403_v27 = vld [vmem:[#allocation37_spill] sm:$0xff] }
 0x399   : > { %8699 = vmatprep.subr.bf16.mxu1 %v8698_v42  ;;  %v8710_v17 = vpack.c.bf16 %v3498_v40, %v3494_v16  ;;  %v16404_v16 = vld [vmem:[#allocation38_spill] sm:$0xff] }
 0x39b   : > { %4176 = vmatmul.mubr.f32.gmra.mrb[148].mxu1 %v12884_v53  ;;  %v3497_v53 = vld [vmem:[#allocation8 + $0x770] sm:$0xff] }
 0x39c   : > { %4181 = vmatprep.mubr.f32.mxu1 %v12900_v24  ;;  %8701 = vmatpush1.bf16.msra.mxu1 %v8700_v2  ;;  %v3506_v24 = vld [vmem:[#allocation8 + $0x7b8] sm:$0xff]  ;;  %v8712_v37 = vpack.c.bf16 %v3497_v53, %v3493_v51 }
 0x39d   : > { %8703 = vmatprep.subr.bf16.mxu1 %v8702_v58  ;;  %v8714_v48 = vpack.c.bf16 %v3506_v24, %v3502_v54  ;;  %v16401_v58 = vld [vmem:[#allocation35_spill] sm:$0xff] }
 0x39e   : > { %v16405_v54 = vld [vmem:[#allocation39_spill] sm:$0xff] }
 0x39f   : > { %4182 = vmatmul.mubr.f32.gmra.mrb[150].mxu1 %v12911_v15  ;;  %v3505_v15 = vld [vmem:[#allocation8 + $0x7b0] sm:$0xff] }
 0x3a0   : > { %4187 = vmatprep.mubr.f32.mxu1 %v12934_v18  ;;  %8705 = vmatpush1.bf16.msra.mxu1 %v8704_v55  ;;  %v3514_v18 = vld [vmem:[#allocation8 + $0x7f8] sm:$0xff]  ;;  %v8716_v10 = vpack.c.bf16 %v3505_v15, %v3501_v63  ;;  %v5206_v24 = vld [vmem:[#allocation11 + $0x8] sm:$0xff] }
 0x3a1   : > { %8707 = vmatprep.subr.bf16.mxu1 %v8706_v12  ;;  %v8718_v13 = vpack.c.bf16 %v3514_v18, %v3510_v31 }
 0x3a3   : > { %4188 = vmatmul.mubr.f32.gmra.mrb[152].mxu1 %v12940_v41  ;;  %v3513_v41 = vld [vmem:[#allocation8 + $0x7f0] sm:$0xff] }
 0x3a4   : > { %4193 = vmatprep.mubr.f32.mxu1 %v12956_v11  ;;  %8709 = vmatpush1.bf16.msra.mxu1 %v8708_v4  ;;  %v8720_v11 = vpack.c.bf16 %v3513_v41, %v3509_v36  ;;  %v5205_v41 = vld [vmem:[#allocation11] sm:$0xff] }
 0x3a5   : > { %8711 = vmatprep.subr.bf16.mxu1 %v8710_v17 }
 0x3a7   : > { %4194 = vmatmul.mubr.f32.gmra.mrb[154].mxu1 %v12967_v47  ;;  %v16394_v47 = vld [vmem:[#allocation31_spill] sm:$0xff] }
 0x3a8   : > { %4199 = vmatprep.mubr.f32.mxu1 %v12990_v28  ;;  %8713 = vmatpush1.bf16.msra.mxu1 %v8712_v37  ;;  %v16395_v28 = vld [vmem:[#allocation32_spill] sm:$0xff]  ;;  %v5210_v37 = vld [vmem:[#allocation11 + $0x28] sm:$0xff] }
 0x3a9   : > { %8715 = vmatprep.subr.bf16.mxu1 %v8714_v48  ;;  %v8722_v63 = vpack.c.bf16 %v5210_v37, %v5206_v24 }
 0x3ab   : > { %4200 = vmatmul.mubr.f32.gmra.mrb[156].mxu1 %v16392_v35  ;;  %8723 = vmatprep.subr.bf16.mxu0 %v8722_v63  ;;  %v5209_v35 = vld [vmem:[#allocation11 + $0x20] sm:$0xff] }
 0x3ac   : > { %4205 = vmatprep.mubr.f32.mxu1 %v13012_v14  ;;  %8717 = vmatpush1.bf16.msra.mxu1 %v8716_v10  ;;  %v16398_v14 = vld [vmem:[#allocation42_spill] sm:$0xff] }
 0x3ad   : > { %8719 = vmatprep.subr.bf16.mxu1 %v8718_v13  ;;  %v13390_v25 = vsub.s32 2, %v16398_v14 }
 0x3af   : > { %4206 = vmatmul.mubr.f32.gmra.mrb[158].mxu1 %v16393_v62 }
 0x3b0   : > { %4211 = vmatprep.mubr.f32.mxu1 %v13046_v33  ;;  %8721 = vmatpush1.bf16.msra.mxu1 %v8720_v11  ;;  %v13394_v33 = vsub.s32 3, %v16398_v14 }
 0x3b2   : > { %16399 = vst [vmem:[#allocation41_spill] sm:$0xff] %v13394_v33 }
 0x3b3   : > { %4212 = vmatmul.mubr.f32.gmra.mrb[160].mxu1 %v16394_v47 }
 0x3b4   : > { %4217 = vmatprep.mubr.f32.mxu1 %v13068_v9  ;;  %v11167_v9 = vld [vmem:[#allocation7] sm:$0xf] }
 0x3b5   : > { %v13398_v52 = vrot.slane %v11167_v9, %v13390_v25 }
 0x3b7   : > { %4218 = vmatmul.mubr.f32.gmra.mrb[162].mxu1 %v16395_v28 }
 0x3b8   : > { %4223 = vmatprep.mubr.f32.mxu1 %v16396_v49  ;;  %v5218_v49 = vld [vmem:[#allocation11 + $0x68] sm:$0xff] }
 0x3bb   : > { %4224 = vmatmul.mubr.f32.gmra.mrb[164].mxu1 %v16397_v29 }
 0x3bc   : > { %4229 = vmatprep.mubr.f32.mxu1 %v13124_v8  ;;  %v13402_v8 = vrot.slane %v11167_v9, %v13394_v33  ;;  %v16406_v9 = vld [vmem:[#allocation40_spill] sm:$0xff] }
 0x3bf   : > { %4230 = vmatmul.mubr.f32.gmra.mrb[166].mxu1 %v13131_v23 }
 0x3c0   : > { %4235 = vmatprep.mubr.f32.mxu1 %v13151_v21 }
 0x3c3   : > { %4236 = vmatmul.mubr.f32.gmra.mrb[168].mxu1 %v13155_v43  ;;  %v2428_v23 = vpop.f32.mrb[64].mxu1 }
 0x3c4   : > { %4241 = vmatprep.mubr.f32.mxu1 %v13171_v26  ;;  %v9234_v42 = vadd.f32 %v2428_v23, %v13398_v52  ;;  %v2430_v44 = vpop.f32.mrb[65].mxu1 }
 0x3c5   : > { %v9235_v21 = vadd.f32 %v2430_v44, %v13402_v8 }
 0x3c6   : > { %v2749_v43 = vmul.f32 0.70710677, %v9234_v42  ;;  %v2621_v29 = vmul.f32 0.5, %v9234_v42 }
 0x3c7   : > { %4242 = vmatmul.mubr.f32.gmra.mrb[170].mxu1 %v16400_v61  ;;  %v2750_v50 = vmul.f32 0.70710677, %v9235_v21  ;;  %v2622_v11 = vmul.f32 0.5, %v9235_v21  ;;  %v8724_v21 = vpack.c.bf16 %v5209_v35, %v5205_v41  ;;  %v5230_v41 = vld [vmem:[#allocation11 + $0xc8] sm:$0xff] }
 0x3c8   : > { %4247 = vmatprep.mubr.f32.mxu1 %v13191_v19  ;;  %v2434_v59 = vpop.f32.mrb[66].mxu1  ;;  %10389 = verf.f32 %v2749_v43  ;;  %v5234_v35 = vld [vmem:[#allocation11 + $0xe8] sm:$0xff] }
 0x3c9   : > { %v13409_v2 = vadd.f32 %v2434_v59, %v13398_v52  ;;  %v2436_v26 = vpop.f32.mrb[67].mxu1  ;;  %10391 = verf.f32 %v2750_v50 }
 0x3ca   : > { %v9237_v3 = vadd.f32 %v2436_v26, %v13402_v8 }
 0x3cb   : > { %4248 = vmatmul.mubr.f32.gmra.mrb[172].mxu1 %v16401_v58  ;;  %v2753_v7 = vmul.f32 0.70710677, %v13409_v2  ;;  %v5213_v58 = vld [vmem:[#allocation11 + $0x40] sm:$0xff] }
 0x3cc   : > { %4253 = vmatprep.mubr.f32.mxu1 %v16402_v32  ;;  %v2754_v45 = vmul.f32 0.70710677, %v9237_v3  ;;  %v2440_v55 = vpop.f32.mrb[68].mxu1  ;;  %v5217_v32 = vld [vmem:[#allocation11 + $0x60] sm:$0xff] }
 0x3cd   : > { %10393 = verf.f32 %v2753_v7  ;;  %v13416_v19 = vadd.f32 %v2440_v55, %v13398_v52  ;;  %v2442_v12 = vpop.f32.mrb[69].mxu1  ;;  %v2626_v7 = vmul.f32 0.5, %v9237_v3 }
 0x3ce   : > { %10395 = verf.f32 %v2754_v45  ;;  %v13420_v60 = vadd.f32 %v2442_v12, %v13402_v8 }
 0x3cf   : > { %4254 = vmatmul.mubr.f32.gmra.mrb[174].mxu1 %v16403_v27  ;;  %v2757_v40 = vmul.f32 0.70710677, %v13416_v19  ;;  %v5222_v27 = vld [vmem:[#allocation11 + $0x88] sm:$0xff] }
 0x3d0   : > { %4259 = vmatprep.mubr.f32.mxu1 %v16404_v16  ;;  %v2758_v4 = vmul.f32 0.70710677, %v13420_v60  ;;  %v2446_v17 = vpop.f32.mrb[70].mxu1  ;;  %v5226_v16 = vld [vmem:[#allocation11 + $0xa8] sm:$0xff] }
 0x3d1   : > { %10397 = verf.f32 %v2757_v40  ;;  %v13426_v51 = vadd.f32 %v2446_v17, %v13398_v52  ;;  %v2448_v53 = vpop.f32.mrb[71].mxu1  ;;  %v2625_v40 = vmul.f32 0.5, %v13409_v2 }
 0x3d2   : > { %10399 = verf.f32 %v2758_v4  ;;  %v13430_v48 = vadd.f32 %v2448_v53, %v13402_v8  ;;  %v10390_v15 = vpop.eup %10389 }
 0x3d3   : > { %4260 = vmatmul.mubr.f32.gmra.mrb[176].mxu1 %v16405_v54  ;;  %v2761_v31 = vmul.f32 0.70710677, %v13426_v51  ;;  %v10392_v18 = vpop.eup %10391  ;;  %v3005_v10 = vadd.f32 1.0, %v10390_v15  ;;  %v8728_v54 = vpack.c.bf16 %v5217_v32, %v5213_v58  ;;  %v8730_v15 = vpack.c.bf16 %v5226_v16, %v5222_v27  ;;  %v5242_v32 = vld [vmem:[#allocation11 + $0x128] sm:$0xff] }
 0x3d4   : > { %4265 = vmatprep.mubr.f32.mxu1 %v13251_v20  ;;  %v2762_v13 = vmul.f32 0.70710677, %v13430_v48  ;;  %v2452_v36 = vpop.f32.mrb[72].mxu1  ;;  %v3006_v62 = vadd.f32 1.0, %v10392_v18  ;;  %v5214_v20 = vld [vmem:[#allocation11 + $0x48] sm:$0xff]  ;;  %v5225_v18 = vld [vmem:[#allocation11 + $0xa0] sm:$0xff] }
 0x3d5   : > { %10401 = verf.f32 %v2761_v31  ;;  %v13436_v47 = vadd.f32 %v2452_v36, %v13398_v52  ;;  %v2454_v28 = vpop.f32.mrb[73].mxu1  ;;  %v13446_v50 = vmul.f32 %v3005_v10, %v2621_v29  ;;  %v8726_v42 = vpack.c.bf16 %v5218_v49, %v5214_v20  ;;  %v5221_v31 = vld [vmem:[#allocation11 + $0x80] sm:$0xff] }
 0x3d6   : > { %10403 = verf.f32 %v2762_v13  ;;  %v13440_v14 = vadd.f32 %v2454_v28, %v13402_v8  ;;  %v13444_v61 = vmul.f32 %v3006_v62, %v2622_v11  ;;  %v2629_v11 = vmul.f32 0.5, %v13416_v19 }
 0x3d7   : > { %4266 = vmatmul.mubr.f32.gmra.mrb[178].mxu1 %v13257_v56  ;;  %v10394_v23 = vpop.eup %10393  ;;  %v2765_v44 = vmul.f32 0.70710677, %v13436_v47  ;;  %v8732_v49 = vpack.c.bf16 %v5225_v18, %v5221_v31 }
 0x3d8   : > { %4271 = vmatprep.mubr.f32.mxu1 %v16406_v9  ;;  %v10396_v43 = vpop.eup %10395  ;;  %v3009_v59 = vadd.f32 1.0, %v10394_v23  ;;  %v2766_v56 = vmul.f32 0.70710677, %v13440_v14  ;;  %v2458_v26 = vpop.f32.mrb[74].mxu1  ;;  %3858 = vmatprep.mubr.f32.mxu0 %v13444_v61 }
 0x3d9   : > { %v3010_v45 = vadd.f32 1.0, %v10396_v43  ;;  %10405 = verf.f32 %v2765_v44  ;;  %v13450_v55 = vadd.f32 %v2458_v26, %v13398_v52  ;;  %v2460_v12 = vpop.f32.mrb[75].mxu1  ;;  %3859 = vmatmul.mubr.f32.vlgmr.msra.gmra.mrb[64].mxu0 %v13446_v50  ;;  %v8734_v44 = vpack.c.bf16 %v5234_v35, %v5230_v41  ;;  %v5233_v43 = vld [vmem:[#allocation11 + $0xe0] sm:$0xff] }
 0x3da   : > { %10407 = verf.f32 %v2766_v56  ;;  %v13456_v4 = vadd.f32 %v2460_v12, %v13402_v8  ;;  %8725 = vmatpush1.bf16.msra.mxu0 %v8724_v21  ;;  %v13464_v63 = vmul.f32 %v3009_v59, %v2625_v40  ;;  %v5229_v21 = vld [vmem:[#allocation11 + $0xc0] sm:$0xff] }
 0x3db   : > { %4272 = vmatmul.mubr.f32.gmra.mrb[180].mxu1 %v13277_v39  ;;  %v10398_v3 = vpop.eup %10397  ;;  %v2769_v17 = vmul.f32 0.70710677, %v13450_v55  ;;  %v13461_v53 = vmul.f32 %v3010_v45, %v2626_v7  ;;  %8727 = vmatprep.subr.bf16.mxu0 %v8726_v42  ;;  %v2633_v42 = vmul.f32 0.5, %v13426_v51  ;;  %v8736_v27 = vpack.c.bf16 %v5233_v43, %v5229_v21  ;;  %v5249_v43 = vld [vmem:[#allocation11 + $0x160] sm:$0xff] }
 0x3dc   : > { %4277 = vmatprep.mubr.f32.mxu1 %v13289_v30  ;;  %v10400_v39 = vpop.eup %10399  ;;  %v3013_v24 = vadd.f32 1.0, %v10398_v3  ;;  %v2770_v37 = vmul.f32 0.70710677, %v13456_v4  ;;  %v2464_v2 = vpop.f32.mrb[76].mxu1  ;;  %v2630_v30 = vmul.f32 0.5, %v13420_v60 }
 0x3dd   : > { %v3014_v10 = vadd.f32 1.0, %v10400_v39  ;;  %10409 = verf.f32 %v2769_v17  ;;  %v13468_v13 = vadd.f32 %v2464_v2, %v13398_v52  ;;  %v2466_v36 = vpop.f32.mrb[77].mxu1  ;;  %3864 = vmatprep.mubr.f32.mxu0 %v13461_v53  ;;  %v2638_v39 = vmul.f32 0.5, %v13440_v14 }
 0x3de   : > { %10411 = verf.f32 %v2770_v37  ;;  %v13474_v62 = vadd.f32 %v2466_v36, %v13402_v8  ;;  %3865 = vmatmul.mubr.f32.gmra.mrb[66].mxu0 %v13464_v63  ;;  %v13482_v23 = vmul.f32 %v3013_v24, %v2629_v11  ;;  %v2642_v11 = vmul.f32 0.5, %v13456_v4  ;;  %v5246_v4 = vld [vmem:[#allocation11 + $0x148] sm:$0xff] }
 0x3df   : > { %4278 = vmatmul.mubr.f32.gmra.mrb[182].mxu1 %v13293_v0  ;;  %v10402_v60 = vpop.eup %10401  ;;  %v2773_v28 = vmul.f32 0.70710677, %v13468_v13  ;;  %v13479_v20 = vmul.f32 %v3014_v10, %v2630_v30  ;;  %8729 = vmatpush1.bf16.msra.mxu0 %v8728_v54  ;;  %v5237_v54 = vld [vmem:[#allocation11 + $0x100] sm:$0xff] }
 0x3e0   : > { %4283 = vmatprep.mubr.f32.mxu1 %v13300_v57  ;;  %v10404_v0 = vpop.eup %10403  ;;  %v3017_v29 = vadd.f32 1.0, %v10402_v60  ;;  %v2774_v9 = vmul.f32 0.70710677, %v13474_v62  ;;  %v2470_v19 = vpop.f32.mrb[78].mxu1  ;;  %8731 = vmatprep.subr.bf16.mxu0 %v8730_v15  ;;  %v2634_v57 = vmul.f32 0.5, %v13430_v48  ;;  %v5238_v48 = vld [vmem:[#allocation11 + $0x108] sm:$0xff] }
 0x3e1   : > { %v3018_v59 = vadd.f32 1.0, %v10404_v0  ;;  %10413 = verf.f32 %v2773_v28  ;;  %v13486_v56 = vadd.f32 %v2470_v19, %v13398_v52  ;;  %v2472_v26 = vpop.f32.mrb[79].mxu1  ;;  %3870 = vmatprep.mubr.f32.mxu0 %v13479_v20  ;;  %v8738_v17 = vpack.c.bf16 %v5242_v32, %v5238_v48 }
 0x3e2   : > { %10415 = verf.f32 %v2774_v9  ;;  %v13492_v58 = vadd.f32 %v2472_v26, %v13402_v8  ;;  %3871 = vmatmul.mubr.f32.gmra.mrb[68].mxu0 %v13482_v23  ;;  %v13500_v3 = vmul.f32 %v3017_v29, %v2633_v42  ;;  %v2637_v15 = vmul.f32 0.5, %v13436_v47  ;;  %v5250_v29 = vld [vmem:[#allocation11 + $0x168] sm:$0xff]  ;;  %v5245_v9 = vld [vmem:[#allocation11 + $0x140] sm:$0xff] }
 0x3e3   : > { %4284 = vmatmul.mubr.f32.gmra.mrb[184].mxu1 %v13303_v38  ;;  %v10406_v7 = vpop.eup %10405  ;;  %v2777_v45 = vmul.f32 0.70710677, %v13486_v56  ;;  %v13497_v12 = vmul.f32 %v3018_v59, %v2634_v57  ;;  %8733 = vmatpush1.bf16.msra.mxu0 %v8732_v49  ;;  %v2641_v49 = vmul.f32 0.5, %v13450_v55  ;;  %v8744_v48 = vpack.c.bf16 %v5249_v43, %v5245_v9  ;;  %v5207_v9 = vld [vmem:[#allocation11 + $0x10] sm:$0xff] }
 0x3e4   : > { %4289 = vmatprep.mubr.f32.mxu1 %v13310_v46  ;;  %v10408_v38 = vpop.eup %10407  ;;  %v3021_v16 = vadd.f32 1.0, %v10406_v7  ;;  %v2778_v51 = vmul.f32 0.70710677, %v13492_v58  ;;  %v2476_v40 = vpop.f32.mrb[80].mxu1  ;;  %8735 = vmatprep.subr.bf16.mxu0 %v8734_v44  ;;  %v5241_v46 = vld [vmem:[#allocation11 + $0x120] sm:$0xff] }
 0x3e5   : > { %v3022_v24 = vadd.f32 1.0, %v10408_v38  ;;  %10417 = verf.f32 %v2777_v45  ;;  %v13504_v37 = vadd.f32 %v2476_v40, %v13398_v52  ;;  %v2478_v2 = vpop.f32.mrb[81].mxu1  ;;  %3876 = vmatprep.mubr.f32.mxu0 %v13497_v12  ;;  %v8740_v10 = vpack.c.bf16 %v5241_v46, %v5237_v54  ;;  %v5258_v38 = vld [vmem:[#allocation11 + $0x1a8] sm:$0xff] }
 0x3e6   : > { %10419 = verf.f32 %v2778_v51  ;;  %v13510_v31 = vadd.f32 %v2478_v2, %v13402_v8  ;;  %3877 = vmatmul.mubr.f32.gmra.mrb[70].mxu0 %v13500_v3  ;;  %v13518_v35 = vmul.f32 %v3021_v16, %v2637_v15  ;;  %v5253_v16 = vld [vmem:[#allocation11 + $0x180] sm:$0xff]  ;;  %v2645_v51 = vmul.f32 0.5, %v13468_v13 }
 0x3e7   : > { %4290 = vmatmul.mubr.f32.gmra.mrb[186].mxu1 %v13313_v6  ;;  %v10410_v14 = vpop.eup %10409  ;;  %v2781_v18 = vmul.f32 0.70710677, %v13504_v37  ;;  %v13515_v30 = vmul.f32 %v3022_v24, %v2638_v39  ;;  %8737 = vmatpush1.bf16.msra.mxu0 %v8736_v27  ;;  %v5254_v27 = vld [vmem:[#allocation11 + $0x188] sm:$0xff]  ;;  %v2649_v54 = vmul.f32 0.5, %v13486_v56  ;;  %v2650_v56 = vmul.f32 0.5, %v13492_v58 }
 0x3e8   : > { %4295 = vmatprep.mubr.f32.mxu1 %v13320_v22  ;;  %v10412_v36 = vpop.eup %10411  ;;  %v3025_v41 = vadd.f32 1.0, %v10410_v14  ;;  %v2782_v6 = vmul.f32 0.70710677, %v13510_v31  ;;  %8739 = vmatprep.subr.bf16.mxu0 %v8738_v17  ;;  %v8746_v39 = vpack.c.bf16 %v5258_v38, %v5254_v27  ;;  %v13554_v24 = vld [vmem:[#allocation11 + $0x1c8] sm:$0xff]  ;;  %v5220_v27 = vld [vmem:[#allocation11 + $0x78] sm:$0xff] }
 0x3e9   : > { %v3026_v60 = vadd.f32 1.0, %v10412_v36  ;;  %10421 = verf.f32 %v2781_v18  ;;  %3882 = vmatprep.mubr.f32.mxu0 %v13515_v30  ;;  %v13559_v36 = vld [vmem:[#allocation11 + $0x1c0] sm:$0xff] }
 0x3ea   : > { %v2482_v47 = vpop.f32.mrb[82].mxu1  ;;  %10423 = verf.f32 %v2782_v6  ;;  %3883 = vmatmul.mubr.f32.gmra.mrb[72].mxu0 %v13518_v35  ;;  %v13536_v42 = vmul.f32 %v3025_v41, %v2641_v49  ;;  %v2653_v49 = vmul.f32 0.5, %v13504_v37 }
 0x3eb   : > { %v13522_v22 = vadd.f32 %v2482_v47, %v13398_v52  ;;  %v2484_v28 = vpop.f32.mrb[83].mxu1  ;;  %4296 = vmatmul.mubr.f32.gmra.mrb[188].mxu1 %v13323_v5  ;;  %v10414_v19 = vpop.eup %10413  ;;  %v13533_v21 = vmul.f32 %v3026_v60, %v2642_v11  ;;  %8741 = vmatpush1.bf16.msra.mxu0 %v8740_v10  ;;  %v8742_v5 = vpack.c.bf16 %v5250_v29, %v5246_v4  ;;  %v5266_v10 = vld [vmem:[#allocation11 + $0x1e8] sm:$0xff]  ;;  %v5265_v11 = vld [vmem:[#allocation11 + $0x1e0] sm:$0xff]  ;;  %v5208_v60 = vld [vmem:[#allocation11 + $0x18] sm:$0xff]  ;;  %v2654_v4 = vmul.f32 0.5, %v13510_v31 }
 0x3ec   : > { %v13528_v0 = vadd.f32 %v2484_v28, %v13402_v8  ;;  %4301 = vmatprep.mubr.f32.mxu1 %v13330_v34  ;;  %v10416_v55 = vpop.eup %10415  ;;  %v3029_v57 = vadd.f32 1.0, %v10414_v19  ;;  %v2646_v34 = vmul.f32 0.5, %v13474_v62  ;;  %v5257_v62 = vld [vmem:[#allocation11 + $0x1a0] sm:$0xff]  ;;  %v5212_v28 = vld [vmem:[#allocation11 + $0x38] sm:$0xff]  ;;  %v13574_v29 = vld [vmem:[#allocation11 + $0x208] sm:$0xff]  ;;  %v8750_v37 = vpack.c.bf16 %v5266_v10, %v13554_v24 }
 0x3ed   : > { %v2785_v44 = vmul.f32 0.70710677, %v13522_v22  ;;  %v3030_v32 = vadd.f32 1.0, %v10416_v55  ;;  %3888 = vmatprep.mubr.f32.mxu0 %v13533_v21  ;;  %8743 = vmatprep.subr.bf16.mxu0 %v8742_v5  ;;  %v5211_v19 = vld [vmem:[#allocation11 + $0x30] sm:$0xff]  ;;  %v13580_v31 = vld [vmem:[#allocation11 + $0x228] sm:$0xff]  ;;  %v8850_v43 = vpack.c.bf16 %v5212_v28, %v5208_v60  ;;  %v13582_v55 = vld [vmem:[#allocation11 + $0x200] sm:$0xff] }
 0x3ee   : > { %v2786_v59 = vmul.f32 0.70710677, %v13528_v0  ;;  %v2488_v26 = vpop.f32.mrb[84].mxu1  ;;  %3889 = vmatmul.mubr.f32.gmra.mrb[74].mxu0 %v13536_v42  ;;  %v13557_v18 = vmul.f32 %v3029_v57, %v2645_v51  ;;  %v13584_v57 = vld [vmem:[#allocation11 + $0x220] sm:$0xff]  ;;  %v8754_v24 = vpack.c.bf16 %v13580_v31, %v13574_v29  ;;  %v13612_v10 = vld [vmem:[#allocation11 + $0x98] sm:$0xff] }
 0x3ef   : > { %10425 = verf.f32 %v2785_v44  ;;  %v13540_v7 = vadd.f32 %v2488_v26, %v13398_v52  ;;  %v2490_v45 = vpop.f32.mrb[85].mxu1  ;;  %4302 = vmatmul.mubr.f32.gmra.mrb[190].mxu1 %v13333_v1  ;;  %v10418_v17 = vpop.eup %10417  ;;  %v13552_v1 = vmul.f32 %v3030_v32, %v2646_v34  ;;  %8745 = vmatpush1.bf16.msra.mxu0 %v8744_v48  ;;  %v8752_v32 = vpack.c.bf16 %v5265_v11, %v13559_v36  ;;  %v5228_v60 = vld [vmem:[#allocation11 + $0xb8] sm:$0xff]  ;;  %v13617_v28 = vld [vmem:[#allocation11 + $0x240] sm:$0xff] }
 0x3f0   : > { %10427 = verf.f32 %v2786_v59  ;;  %v13546_v40 = vadd.f32 %v2490_v45, %v13402_v8  ;;  %4372 = vmatprep.mubr.f32.mxu1 %v13444_v61  ;;  %v10420_v13 = vpop.eup %10419  ;;  %v3033_v2 = vadd.f32 1.0, %v10418_v17  ;;  %v8748_v61 = vpack.c.bf16 %v5257_v62, %v5253_v16  ;;  %8747 = vmatprep.subr.bf16.mxu0 %v8746_v39  ;;  %v5216_v45 = vld [vmem:[#allocation11 + $0x58] sm:$0xff]  ;;  %v5215_v17 = vld [vmem:[#allocation11 + $0x50] sm:$0xff] }
 0x3f1   : > { %v2789_v46 = vmul.f32 0.70710677, %v13540_v7  ;;  %v3034_v41 = vadd.f32 1.0, %v10420_v13  ;;  %3894 = vmatprep.mubr.f32.mxu0 %v13552_v1  ;;  %v8852_v62 = vpack.c.bf16 %v5211_v19, %v5207_v9  ;;  %8851 = vmatprep.subr.bf16.mxu1 %v8850_v43  ;;  %v13632_v31 = vld [vmem:[#allocation11 + $0xd8] sm:$0xff] }
 0x3f2   : > { %v2790_v15 = vmul.f32 0.70710677, %v13546_v40  ;;  %v2494_v14 = vpop.f32.mrb[86].mxu1  ;;  %3895 = vmatmul.mubr.f32.gmra.mrb[76].mxu0 %v13557_v18  ;;  %v13587_v34 = vmul.f32 %v3033_v2, %v2649_v54  ;;  %v2657_v54 = vmul.f32 0.5, %v13522_v22  ;;  %v8756_v22 = vpack.c.bf16 %v13584_v57, %v13582_v55 }
 0x3f3   : > { %10429 = verf.f32 %v2789_v46  ;;  %v13563_v6 = vadd.f32 %v2494_v14, %v13398_v52  ;;  %v2496_v47 = vpop.f32.mrb[87].mxu1  ;;  %4373 = vmatmul.mubr.f32.vlgmr.msra.gmra.mrb[128].mxu1 %v13446_v50  ;;  %v10422_v50 = vpop.eup %10421  ;;  %v13577_v5 = vmul.f32 %v3034_v41, %v2650_v56  ;;  %8749 = vmatpush1.bf16.msra.mxu0 %v8748_v61  ;;  %v5219_v46 = vld [vmem:[#allocation11 + $0x70] sm:$0xff]  ;;  %v13608_v14 = vld [vmem:[#allocation11 + $0x248] sm:$0xff] }
 0x3f4   : > { %10431 = verf.f32 %v2790_v15  ;;  %v13570_v58 = vadd.f32 %v2496_v47, %v13402_v8  ;;  %4378 = vmatprep.mubr.f32.mxu1 %v13461_v53  ;;  %v10424_v53 = vpop.eup %10423  ;;  %v3037_v59 = vadd.f32 1.0, %v10422_v50  ;;  %8751 = vmatprep.subr.bf16.mxu0 %v8750_v37  ;;  %v8854_v15 = vpack.c.bf16 %v5220_v27, %v5216_v45  ;;  %v13610_v61 = vld [vmem:[#allocation11 + $0x268] sm:$0xff]  ;;  %v5223_v50 = vld [vmem:[#allocation11 + $0x90] sm:$0xff] }
 0x3f5   : > { %v2793_v44 = vmul.f32 0.70710677, %v13563_v6  ;;  %v3038_v38 = vadd.f32 1.0, %v10424_v53  ;;  %3900 = vmatprep.mubr.f32.mxu0 %v13577_v5  ;;  %8853 = vmatpush1.bf16.msra.mxu1 %v8852_v62  ;;  %v8856_v11 = vpack.c.bf16 %v5219_v46, %v5215_v17  ;;  %v8858_v53 = vpack.c.bf16 %v5228_v60, %v13612_v10  ;;  %v5286_v62 = vld [vmem:[#allocation11 + $0x288] sm:$0xff] }
 0x3f6   : > { %v2794_v26 = vmul.f32 0.70710677, %v13570_v58  ;;  %v2500_v48 = vpop.f32.mrb[88].mxu1  ;;  %3901 = vmatmul.mubr.f32.gmra.mrb[78].mxu0 %v13587_v34  ;;  %v13615_v47 = vmul.f32 %v3037_v59, %v2653_v49  ;;  %v5281_v49 = vld [vmem:[#allocation11 + $0x260] sm:$0xff]  ;;  %8855 = vmatprep.subr.bf16.mxu1 %v8854_v15  ;;  %v13640_v59 = vld [vmem:[#allocation11 + $0xf8] sm:$0xff]  ;;  %v5290_v17 = vld [vmem:[#allocation11 + $0x2a8] sm:$0xff] }
 0x3f7   : > { %10433 = verf.f32 %v2793_v44  ;;  %v13591_v16 = vadd.f32 %v2500_v48, %v13398_v52  ;;  %v2502_v51 = vpop.f32.mrb[89].mxu1  ;;  %4379 = vmatmul.mubr.f32.gmra.mrb[130].mxu1 %v13464_v63  ;;  %v13604_v63 = vmul.f32 %v3038_v38, %v2654_v4  ;;  %8753 = vmatpush1.bf16.msra.mxu0 %v8752_v32  ;;  %v2658_v4 = vmul.f32 0.5, %v13528_v0  ;;  %v5227_v44 = vld [vmem:[#allocation11 + $0xb0] sm:$0xff] }
 0x3f8   : > { %10435 = verf.f32 %v2794_v26  ;;  %v13597_v39 = vadd.f32 %v2502_v51, %v13402_v8  ;;  %4384 = vmatprep.mubr.f32.mxu1 %v13479_v20  ;;  %v8758_v0 = vpack.c.bf16 %v13610_v61, %v13608_v14  ;;  %8755 = vmatprep.subr.bf16.mxu0 %v8754_v24  ;;  %v13642_v26 = vld [vmem:[#allocation11 + $0xd0] sm:$0xff]  ;;  %v8760_v38 = vpack.c.bf16 %v5281_v49, %v13617_v28 }
 0x3f9   : > { %v10426_v13 = vpop.eup %10425  ;;  %v2797_v2 = vmul.f32 0.70710677, %v13591_v16  ;;  %3906 = vmatprep.mubr.f32.mxu0 %v13604_v63  ;;  %8857 = vmatpush1.bf16.msra.mxu1 %v8856_v11  ;;  %v8860_v51 = vpack.c.bf16 %v5227_v44, %v5223_v50  ;;  %v2662_v46 = vmul.f32 0.5, %v13546_v40  ;;  %v2661_v15 = vmul.f32 0.5, %v13540_v7 }
 0x3fa   : > { %v10428_v20 = vpop.eup %10427  ;;  %v3041_v36 = vadd.f32 1.0, %v10426_v13  ;;  %v2798_v56 = vmul.f32 0.70710677, %v13597_v39  ;;  %v2506_v41 = vpop.f32.mrb[90].mxu1  ;;  %3907 = vmatmul.mubr.f32.gmra.mrb[80].mxu0 %v13615_v47  ;;  %v8862_v40 = vpack.c.bf16 %v13640_v59, %v13632_v31  ;;  %8859 = vmatprep.subr.bf16.mxu1 %v8858_v53  ;;  %v8762_v7 = vpack.c.bf16 %v5290_v17, %v5286_v62  ;;  %v5294_v31 = vld [vmem:[#allocation11 + $0x2c8] sm:$0xff]  ;;  %v5252_v62 = vld [vmem:[#allocation11 + $0x178] sm:$0xff] }
 0x3fb   : > { %v3042_v29 = vadd.f32 1.0, %v10428_v20  ;;  %10437 = verf.f32 %v2797_v2  ;;  %v13621_v9 = vadd.f32 %v2506_v41, %v13398_v52  ;;  %v2508_v19 = vpop.f32.mrb[91].mxu1  ;;  %4385 = vmatmul.mubr.f32.gmra.mrb[132].mxu1 %v13482_v23  ;;  %8757 = vmatpush1.bf16.msra.mxu0 %v8756_v22  ;;  %v5285_v2 = vld [vmem:[#allocation11 + $0x280] sm:$0xff]  ;;  %v2666_v49 = vmul.f32 0.5, %v13570_v58 }
 0x3fc   : > { %10439 = verf.f32 %v2798_v56  ;;  %v13626_v37 = vadd.f32 %v2508_v19, %v13402_v8  ;;  %4390 = vmatprep.mubr.f32.mxu1 %v13497_v12  ;;  %v13637_v57 = vmul.f32 %v3041_v36, %v2657_v54  ;;  %v13644_v12 = vld [vmem:[#allocation11 + $0xf0] sm:$0xff]  ;;  %v5289_v22 = vld [vmem:[#allocation11 + $0x2a0] sm:$0xff]  ;;  %8759 = vmatprep.subr.bf16.mxu0 %v8758_v0  ;;  %v13667_v36 = vld [vmem:[#allocation11 + $0x118] sm:$0xff] }
 0x3fd   : > { %v10430_v43 = vpop.eup %10429  ;;  %v2801_v55 = vmul.f32 0.70710677, %v13621_v9  ;;  %v13635_v23 = vmul.f32 %v3042_v29, %v2658_v4  ;;  %v13669_v56 = vld [vmem:[#allocation11 + $0x138] sm:$0xff]  ;;  %8861 = vmatpush1.bf16.msra.mxu1 %v8860_v51  ;;  %v8764_v4 = vpack.c.bf16 %v5289_v22, %v5285_v2  ;;  %v13674_v29 = vld [vmem:[#allocation11 + $0x110] sm:$0xff] }
 0x3fe   : > { %v10432_v48 = vpop.eup %10431  ;;  %v3045_v32 = vadd.f32 1.0, %v10430_v43  ;;  %v2802_v45 = vmul.f32 0.70710677, %v13626_v37  ;;  %v2512_v27 = vpop.f32.mrb[92].mxu1  ;;  %v13676_v19 = vld [vmem:[#allocation11 + $0x130] sm:$0xff]  ;;  %v5298_v43 = vld [vmem:[#allocation11 + $0x2e8] sm:$0xff]  ;;  %8863 = vmatprep.subr.bf16.mxu1 %v8862_v40 }
 0x3ff   : > { %v3046_v54 = vadd.f32 1.0, %v10432_v48  ;;  %10441 = verf.f32 %v2801_v55  ;;  %v13650_v24 = vadd.f32 %v2512_v27, %v13398_v52  ;;  %v2514_v13 = vpop.f32.mrb[93].mxu1  ;;  %3912 = vmatprep.mubr.f32.mxu0 %v13635_v23  ;;  %4391 = vmatmul.mubr.f32.gmra.mrb[134].mxu1 %v13500_v3  ;;  %v8864_v3 = vpack.c.bf16 %v13644_v12, %v13642_v26  ;;  %v5293_v12 = vld [vmem:[#allocation11 + $0x2c0] sm:$0xff]  ;;  %v5248_v51 = vld [vmem:[#allocation11 + $0x158] sm:$0xff]  ;;  %v5247_v22 = vld [vmem:[#allocation11 + $0x150] sm:$0xff] }
 0x400   : > { %10443 = verf.f32 %v2802_v45  ;;  %v13656_v14 = vadd.f32 %v2514_v13, %v13402_v8  ;;  %3913 = vmatmul.mubr.f32.gmra.mrb[82].mxu0 %v13637_v57  ;;  %4396 = vmatprep.mubr.f32.mxu1 %v13515_v30  ;;  %v13672_v28 = vmul.f32 %v3045_v32, %v2661_v15  ;;  %v2665_v55 = vmul.f32 0.5, %v13563_v6  ;;  %v5297_v48 = vld [vmem:[#allocation11 + $0x2e0] sm:$0xff]  ;;  %v5251_v15 = vld [vmem:[#allocation11 + $0x170] sm:$0xff] }
 0x401   : > { %v10434_v61 = vpop.eup %10433  ;;  %v2805_v10 = vmul.f32 0.70710677, %v13650_v24  ;;  %v13663_v20 = vmul.f32 %v3046_v54, %v2662_v46  ;;  %8761 = vmatpush1.bf16.msra.mxu0 %v8760_v38  ;;  %v8868_v6 = vpack.c.bf16 %v13676_v19, %v13674_v29  ;;  %8865 = vmatpush1.bf16.msra.mxu1 %v8864_v3  ;;  %v8766_v17 = vpack.c.bf16 %v5298_v43, %v5294_v31  ;;  %v13722_v19 = vld [vmem:[#allocation11 + $0x190] sm:$0xff] }
 0x402   : > { %v10436_v41 = vpop.eup %10435  ;;  %v3049_v30 = vadd.f32 1.0, %v10434_v61  ;;  %v2806_v11 = vmul.f32 0.70710677, %v13656_v14  ;;  %v2518_v60 = vpop.f32.mrb[94].mxu1  ;;  %8763 = vmatprep.subr.bf16.mxu0 %v8762_v7  ;;  %v2670_v46 = vmul.f32 0.5, %v13597_v39  ;;  %v2669_v40 = vmul.f32 0.5, %v13591_v16 }
 0x403   : > { %v3050_v50 = vadd.f32 1.0, %v10436_v41  ;;  %10445 = verf.f32 %v2805_v10  ;;  %v13680_v44 = vadd.f32 %v2518_v60, %v13398_v52  ;;  %v2520_v0 = vpop.f32.mrb[95].mxu1  ;;  %3918 = vmatprep.mubr.f32.mxu0 %v13663_v20  ;;  %4397 = vmatmul.mubr.f32.gmra.mrb[136].mxu1 %v13518_v35  ;;  %v8866_v35 = vpack.c.bf16 %v13669_v56, %v13667_v36  ;;  %v13712_v39 = vld [vmem:[#allocation11 + $0x198] sm:$0xff]  ;;  %v5302_v56 = vld [vmem:[#allocation11 + $0x308] sm:$0xff] }
 0x404   : > { %10447 = verf.f32 %v2806_v11  ;;  %v13686_v53 = vadd.f32 %v2520_v0, %v13402_v8  ;;  %3919 = vmatmul.mubr.f32.gmra.mrb[84].mxu0 %v13672_v28  ;;  %4402 = vmatprep.mubr.f32.mxu1 %v13533_v21  ;;  %v13698_v38 = vmul.f32 %v3049_v30, %v2665_v55  ;;  %v8768_v10 = vpack.c.bf16 %v5297_v48, %v5293_v12  ;;  %v13717_v16 = vld [vmem:[#allocation11 + $0x1b8] sm:$0xff]  ;;  %v5306_v41 = vld [vmem:[#allocation11 + $0x328] sm:$0xff]  ;;  %v5301_v55 = vld [vmem:[#allocation11 + $0x300] sm:$0xff] }
 0x405   : > { %v10438_v58 = vpop.eup %10437  ;;  %v2809_v59 = vmul.f32 0.70710677, %v13680_v44  ;;  %v13691_v26 = vmul.f32 %v3050_v50, %v2666_v49  ;;  %8765 = vmatpush1.bf16.msra.mxu0 %v8764_v4  ;;  %8867 = vmatprep.subr.bf16.mxu1 %v8866_v35  ;;  %v8872_v29 = vpack.c.bf16 %v5251_v15, %v5247_v22  ;;  %v5259_v49 = vld [vmem:[#allocation11 + $0x1b0] sm:$0xff]  ;;  %v2674_v50 = vmul.f32 0.5, %v13626_v37 }
 0x406   : > { %v10440_v32 = vpop.eup %10439  ;;  %v3053_v45 = vadd.f32 1.0, %v10438_v58  ;;  %v2810_v27 = vmul.f32 0.70710677, %v13686_v53  ;;  %v2524_v21 = vpop.f32.mrb[96].mxu1  ;;  %8767 = vmatprep.subr.bf16.mxu0 %v8766_v17  ;;  %8869 = vmatpush1.bf16.msra.mxu1 %v8868_v6  ;;  %v5305_v58 = vld [vmem:[#allocation11 + $0x320] sm:$0xff]  ;;  %v8770_v37 = vpack.c.bf16 %v5306_v41, %v5302_v56  ;;  %v5263_v17 = vld [vmem:[#allocation11 + $0x1d0] sm:$0xff] }
 0x407   : > { %v3054_v54 = vadd.f32 1.0, %v10440_v32  ;;  %10449 = verf.f32 %v2809_v59  ;;  %v13702_v13 = vadd.f32 %v2524_v21, %v13398_v52  ;;  %v2526_v2 = vpop.f32.mrb[97].mxu1  ;;  %3924 = vmatprep.mubr.f32.mxu0 %v13691_v26  ;;  %4403 = vmatmul.mubr.f32.gmra.mrb[138].mxu1 %v13536_v42  ;;  %v8870_v42 = vpack.c.bf16 %v5252_v62, %v5248_v51  ;;  %v5264_v32 = vld [vmem:[#allocation11 + $0x1d8] sm:$0xff]  ;;  %v5309_v41 = vld [vmem:[#allocation11 + $0x340] sm:$0xff] }
 0x408   : > { %10451 = verf.f32 %v2810_v27  ;;  %v13708_v61 = vadd.f32 %v2526_v2, %v13402_v8  ;;  %3925 = vmatmul.mubr.f32.gmra.mrb[86].mxu0 %v13698_v38  ;;  %4408 = vmatprep.mubr.f32.mxu1 %v13552_v1  ;;  %v13720_v4 = vmul.f32 %v3053_v45, %v2669_v40  ;;  %v2673_v59 = vmul.f32 0.5, %v13621_v9  ;;  %v5268_v45 = vld [vmem:[#allocation11 + $0x1f8] sm:$0xff] }
 0x409   : > { %v10442_v3 = vpop.eup %10441  ;;  %v2813_v7 = vmul.f32 0.70710677, %v13702_v13  ;;  %v13715_v36 = vmul.f32 %v3054_v54, %v2670_v46  ;;  %8769 = vmatpush1.bf16.msra.mxu0 %v8768_v10  ;;  %8871 = vmatprep.subr.bf16.mxu1 %v8870_v42  ;;  %v8876_v9 = vpack.c.bf16 %v5259_v49, %v13722_v19  ;;  %v5267_v46 = vld [vmem:[#allocation11 + $0x1f0] sm:$0xff]  ;;  %v8772_v54 = vpack.c.bf16 %v5305_v58, %v5301_v55  ;;  %v5314_v10 = vld [vmem:[#allocation11 + $0x368] sm:$0xff]  ;;  %v5276_v19 = vld [vmem:[#allocation11 + $0x238] sm:$0xff] }
 0x40a   : > { %v10444_v30 = vpop.eup %10443  ;;  %v3057_v11 = vadd.f32 1.0, %v10442_v3  ;;  %v2814_v60 = vmul.f32 0.70710677, %v13708_v61  ;;  %v2530_v1 = vpop.f32.mrb[98].mxu1  ;;  %8873 = vmatpush1.bf16.msra.mxu1 %v8872_v29  ;;  %8771 = vmatprep.subr.bf16.mxu0 %v8770_v37  ;;  %v2678_v2 = vmul.f32 0.5, %v13656_v14  ;;  %v2677_v3 = vmul.f32 0.5, %v13650_v24 }
 0x40b   : > { %v3058_v0 = vadd.f32 1.0, %v10444_v30  ;;  %10453 = verf.f32 %v2813_v7  ;;  %v13726_v31 = vadd.f32 %v2530_v1, %v13398_v52  ;;  %v2532_v43 = vpop.f32.mrb[99].mxu1  ;;  %3930 = vmatprep.mubr.f32.mxu0 %v13715_v36  ;;  %4409 = vmatmul.mubr.f32.gmra.mrb[140].mxu1 %v13557_v18  ;;  %v8874_v18 = vpack.c.bf16 %v13717_v16, %v13712_v39  ;;  %v5310_v39 = vld [vmem:[#allocation11 + $0x348] sm:$0xff]  ;;  %v5313_v30 = vld [vmem:[#allocation11 + $0x360] sm:$0xff]  ;;  %v5271_v58 = vld [vmem:[#allocation11 + $0x210] sm:$0xff] }
 0x40c   : > { %10455 = verf.f32 %v2814_v60  ;;  %v13732_v35 = vadd.f32 %v2532_v43, %v13402_v8  ;;  %3931 = vmatmul.mubr.f32.gmra.mrb[88].mxu0 %v13720_v4  ;;  %4414 = vmatprep.mubr.f32.mxu1 %v13577_v5  ;;  %v13743_v5 = vmul.f32 %v3057_v11, %v2673_v59  ;;  %v8878_v56 = vpack.c.bf16 %v5268_v45, %v5264_v32  ;;  %v5275_v59 = vld [vmem:[#allocation11 + $0x230] sm:$0xff] }
 0x40d   : > { %v10446_v6 = vpop.eup %10445  ;;  %v2817_v12 = vmul.f32 0.70710677, %v13726_v31  ;;  %v13737_v48 = vmul.f32 %v3058_v0, %v2674_v50  ;;  %8875 = vmatprep.subr.bf16.mxu1 %v8874_v18  ;;  %8773 = vmatpush1.bf16.msra.mxu0 %v8772_v54  ;;  %v8774_v49 = vpack.c.bf16 %v5314_v10, %v5310_v39  ;;  %v2682_v50 = vmul.f32 0.5, %v13686_v53 }
 0x40e   : > { %v10448_v27 = vpop.eup %10447  ;;  %v3061_v21 = vadd.f32 1.0, %v10446_v6  ;;  %v2818_v51 = vmul.f32 0.70710677, %v13732_v35  ;;  %v2536_v62 = vpop.f32.mrb[100].mxu1  ;;  %8877 = vmatpush1.bf16.msra.mxu1 %v8876_v9  ;;  %v2681_v37 = vmul.f32 0.5, %v13680_v44  ;;  %v8776_v53 = vpack.c.bf16 %v5313_v30, %v5309_v41 }
 0x40f   : > { %v3062_v22 = vadd.f32 1.0, %v10448_v27  ;;  %10457 = verf.f32 %v2817_v12  ;;  %v13747_v15 = vadd.f32 %v2536_v62, %v13398_v52  ;;  %v2538_v40 = vpop.f32.mrb[101].mxu1  ;;  %3936 = vmatprep.mubr.f32.mxu0 %v13737_v48  ;;  %4415 = vmatmul.mubr.f32.gmra.mrb[142].mxu1 %v13587_v34  ;;  %v8880_v34 = vpack.c.bf16 %v5267_v46, %v5263_v17  ;;  %v5280_v62 = vld [vmem:[#allocation11 + $0x258] sm:$0xff] }
 0x410   : > { %10459 = verf.f32 %v2818_v51  ;;  %v13753_v7 = vadd.f32 %v2538_v40, %v13402_v8  ;;  %3937 = vmatmul.mubr.f32.gmra.mrb[90].mxu0 %v13743_v5  ;;  %4420 = vmatprep.mubr.f32.mxu1 %v13604_v63  ;;  %v13761_v29 = vmul.f32 %v3061_v21, %v2677_v3  ;;  %v5272_v63 = vld [vmem:[#allocation11 + $0x218] sm:$0xff]  ;;  %v8884_v51 = vpack.c.bf16 %v5275_v59, %v5271_v58  ;;  %v5283_v40 = vld [vmem:[#allocation11 + $0x270] sm:$0xff] }
 0x411   : > { %v10450_v14 = vpop.eup %10449  ;;  %v2821_v42 = vmul.f32 0.70710677, %v13747_v15  ;;  %v13758_v16 = vmul.f32 %v3062_v22, %v2678_v2  ;;  %8879 = vmatprep.subr.bf16.mxu1 %v8878_v56  ;;  %8775 = vmatprep.subr.bf16.mxu0 %v8774_v49  ;;  %v2686_v17 = vmul.f32 0.5, %v13708_v61  ;;  %v5279_v22 = vld [vmem:[#allocation11 + $0x250] sm:$0xff]  ;;  %v2685_v39 = vmul.f32 0.5, %v13702_v13 }
 0x412   : > { %v10452_v24 = vpop.eup %10451  ;;  %v3065_v11 = vadd.f32 1.0, %v10450_v14  ;;  %v2822_v60 = vmul.f32 0.70710677, %v13753_v7  ;;  %v2542_v1 = vpop.f32.mrb[102].mxu1  ;;  %8881 = vmatpush1.bf16.msra.mxu1 %v8880_v34  ;;  %8777 = vmatpush1.bf16.msra.mxu0 %v8776_v53  ;;  %v8888_v30 = vpack.c.bf16 %v5283_v40, %v5279_v22  ;;  %v5291_v49 = vld [vmem:[#allocation11 + $0x2b0] sm:$0xff] }
 0x413   : > { %v3066_v0 = vadd.f32 1.0, %v10452_v24  ;;  %10461 = verf.f32 %v2821_v42  ;;  %v13765_v43 = vadd.f32 %v2542_v1, %v13398_v52  ;;  %v2544_v55 = vpop.f32.mrb[103].mxu1  ;;  %3942 = vmatprep.mubr.f32.mxu0 %v13758_v16  ;;  %4421 = vmatmul.mubr.f32.gmra.mrb[144].mxu1 %v13615_v47  ;;  %v8882_v47 = vpack.c.bf16 %v5276_v19, %v5272_v63  ;;  %v5288_v24 = vld [vmem:[#allocation11 + $0x298] sm:$0xff]  ;;  %v5287_v19 = vld [vmem:[#allocation11 + $0x290] sm:$0xff] }
 0x414   : > { %10463 = verf.f32 %v2822_v60  ;;  %v13771_v6 = vadd.f32 %v2544_v55, %v13402_v8  ;;  %3943 = vmatmul.mubr.f32.gmra.mrb[92].mxu0 %v13761_v29  ;;  %4426 = vmatprep.mubr.f32.mxu1 %v13635_v23  ;;  %v13779_v21 = vmul.f32 %v3065_v11, %v2681_v37  ;;  %v5284_v23 = vld [vmem:[#allocation11 + $0x278] sm:$0xff] }
 0x415   : > { %v10454_v12 = vpop.eup %10453  ;;  %v2825_v18 = vmul.f32 0.70710677, %v13765_v43  ;;  %v13776_v9 = vmul.f32 %v3066_v0, %v2682_v50  ;;  %8883 = vmatprep.subr.bf16.mxu1 %v8882_v47  ;;  %v8886_v42 = vpack.c.bf16 %v5284_v23, %v5280_v62  ;;  %v5292_v11 = vld [vmem:[#allocation11 + $0x2b8] sm:$0xff]  ;;  %v2689_v50 = vmul.f32 0.5, %v13726_v31 }
 0x416   : > { %v10456_v32 = vpop.eup %10455  ;;  %v3069_v45 = vadd.f32 1.0, %v10454_v12  ;;  %v2826_v44 = vmul.f32 0.70710677, %v13771_v6  ;;  %v2548_v27 = vpop.f32.mrb[104].mxu1  ;;  %8885 = vmatpush1.bf16.msra.mxu1 %v8884_v51  ;;  %v8890_v59 = vpack.c.bf16 %v5292_v11, %v5288_v24  ;;  %v2694_v47 = vmul.f32 0.5, %v13753_v7 }
 0x417   : > { %v3070_v46 = vadd.f32 1.0, %v10456_v32  ;;  %10465 = verf.f32 %v2825_v18  ;;  %v13783_v54 = vadd.f32 %v2548_v27, %v13398_v52  ;;  %v2550_v2 = vpop.f32.mrb[105].mxu1  ;;  %3948 = vmatprep.mubr.f32.mxu0 %v13776_v9  ;;  %4427 = vmatmul.mubr.f32.gmra.mrb[146].mxu1 %v13637_v57  ;;  %v8892_v18 = vpack.c.bf16 %v5291_v49, %v5287_v19 }
 0x418   : > { %10467 = verf.f32 %v2826_v44  ;;  %v13789_v10 = vadd.f32 %v2550_v2, %v13402_v8  ;;  %3949 = vmatmul.mubr.f32.gmra.mrb[94].mxu0 %v13779_v21  ;;  %4432 = vmatprep.mubr.f32.mxu1 %v13663_v20  ;;  %v13797_v41 = vmul.f32 %v3069_v45, %v2685_v39  ;;  %v2690_v20 = vmul.f32 0.5, %v13732_v35 }
 0x419   : > { %v10458_v61 = vpop.eup %10457  ;;  %v2829_v3 = vmul.f32 0.70710677, %v13783_v54  ;;  %v13794_v14 = vmul.f32 %v3070_v46, %v2686_v17  ;;  %8887 = vmatprep.subr.bf16.mxu1 %v8886_v42  ;;  %v2693_v44 = vmul.f32 0.5, %v13747_v15  ;;  %v2698_v2 = vmul.f32 0.5, %v13771_v6 }
 0x41a   : > { %v10460_v57 = vpop.eup %10459  ;;  %v3073_v56 = vadd.f32 1.0, %v10458_v61  ;;  %v2830_v34 = vmul.f32 0.70710677, %v13789_v10  ;;  %v2554_v13 = vpop.f32.mrb[106].mxu1  ;;  %8889 = vmatpush1.bf16.msra.mxu1 %v8888_v30  ;;  %v2697_v39 = vmul.f32 0.5, %v13765_v43  ;;  %v2702_v43 = vmul.f32 0.5, %v13789_v10 }
 0x41b   : > { %v3074_v60 = vadd.f32 1.0, %v10460_v57  ;;  %10469 = verf.f32 %v2829_v3  ;;  %v13801_v1 = vadd.f32 %v2554_v13, %v13398_v52  ;;  %v2556_v63 = vpop.f32.mrb[107].mxu1  ;;  %3954 = vmatprep.mubr.f32.mxu0 %v13794_v14  ;;  %4433 = vmatmul.mubr.f32.gmra.mrb[148].mxu1 %v13672_v28  ;;  %v2701_v11 = vmul.f32 0.5, %v13783_v54 }
 0x41c   : > { %10471 = verf.f32 %v2830_v34  ;;  %v13807_v0 = vadd.f32 %v2556_v63, %v13402_v8  ;;  %3955 = vmatmul.mubr.f32.gmra.mrb[96].mxu0 %v13797_v41  ;;  %4438 = vmatprep.mubr.f32.mxu1 %v13691_v26  ;;  %v13815_v12 = vmul.f32 %v3073_v56, %v2689_v50 }
 0x41d   : > { %v10462_v35 = vpop.eup %10461  ;;  %v2833_v55 = vmul.f32 0.70710677, %v13801_v1  ;;  %v13812_v58 = vmul.f32 %v3074_v60, %v2690_v20  ;;  %8891 = vmatprep.subr.bf16.mxu1 %v8890_v59 }
 0x41e   : > { %v10464_v28 = vpop.eup %10463  ;;  %v3077_v37 = vadd.f32 1.0, %v10462_v35  ;;  %v2834_v53 = vmul.f32 0.70710677, %v13807_v0  ;;  %v2560_v31 = vpop.f32.mrb[108].mxu1  ;;  %8893 = vmatpush1.bf16.msra.mxu1 %v8892_v18  ;;  %v2706_v54 = vmul.f32 0.5, %v13807_v0 }
 0x41f   : > { %v3078_v32 = vadd.f32 1.0, %v10464_v28  ;;  %10473 = verf.f32 %v2833_v55  ;;  %v13819_v26 = vadd.f32 %v2560_v31, %v13398_v52  ;;  %v2562_v45 = vpop.f32.mrb[109].mxu1  ;;  %3960 = vmatprep.mubr.f32.mxu0 %v13812_v58  ;;  %4439 = vmatmul.mubr.f32.gmra.mrb[150].mxu1 %v13698_v38  ;;  %v2705_v28 = vmul.f32 0.5, %v13801_v1 }
 0x420   : > { %10475 = verf.f32 %v2834_v53  ;;  %v13825_v27 = vadd.f32 %v2562_v45, %v13402_v8  ;;  %3961 = vmatmul.mubr.f32.gmra.mrb[98].mxu0 %v13815_v12  ;;  %4444 = vmatprep.mubr.f32.mxu1 %v13715_v36  ;;  %v13833_v15 = vmul.f32 %v3077_v37, %v2693_v44 }
 0x421   : > { %v10466_v7 = vpop.eup %10465  ;;  %v2837_v51 = vmul.f32 0.70710677, %v13819_v26  ;;  %v13830_v62 = vmul.f32 %v3078_v32, %v2694_v47 }
 0x422   : > { %v10468_v23 = vpop.eup %10467  ;;  %v3081_v17 = vadd.f32 1.0, %v10466_v7  ;;  %v2838_v38 = vmul.f32 0.70710677, %v13825_v27  ;;  %v2566_v46 = vpop.f32.mrb[110].mxu1  ;;  %v2710_v1 = vmul.f32 0.5, %v13825_v27  ;;  %v5295_v27 = vld [vmem:[#allocation11 + $0x2d0] sm:$0xff] }
 0x423   : > { %v3082_v22 = vadd.f32 1.0, %v10468_v23  ;;  %10477 = verf.f32 %v2837_v51  ;;  %v13837_v36 = vadd.f32 %v2566_v46, %v13398_v52  ;;  %v2568_v40 = vpop.f32.mrb[111].mxu1  ;;  %3966 = vmatprep.mubr.f32.mxu0 %v13830_v62  ;;  %4445 = vmatmul.mubr.f32.gmra.mrb[152].mxu1 %v13720_v4  ;;  %v5296_v51 = vld [vmem:[#allocation11 + $0x2d8] sm:$0xff]  ;;  %v5299_v46 = vld [vmem:[#allocation11 + $0x2f0] sm:$0xff] }
 0x424   : > { %10479 = verf.f32 %v2838_v38  ;;  %v13843_v61 = vadd.f32 %v2568_v40, %v13402_v8  ;;  %3967 = vmatmul.mubr.f32.gmra.mrb[100].mxu0 %v13833_v15  ;;  %4450 = vmatprep.mubr.f32.mxu1 %v13737_v48  ;;  %v13851_v13 = vmul.f32 %v3081_v17, %v2697_v39  ;;  %v5300_v23 = vld [vmem:[#allocation11 + $0x2f8] sm:$0xff]  ;;  %v2709_v17 = vmul.f32 0.5, %v13819_v26 }
 0x425   : > { %v10470_v6 = vpop.eup %10469  ;;  %v2841_v3 = vmul.f32 0.70710677, %v13837_v36  ;;  %v13848_v42 = vmul.f32 %v3082_v22, %v2698_v2 }
 0x426   : > { %v10472_v57 = vpop.eup %10471  ;;  %v3085_v56 = vadd.f32 1.0, %v10470_v6  ;;  %v2842_v34 = vmul.f32 0.70710677, %v13843_v61  ;;  %v2572_v4 = vpop.f32.mrb[112].mxu1 }
 0x427   : > { %v3086_v30 = vadd.f32 1.0, %v10472_v57  ;;  %10481 = verf.f32 %v2841_v3  ;;  %v13855_v24 = vadd.f32 %v2572_v4, %v13398_v52  ;;  %v2574_v48 = vpop.f32.mrb[113].mxu1  ;;  %3972 = vmatprep.mubr.f32.mxu0 %v13848_v42  ;;  %4451 = vmatmul.mubr.f32.gmra.mrb[154].mxu1 %v13743_v5 }
 0x428   : > { %10483 = verf.f32 %v2842_v34  ;;  %v13861_v20 = vadd.f32 %v2574_v48, %v13402_v8  ;;  %3973 = vmatmul.mubr.f32.gmra.mrb[102].mxu0 %v13851_v13  ;;  %4456 = vmatprep.mubr.f32.mxu1 %v13758_v16  ;;  %v13869_v35 = vmul.f32 %v3085_v56, %v2701_v11  ;;  %v8896_v56 = vpack.c.bf16 %v5299_v46, %v5295_v27  ;;  %v5308_v48 = vld [vmem:[#allocation11 + $0x338] sm:$0xff] }
 0x429   : > { %v10474_v10 = vpop.eup %10473  ;;  %v2845_v60 = vmul.f32 0.70710677, %v13855_v24  ;;  %v13866_v63 = vmul.f32 %v3086_v30, %v2702_v43  ;;  %v2714_v34 = vmul.f32 0.5, %v13843_v61  ;;  %v5304_v30 = vld [vmem:[#allocation11 + $0x318] sm:$0xff]  ;;  %v2713_v11 = vmul.f32 0.5, %v13837_v36  ;;  %v5303_v61 = vld [vmem:[#allocation11 + $0x310] sm:$0xff] }
 0x42a   : > { %v10476_v19 = vpop.eup %10475  ;;  %v3089_v49 = vadd.f32 1.0, %v10474_v10  ;;  %v2846_v50 = vmul.f32 0.70710677, %v13861_v20  ;;  %v2578_v5 = vpop.f32.mrb[114].mxu1 }
 0x42b   : > { %v3090_v55 = vadd.f32 1.0, %v10476_v19  ;;  %10485 = verf.f32 %v2845_v60  ;;  %v13873_v59 = vadd.f32 %v2578_v5, %v13398_v52  ;;  %v2580_v16 = vpop.f32.mrb[115].mxu1  ;;  %3978 = vmatprep.mubr.f32.mxu0 %v13866_v63  ;;  %4457 = vmatmul.mubr.f32.gmra.mrb[156].mxu1 %v13761_v29  ;;  %v5307_v60 = vld [vmem:[#allocation11 + $0x330] sm:$0xff] }
 0x42c   : > { %10487 = verf.f32 %v2846_v50  ;;  %v13879_v37 = vadd.f32 %v2580_v16, %v13402_v8  ;;  %3979 = vmatmul.mubr.f32.gmra.mrb[104].mxu0 %v13869_v35  ;;  %4462 = vmatprep.mubr.f32.mxu1 %v13776_v9  ;;  %v13887_v45 = vmul.f32 %v3089_v49, %v2705_v28  ;;  %v8900_v28 = vpack.c.bf16 %v5307_v60, %v5303_v61 }
 0x42d   : > { %v10478_v0 = vpop.eup %10477  ;;  %v2849_v53 = vmul.f32 0.70710677, %v13873_v59  ;;  %v13884_v31 = vmul.f32 %v3090_v55, %v2706_v54 }
 0x42e   : > { %v10480_v18 = vpop.eup %10479  ;;  %v3093_v47 = vadd.f32 1.0, %v10478_v0  ;;  %v2850_v32 = vmul.f32 0.70710677, %v13879_v37  ;;  %v2584_v29 = vpop.f32.mrb[116].mxu1 }
 0x42f   : > { %v3094_v44 = vadd.f32 1.0, %v10480_v18  ;;  %10489 = verf.f32 %v2849_v53  ;;  %v13891_v7 = vadd.f32 %v2584_v29, %v13398_v52  ;;  %v2586_v9 = vpop.f32.mrb[117].mxu1  ;;  %3984 = vmatprep.mubr.f32.mxu0 %v13884_v31  ;;  %4463 = vmatmul.mubr.f32.gmra.mrb[158].mxu1 %v13779_v21  ;;  %v8894_v21 = vpack.c.bf16 %v5300_v23, %v5296_v51 }
 0x430   : > { %10491 = verf.f32 %v2850_v32  ;;  %v13897_v38 = vadd.f32 %v2586_v9, %v13402_v8  ;;  %3985 = vmatmul.mubr.f32.gmra.mrb[106].mxu0 %v13887_v45  ;;  %4468 = vmatprep.mubr.f32.mxu1 %v13794_v14  ;;  %v13905_v57 = vmul.f32 %v3093_v47, %v2709_v17  ;;  %v5312_v47 = vld [vmem:[#allocation11 + $0x358] sm:$0xff]  ;;  %v2717_v29 = vmul.f32 0.5, %v13855_v24 }
 0x431   : > { %v10482_v2 = vpop.eup %10481  ;;  %v2853_v22 = vmul.f32 0.70710677, %v13891_v7  ;;  %v13902_v40 = vmul.f32 %v3094_v44, %v2710_v1  ;;  %8895 = vmatprep.subr.bf16.mxu1 %v8894_v21  ;;  %v5316_v32 = vld [vmem:[#allocation11 + $0x378] sm:$0xff]  ;;  %v5315_v44 = vld [vmem:[#allocation11 + $0x370] sm:$0xff] }
 0x432   : > { %v10484_v39 = vpop.eup %10483  ;;  %v3097_v6 = vadd.f32 1.0, %v10482_v2  ;;  %v2854_v26 = vmul.f32 0.70710677, %v13897_v38  ;;  %v2590_v3 = vpop.f32.mrb[118].mxu1  ;;  %8897 = vmatpush1.bf16.msra.mxu1 %v8896_v56  ;;  %v5320_v56 = vld [vmem:[#allocation11 + $0x398] sm:$0xff] }
 0x433   : > { %v3098_v4 = vadd.f32 1.0, %v10484_v39  ;;  %10493 = verf.f32 %v2853_v22  ;;  %v13909_v14 = vadd.f32 %v2590_v3, %v13398_v52  ;;  %v2592_v43 = vpop.f32.mrb[119].mxu1  ;;  %3990 = vmatprep.mubr.f32.mxu0 %v13902_v40  ;;  %4469 = vmatmul.mubr.f32.gmra.mrb[160].mxu1 %v13797_v41  ;;  %v8898_v41 = vpack.c.bf16 %v5308_v48, %v5304_v30  ;;  %v5322_v3 = vld [vmem:[#allocation11 + $0x3a8] sm:$0xff]  ;;  %v5321_v30 = vld [vmem:[#allocation11 + $0x3a0] sm:$0xff]  ;;  %v5324_v48 = vld [vmem:[#allocation11 + $0x3b8] sm:$0xff] }
 0x434   : > { %10495 = verf.f32 %v2854_v26  ;;  %v13915_v10 = vadd.f32 %v2592_v43, %v13402_v8  ;;  %3991 = vmatmul.mubr.f32.gmra.mrb[108].mxu0 %v13905_v57  ;;  %4474 = vmatprep.mubr.f32.mxu1 %v13812_v58  ;;  %v13923_v16 = vmul.f32 %v3097_v6, %v2713_v11  ;;  %v2718_v58 = vmul.f32 0.5, %v13861_v20  ;;  %v5311_v20 = vld [vmem:[#allocation11 + $0x350] sm:$0xff]  ;;  %v5318_v26 = vld [vmem:[#allocation11 + $0x388] sm:$0xff]  ;;  %v5317_v43 = vld [vmem:[#allocation11 + $0x380] sm:$0xff] }
 0x435   : > { %v10486_v19 = vpop.eup %10485  ;;  %v2857_v49 = vmul.f32 0.70710677, %v13909_v14  ;;  %v13920_v50 = vmul.f32 %v3098_v4, %v2714_v34  ;;  %8899 = vmatprep.subr.bf16.mxu1 %v8898_v41  ;;  %v8904_v22 = vpack.c.bf16 %v5315_v44, %v5311_v20  ;;  %v2721_v34 = vmul.f32 0.5, %v13873_v59 }
 0x436   : > { %v10488_v5 = vpop.eup %10487  ;;  %v3101_v54 = vadd.f32 1.0, %v10486_v19  ;;  %v2858_v36 = vmul.f32 0.70710677, %v13915_v10  ;;  %v2596_v55 = vpop.f32.mrb[120].mxu1  ;;  %8901 = vmatpush1.bf16.msra.mxu1 %v8900_v28  ;;  %v8780_v59 = vpack.c.bf16 %v5321_v30, %v5317_v43  ;;  %v5319_v19 = vld [vmem:[#allocation11 + $0x390] sm:$0xff]  ;;  %v2729_v43 = vmul.f32 0.5, %v13909_v14 }
 0x437   : > { %v3102_v0 = vadd.f32 1.0, %v10488_v5  ;;  %10497 = verf.f32 %v2857_v49  ;;  %v13927_v53 = vadd.f32 %v2596_v55, %v13398_v52  ;;  %v2598_v18 = vpop.f32.mrb[121].mxu1  ;;  %3996 = vmatprep.mubr.f32.mxu0 %v13920_v50  ;;  %4475 = vmatmul.mubr.f32.gmra.mrb[162].mxu1 %v13815_v12  ;;  %v8902_v12 = vpack.c.bf16 %v5316_v32, %v5312_v47  ;;  %v5323_v49 = vld [vmem:[#allocation11 + $0x3b0] sm:$0xff]  ;;  %v5328_v32 = vld [vmem:[#allocation11 + $0x3d8] sm:$0xff] }
 0x438   : > { %10499 = verf.f32 %v2858_v36  ;;  %v13933_v1 = vadd.f32 %v2598_v18, %v13402_v8  ;;  %3997 = vmatmul.mubr.f32.gmra.mrb[110].mxu0 %v13923_v16  ;;  %4480 = vmatprep.mubr.f32.mxu1 %v13830_v62  ;;  %v13941_v2 = vmul.f32 %v3101_v54, %v2717_v29  ;;  %v2722_v62 = vmul.f32 0.5, %v13879_v37  ;;  %v5330_v18 = vld [vmem:[#allocation11 + $0x3e8] sm:$0xff] }
 0x439   : > { %v10490_v9 = vpop.eup %10489  ;;  %v2861_v51 = vmul.f32 0.70710677, %v13927_v53  ;;  %v13938_v23 = vmul.f32 %v3102_v0, %v2718_v58  ;;  %v8778_v37 = vpack.c.bf16 %v5322_v3, %v5318_v26  ;;  %8903 = vmatprep.subr.bf16.mxu1 %v8902_v12  ;;  %v8906_v55 = vpack.c.bf16 %v5324_v48, %v5320_v56  ;;  %v5326_v0 = vld [vmem:[#allocation11 + $0x3c8] sm:$0xff]  ;;  %v5332_v12 = vld [vmem:[#allocation11 + $0x3f8] sm:$0xff] }
 0x43a   : > { %v10492_v17 = vpop.eup %10491  ;;  %v3105_v27 = vadd.f32 1.0, %v10490_v9  ;;  %v2862_v24 = vmul.f32 0.70710677, %v13933_v1  ;;  %v2602_v46 = vpop.f32.mrb[122].mxu1  ;;  %8905 = vmatpush1.bf16.msra.mxu1 %v8904_v22  ;;  %v8908_v47 = vpack.c.bf16 %v5323_v49, %v5319_v19  ;;  %v2725_v29 = vmul.f32 0.5, %v13891_v7  ;;  %v5325_v9 = vld [vmem:[#allocation11 + $0x3c0] sm:$0xff] }
 0x43b   : > { %v3106_v21 = vadd.f32 1.0, %v10492_v17  ;;  %10501 = verf.f32 %v2861_v51  ;;  %v13945_v39 = vadd.f32 %v2602_v46, %v13398_v52  ;;  %v2604_v6 = vpop.f32.mrb[123].mxu1  ;;  %4002 = vmatprep.mubr.f32.mxu0 %v13938_v23  ;;  %4481 = vmatmul.mubr.f32.gmra.mrb[164].mxu1 %v13833_v15  ;;  %v2726_v15 = vmul.f32 0.5, %v13897_v38  ;;  %v5329_v51 = vld [vmem:[#allocation11 + $0x3e0] sm:$0xff]  ;;  %v5327_v46 = vld [vmem:[#allocation11 + $0x3d0] sm:$0xff] }
 0x43c   : > { %10503 = verf.f32 %v2862_v24  ;;  %v13951_v4 = vadd.f32 %v2604_v6, %v13402_v8  ;;  %4003 = vmatmul.mubr.f32.gmra.mrb[112].mxu0 %v13941_v2  ;;  %4486 = vmatprep.mubr.f32.mxu1 %v13848_v42  ;;  %v13960_v36 = vmul.f32 %v3105_v27, %v2721_v34  ;;  %v8782_v44 = vpack.c.bf16 %v5330_v18, %v5326_v0  ;;  %v5331_v22 = vld [vmem:[#allocation11 + $0x3f0] sm:$0xff] }
 0x43d   : > { %v10494_v11 = vpop.eup %10493  ;;  %v2865_v61 = vmul.f32 0.70710677, %v13945_v39  ;;  %v13957_v60 = vmul.f32 %v3106_v21, %v2722_v62  ;;  %8779 = vmatprep.subr.bf16.mxu0 %v8778_v37  ;;  %8907 = vmatprep.subr.bf16.mxu1 %v8906_v55  ;;  %v8784_v7 = vpack.c.bf16 %v5329_v51, %v5325_v9  ;;  %v8910_v3 = vpack.c.bf16 %v5332_v12, %v5328_v32  ;;  %v5338_v9 = vld [vmem:[#allocation11 + $0x428] sm:$0xff] }
 0x43e   : > { %v10496_v41 = vpop.eup %10495  ;;  %v3109_v5 = vadd.f32 1.0, %v10494_v11  ;;  %v2866_v54 = vmul.f32 0.70710677, %v13951_v4  ;;  %v2608_v42 = vpop.f32.mrb[124].mxu1  ;;  %8781 = vmatpush1.bf16.msra.mxu0 %v8780_v59  ;;  %8909 = vmatpush1.bf16.msra.mxu1 %v8908_v47  ;;  %v8912_v37 = vpack.c.bf16 %v5331_v22, %v5327_v46  ;;  %v2734_v14 = vmul.f32 0.5, %v13933_v1 }
 0x43f   : > { %v3110_v28 = vadd.f32 1.0, %v10496_v41  ;;  %10505 = verf.f32 %v2865_v61  ;;  %v13963_v38 = vadd.f32 %v2608_v42, %v13398_v52  ;;  %v2610_v58 = vpop.f32.mrb[125].mxu1  ;;  %4008 = vmatprep.mubr.f32.mxu0 %v13957_v60  ;;  %4487 = vmatmul.mubr.f32.gmra.mrb[166].mxu1 %v13851_v13  ;;  %v2730_v13 = vmul.f32 0.5, %v13915_v10 }
 0x440   : > { %10507 = verf.f32 %v2866_v54  ;;  %v13969_v20 = vadd.f32 %v2610_v58, %v13402_v8  ;;  %4009 = vmatmul.mubr.f32.gmra.mrb[114].mxu0 %v13960_v36  ;;  %4492 = vmatprep.mubr.f32.mxu1 %v13866_v63  ;;  %v13978_v26 = vmul.f32 %v3109_v5, %v2725_v29  ;;  %v2738_v42 = vmul.f32 0.5, %v13951_v4 }
 0x441   : > { %v10498_v17 = vpop.eup %10497  ;;  %v2869_v27 = vmul.f32 0.70710677, %v13963_v38  ;;  %v13975_v24 = vmul.f32 %v3110_v28, %v2726_v15  ;;  %8783 = vmatprep.subr.bf16.mxu0 %v8782_v44  ;;  %8911 = vmatprep.subr.bf16.mxu1 %v8910_v3  ;;  %v2737_v55 = vmul.f32 0.5, %v13945_v39  ;;  %v2741_v4 = vmul.f32 0.5, %v13963_v38 }
 0x442   : > { %v10500_v62 = vpop.eup %10499  ;;  %v3113_v21 = vadd.f32 1.0, %v10498_v17  ;;  %v2870_v63 = vmul.f32 0.70710677, %v13969_v20  ;;  %v2614_v6 = vpop.f32.mrb[126].mxu1  ;;  %8785 = vmatpush1.bf16.msra.mxu0 %v8784_v7  ;;  %8913 = vmatpush1.bf16.msra.mxu1 %v8912_v37  ;;  %v2742_v0 = vmul.f32 0.5, %v13969_v20  ;;  %v16407_v17 = vld [vmem:[#allocation45_spill] sm:$0xff] }
 0x443   : > { %v3114_v10 = vadd.f32 1.0, %v10500_v62  ;;  %10509 = verf.f32 %v2869_v27  ;;  %v9296_v56 = vadd.f32 %v2614_v6, %v13398_v52  ;;  %v2616_v34 = vpop.f32.mrb[127].mxu1  ;;  %4014 = vmatprep.mubr.f32.mxu0 %v13975_v24  ;;  %4493 = vmatmul.mubr.f32.gmra.mrb[168].mxu1 %v13869_v35  ;;  %v16408_v27 = vld [vmem:[#allocation47_spill] sm:$0xff] }
 0x444   : > { %10511 = verf.f32 %v2870_v63  ;;  %v9297_v30 = vadd.f32 %v2616_v34, %v13402_v8  ;;  %4015 = vmatmul.mubr.f32.gmra.mrb[116].mxu0 %v13978_v26  ;;  %4498 = vmatprep.mubr.f32.mxu1 %v13884_v31  ;;  %v3241_v35 = vmul.f32 %v3113_v21, %v2729_v43  ;;  %v2733_v8 = vmul.f32 0.5, %v13927_v53 }
 0x445   : > { %v10502_v48 = vpop.eup %10501  ;;  %v2873_v11 = vmul.f32 0.70710677, %v9296_v56  ;;  %v13987_v15 = vmul.f32 %v3114_v10, %v2730_v13  ;;  %v2745_v20 = vmul.f32 0.5, %v9296_v56 }
 0x446   : > { %v10504_v52 = vpop.eup %10503  ;;  %v3117_v61 = vadd.f32 1.0, %v10502_v48  ;;  %v2874_v59 = vmul.f32 0.70710677, %v9297_v30  ;;  %v2746_v29 = vmul.f32 0.5, %v9297_v30 }
 0x447   : > { %v3118_v19 = vadd.f32 1.0, %v10504_v52  ;;  %10513 = verf.f32 %v2873_v11  ;;  %4020 = vmatprep.mubr.f32.mxu0 %v13987_v15  ;;  %4499 = vmatmul.mubr.f32.gmra.mrb[170].mxu1 %v13887_v45 }
 0x448   : > { %10515 = verf.f32 %v2874_v59  ;;  %4021 = vmatmul.mubr.f32.gmra.mrb[118].mxu0 %v3241_v35  ;;  %4504 = vmatprep.mubr.f32.mxu1 %v13902_v40  ;;  %v3245_v54 = vmul.f32 %v3117_v61, %v2733_v8  ;;  %v5337_v8 = vld [vmem:[#allocation11 + $0x420] sm:$0xff] }
 0x449   : > { %v10506_v31 = vpop.eup %10505  ;;  %v3246_v49 = vmul.f32 %v3118_v19, %v2734_v14  ;;  %v5333_v19 = vld [vmem:[#allocation11 + $0x400] sm:$0xff] }
 0x44a   : > { %v10508_v41 = vpop.eup %10507  ;;  %v3121_v5 = vadd.f32 1.0, %v10506_v31  ;;  %v5342_v31 = vld [vmem:[#allocation11 + $0x448] sm:$0xff] }
 0x44b   : > { %v3122_v1 = vadd.f32 1.0, %v10508_v41  ;;  %4026 = vmatprep.mubr.f32.mxu0 %v3246_v49  ;;  %4505 = vmatmul.mubr.f32.gmra.mrb[172].mxu1 %v13905_v57 }
 0x44c   : > { %4027 = vmatmul.mubr.f32.gmra.mrb[120].mxu0 %v3245_v54  ;;  %4510 = vmatprep.mubr.f32.mxu1 %v13920_v50  ;;  %v3249_v58 = vmul.f32 %v3121_v5, %v2737_v55 }
 0x44d   : > { %v10510_v45 = vpop.eup %10509  ;;  %v3250_v53 = vmul.f32 %v3122_v1, %v2738_v42  ;;  %v5335_v42 = vld [vmem:[#allocation11 + $0x410] sm:$0xff] }
 0x44e   : > { %v10512_v28 = vpop.eup %10511  ;;  %v3125_v40 = vadd.f32 1.0, %v10510_v45  ;;  %v5339_v1 = vld [vmem:[#allocation11 + $0x430] sm:$0xff] }
 0x44f   : > { %v3126_v18 = vadd.f32 1.0, %v10512_v28  ;;  %4032 = vmatprep.mubr.f32.mxu0 %v3250_v53  ;;  %4511 = vmatmul.mubr.f32.gmra.mrb[174].mxu1 %v13923_v16  ;;  %v5334_v16 = vld [vmem:[#allocation11 + $0x408] sm:$0xff] }
 0x450   : > { %4033 = vmatmul.mubr.f32.gmra.mrb[122].mxu0 %v3249_v58  ;;  %4516 = vmatprep.mubr.f32.mxu1 %v13938_v23  ;;  %v3253_v32 = vmul.f32 %v3125_v40, %v2741_v4  ;;  %v8786_v51 = vpack.c.bf16 %v5338_v9, %v5334_v16  ;;  %v5336_v23 = vld [vmem:[#allocation11 + $0x418] sm:$0xff]  ;;  %v5346_v28 = vld [vmem:[#allocation11 + $0x468] sm:$0xff]  ;;  %v8916_v16 = vpack.c.bf16 %v5339_v1, %v5335_v42 }
 0x451   : > { %v10514_v57 = vpop.eup %10513  ;;  %v3254_v39 = vmul.f32 %v3126_v18, %v2742_v0  ;;  %v5344_v40 = vld [vmem:[#allocation11 + $0x458] sm:$0xff]  ;;  %v5362_v1 = vld [vmem:[#allocation11 + $0x4e8] sm:$0xff] }
 0x452   : > { %v10516_v47 = vpop.eup %10515  ;;  %v3129_v50 = vadd.f32 1.0, %v10514_v57  ;;  %8787 = vmatprep.subr.bf16.mxu0 %v8786_v51  ;;  %v14040_v57 = vld [vmem:[#allocation11 + $0x440] sm:$0xff] }
 0x453   : > { %v3130_v44 = vadd.f32 1.0, %v10516_v47  ;;  %4038 = vmatprep.mubr.f32.mxu0 %v3254_v39  ;;  %4517 = vmatmul.mubr.f32.gmra.mrb[176].mxu1 %v13941_v2  ;;  %v5340_v2 = vld [vmem:[#allocation11 + $0x438] sm:$0xff] }
 0x454   : > { %4039 = vmatmul.mubr.f32.gmra.mrb[124].mxu0 %v3253_v32  ;;  %4522 = vmatprep.mubr.f32.mxu1 %v13957_v60  ;;  %v3257_v12 = vmul.f32 %v3129_v50, %v2745_v20  ;;  %v8914_v60 = vpack.c.bf16 %v5340_v2, %v5336_v23  ;;  %v14049_v20 = vld [vmem:[#allocation11 + $0x4a8] sm:$0xff]  ;;  %v8790_v23 = vpack.c.bf16 %v5346_v28, %v5342_v31 }
 0x455   : > { %v3258_v38 = vmul.f32 %v3130_v44, %v2746_v29  ;;  %v8788_v29 = vpack.c.bf16 %v5337_v8, %v5333_v19  ;;  %v14047_v44 = vld [vmem:[#allocation11 + $0x488] sm:$0xff]  ;;  %v5353_v8 = vld [vmem:[#allocation11 + $0x4a0] sm:$0xff] }
 0x456   : > { %8915 = vmatprep.subr.bf16.mxu1 %v8914_v60  ;;  %v5343_v60 = vld [vmem:[#allocation11 + $0x450] sm:$0xff] }
 0x457   : > { %4044 = vmatprep.mubr.f32.mxu0 %v3258_v38  ;;  %4523 = vmatmul.mubr.f32.gmra.mrb[178].mxu1 %v13960_v36  ;;  %v3515_v36 = vld [vmem:[#allocation10] sm:$0xf] }
 0x458   : > { %4045 = vmatmul.mubr.f32.gmra.mrb[126].mxu0 %v3257_v12  ;;  %4528 = vmatprep.mubr.f32.mxu1 %v13975_v24  ;;  %v14009_v13 = vrot.slane %v3515_v36, %v16407_v17  ;;  %v14012_v24 = vrot.slane %v3515_v36, %v16408_v27  ;;  %v5347_v36 = vld [vmem:[#allocation11 + $0x470] sm:$0xff] }
 0x45b   : > { %4529 = vmatmul.mubr.f32.gmra.mrb[180].mxu1 %v13978_v26 }
 0x45c   : > { %4534 = vmatprep.mubr.f32.mxu1 %v13987_v15 }
 0x45f   : > { %4535 = vmatmul.mubr.f32.gmra.mrb[182].mxu1 %v3241_v35 }
 0x460   : > { %4540 = vmatprep.mubr.f32.mxu1 %v3246_v49 }
 0x463   : > { %4541 = vmatmul.mubr.f32.gmra.mrb[184].mxu1 %v3245_v54 }
 0x464   : > { %4546 = vmatprep.mubr.f32.mxu1 %v3250_v53 }
 0x467   : > { %4547 = vmatmul.mubr.f32.gmra.mrb[186].mxu1 %v3249_v58  ;;  %v5348_v58 = vld [vmem:[#allocation11 + $0x478] sm:$0xff] }
 0x468   : > { %4552 = vmatprep.mubr.f32.mxu1 %v3254_v39  ;;  %v14042_v39 = vld [vmem:[#allocation11 + $0x460] sm:$0xff]  ;;  %v8918_v2 = vpack.c.bf16 %v5348_v58, %v5344_v40 }
 0x469   : > { %v14069_v58 = vld [vmem:[#allocation11 + $0x4c0] sm:$0xff] }
 0x46b   : > { %4553 = vmatmul.mubr.f32.gmra.mrb[188].mxu1 %v3253_v32 }
 0x46c   : > { %4558 = vmatprep.mubr.f32.mxu1 %v3258_v38 }
 0x46f   : > { %4559 = vmatmul.mubr.f32.gmra.mrb[190].mxu1 %v3257_v12 }
 0x4ac   : > { %v3860_v7 = vpop.f32.mrb[64].mxu0 }
 0x4ad   : > { %v9298_v46 = vadd.f32 %v3860_v7, %v14009_v13  ;;  %v3862_v22 = vpop.f32.mrb[65].mxu0 }
 0x4ae   : > { %v9299_v62 = vadd.f32 %v3862_v22, %v14012_v24 }
 0x4af   : > { %v4693_v21 = vmul.f32 0.70710677, %v9298_v46  ;;  %v4565_v0 = vmul.f32 0.5, %v9298_v46 }
 0x4b0   : > { %v4694_v63 = vmul.f32 0.70710677, %v9299_v62  ;;  %v4566_v55 = vmul.f32 0.5, %v9299_v62  ;;  %v8792_v62 = vpack.c.bf16 %v14042_v39, %v14040_v57  ;;  %v14073_v57 = vld [vmem:[#allocation11 + $0x4d0] sm:$0xff] }
 0x4b1   : > { %v3866_v6 = vpop.f32.mrb[66].mxu0  ;;  %10517 = verf.f32 %v4693_v21  ;;  %v5352_v21 = vld [vmem:[#allocation11 + $0x498] sm:$0xff] }
 0x4b2   : > { %v14017_v26 = vadd.f32 %v3866_v6, %v14009_v13  ;;  %v3868_v3 = vpop.f32.mrb[67].mxu0  ;;  %10519 = verf.f32 %v4694_v63  ;;  %v5356_v63 = vld [vmem:[#allocation11 + $0x4b8] sm:$0xff] }
 0x4b3   : > { %v9301_v10 = vadd.f32 %v3868_v3, %v14012_v24  ;;  %v8922_v31 = vpack.c.bf16 %v5356_v63, %v5352_v21 }
 0x4b4   : > { %v4697_v56 = vmul.f32 0.70710677, %v14017_v26  ;;  %v4569_v6 = vmul.f32 0.5, %v14017_v26  ;;  %v8920_v26 = vpack.c.bf16 %v5347_v36, %v5343_v60 }
 0x4b5   : > { %v4698_v34 = vmul.f32 0.70710677, %v9301_v10  ;;  %v3872_v37 = vpop.f32.mrb[68].mxu0  ;;  %v4570_v7 = vmul.f32 0.5, %v9301_v10 }
 0x4b6   : > { %10521 = verf.f32 %v4697_v56  ;;  %v14022_v43 = vadd.f32 %v3872_v37, %v14009_v13  ;;  %v3874_v30 = vpop.f32.mrb[69].mxu0  ;;  %v8794_v56 = vpack.c.bf16 %v14049_v20, %v14047_v44  ;;  %v5363_v20 = vld [vmem:[#allocation11 + $0x4f0] sm:$0xff] }
 0x4b7   : > { %10523 = verf.f32 %v4698_v34  ;;  %v14025_v48 = vadd.f32 %v3874_v30, %v14012_v24 }
 0x4b8   : > { %v4701_v52 = vmul.f32 0.70710677, %v14022_v43 }
 0x4b9   : > { %v4702_v11 = vmul.f32 0.70710677, %v14025_v48  ;;  %v3878_v15 = vpop.f32.mrb[70].mxu0 }
 0x4ba   : > { %v3880_v61 = vpop.f32.mrb[71].mxu0  ;;  %v14030_v59 = vadd.f32 %v3878_v15, %v14009_v13 }
 0x4bb   : > { %10525 = verf.f32 %v4702_v11  ;;  %v14033_v35 = vadd.f32 %v3880_v61, %v14012_v24  ;;  %v10518_v14 = vpop.eup %10517  ;;  %v5349_v11 = vld [vmem:[#allocation11 + $0x480] sm:$0xff] }
 0x4bc   : > { %v10520_v49 = vpop.eup %10519  ;;  %v4949_v41 = vadd.f32 1.0, %v10518_v14  ;;  %10527 = verf.f32 %v4701_v52  ;;  %v4705_v18 = vmul.f32 0.70710677, %v14030_v59  ;;  %v8796_v40 = vpack.c.bf16 %v5353_v8, %v5349_v11 }
 0x4bd   : > { %v4706_v5 = vmul.f32 0.70710677, %v14033_v35  ;;  %v3884_v54 = vpop.f32.mrb[72].mxu0  ;;  %v4950_v45 = vadd.f32 1.0, %v10520_v49  ;;  %v5351_v49 = vld [vmem:[#allocation11 + $0x490] sm:$0xff]  ;;  %v4573_v11 = vmul.f32 0.5, %v14022_v43 }
 0x4be   : > { %v3886_v53 = vpop.f32.mrb[73].mxu0  ;;  %v14045_v50 = vadd.f32 %v3884_v54, %v14009_v13  ;;  %v5077_v38 = vmul.f32 %v4949_v41, %v4565_v0  ;;  %v5355_v41 = vld [vmem:[#allocation11 + $0x4b0] sm:$0xff]  ;;  %v5358_v54 = vld [vmem:[#allocation11 + $0x4c8] sm:$0xff]  ;;  %v14071_v0 = vld [vmem:[#allocation11 + $0x4e0] sm:$0xff] }
 0x4bf   : > { %10529 = verf.f32 %v4706_v5  ;;  %v14038_v4 = vadd.f32 %v3886_v53, %v14012_v24  ;;  %v5078_v32 = vmul.f32 %v4950_v45, %v4566_v55  ;;  %v5360_v55 = vld [vmem:[#allocation11 + $0x4d8] sm:$0xff]  ;;  %v8800_v36 = vpack.c.bf16 %v14071_v0, %v14069_v58 }
 0x4c0   : > { %v10522_v47 = vpop.eup %10521  ;;  %10531 = verf.f32 %v4705_v18  ;;  %v4709_v10 = vmul.f32 0.70710677, %v14045_v50  ;;  %v5364_v45 = vld [vmem:[#allocation11 + $0x4f8] sm:$0xff]  ;;  %v8924_v18 = vpack.c.bf16 %v5355_v41, %v5351_v49  ;;  %v14120_v49 = vld [vmem:[#allocation11 + $0x540] sm:$0xff] }
 0x4c1   : > { %v10524_v9 = vpop.eup %10523  ;;  %v4953_v51 = vadd.f32 1.0, %v10522_v47  ;;  %v3890_v12 = vpop.f32.mrb[74].mxu0  ;;  %5547 = vmatprep.mubr.f32.mxu0 %v5078_v32  ;;  %6061 = vmatprep.mubr.f32.mxu1 %v5078_v32  ;;  %v4710_v3 = vmul.f32 0.70710677, %v14038_v4  ;;  %v4574_v47 = vmul.f32 0.5, %v14025_v48  ;;  %v5376_v41 = vld [vmem:[#allocation11 + $0x558] sm:$0xff] }
 0x4c2   : > { %v4954_v46 = vadd.f32 1.0, %v10524_v9  ;;  %v3892_v22 = vpop.f32.mrb[75].mxu0  ;;  %5548 = vmatmul.mubr.f32.vlgmr.msra.gmra.mrb[128].mxu0 %v5077_v38  ;;  %6062 = vmatmul.mubr.f32.vlgmr.msra.gmra.mrb[192].mxu1 %v5077_v38  ;;  %v14064_v52 = vadd.f32 %v3890_v12, %v14009_v13  ;;  %v8798_v38 = vpack.c.bf16 %v5362_v1, %v5358_v54  ;;  %v14083_v12 = vld [vmem:[#allocation11 + $0x528] sm:$0xff]  ;;  %v14123_v1 = vld [vmem:[#allocation11 + $0x560] sm:$0xff] }
 0x4c3   : > { %v14059_v34 = vadd.f32 %v3892_v22, %v14012_v24  ;;  %8789 = vmatpush1.bf16.msra.mxu0 %v8788_v29  ;;  %8917 = vmatpush1.bf16.msra.mxu1 %v8916_v16  ;;  %v5081_v19 = vmul.f32 %v4953_v51, %v4569_v6  ;;  %10533 = verf.f32 %v4710_v3  ;;  %v14081_v51 = vld [vmem:[#allocation11 + $0x508] sm:$0xff]  ;;  %v14094_v22 = vld [vmem:[#allocation11 + $0x518] sm:$0xff]  ;;  %v8928_v6 = vpack.c.bf16 %v5363_v20, %v14073_v57 }
 0x4c4   : > { %v5082_v30 = vmul.f32 %v4954_v46, %v4570_v7  ;;  %8791 = vmatprep.subr.bf16.mxu0 %v8790_v23  ;;  %8919 = vmatprep.subr.bf16.mxu1 %v8918_v2  ;;  %10535 = verf.f32 %v4709_v10  ;;  %v4713_v32 = vmul.f32 0.70710677, %v14064_v52  ;;  %v8926_v23 = vpack.c.bf16 %v5364_v45, %v5360_v55  ;;  %v14090_v7 = vld [vmem:[#allocation11 + $0x500] sm:$0xff]  ;;  %v5372_v3 = vld [vmem:[#allocation11 + $0x538] sm:$0xff]  ;;  %v14104_v10 = vld [vmem:[#allocation11 + $0x530] sm:$0xff] }
 0x4c5   : > { %v10526_v15 = vpop.eup %10525  ;;  %v3896_v61 = vpop.f32.mrb[76].mxu0  ;;  %v4714_v28 = vmul.f32 0.70710677, %v14059_v34  ;;  %v14092_v46 = vld [vmem:[#allocation11 + $0x520] sm:$0xff]  ;;  %v14125_v55 = vld [vmem:[#allocation11 + $0x588] sm:$0xff] }
 0x4c6   : > { %v14061_v37 = vpop.f32.mrb[128].mxu1  ;;  %v3898_v5 = vpop.f32.mrb[77].mxu0  ;;  %5553 = vmatprep.mubr.f32.mxu0 %v5082_v30  ;;  %6067 = vmatprep.mubr.f32.mxu1 %v5082_v30  ;;  %v4958_v42 = vadd.f32 1.0, %v10526_v15  ;;  %v14097_v21 = vadd.f32 %v3896_v61, %v14009_v13  ;;  %v14109_v15 = vld [vmem:[#allocation11 + $0x568] sm:$0xff]  ;;  %v4578_v61 = vmul.f32 0.5, %v14033_v35  ;;  %v8804_v43 = vpack.c.bf16 %v14092_v46, %v14090_v7  ;;  %v5388_v7 = vld [vmem:[#allocation11 + $0x5b8] sm:$0xff] }
 0x4c7   : > { %v14066_v14 = vpop.f32.mrb[129].mxu1  ;;  %5554 = vmatmul.mubr.f32.gmra.mrb[130].mxu0 %v5081_v19  ;;  %6068 = vmatmul.mubr.f32.gmra.mrb[194].mxu1 %v5081_v19  ;;  %v10528_v53 = vpop.eup %10527  ;;  %v14086_v48 = vadd.f32 %v3898_v5, %v14012_v24  ;;  %10537 = verf.f32 %v4714_v28  ;;  %v5380_v5 = vld [vmem:[#allocation11 + $0x578] sm:$0xff]  ;;  %v14127_v45 = vld [vmem:[#allocation11 + $0x5a8] sm:$0xff] }
 0x4c8   : > { %8793 = vmatpush1.bf16.msra.mxu0 %v8792_v62  ;;  %8921 = vmatpush1.bf16.msra.mxu1 %v8920_v26  ;;  %v4957_v2 = vadd.f32 1.0, %v10528_v53  ;;  %v5086_v60 = vmul.f32 %v4958_v42, %v4574_v47  ;;  %10539 = verf.f32 %v4713_v32  ;;  %v14107_v26 = vld [vmem:[#allocation11 + $0x548] sm:$0xff]  ;;  %v8930_v53 = vpack.c.bf16 %v5372_v3, %v14094_v22  ;;  %v5379_v47 = vld [vmem:[#allocation11 + $0x570] sm:$0xff]  ;;  %v14152_v22 = vld [vmem:[#allocation11 + $0x580] sm:$0xff] }
 0x4c9   : > { %v10530_v39 = vpop.eup %10529  ;;  %v3902_v44 = vpop.f32.mrb[78].mxu0  ;;  %8795 = vmatprep.subr.bf16.mxu0 %v8794_v56  ;;  %8923 = vmatprep.subr.bf16.mxu1 %v8922_v31  ;;  %v14102_v56 = vld [vmem:[#allocation11 + $0x510] sm:$0xff]  ;;  %v8802_v31 = vpack.c.bf16 %v14083_v12, %v14081_v51  ;;  %v4718_v54 = vmul.f32 0.70710677, %v14086_v48  ;;  %v4717_v58 = vmul.f32 0.70710677, %v14097_v21  ;;  %v8934_v12 = vpack.c.bf16 %v5380_v5, %v5376_v41 }
 0x4ca   : > { %v14077_v29 = vpop.f32.mrb[130].mxu1  ;;  %v3904_v9 = vpop.f32.mrb[79].mxu0  ;;  %v4962_v62 = vadd.f32 1.0, %v10530_v39  ;;  %5559 = vmatprep.mubr.f32.mxu0 %v5086_v60  ;;  %6073 = vmatprep.mubr.f32.mxu1 %v5086_v60  ;;  %v5085_v42 = vmul.f32 %v4957_v2, %v4573_v11  ;;  %v8932_v28 = vpack.c.bf16 %v14104_v10, %v14102_v56  ;;  %v5375_v39 = vld [vmem:[#allocation11 + $0x550] sm:$0xff]  ;;  %v14139_v20 = vadd.f32 %v3902_v44, %v14009_v13  ;;  %v5394_v11 = vld [vmem:[#allocation11 + $0x5e8] sm:$0xff] }
 0x4cb   : > { %v14079_v16 = vpop.f32.mrb[131].mxu1  ;;  %v10532_v30 = vpop.eup %10531  ;;  %v14134_v0 = vadd.f32 %v3904_v9, %v14012_v24  ;;  %v8806_v9 = vpack.c.bf16 %v14109_v15, %v14107_v26  ;;  %v4577_v2 = vmul.f32 0.5, %v14030_v59  ;;  %10541 = verf.f32 %v4718_v54  ;;  %v5383_v26 = vld [vmem:[#allocation11 + $0x590] sm:$0xff] }
 0x4cc   : > { %8797 = vmatpush1.bf16.msra.mxu0 %v8796_v40  ;;  %8925 = vmatpush1.bf16.msra.mxu1 %v8924_v18  ;;  %v4961_v40 = vadd.f32 1.0, %v10532_v30  ;;  %v5090_v18 = vmul.f32 %v4962_v62, %v4578_v61  ;;  %v8808_v44 = vpack.c.bf16 %v14123_v1, %v14120_v49  ;;  %v8810_v46 = vpack.c.bf16 %v14127_v45, %v14125_v55  ;;  %v5385_v62 = vld [vmem:[#allocation11 + $0x5a0] sm:$0xff]  ;;  %v5387_v54 = vld [vmem:[#allocation11 + $0x5b0] sm:$0xff] }
 0x4cd   : > { %v14112_v19 = vpop.f32.mrb[80].mxu0  ;;  %8799 = vmatprep.subr.bf16.mxu0 %v8798_v38  ;;  %8927 = vmatprep.subr.bf16.mxu1 %v8926_v23  ;;  %v10534_v32 = vpop.eup %10533  ;;  %v8936_v59 = vpack.c.bf16 %v5379_v47, %v5375_v39  ;;  %10543 = verf.f32 %v4717_v58  ;;  %v4722_v56 = vmul.f32 0.70710677, %v14134_v0  ;;  %v4721_v61 = vmul.f32 0.70710677, %v14139_v20 }
 0x4ce   : > { %v14099_v63 = vpop.f32.mrb[132].mxu1  ;;  %v3910_v35 = vpop.f32.mrb[81].mxu0  ;;  %5560 = vmatmul.mubr.f32.gmra.mrb[132].mxu0 %v5085_v42  ;;  %6074 = vmatmul.mubr.f32.gmra.mrb[196].mxu1 %v5085_v42  ;;  %v4966_v3 = vadd.f32 1.0, %v10534_v32  ;;  %v5089_v10 = vmul.f32 %v4961_v40, %v4577_v2  ;;  %v14170_v1 = vadd.f32 %v14112_v19, %v14009_v13  ;;  %v4581_v45 = vmul.f32 0.5, %v14045_v50  ;;  %v5393_v2 = vld [vmem:[#allocation11 + $0x5e0] sm:$0xff] }
 0x4cf   : > { %v14114_v8 = vpop.f32.mrb[133].mxu1  ;;  %v10536_v23 = vpop.eup %10535  ;;  %5565 = vmatprep.mubr.f32.mxu0 %v5090_v18  ;;  %6079 = vmatprep.mubr.f32.mxu1 %v5090_v18  ;;  %10545 = verf.f32 %v4722_v56 }
 0x4d0   : > { %8801 = vmatpush1.bf16.msra.mxu0 %v8800_v36  ;;  %8929 = vmatpush1.bf16.msra.mxu1 %v8928_v6  ;;  %v5384_v36 = vld [vmem:[#allocation11 + $0x598] sm:$0xff]  ;;  %v14154_v6 = vld [vmem:[#allocation11 + $0x5c8] sm:$0xff]  ;;  %v4965_v15 = vadd.f32 1.0, %v10536_v23  ;;  %10547 = verf.f32 %v4721_v61  ;;  %v5389_v23 = vld [vmem:[#allocation11 + $0x5c0] sm:$0xff] }
 0x4d1   : > { %8803 = vmatprep.subr.bf16.mxu0 %v8802_v31  ;;  %8931 = vmatprep.subr.bf16.mxu1 %v8930_v53  ;;  %v14161_v31 = vadd.f32 %v3910_v35, %v14012_v24  ;;  %v8938_v5 = vpack.c.bf16 %v5388_v7, %v5384_v36  ;;  %v10538_v42 = vpop.eup %10537  ;;  %v8812_v53 = vpack.c.bf16 %v5385_v62, %v14152_v22  ;;  %v4586_v36 = vmul.f32 0.5, %v14059_v34  ;;  %v5402_v22 = vld [vmem:[#allocation11 + $0x628] sm:$0xff] }
 0x4d2   : > { %v14136_v57 = vpop.f32.mrb[134].mxu1  ;;  %5566 = vmatmul.mubr.f32.gmra.mrb[134].mxu0 %v5089_v10  ;;  %6080 = vmatmul.mubr.f32.gmra.mrb[198].mxu1 %v5089_v10  ;;  %v10540_v35 = vpop.eup %10539  ;;  %v8814_v58 = vpack.c.bf16 %v5394_v11, %v14154_v6  ;;  %v4970_v18 = vadd.f32 1.0, %v10538_v42  ;;  %v5093_v39 = vmul.f32 %v4965_v15, %v4581_v45  ;;  %v8816_v56 = vpack.c.bf16 %v5393_v2, %v5389_v23  ;;  %v5401_v15 = vld [vmem:[#allocation11 + $0x620] sm:$0xff] }
 0x4d3   : > { %v14141_v38 = vpop.f32.mrb[82].mxu0  ;;  %v14143_v51 = vpop.f32.mrb[135].mxu1  ;;  %v4726_v19 = vmul.f32 0.70710677, %v14161_v31  ;;  %v4969_v50 = vadd.f32 1.0, %v10540_v35 }
 0x4d4   : > { %v3916_v60 = vpop.f32.mrb[83].mxu0  ;;  %8805 = vmatpush1.bf16.msra.mxu0 %v8804_v43  ;;  %8933 = vmatpush1.bf16.msra.mxu1 %v8932_v28  ;;  %v4582_v43 = vmul.f32 0.5, %v14038_v4  ;;  %v8940_v4 = vpack.c.bf16 %v5387_v54, %v5383_v26  ;;  %v14192_v62 = vadd.f32 %v14141_v38, %v14009_v13  ;;  %v5098_v34 = vmul.f32 %v4970_v18, %v4586_v36  ;;  %v5397_v26 = vld [vmem:[#allocation11 + $0x600] sm:$0xff]  ;;  %v5414_v36 = vld [vmem:[#allocation11 + $0x688] sm:$0xff] }
 0x4d5   : > { %8807 = vmatprep.subr.bf16.mxu0 %v8806_v9  ;;  %8935 = vmatprep.subr.bf16.mxu1 %v8934_v12  ;;  %v4725_v9 = vmul.f32 0.70710677, %v14170_v1  ;;  %v14187_v7 = vadd.f32 %v3916_v60, %v14012_v24  ;;  %10549 = verf.f32 %v4726_v19  ;;  %v4590_v19 = vmul.f32 0.5, %v14086_v48 }
 0x4d6   : > { %v14157_v30 = vpop.f32.mrb[136].mxu1  ;;  %v5094_v28 = vmul.f32 %v4966_v3, %v4582_v43  ;;  %v4729_v42 = vmul.f32 0.70710677, %v14192_v62 }
 0x4d7   : > { %v14163_v49 = vpop.f32.mrb[84].mxu0  ;;  %v14165_v41 = vpop.f32.mrb[137].mxu1  ;;  %10551 = verf.f32 %v4725_v9  ;;  %v4730_v61 = vmul.f32 0.70710677, %v14187_v7  ;;  %v5409_v9 = vld [vmem:[#allocation11 + $0x660] sm:$0xff] }
 0x4d8   : > { %v3922_v55 = vpop.f32.mrb[85].mxu0  ;;  %8809 = vmatpush1.bf16.msra.mxu0 %v8808_v44  ;;  %8937 = vmatpush1.bf16.msra.mxu1 %v8936_v59  ;;  %v5398_v44 = vld [vmem:[#allocation11 + $0x608] sm:$0xff]  ;;  %v10542_v59 = vpop.eup %10541  ;;  %v14211_v45 = vadd.f32 %v14163_v49, %v14009_v13  ;;  %v4589_v49 = vmul.f32 0.5, %v14097_v21 }
 0x4d9   : > { %8811 = vmatprep.subr.bf16.mxu0 %v8810_v46  ;;  %8939 = vmatprep.subr.bf16.mxu1 %v8938_v5  ;;  %v4585_v46 = vmul.f32 0.5, %v14064_v52  ;;  %v10544_v10 = vpop.eup %10543  ;;  %v8818_v38 = vpack.c.bf16 %v5402_v22, %v5398_v44  ;;  %v14204_v5 = vadd.f32 %v3922_v55, %v14012_v24  ;;  %v4974_v54 = vadd.f32 1.0, %v10542_v59  ;;  %v5418_v44 = vld [vmem:[#allocation11 + $0x6a8] sm:$0xff] }
 0x4da   : > { %v14174_v40 = vpop.f32.mrb[138].mxu1  ;;  %5571 = vmatprep.mubr.f32.mxu0 %v5094_v28  ;;  %6085 = vmatprep.mubr.f32.mxu1 %v5094_v28  ;;  %v4973_v35 = vadd.f32 1.0, %v10544_v10  ;;  %v8820_v55 = vpack.c.bf16 %v5401_v15, %v5397_v26  ;;  %v10546_v18 = vpop.eup %10545  ;;  %10553 = verf.f32 %v4730_v61  ;;  %v4733_v48 = vmul.f32 0.70710677, %v14211_v45 }
 0x4db   : > { %v14178_v47 = vpop.f32.mrb[86].mxu0  ;;  %v14180_v32 = vpop.f32.mrb[139].mxu1  ;;  %5572 = vmatmul.mubr.f32.gmra.mrb[136].mxu0 %v5093_v39  ;;  %6086 = vmatmul.mubr.f32.gmra.mrb[200].mxu1 %v5093_v39  ;;  %v5097_v52 = vmul.f32 %v4969_v50, %v4585_v46  ;;  %v5405_v50 = vld [vmem:[#allocation11 + $0x640] sm:$0xff]  ;;  %v4734_v2 = vmul.f32 0.70710677, %v14204_v5  ;;  %10555 = verf.f32 %v4729_v42  ;;  %v5102_v22 = vmul.f32 %v4974_v54, %v4590_v19 }
 0x4dc   : > { %v14183_v12 = vpop.f32.mrb[87].mxu0  ;;  %8813 = vmatpush1.bf16.msra.mxu0 %v8812_v53  ;;  %8941 = vmatpush1.bf16.msra.mxu1 %v8940_v4  ;;  %v5410_v4 = vld [vmem:[#allocation11 + $0x668] sm:$0xff]  ;;  %v10548_v23 = vpop.eup %10547  ;;  %v8824_v21 = vpack.c.bf16 %v5409_v9, %v5405_v50  ;;  %v8826_v61 = vpack.c.bf16 %v5418_v44, %v5414_v36  ;;  %v5413_v54 = vld [vmem:[#allocation11 + $0x680] sm:$0xff] }
 0x4dd   : > { %8815 = vmatprep.subr.bf16.mxu0 %v8814_v58  ;;  %5577 = vmatprep.mubr.f32.mxu0 %v5098_v34  ;;  %v5406_v58 = vld [vmem:[#allocation11 + $0x648] sm:$0xff]  ;;  %v14231_v26 = vadd.f32 %v14183_v12, %v14012_v24  ;;  %v5417_v42 = vld [vmem:[#allocation11 + $0x6a0] sm:$0xff]  ;;  %10557 = verf.f32 %v4734_v2  ;;  %v4593_v12 = vmul.f32 0.5, %v14139_v20 }
 0x4de   : > { %v14194_v6 = vpop.f32.mrb[140].mxu1  ;;  %6091 = vmatprep.mubr.f32.mxu1 %v5098_v34  ;;  %v8822_v59 = vpack.c.bf16 %v5410_v4, %v5406_v58  ;;  %v4978_v34 = vadd.f32 1.0, %v10546_v18  ;;  %10559 = verf.f32 %v4733_v48  ;;  %v4597_v48 = vmul.f32 0.5, %v14170_v1 }
 0x4df   : > { %v14196_v3 = vpop.f32.mrb[88].mxu0  ;;  %v14198_v60 = vpop.f32.mrb[141].mxu1  ;;  %5578 = vmatmul.mubr.f32.gmra.mrb[138].mxu0 %v5097_v52  ;;  %6092 = vmatmul.mubr.f32.gmra.mrb[202].mxu1 %v5097_v52 }
 0x4e0   : > { %v14200_v11 = vpop.f32.mrb[89].mxu0  ;;  %8817 = vmatpush1.bf16.msra.mxu0 %v8816_v56  ;;  %v5101_v56 = vmul.f32 %v4973_v35, %v4589_v49  ;;  %5583 = vmatprep.mubr.f32.mxu0 %v5102_v22  ;;  %v10550_v58 = vpop.eup %10549  ;;  %v4594_v35 = vmul.f32 0.5, %v14134_v0  ;;  %v8828_v0 = vpack.c.bf16 %v5417_v42, %v5413_v54 }
 0x4e1   : > { %8819 = vmatprep.subr.bf16.mxu0 %v8818_v38  ;;  %v4977_v38 = vadd.f32 1.0, %v10548_v23  ;;  %6097 = vmatprep.mubr.f32.mxu1 %v5102_v22  ;;  %v10552_v4 = vpop.eup %10551  ;;  %v4982_v23 = vadd.f32 1.0, %v10550_v58  ;;  %v14250_v49 = vadd.f32 %v14200_v11, %v14012_v24  ;;  %v4598_v22 = vmul.f32 0.5, %v14161_v31 }
 0x4e2   : > { %v14207_v43 = vpop.f32.mrb[142].mxu1  ;;  %v5106_v19 = vmul.f32 %v4978_v34, %v4594_v35  ;;  %v4981_v36 = vadd.f32 1.0, %v10552_v4  ;;  %v14261_v11 = vadd.f32 %v14196_v3, %v14009_v13 }
 0x4e3   : > { %v14213_v53 = vpop.f32.mrb[90].mxu0  ;;  %v14215_v28 = vpop.f32.mrb[143].mxu1  ;;  %5584 = vmatmul.mubr.f32.gmra.mrb[140].mxu0 %v5101_v56  ;;  %6098 = vmatmul.mubr.f32.gmra.mrb[204].mxu1 %v5101_v56  ;;  %v5105_v2 = vmul.f32 %v4977_v38, %v4593_v12  ;;  %v4742_v31 = vmul.f32 0.70710677, %v14250_v49 }
 0x4e4   : > { %v14218_v39 = vpop.f32.mrb[91].mxu0  ;;  %8821 = vmatpush1.bf16.msra.mxu0 %v8820_v55  ;;  %v14238_v55 = vadd.f32 %v14178_v47, %v14009_v13  ;;  %v4738_v47 = vmul.f32 0.70710677, %v14231_v26  ;;  %5589 = vmatprep.mubr.f32.mxu0 %v5106_v19  ;;  %v10554_v34 = vpop.eup %10553  ;;  %v5109_v42 = vmul.f32 %v4981_v36, %v4597_v48  ;;  %v4741_v4 = vmul.f32 0.70710677, %v14261_v11 }
 0x4e5   : > { %8823 = vmatprep.subr.bf16.mxu0 %v8822_v59  ;;  %6103 = vmatprep.mubr.f32.mxu1 %v5106_v19  ;;  %v10556_v38 = vpop.eup %10555  ;;  %v4986_v58 = vadd.f32 1.0, %v10554_v34  ;;  %v14275_v12 = vadd.f32 %v14218_v39, %v14012_v24 }
 0x4e6   : > { %v14222_v46 = vpop.f32.mrb[144].mxu1  ;;  %v4737_v44 = vmul.f32 0.70710677, %v14238_v55  ;;  %10561 = verf.f32 %v4738_v47  ;;  %v4985_v35 = vadd.f32 1.0, %v10556_v38  ;;  %v14284_v47 = vadd.f32 %v14213_v53, %v14009_v13 }
 0x4e7   : > { %16409 = vst [vmem:[#allocation43_spill] sm:$0xff] %v14222_v46  ;;  %v14225_v10 = vpop.f32.mrb[92].mxu0  ;;  %v14227_v52 = vpop.f32.mrb[145].mxu1  ;;  %5590 = vmatmul.mubr.f32.gmra.mrb[142].mxu0 %v5105_v2  ;;  %6104 = vmatmul.mubr.f32.gmra.mrb[206].mxu1 %v5105_v2  ;;  %v4746_v48 = vmul.f32 0.70710677, %v14275_v12 }
 0x4e8   : > { %v14233_v15 = vpop.f32.mrb[93].mxu0  ;;  %8825 = vmatpush1.bf16.msra.mxu0 %v8824_v21  ;;  %10563 = verf.f32 %v4737_v44  ;;  %v10558_v3 = vpop.eup %10557  ;;  %v4601_v44 = vmul.f32 0.5, %v14192_v62  ;;  %v4745_v62 = vmul.f32 0.70710677, %v14284_v47 }
 0x4e9   : > { %8827 = vmatprep.subr.bf16.mxu0 %v8826_v61  ;;  %v5110_v61 = vmul.f32 %v4982_v23, %v4598_v22  ;;  %v4602_v23 = vmul.f32 0.5, %v14187_v7  ;;  %10565 = verf.f32 %v4742_v31  ;;  %v10560_v36 = vpop.eup %10559  ;;  %v4990_v39 = vadd.f32 1.0, %v10558_v3 }
 0x4ea   : > { %v14241_v18 = vpop.f32.mrb[146].mxu1  ;;  %10567 = verf.f32 %v4741_v4  ;;  %v14294_v7 = vadd.f32 %v14233_v15, %v14012_v24  ;;  %v5113_v38 = vmul.f32 %v4985_v35, %v4601_v44  ;;  %v14306_v15 = vadd.f32 %v14225_v10, %v14009_v13 }
 0x4eb   : > { %16410 = vst [vmem:[#allocation44_spill] sm:$0xff] %v14241_v18  ;;  %v14243_v50 = vpop.f32.mrb[94].mxu0  ;;  %v14245_v9 = vpop.f32.mrb[147].mxu1  ;;  %5595 = vmatprep.mubr.f32.mxu0 %v5110_v61  ;;  %6109 = vmatprep.mubr.f32.mxu1 %v5110_v61  ;;  %v5114_v22 = vmul.f32 %v4986_v58, %v4602_v23  ;;  %v4606_v61 = vmul.f32 0.5, %v14204_v5  ;;  %v4989_v58 = vadd.f32 1.0, %v10560_v36  ;;  %v4605_v5 = vmul.f32 0.5, %v14211_v45 }
 0x4ec   : > { %16411 = vst [vmem:[#allocation46_spill] sm:$0xff] %v14245_v9  ;;  %v14252_v20 = vpop.f32.mrb[95].mxu0  ;;  %8829 = vmatpush1.bf16.msra.mxu0 %v8828_v0  ;;  %6110 = vmatmul.mubr.f32.gmra.mrb[208].mxu1 %v5109_v42  ;;  %10569 = verf.f32 %v4746_v48  ;;  %v4750_v44 = vmul.f32 0.70710677, %v14294_v7  ;;  %v4749_v27 = vmul.f32 0.70710677, %v14306_v15 }
 0x4ed   : > { %5596 = vmatmul.mubr.f32.gmra.mrb[144].mxu0 %v5109_v42  ;;  %6115 = vmatprep.mubr.f32.mxu1 %v5114_v22  ;;  %v5118_v35 = vmul.f32 %v4990_v39, %v4606_v61  ;;  %10571 = verf.f32 %v4745_v62  ;;  %v14321_v45 = vadd.f32 %v14252_v20, %v14012_v24  ;;  %v14328_v62 = vadd.f32 %v14243_v50, %v14009_v13 }
 0x4ee   : > { %v14256_v59 = vpop.f32.mrb[148].mxu1  ;;  %5601 = vmatprep.mubr.f32.mxu0 %v5114_v22  ;;  %10573 = verf.f32 %v4750_v44 }
 0x4ef   : > { %16412 = vst [vmem:[#allocation48_spill] sm:$0xff] %v14256_v59  ;;  %v14263_v56 = vpop.f32.mrb[96].mxu0  ;;  %v14265_v21 = vpop.f32.mrb[149].mxu1  ;;  %10575 = verf.f32 %v4749_v27 }
 0x4f0   : > { %16413 = vst [vmem:[#allocation49_spill] sm:$0xff] %v14265_v21  ;;  %v14268_v54 = vpop.f32.mrb[97].mxu0  ;;  %6116 = vmatmul.mubr.f32.gmra.mrb[210].mxu1 %v5113_v38  ;;  %v10562_v3 = vpop.eup %10561 }
 0x4f1   : > { %5602 = vmatmul.mubr.f32.gmra.mrb[146].mxu0 %v5113_v38  ;;  %6121 = vmatprep.mubr.f32.mxu1 %v5118_v35  ;;  %v4994_v10 = vadd.f32 1.0, %v10562_v3  ;;  %v5117_v38 = vmul.f32 %v4989_v58, %v4605_v5  ;;  %v14340_v50 = vadd.f32 %v14268_v54, %v14012_v24 }
 0x4f2   : > { %v14270_v1 = vpop.f32.mrb[150].mxu1  ;;  %v10564_v23 = vpop.eup %10563  ;;  %5607 = vmatprep.mubr.f32.mxu0 %v5118_v35  ;;  %v4609_v35 = vmul.f32 0.5, %v14238_v55 }
 0x4f3   : > { %16414 = vst [vmem:[#allocation50_spill] sm:$0xff] %v14270_v1  ;;  %v14277_v19 = vpop.f32.mrb[98].mxu0  ;;  %v14279_v0 = vpop.f32.mrb[151].mxu1  ;;  %v4993_v61 = vadd.f32 1.0, %v10564_v23 }
 0x4f4   : > { %16415 = vst [vmem:[#allocation51_spill] sm:$0xff] %v14279_v0  ;;  %v14286_v2 = vpop.f32.mrb[99].mxu0  ;;  %v10566_v39 = vpop.eup %10565  ;;  %6122 = vmatmul.mubr.f32.gmra.mrb[212].mxu1 %v5117_v38 }
 0x4f5   : > { %5608 = vmatmul.mubr.f32.gmra.mrb[148].mxu0 %v5117_v38  ;;  %v10568_v23 = vpop.eup %10567  ;;  %v4998_v20 = vadd.f32 1.0, %v10566_v39  ;;  %v5121_v44 = vmul.f32 %v4993_v61, %v4609_v35  ;;  %v14354_v39 = vadd.f32 %v14263_v56, %v14009_v13  ;;  %v4613_v35 = vmul.f32 0.5, %v14261_v11 }
 0x4f6   : > { %v14289_v34 = vpop.f32.mrb[152].mxu1  ;;  %v4997_v27 = vadd.f32 1.0, %v10568_v23  ;;  %v10570_v54 = vpop.eup %10569  ;;  %v14367_v11 = vadd.f32 %v14286_v2, %v14012_v24 }
 0x4f7   : > { %16416 = vst [vmem:[#allocation52_spill] sm:$0xff] %v14289_v34  ;;  %v14296_v31 = vpop.f32.mrb[100].mxu0  ;;  %v14298_v53 = vpop.f32.mrb[153].mxu1  ;;  %v5002_v23 = vadd.f32 1.0, %v10570_v54  ;;  %v4617_v54 = vmul.f32 0.5, %v14284_v47 }
 0x4f8   : > { %16417 = vst [vmem:[#allocation53_spill] sm:$0xff] %v14298_v53  ;;  %v14302_v42 = vpop.f32.mrb[101].mxu0 }
 0x4fa   : > { %v14308_v4 = vpop.f32.mrb[154].mxu1 }
 0x4fb   : > { %16418 = vst [vmem:[#allocation54_spill] sm:$0xff] %v14308_v4  ;;  %v14312_v22 = vpop.f32.mrb[102].mxu0  ;;  %v14314_v17 = vpop.f32.mrb[155].mxu1  ;;  %v4610_v4 = vmul.f32 0.5, %v14231_v26  ;;  %v4754_v26 = vmul.f32 0.70710677, %v14321_v45 }
 0x4fc   : > { %16419 = vst [vmem:[#allocation55_spill] sm:$0xff] %v14314_v17  ;;  %v14316_v36 = vpop.f32.mrb[103].mxu0 }
 0x4fd   : > { %v5122_v5 = vmul.f32 %v4994_v10, %v4610_v4  ;;  %10577 = verf.f32 %v4754_v26  ;;  %v14374_v26 = vadd.f32 %v14277_v19, %v14009_v13  ;;  %v14386_v19 = vadd.f32 %v14302_v42, %v14012_v24 }
 0x4fe   : > { %v14323_v48 = vpop.f32.mrb[156].mxu1 }
 0x4ff   : > { %16420 = vst [vmem:[#allocation56_spill] sm:$0xff] %v14323_v48  ;;  %v14330_v58 = vpop.f32.mrb[104].mxu0  ;;  %v14332_v3 = vpop.f32.mrb[157].mxu1  ;;  %v4614_v48 = vmul.f32 0.5, %v14250_v49  ;;  %5613 = vmatprep.mubr.f32.mxu0 %v5122_v5  ;;  %6127 = vmatprep.mubr.f32.mxu1 %v5122_v5  ;;  %v4758_v5 = vmul.f32 0.70710677, %v14340_v50 }
 0x500   : > { %16421 = vst [vmem:[#allocation57_spill] sm:$0xff] %v14332_v3  ;;  %v14335_v17 = vpop.f32.mrb[105].mxu0  ;;  %v4753_v3 = vmul.f32 0.70710677, %v14328_v62  ;;  %5614 = vmatmul.mubr.f32.gmra.mrb[150].mxu0 %v5121_v44  ;;  %6128 = vmatmul.mubr.f32.gmra.mrb[214].mxu1 %v5121_v44  ;;  %v10572_v49 = vpop.eup %10571  ;;  %v5125_v44 = vmul.f32 %v4997_v27, %v4613_v35  ;;  %v4761_v47 = vmul.f32 0.70710677, %v14374_v26 }
 0x501   : > { %v5126_v61 = vmul.f32 %v4998_v20, %v4614_v48  ;;  %v10574_v56 = vpop.eup %10573  ;;  %v5001_v53 = vadd.f32 1.0, %v10572_v49  ;;  %v4757_v48 = vmul.f32 0.70710677, %v14354_v39  ;;  %v4638_v59 = vmul.f32 0.5, %v14386_v19 }
 0x502   : > { %v14342_v38 = vpop.f32.mrb[158].mxu1  ;;  %10579 = verf.f32 %v4753_v3  ;;  %v4618_v3 = vmul.f32 0.5, %v14275_v12  ;;  %v5006_v49 = vadd.f32 1.0, %v10574_v56  ;;  %v4762_v12 = vmul.f32 0.70710677, %v14367_v11 }
 0x503   : > { %16422 = vst [vmem:[#allocation30_spill] sm:$0xff] %v14342_v38  ;;  %v14346_v55 = vpop.f32.mrb[106].mxu0  ;;  %v14348_v4 = vpop.f32.mrb[159].mxu1  ;;  %5619 = vmatprep.mubr.f32.mxu0 %v5126_v61  ;;  %6133 = vmatprep.mubr.f32.mxu1 %v5126_v61  ;;  %10581 = verf.f32 %v4758_v5  ;;  %v5129_v5 = vmul.f32 %v5001_v53, %v4617_v54  ;;  %v14400_v53 = vadd.f32 %v14296_v31, %v14009_v13 }
 0x504   : > { %16423 = vst [vmem:[#allocation31_spill] sm:$0xff] %v14348_v4  ;;  %v14350_v10 = vpop.f32.mrb[107].mxu0  ;;  %5620 = vmatmul.mubr.f32.gmra.mrb[152].mxu0 %v5125_v44  ;;  %6134 = vmatmul.mubr.f32.gmra.mrb[216].mxu1 %v5125_v44  ;;  %v10576_v61 = vpop.eup %10575  ;;  %v5130_v35 = vmul.f32 %v5002_v23, %v4618_v3  ;;  %10583 = verf.f32 %v4757_v48 }
 0x505   : > { %v5005_v56 = vadd.f32 1.0, %v10576_v61  ;;  %10585 = verf.f32 %v4762_v12  ;;  %v4766_v61 = vmul.f32 0.70710677, %v14386_v19  ;;  %v4637_v19 = vmul.f32 0.5, %v14400_v53 }
 0x506   : > { %v14358_v38 = vpop.f32.mrb[160].mxu1  ;;  %5625 = vmatprep.mubr.f32.mxu0 %v5130_v35  ;;  %6139 = vmatprep.mubr.f32.mxu1 %v5130_v35  ;;  %v4621_v35 = vmul.f32 0.5, %v14306_v15  ;;  %10587 = verf.f32 %v4761_v47  ;;  %v4626_v47 = vmul.f32 0.5, %v14321_v45  ;;  %v14432_v45 = vadd.f32 %v14335_v17, %v14012_v24 }
 0x507   : > { %16424 = vst [vmem:[#allocation32_spill] sm:$0xff] %v14358_v38  ;;  %v14360_v4 = vpop.f32.mrb[108].mxu0  ;;  %v14362_v34 = vpop.f32.mrb[161].mxu1  ;;  %10589 = verf.f32 %v4766_v61  ;;  %v14444_v17 = vadd.f32 %v14330_v58, %v14009_v13 }
 0x508   : > { %16425 = vst [vmem:[#allocation33_spill] sm:$0xff] %v14362_v34  ;;  %v14369_v20 = vpop.f32.mrb[109].mxu0  ;;  %5626 = vmatmul.mubr.f32.gmra.mrb[154].mxu0 %v5129_v5  ;;  %6140 = vmatmul.mubr.f32.gmra.mrb[218].mxu1 %v5129_v5  ;;  %v10578_v42 = vpop.eup %10577 }
 0x509   : > { %v5010_v5 = vadd.f32 1.0, %v10578_v42  ;;  %v4773_v0 = vmul.f32 0.70710677, %v14444_v17 }
 0x50a   : > { %v14376_v27 = vpop.f32.mrb[162].mxu1 }
 0x50b   : > { %16426 = vst [vmem:[#allocation58_spill] sm:$0xff] %v14376_v27  ;;  %v14379_v2 = vpop.f32.mrb[110].mxu0  ;;  %v14381_v38 = vpop.f32.mrb[163].mxu1  ;;  %v4622_v27 = vmul.f32 0.5, %v14294_v7 }
 0x50c   : > { %16427 = vst [vmem:[#allocation42_spill] sm:$0xff] %v14381_v38  ;;  %v14388_v44 = vpop.f32.mrb[111].mxu0  ;;  %v10580_v38 = vpop.eup %10579 }
 0x50d   : > { %v5134_v54 = vmul.f32 %v5006_v49, %v4622_v27  ;;  %v10582_v31 = vpop.eup %10581  ;;  %v5009_v1 = vadd.f32 1.0, %v10580_v38  ;;  %v4765_v27 = vmul.f32 0.70710677, %v14400_v53  ;;  %v14413_v49 = vadd.f32 %v14316_v36, %v14012_v24 }
 0x50e   : > { %v14392_v23 = vpop.f32.mrb[164].mxu1  ;;  %v4625_v38 = vmul.f32 0.5, %v14328_v62  ;;  %v10584_v42 = vpop.eup %10583  ;;  %v4630_v62 = vmul.f32 0.5, %v14340_v50 }
 0x50f   : > { %16428 = vst [vmem:[#allocation34_spill] sm:$0xff] %v14392_v23  ;;  %v14394_v48 = vpop.f32.mrb[112].mxu0  ;;  %v14396_v3 = vpop.f32.mrb[165].mxu1  ;;  %5631 = vmatprep.mubr.f32.mxu0 %v5134_v54  ;;  %6145 = vmatprep.mubr.f32.mxu1 %v5134_v54  ;;  %v5133_v23 = vmul.f32 %v5005_v56, %v4621_v35  ;;  %v14422_v56 = vadd.f32 %v14312_v22, %v14009_v13  ;;  %v5014_v54 = vadd.f32 1.0, %v10582_v31  ;;  %10591 = verf.f32 %v4765_v27 }
 0x510   : > { %16429 = vst [vmem:[#allocation35_spill] sm:$0xff] %v14396_v3  ;;  %v14402_v7 = vpop.f32.mrb[113].mxu0  ;;  %v5138_v35 = vmul.f32 %v5010_v5, %v4626_v47  ;;  %v5137_v22 = vmul.f32 %v5009_v1, %v4625_v38  ;;  %v5013_v31 = vadd.f32 1.0, %v10584_v42  ;;  %v10586_v47 = vpop.eup %10585  ;;  %v4774_v42 = vmul.f32 0.70710677, %v14432_v45 }
 0x511   : > { %5632 = vmatmul.mubr.f32.gmra.mrb[156].mxu0 %v5133_v23  ;;  %6146 = vmatmul.mubr.f32.gmra.mrb[220].mxu1 %v5133_v23  ;;  %v4769_v5 = vmul.f32 0.70710677, %v14422_v56  ;;  %v5142_v1 = vmul.f32 %v5014_v54, %v4630_v62  ;;  %v10588_v50 = vpop.eup %10587  ;;  %v4642_v21 = vmul.f32 0.5, %v14413_v49 }
 0x512   : > { %v14406_v3 = vpop.f32.mrb[166].mxu1  ;;  %5637 = vmatprep.mubr.f32.mxu0 %v5138_v35  ;;  %6151 = vmatprep.mubr.f32.mxu1 %v5138_v35  ;;  %v10590_v54 = vpop.eup %10589  ;;  %v5017_v62 = vadd.f32 1.0, %v10588_v50 }
 0x513   : > { %16430 = vst [vmem:[#allocation36_spill] sm:$0xff] %v14406_v3  ;;  %v14408_v34 = vpop.f32.mrb[114].mxu0  ;;  %v14415_v15 = vpop.f32.mrb[167].mxu1 }
 0x514   : > { %16431 = vst [vmem:[#allocation37_spill] sm:$0xff] %v14415_v15  ;;  %v14417_v12 = vpop.f32.mrb[115].mxu0  ;;  %v4770_v15 = vmul.f32 0.70710677, %v14413_v49 }
 0x515   : > { %5638 = vmatmul.mubr.f32.gmra.mrb[158].mxu0 %v5137_v22  ;;  %6152 = vmatmul.mubr.f32.gmra.mrb[222].mxu1 %v5137_v22  ;;  %v5018_v22 = vadd.f32 1.0, %v10586_v47  ;;  %v4633_v47 = vmul.f32 0.5, %v14374_v26 }
 0x516   : > { %v14425_v36 = vpop.f32.mrb[168].mxu1  ;;  %10593 = verf.f32 %v4770_v15  ;;  %5643 = vmatprep.mubr.f32.mxu0 %v5142_v1  ;;  %6157 = vmatprep.mubr.f32.mxu1 %v5142_v1 }
 0x517   : > { %16432 = vst [vmem:[#allocation38_spill] sm:$0xff] %v14425_v36  ;;  %v14427_v3 = vpop.f32.mrb[116].mxu0  ;;  %v14434_v61 = vpop.f32.mrb[169].mxu1  ;;  %10595 = verf.f32 %v4769_v5  ;;  %v4634_v5 = vmul.f32 0.5, %v14367_v11  ;;  %v14478_v11 = vadd.f32 %v14369_v20, %v14012_v24  ;;  %v14490_v20 = vadd.f32 %v14360_v4, %v14009_v13 }
 0x518   : > { %16433 = vst [vmem:[#allocation39_spill] sm:$0xff] %v14434_v61  ;;  %v14436_v23 = vpop.f32.mrb[117].mxu0  ;;  %v4629_v61 = vmul.f32 0.5, %v14354_v39  ;;  %10597 = verf.f32 %v4774_v42  ;;  %v14502_v4 = vadd.f32 %v14388_v44, %v14012_v24  ;;  %v4641_v44 = vmul.f32 0.5, %v14422_v56 }
 0x519   : > { %v10592_v1 = vpop.eup %10591  ;;  %v5146_v50 = vmul.f32 %v5018_v22, %v4634_v5  ;;  %10599 = verf.f32 %v4773_v0 }
 0x51a   : > { %v14440_v27 = vpop.f32.mrb[170].mxu1  ;;  %v5021_v0 = vadd.f32 1.0, %v10592_v1 }
 0x51b   : > { %16434 = vst [vmem:[#allocation40_spill] sm:$0xff] %v14440_v27  ;;  %v14446_v38 = vpop.f32.mrb[118].mxu0  ;;  %v14448_v36 = vpop.f32.mrb[171].mxu1  ;;  %v5141_v27 = vmul.f32 %v5013_v31, %v4629_v61  ;;  %v14468_v61 = vadd.f32 %v14346_v55, %v14009_v13  ;;  %v5145_v55 = vmul.f32 %v5017_v62, %v4633_v47 }
 0x51c   : > { %16435 = vst [vmem:[#allocation59_spill] sm:$0xff] %v14448_v36  ;;  %v14452_v35 = vpop.f32.mrb[119].mxu0  ;;  %v14459_v36 = vadd.f32 %v14350_v10, %v14012_v24  ;;  %v5022_v10 = vadd.f32 1.0, %v10590_v54 }
 0x51d   : > { %5644 = vmatmul.mubr.f32.gmra.mrb[160].mxu0 %v5141_v27  ;;  %6158 = vmatmul.mubr.f32.gmra.mrb[224].mxu1 %v5141_v27  ;;  %v4777_v26 = vmul.f32 0.70710677, %v14468_v61 }
 0x51e   : > { %v14454_v58 = vpop.f32.mrb[172].mxu1  ;;  %5649 = vmatprep.mubr.f32.mxu0 %v5146_v50  ;;  %6163 = vmatprep.mubr.f32.mxu1 %v5146_v50  ;;  %v5150_v62 = vmul.f32 %v5022_v10, %v4638_v59  ;;  %v5149_v59 = vmul.f32 %v5021_v0, %v4637_v19  ;;  %v14517_v0 = vadd.f32 %v14379_v2, %v14009_v13  ;;  %v4786_v19 = vmul.f32 0.70710677, %v14502_v4 }
 0x51f   : > { %16436 = vst [vmem:[#allocation60_spill] sm:$0xff] %v14454_v58  ;;  %v14461_v39 = vpop.f32.mrb[120].mxu0  ;;  %v14463_v15 = vpop.f32.mrb[173].mxu1 }
 0x520   : > { %16437 = vst [vmem:[#allocation61_spill] sm:$0xff] %v14463_v15  ;;  %v14470_v31 = vpop.f32.mrb[121].mxu0  ;;  %v4778_v15 = vmul.f32 0.70710677, %v14459_v36  ;;  %v10594_v54 = vpop.eup %10593  ;;  %v4785_v2 = vmul.f32 0.70710677, %v14517_v0 }
 0x521   : > { %5650 = vmatmul.mubr.f32.gmra.mrb[162].mxu0 %v5145_v55  ;;  %6164 = vmatmul.mubr.f32.gmra.mrb[226].mxu1 %v5145_v55  ;;  %v10596_v47 = vpop.eup %10595  ;;  %v5026_v1 = vadd.f32 1.0, %v10594_v54 }
 0x522   : > { %v14473_v58 = vpop.f32.mrb[174].mxu1  ;;  %10601 = verf.f32 %v4778_v15  ;;  %5655 = vmatprep.mubr.f32.mxu0 %v5150_v62  ;;  %6169 = vmatprep.mubr.f32.mxu1 %v5150_v62  ;;  %v10598_v55 = vpop.eup %10597  ;;  %v5025_v53 = vadd.f32 1.0, %v10596_v47  ;;  %v4781_v15 = vmul.f32 0.70710677, %v14490_v20 }
 0x523   : > { %16438 = vst [vmem:[#allocation62_spill] sm:$0xff] %v14473_v58  ;;  %v14480_v42 = vpop.f32.mrb[122].mxu0  ;;  %v14482_v27 = vpop.f32.mrb[175].mxu1  ;;  %v4782_v58 = vmul.f32 0.70710677, %v14478_v11  ;;  %10603 = verf.f32 %v4777_v26  ;;  %v5030_v47 = vadd.f32 1.0, %v10598_v55 }
 0x524   : > { %16439 = vst [vmem:[#allocation63_spill] sm:$0xff] %v14482_v27  ;;  %v14486_v22 = vpop.f32.mrb[123].mxu0  ;;  %v10600_v62 = vpop.eup %10599  ;;  %v5153_v49 = vmul.f32 %v5025_v53, %v4641_v44  ;;  %v14531_v53 = vadd.f32 %v14402_v7, %v14012_v24 }
 0x525   : > { %10605 = verf.f32 %v4782_v58  ;;  %5656 = vmatmul.mubr.f32.gmra.mrb[164].mxu0 %v5149_v59  ;;  %6170 = vmatmul.mubr.f32.gmra.mrb[228].mxu1 %v5149_v59  ;;  %v4646_v59 = vmul.f32 0.5, %v14432_v45 }
 0x526   : > { %v14492_v5 = vpop.f32.mrb[176].mxu1  ;;  %10607 = verf.f32 %v4781_v15  ;;  %v4645_v15 = vmul.f32 0.5, %v14444_v17  ;;  %v4650_v17 = vmul.f32 0.5, %v14459_v36  ;;  %v4790_v7 = vmul.f32 0.70710677, %v14531_v53 }
 0x527   : > { %16440 = vst [vmem:[#allocation64_spill] sm:$0xff] %v14492_v5  ;;  %v14496_v50 = vpop.f32.mrb[124].mxu0  ;;  %v14498_v27 = vpop.f32.mrb[177].mxu1  ;;  %10609 = verf.f32 %v4786_v19  ;;  %v14555_v36 = vadd.f32 %v14408_v34, %v14009_v13  ;;  %v14565_v34 = vadd.f32 %v14436_v23, %v14012_v24 }
 0x528   : > { %16441 = vst [vmem:[#allocation65_spill] sm:$0xff] %v14498_v27  ;;  %v14504_v10 = vpop.f32.mrb[125].mxu0  ;;  %10611 = verf.f32 %v4785_v2 }
 0x529   : > { %10613 = verf.f32 %v4790_v7  ;;  %v4793_v7 = vmul.f32 0.70710677, %v14555_v36 }
 0x52a   : > { %v14507_v5 = vpop.f32.mrb[178].mxu1 }
 0x52b   : > { %16442 = vst [vmem:[#allocation66_spill] sm:$0xff] %v14507_v5  ;;  %v14510_v26 = vpop.f32.mrb[126].mxu0  ;;  %v14512_v54 = vpop.f32.mrb[179].mxu1  ;;  %v5154_v5 = vmul.f32 %v5026_v1, %v4642_v21  ;;  %v5158_v21 = vmul.f32 %v5030_v47, %v4646_v59  ;;  %v14545_v59 = vadd.f32 %v14417_v12, %v14012_v24  ;;  %v4654_v12 = vmul.f32 0.5, %v14478_v11  ;;  %v5422_v11 = vld [vmem:[#allocation11 + $0x6c8] sm:$0xff] }
 0x52c   : > { %16443 = vst [vmem:[#allocation67_spill] sm:$0xff] %v14512_v54  ;;  %v14520_v27 = vpop.f32.mrb[127].mxu0  ;;  %v5029_v54 = vadd.f32 1.0, %v10600_v62  ;;  %v10602_v55 = vpop.eup %10601 }
 0x52d   : > { %5661 = vmatprep.mubr.f32.mxu0 %v5154_v5  ;;  %6175 = vmatprep.mubr.f32.mxu1 %v5154_v5  ;;  %v10604_v1 = vpop.eup %10603  ;;  %v14537_v5 = vadd.f32 %v14394_v48, %v14009_v13  ;;  %v5034_v44 = vadd.f32 1.0, %v10602_v55  ;;  %v4649_v55 = vmul.f32 0.5, %v14468_v61 }
 0x52e   : > { %v14522_v58 = vpop.f32.mrb[180].mxu1  ;;  %5662 = vmatmul.mubr.f32.gmra.mrb[166].mxu0 %v5153_v49  ;;  %6176 = vmatmul.mubr.f32.gmra.mrb[230].mxu1 %v5153_v49  ;;  %v5157_v62 = vmul.f32 %v5029_v54, %v4645_v15  ;;  %v5033_v49 = vadd.f32 1.0, %v10604_v1 }
 0x52f   : > { %16444 = vst [vmem:[#allocation68_spill] sm:$0xff] %v14522_v58  ;;  %v14525_v56 = vpop.f32.mrb[181].mxu1  ;;  %5667 = vmatprep.mubr.f32.mxu0 %v5158_v21  ;;  %6181 = vmatprep.mubr.f32.mxu1 %v5158_v21  ;;  %v10606_v47 = vpop.eup %10605  ;;  %v4789_v54 = vmul.f32 0.70710677, %v14537_v5  ;;  %v5162_v15 = vmul.f32 %v5034_v44, %v4650_v17  ;;  %v4653_v17 = vmul.f32 0.5, %v14490_v20 }
 0x530   : > { %16445 = vst [vmem:[#allocation69_spill] sm:$0xff] %v14525_v56  ;;  %v10608_v2 = vpop.eup %10607  ;;  %v5038_v21 = vadd.f32 1.0, %v10606_v47  ;;  %v4798_v20 = vmul.f32 0.70710677, %v14565_v34 }
 0x531   : > { %10615 = verf.f32 %v4789_v54 }
 0x532   : > { %v14533_v45 = vpop.f32.mrb[182].mxu1  ;;  %5668 = vmatmul.mubr.f32.gmra.mrb[168].mxu0 %v5157_v62  ;;  %6182 = vmatmul.mubr.f32.gmra.mrb[232].mxu1 %v5157_v62  ;;  %v4794_v62 = vmul.f32 0.70710677, %v14545_v59  ;;  %v5166_v47 = vmul.f32 %v5038_v21, %v4654_v12  ;;  %v4658_v12 = vmul.f32 0.5, %v14502_v4 }
 0x533   : > { %16446 = vst [vmem:[#allocation70_spill] sm:$0xff] %v14533_v45  ;;  %v14539_v19 = vpop.f32.mrb[183].mxu1  ;;  %v5161_v45 = vmul.f32 %v5033_v49, %v4649_v55  ;;  %5673 = vmatprep.mubr.f32.mxu0 %v5162_v15  ;;  %6187 = vmatprep.mubr.f32.mxu1 %v5162_v15  ;;  %v5426_v49 = vld [vmem:[#allocation11 + $0x6e8] sm:$0xff]  ;;  %v5421_v55 = vld [vmem:[#allocation11 + $0x6c0] sm:$0xff] }
 0x534   : > { %16447 = vst [vmem:[#allocation71_spill] sm:$0xff] %v14539_v19  ;;  %v5037_v19 = vadd.f32 1.0, %v10608_v2  ;;  %v5425_v15 = vld [vmem:[#allocation11 + $0x6e0] sm:$0xff]  ;;  %10617 = verf.f32 %v4794_v62  ;;  %v8830_v54 = vpack.c.bf16 %v5426_v49, %v5422_v11  ;;  %v5396_v62 = vld [vmem:[#allocation11 + $0x5f8] sm:$0xff]  ;;  %v5391_v49 = vld [vmem:[#allocation11 + $0x5d0] sm:$0xff] }
 0x535   : > { %10619 = verf.f32 %v4793_v7 }
 0x536   : > { %v14547_v48 = vpop.f32.mrb[184].mxu1  ;;  %5674 = vmatmul.mubr.f32.gmra.mrb[170].mxu0 %v5161_v45  ;;  %6188 = vmatmul.mubr.f32.gmra.mrb[234].mxu1 %v5161_v45  ;;  %v14571_v45 = vadd.f32 %v14427_v3, %v14009_v13  ;;  %v5165_v23 = vmul.f32 %v5037_v19, %v4653_v17  ;;  %v14585_v3 = vadd.f32 %v14452_v35, %v14012_v24  ;;  %v5392_v19 = vld [vmem:[#allocation11 + $0x5d8] sm:$0xff]  ;;  %10621 = verf.f32 %v4798_v20 }
 0x537   : > { %16448 = vst [vmem:[#allocation72_spill] sm:$0xff] %v14547_v48  ;;  %v14551_v1 = vpop.f32.mrb[185].mxu1  ;;  %v10610_v48 = vpop.eup %10609  ;;  %5679 = vmatprep.mubr.f32.mxu0 %v5166_v47  ;;  %6193 = vmatprep.mubr.f32.mxu1 %v5166_v47 }
 0x538   : > { %16449 = vst [vmem:[#allocation73_spill] sm:$0xff] %v14551_v1  ;;  %v5042_v2 = vadd.f32 1.0, %v10610_v48  ;;  %v14581_v48 = vadd.f32 %v14446_v38, %v14009_v13  ;;  %8831 = vmatprep.subr.bf16.mxu0 %v8830_v54  ;;  %v4797_v11 = vmul.f32 0.70710677, %v14571_v45  ;;  %v5395_v38 = vld [vmem:[#allocation11 + $0x5f0] sm:$0xff] }
 0x53a   : > { %v14559_v61 = vpop.f32.mrb[186].mxu1  ;;  %5680 = vmatmul.mubr.f32.gmra.mrb[172].mxu0 %v5165_v23  ;;  %6194 = vmatmul.mubr.f32.gmra.mrb[236].mxu1 %v5165_v23  ;;  %v5170_v4 = vmul.f32 %v5042_v2, %v4658_v12  ;;  %v8942_v2 = vpack.c.bf16 %v5396_v62, %v5392_v19  ;;  %v8944_v23 = vpack.c.bf16 %v5395_v38, %v5391_v49  ;;  %10623 = verf.f32 %v4797_v11  ;;  %v5430_v62 = vld [vmem:[#allocation11 + $0x708] sm:$0xff]  ;;  %v11168_v11 = vld [vmem:[#allocation10] sm:$0xf] }
 0x53b   : > { %16450 = vst [vmem:[#allocation74_spill] sm:$0xff] %v14559_v61  ;;  %v14561_v44 = vpop.f32.mrb[187].mxu1  ;;  %v10612_v61 = vpop.eup %10611  ;;  %v14601_v12 = vadd.f32 %v14461_v39, %v14009_v13  ;;  %v14607_v19 = vadd.f32 %v14486_v22, %v14012_v24  ;;  %v5434_v39 = vld [vmem:[#allocation11 + $0x728] sm:$0xff]  ;;  %v14610_v49 = vrot.slane %v11168_v11, %v13394_v33  ;;  %v4661_v38 = vmul.f32 0.5, %v14537_v5 }
 0x53c   : > { %16451 = vst [vmem:[#allocation75_spill] sm:$0xff] %v14561_v44  ;;  %v8832_v44 = vpack.c.bf16 %v5425_v15, %v5421_v55  ;;  %v5041_v58 = vadd.f32 1.0, %v10612_v61  ;;  %v4657_v61 = vmul.f32 0.5, %v14517_v0  ;;  %v10614_v7 = vpop.eup %10613  ;;  %5685 = vmatprep.mubr.f32.mxu0 %v5170_v4  ;;  %6199 = vmatprep.mubr.f32.mxu1 %v5170_v4  ;;  %v14596_v55 = vadd.f32 %v14470_v31, %v14012_v24 }
 0x53d   : > { %v10616_v35 = vpop.eup %10615  ;;  %v4802_v0 = vmul.f32 0.70710677, %v14585_v3  ;;  %v5046_v54 = vadd.f32 1.0, %v10614_v7  ;;  %8943 = vmatprep.subr.bf16.mxu1 %v8942_v2  ;;  %v4662_v31 = vmul.f32 0.5, %v14531_v53  ;;  %v5429_v7 = vld [vmem:[#allocation11 + $0x700] sm:$0xff]  ;;  %v14616_v22 = vadd.f32 %v14480_v42, %v14009_v13 }
 0x53e   : > { %v14573_v21 = vpop.f32.mrb[188].mxu1  ;;  %8833 = vmatpush1.bf16.msra.mxu0 %v8832_v44  ;;  %v4801_v44 = vmul.f32 0.70710677, %v14581_v48  ;;  %v5169_v15 = vmul.f32 %v5041_v58, %v4657_v61  ;;  %v10618_v20 = vpop.eup %10617  ;;  %v5045_v4 = vadd.f32 1.0, %v10616_v35  ;;  %v4806_v58 = vmul.f32 0.70710677, %v14596_v55  ;;  %8945 = vmatpush1.bf16.msra.mxu1 %v8944_v23 }
 0x53f   : > { %16452 = vst [vmem:[#allocation76_spill] sm:$0xff] %v14573_v21  ;;  %v14577_v1 = vpop.f32.mrb[189].mxu1  ;;  %v5399_v61 = vld [vmem:[#allocation11 + $0x610] sm:$0xff]  ;;  %v5433_v53 = vld [vmem:[#allocation11 + $0x720] sm:$0xff]  ;;  %v4805_v2 = vmul.f32 0.70710677, %v14601_v12  ;;  %v5174_v23 = vmul.f32 %v5046_v54, %v4662_v31  ;;  %v8834_v33 = vpack.c.bf16 %v5434_v39, %v5430_v62  ;;  %v14621_v9 = vrot.slane %v11168_v11, %v13390_v25 }
 0x540   : > { %16453 = vst [vmem:[#allocation77_spill] sm:$0xff] %v14577_v1  ;;  %5686 = vmatmul.mubr.f32.gmra.mrb[174].mxu0 %v5169_v15  ;;  %6200 = vmatmul.mubr.f32.gmra.mrb[238].mxu1 %v5169_v15  ;;  %10625 = verf.f32 %v4801_v44  ;;  %v5403_v35 = vld [vmem:[#allocation11 + $0x630] sm:$0xff]  ;;  %v10620_v44 = vpop.eup %10619  ;;  %v5050_v15 = vadd.f32 1.0, %v10618_v20  ;;  %v4666_v21 = vmul.f32 0.5, %v14545_v59  ;;  %v5173_v1 = vmul.f32 %v5045_v4, %v4661_v38  ;;  %v5408_v54 = vld [vmem:[#allocation11 + $0x658] sm:$0xff] }
 0x541   : > { %10627 = verf.f32 %v4802_v0  ;;  %v4810_v5 = vmul.f32 0.70710677, %v14607_v19  ;;  %5691 = vmatprep.mubr.f32.mxu0 %v5174_v23  ;;  %6205 = vmatprep.mubr.f32.mxu1 %v5174_v23  ;;  %v8836_v0 = vpack.c.bf16 %v5433_v53, %v5429_v7  ;;  %v8948_v18 = vpack.c.bf16 %v5403_v35, %v5399_v61  ;;  %v10622_v20 = vpop.eup %10621  ;;  %v5407_v31 = vld [vmem:[#allocation11 + $0x650] sm:$0xff]  ;;  %v5416_v53 = vld [vmem:[#allocation11 + $0x698] sm:$0xff] }
 0x542   : > { %v14587_v47 = vpop.f32.mrb[190].mxu1  ;;  %10629 = verf.f32 %v4806_v58  ;;  %v5049_v46 = vadd.f32 1.0, %v10620_v44  ;;  %8835 = vmatprep.subr.bf16.mxu0 %v8834_v33  ;;  %v14625_v42 = vadd.f32 %v14504_v10, %v14012_v24  ;;  %v4809_v59 = vmul.f32 0.70710677, %v14616_v22  ;;  %v5412_v10 = vld [vmem:[#allocation11 + $0x678] sm:$0xff]  ;;  %v5411_v58 = vld [vmem:[#allocation11 + $0x670] sm:$0xff] }
 0x543   : > { %16454 = vst [vmem:[#allocation78_spill] sm:$0xff] %v14587_v47  ;;  %v14591_v17 = vpop.f32.mrb[191].mxu1  ;;  %v5400_v47 = vld [vmem:[#allocation11 + $0x618] sm:$0xff]  ;;  %10631 = verf.f32 %v4805_v2  ;;  %v14634_v4 = vadd.f32 %v14066_v14, %v14610_v49  ;;  %v4665_v33 = vmul.f32 0.5, %v14555_v36  ;;  %8837 = vmatpush1.bf16.msra.mxu0 %v8836_v0  ;;  %v8950_v39 = vpack.c.bf16 %v5412_v10, %v5408_v54  ;;  %v5415_v23 = vld [vmem:[#allocation11 + $0x690] sm:$0xff] }
 0x544   : > { %16455 = vst [vmem:[#allocation79_spill] sm:$0xff] %v14591_v17  ;;  %v5404_v17 = vld [vmem:[#allocation11 + $0x638] sm:$0xff]  ;;  %5692 = vmatmul.mubr.f32.gmra.mrb[176].mxu0 %v5173_v1  ;;  %6206 = vmatmul.mubr.f32.gmra.mrb[240].mxu1 %v5173_v1  ;;  %v10624_v62 = vpop.eup %10623  ;;  %v5054_v1 = vadd.f32 1.0, %v10622_v20  ;;  %10633 = verf.f32 %v4810_v5  ;;  %v4814_v14 = vmul.f32 0.70710677, %v14625_v42  ;;  %v8952_v61 = vpack.c.bf16 %v5411_v58, %v5407_v31  ;;  %v5437_v20 = vld [vmem:[#allocation11 + $0x740] sm:$0xff] }
 0x545   : > { %v8946_v56 = vpack.c.bf16 %v5404_v17, %v5400_v47  ;;  %v14630_v47 = vadd.f32 %v14496_v50, %v14009_v13  ;;  %v5178_v17 = vmul.f32 %v5050_v15, %v4666_v21  ;;  %v14639_v50 = vadd.f32 %v14061_v37, %v14621_v9  ;;  %v5420_v35 = vld [vmem:[#allocation11 + $0x6b8] sm:$0xff] }
 0x546   : > { %v5177_v21 = vmul.f32 %v5049_v46, %v4665_v33  ;;  %10635 = verf.f32 %v4809_v59  ;;  %v4696_v38 = vmul.f32 0.70710677, %v14634_v4  ;;  %v5053_v7 = vadd.f32 1.0, %v10624_v62  ;;  %v5419_v59 = vld [vmem:[#allocation11 + $0x6b0] sm:$0xff]  ;;  %v5424_v62 = vld [vmem:[#allocation11 + $0x6d8] sm:$0xff] }
 0x547   : > { %8947 = vmatprep.subr.bf16.mxu1 %v8946_v56  ;;  %5697 = vmatprep.mubr.f32.mxu0 %v5178_v17  ;;  %v4670_v56 = vmul.f32 0.5, %v14565_v34  ;;  %v14647_v37 = vadd.f32 %v14510_v26, %v14009_v13  ;;  %v14651_v34 = vadd.f32 %v14520_v27, %v14012_v24  ;;  %10637 = verf.f32 %v4814_v14  ;;  %v5438_v13 = vld [vmem:[#allocation11 + $0x748] sm:$0xff] }
 0x548   : > { %8949 = vmatpush1.bf16.msra.mxu1 %v8948_v18  ;;  %6211 = vmatprep.mubr.f32.mxu1 %v5178_v17  ;;  %v4813_v18 = vmul.f32 0.70710677, %v14630_v47  ;;  %v4695_v44 = vmul.f32 0.70710677, %v14639_v50  ;;  %v14656_v15 = vadd.f32 %v14077_v29, %v14621_v9  ;;  %v4669_v2 = vmul.f32 0.5, %v14571_v45  ;;  %v5442_v26 = vld [vmem:[#allocation11 + $0x768] sm:$0xff] }
 0x549   : > { %5698 = vmatmul.mubr.f32.gmra.mrb[178].mxu0 %v5177_v21  ;;  %6212 = vmatmul.mubr.f32.gmra.mrb[242].mxu1 %v5177_v21  ;;  %v5182_v46 = vmul.f32 %v5054_v1, %v4670_v56  ;;  %v14661_v24 = vadd.f32 %v14079_v16, %v14610_v49  ;;  %v4817_v0 = vmul.f32 0.70710677, %v14647_v37  ;;  %v5441_v29 = vld [vmem:[#allocation11 + $0x760] sm:$0xff]  ;;  %v4818_v17 = vmul.f32 0.70710677, %v14651_v34  ;;  %v5428_v1 = vld [vmem:[#allocation11 + $0x6f8] sm:$0xff] }
 0x54a   : > { %v10626_v36 = vpop.eup %10625  ;;  %8951 = vmatprep.subr.bf16.mxu1 %v8950_v39  ;;  %10639 = verf.f32 %v4813_v18  ;;  %v5181_v54 = vmul.f32 %v5053_v7, %v4669_v2  ;;  %v4673_v10 = vmul.f32 0.5, %v14581_v48  ;;  %v4674_v16 = vmul.f32 0.5, %v14585_v3  ;;  %v5423_v18 = vld [vmem:[#allocation11 + $0x6d0] sm:$0xff] }
 0x54b   : > { %v10628_v11 = vpop.eup %10627  ;;  %5703 = vmatprep.mubr.f32.mxu0 %v5182_v46  ;;  %6217 = vmatprep.mubr.f32.mxu1 %v5182_v46  ;;  %10641 = verf.f32 %v4696_v38  ;;  %v5057_v45 = vadd.f32 1.0, %v10626_v36  ;;  %v8838_v31 = vpack.c.bf16 %v5442_v26, %v5438_v13  ;;  %v8954_v58 = vpack.c.bf16 %v5420_v35, %v5416_v53  ;;  %v5427_v36 = vld [vmem:[#allocation11 + $0x6f0] sm:$0xff]  ;;  %v5432_v53 = vld [vmem:[#allocation11 + $0x718] sm:$0xff] }
 0x54c   : > { %8953 = vmatpush1.bf16.msra.mxu1 %v8952_v61  ;;  %v10630_v5 = vpop.eup %10629  ;;  %v5058_v27 = vadd.f32 1.0, %v10628_v11  ;;  %10643 = verf.f32 %v4818_v17  ;;  %v8840_v14 = vpack.c.bf16 %v5441_v29, %v5437_v20  ;;  %v8956_v21 = vpack.c.bf16 %v5419_v59, %v5415_v23  ;;  %v5436_v35 = vld [vmem:[#allocation11 + $0x738] sm:$0xff]  ;;  %v5446_v23 = vld [vmem:[#allocation11 + $0x788] sm:$0xff]  ;;  %v5445_v29 = vld [vmem:[#allocation11 + $0x780] sm:$0xff] }
 0x54d   : > { %v10632_v33 = vpop.eup %10631  ;;  %v5062_v56 = vadd.f32 1.0, %v10630_v5  ;;  %5704 = vmatmul.mubr.f32.gmra.mrb[180].mxu0 %v5181_v54  ;;  %6218 = vmatmul.mubr.f32.gmra.mrb[244].mxu1 %v5181_v54  ;;  %v4700_v61 = vmul.f32 0.70710677, %v14661_v24  ;;  %v14670_v48 = vadd.f32 %v14114_v8, %v14610_v49  ;;  %10645 = verf.f32 %v4817_v0  ;;  %v5450_v5 = vld [vmem:[#allocation11 + $0x7a8] sm:$0xff]  ;;  %v5435_v59 = vld [vmem:[#allocation11 + $0x730] sm:$0xff] }
 0x54e   : > { %v10634_v39 = vpop.eup %10633  ;;  %8839 = vmatprep.subr.bf16.mxu0 %v8838_v31  ;;  %8955 = vmatprep.subr.bf16.mxu1 %v8954_v58  ;;  %v5186_v3 = vmul.f32 %v5058_v27, %v4674_v16  ;;  %v5061_v11 = vadd.f32 1.0, %v10632_v33  ;;  %v4678_v38 = vmul.f32 0.5, %v14596_v55  ;;  %v5185_v7 = vmul.f32 %v5057_v45, %v4673_v10  ;;  %v5431_v55 = vld [vmem:[#allocation11 + $0x710] sm:$0xff] }
 0x54f   : > { %8841 = vmatpush1.bf16.msra.mxu0 %v8840_v14  ;;  %v8958_v46 = vpack.c.bf16 %v5428_v1, %v5424_v62  ;;  %10647 = verf.f32 %v4695_v44  ;;  %v4699_v13 = vmul.f32 0.70710677, %v14656_v15  ;;  %v14676_v8 = vadd.f32 %v14099_v63, %v14621_v9  ;;  %v5449_v44 = vld [vmem:[#allocation11 + $0x7a0] sm:$0xff]  ;;  %v5444_v14 = vld [vmem:[#allocation11 + $0x778] sm:$0xff] }
 0x550   : > { %8957 = vmatpush1.bf16.msra.mxu1 %v8956_v21  ;;  %v10636_v2 = vpop.eup %10635  ;;  %5709 = vmatprep.mubr.f32.mxu0 %v5186_v3  ;;  %v8960_v26 = vpack.c.bf16 %v5427_v36, %v5423_v18  ;;  %v4677_v27 = vmul.f32 0.5, %v14601_v12  ;;  %v5066_v0 = vadd.f32 1.0, %v10634_v39  ;;  %v5190_v20 = vmul.f32 %v5062_v56, %v4678_v38  ;;  %v5440_v56 = vld [vmem:[#allocation11 + $0x758] sm:$0xff]  ;;  %v5439_v39 = vld [vmem:[#allocation11 + $0x750] sm:$0xff] }
 0x551   : > { %6223 = vmatprep.mubr.f32.mxu1 %v5186_v3  ;;  %5710 = vmatmul.mubr.f32.gmra.mrb[182].mxu0 %v5185_v7  ;;  %v10638_v45 = vpop.eup %10637  ;;  %10649 = verf.f32 %v4700_v61  ;;  %v4704_v63 = vmul.f32 0.70710677, %v14670_v48  ;;  %v14682_v17 = vadd.f32 %v14143_v51, %v14610_v49  ;;  %v4682_v54 = vmul.f32 0.5, %v14607_v19  ;;  %v5443_v61 = vld [vmem:[#allocation11 + $0x770] sm:$0xff]  ;;  %v5448_v38 = vld [vmem:[#allocation11 + $0x798] sm:$0xff] }
 0x552   : > { %6224 = vmatmul.mubr.f32.gmra.mrb[246].mxu1 %v5185_v7  ;;  %8959 = vmatprep.subr.bf16.mxu1 %v8958_v46  ;;  %v5065_v33 = vadd.f32 1.0, %v10636_v2  ;;  %v5189_v12 = vmul.f32 %v5061_v11, %v4677_v27  ;;  %v8842_v10 = vpack.c.bf16 %v5450_v5, %v5446_v23  ;;  %v8962_v16 = vpack.c.bf16 %v5436_v35, %v5432_v53  ;;  %v5454_v35 = vld [vmem:[#allocation11 + $0x7c8] sm:$0xff]  ;;  %v5447_v23 = vld [vmem:[#allocation11 + $0x790] sm:$0xff] }
 0x553   : > { %5715 = vmatprep.mubr.f32.mxu0 %v5190_v20  ;;  %10651 = verf.f32 %v4699_v13  ;;  %v4703_v58 = vmul.f32 0.70710677, %v14676_v8  ;;  %6229 = vmatprep.mubr.f32.mxu1 %v5190_v20  ;;  %v8844_v62 = vpack.c.bf16 %v5449_v44, %v5445_v29  ;;  %v8964_v1 = vpack.c.bf16 %v5435_v59, %v5431_v55  ;;  %v5458_v2 = vld [vmem:[#allocation11 + $0x7e8] sm:$0xff]  ;;  %v5452_v13 = vld [vmem:[#allocation11 + $0x7b8] sm:$0xff]  ;;  %v5457_v20 = vld [vmem:[#allocation11 + $0x7e0] sm:$0xff] }
 0x554   : > { %8961 = vmatpush1.bf16.msra.mxu1 %v8960_v26  ;;  %v10640_v31 = vpop.eup %10639  ;;  %v14688_v19 = vadd.f32 %v14136_v57, %v14621_v9  ;;  %v4681_v21 = vmul.f32 0.5, %v14616_v22  ;;  %v5070_v18 = vadd.f32 1.0, %v10638_v45  ;;  %8843 = vmatprep.subr.bf16.mxu0 %v8842_v10  ;;  %v5194_v36 = vmul.f32 %v5066_v0, %v4682_v54  ;;  %v5453_v0 = vld [vmem:[#allocation11 + $0x7c0] sm:$0xff]  ;;  %v5451_v29 = vld [vmem:[#allocation11 + $0x7b0] sm:$0xff]  ;;  %v5460_v10 = vld [vmem:[#allocation11 + $0x7f8] sm:$0xff] }
 0x555   : > { %v10642_v51 = vpop.eup %10641  ;;  %5716 = vmatmul.mubr.f32.gmra.mrb[184].mxu0 %v5189_v12  ;;  %10653 = verf.f32 %v4704_v63  ;;  %v4708_v3 = vmul.f32 0.70710677, %v14682_v17  ;;  %v14694_v11 = vadd.f32 %v14165_v41, %v14610_v49  ;;  %8963 = vmatprep.subr.bf16.mxu1 %v8962_v16  ;;  %v5069_v7 = vadd.f32 1.0, %v10640_v31 }
 0x556   : > { %6230 = vmatmul.mubr.f32.gmra.mrb[248].mxu1 %v5189_v12  ;;  %v10644_v57 = vpop.eup %10643  ;;  %v4686_v22 = vmul.f32 0.5, %v14625_v42  ;;  %8845 = vmatpush1.bf16.msra.mxu0 %v8844_v62  ;;  %v5193_v46 = vmul.f32 %v5065_v33, %v4681_v21  ;;  %v8966_v53 = vpack.c.bf16 %v5444_v14, %v5440_v56  ;;  %10655 = verf.f32 %v4703_v58  ;;  %v5456_v12 = vld [vmem:[#allocation11 + $0x7d8] sm:$0xff] }
 0x557   : > { %v10646_v26 = vpop.eup %10645  ;;  %5721 = vmatprep.mubr.f32.mxu0 %v5194_v36  ;;  %6235 = vmatprep.mubr.f32.mxu1 %v5194_v36  ;;  %v8968_v41 = vpack.c.bf16 %v5443_v61, %v5439_v39  ;;  %v4707_v5 = vmul.f32 0.70710677, %v14688_v19  ;;  %v14700_v55 = vadd.f32 %v14157_v30, %v14621_v9  ;;  %v4685_v42 = vmul.f32 0.5, %v14630_v47  ;;  %v5459_v36 = vld [vmem:[#allocation11 + $0x7f0] sm:$0xff] }
 0x558   : > { %8965 = vmatpush1.bf16.msra.mxu1 %v8964_v1  ;;  %v5198_v27 = vmul.f32 %v5070_v18, %v4686_v22  ;;  %10657 = verf.f32 %v4708_v3  ;;  %v5074_v59 = vadd.f32 1.0, %v10644_v57  ;;  %v8846_v45 = vpack.c.bf16 %v5458_v2, %v5454_v35  ;;  %v5455_v18 = vld [vmem:[#allocation11 + $0x7d0] sm:$0xff] }
 0x559   : > { %5722 = vmatmul.mubr.f32.gmra.mrb[186].mxu0 %v5193_v46  ;;  %8967 = vmatprep.subr.bf16.mxu1 %v8966_v53  ;;  %v10648_v44 = vpop.eup %10647  ;;  %v8970_v63 = vpack.c.bf16 %v5452_v13, %v5448_v38  ;;  %v4712_v54 = vmul.f32 0.70710677, %v14694_v11  ;;  %v14706_v30 = vadd.f32 %v14180_v32, %v14610_v49  ;;  %v5073_v33 = vadd.f32 1.0, %v10646_v26 }
 0x55a   : > { %6236 = vmatmul.mubr.f32.gmra.mrb[250].mxu1 %v5193_v46  ;;  %5727 = vmatprep.mubr.f32.mxu0 %v5198_v27  ;;  %v5197_v47 = vmul.f32 %v5069_v7, %v4685_v42  ;;  %v4952_v31 = vadd.f32 1.0, %v10642_v51  ;;  %v4690_v58 = vmul.f32 0.5, %v14651_v34  ;;  %v8848_v62 = vpack.c.bf16 %v5457_v20, %v5453_v0 }
 0x55b   : > { %v10650_v16 = vpop.eup %10649  ;;  %6241 = vmatprep.mubr.f32.mxu1 %v5198_v27  ;;  %8847 = vmatprep.subr.bf16.mxu0 %v8846_v45  ;;  %v8972_v1 = vpack.c.bf16 %v5451_v29, %v5447_v23  ;;  %v4951_v56 = vadd.f32 1.0, %v10648_v44  ;;  %v4568_v14 = vmul.f32 0.5, %v14634_v4  ;;  %v14712_v32 = vadd.f32 %v14174_v40, %v14621_v9 }
 0x55c   : > { %8969 = vmatpush1.bf16.msra.mxu1 %v8968_v41  ;;  %v4689_v21 = vmul.f32 0.5, %v14647_v37  ;;  %10659 = verf.f32 %v4707_v5  ;;  %v4711_v34 = vmul.f32 0.70710677, %v14700_v55  ;;  %8849 = vmatpush1.bf16.msra.mxu0 %v8848_v62  ;;  %v5202_v39 = vmul.f32 %v5074_v59, %v4690_v58 }
 0x55d   : > { %5728 = vmatmul.mubr.f32.gmra.mrb[188].mxu0 %v5197_v47  ;;  %8971 = vmatprep.subr.bf16.mxu1 %v8970_v63  ;;  %v10652_v51 = vpop.eup %10651  ;;  %v8974_v61 = vpack.c.bf16 %v5460_v10, %v5456_v12  ;;  %10661 = verf.f32 %v4712_v54  ;;  %v4716_v4 = vmul.f32 0.70710677, %v14706_v30  ;;  %v14719_v40 = vadd.f32 %v14198_v60, %v14610_v49  ;;  %v16456_v63 = vld [vmem:[#allocation43_spill] sm:$0xff] }
 0x55e   : > { %6242 = vmatmul.mubr.f32.gmra.mrb[252].mxu1 %v5197_v47  ;;  %v5201_v37 = vmul.f32 %v5073_v33, %v4689_v21  ;;  %v4567_v38 = vmul.f32 0.5, %v14639_v50  ;;  %v4956_v57 = vadd.f32 1.0, %v10650_v16  ;;  %5733 = vmatprep.mubr.f32.mxu0 %v5202_v39  ;;  %v5080_v7 = vmul.f32 %v4952_v31, %v4568_v14 }
 0x55f   : > { %v10654_v3 = vpop.eup %10653  ;;  %6247 = vmatprep.mubr.f32.mxu1 %v5202_v39  ;;  %v8976_v22 = vpack.c.bf16 %v5459_v36, %v5455_v18  ;;  %v4715_v46 = vmul.f32 0.70710677, %v14712_v32  ;;  %v14725_v53 = vadd.f32 %v14194_v6, %v14621_v9  ;;  %v4572_v2 = vmul.f32 0.5, %v14661_v24  ;;  %v16459_v36 = vld [vmem:[#allocation49_spill] sm:$0xff] }
 0x560   : > { %8973 = vmatpush1.bf16.msra.mxu1 %v8972_v1  ;;  %v10656_v60 = vpop.eup %10655  ;;  %v5079_v35 = vmul.f32 %v4951_v56, %v4567_v38  ;;  %10663 = verf.f32 %v4711_v34  ;;  %v4955_v50 = vadd.f32 1.0, %v10652_v51  ;;  %v4720_v13 = vmul.f32 0.70710677, %v14719_v40  ;;  %v16458_v56 = vld [vmem:[#allocation44_spill] sm:$0xff]  ;;  %v7151_v38 = vld [vmem:[#allocation14] sm:$0xff] }
 0x561   : > { %5734 = vmatmul.mubr.f32.gmra.mrb[190].mxu0 %v5201_v37  ;;  %8975 = vmatprep.subr.bf16.mxu1 %v8974_v61  ;;  %10665 = verf.f32 %v4716_v4  ;;  %v14731_v26 = vadd.f32 %v14215_v28, %v14610_v49  ;;  %v4960_v41 = vadd.f32 1.0, %v10654_v3  ;;  %v5084_v23 = vmul.f32 %v4956_v57, %v4572_v2  ;;  %v7152_v61 = vld [vmem:[#allocation14 + $0x8] sm:$0xff]  ;;  %v7154_v3 = vld [vmem:[#allocation14 + $0x18] sm:$0xff]  ;;  %v7153_v57 = vld [vmem:[#allocation14 + $0x10] sm:$0xff] }
 0x562   : > { %6248 = vmatmul.mubr.f32.gmra.mrb[254].mxu1 %v5201_v37  ;;  %5804 = vmatprep.mubr.f32.mxu0 %v5080_v7  ;;  %v10658_v6 = vpop.eup %10657  ;;  %v4571_v5 = vmul.f32 0.5, %v14656_v15  ;;  %10667 = verf.f32 %v4715_v46  ;;  %v4719_v24 = vmul.f32 0.70710677, %v14725_v53  ;;  %v14737_v42 = vadd.f32 %v14207_v43, %v14621_v9  ;;  %v16460_v46 = vld [vmem:[#allocation48_spill] sm:$0xff] }
 0x563   : > { %6318 = vmatprep.mubr.f32.mxu1 %v5080_v7  ;;  %v4959_v27 = vadd.f32 1.0, %v10656_v60  ;;  %v4576_v0 = vmul.f32 0.5, %v14670_v48  ;;  %10669 = verf.f32 %v4720_v13  ;;  %v4724_v28 = vmul.f32 0.70710677, %v14731_v26  ;;  %v7158_v2 = vld [vmem:[#allocation14 + $0x38] sm:$0xff] }
 0x564   : > { %8977 = vmatpush1.bf16.msra.mxu1 %v8976_v22  ;;  %v14743_v20 = vadd.f32 %v14227_v52, %v14610_v49  ;;  %v5083_v15 = vmul.f32 %v4955_v50, %v4571_v5  ;;  %v4964_v44 = vadd.f32 1.0, %v10658_v6  ;;  %v4575_v45 = vmul.f32 0.5, %v14676_v8  ;;  %v16457_v52 = vld [vmem:[#allocation46_spill] sm:$0xff] }
 0x565   : > { %5805 = vmatmul.mubr.f32.vlgmr.msra.gmra.mrb[128].mxu0 %v5079_v35  ;;  %v5088_v59 = vmul.f32 %v4960_v41, %v4576_v0  ;;  %10671 = verf.f32 %v4719_v24  ;;  %v4723_v48 = vmul.f32 0.70710677, %v14737_v42  ;;  %v14749_v54 = vadd.f32 %v16456_v63, %v14621_v9  ;;  %v7160_v63 = vld [vmem:[#allocation14 + $0x48] sm:$0xff] }
 0x566   : > { %5810 = vmatprep.mubr.f32.mxu0 %v5084_v23  ;;  %v10660_v29 = vpop.eup %10659  ;;  %v4580_v33 = vmul.f32 0.5, %v14682_v17  ;;  %v14754_v47 = vadd.f32 %v16457_v52, %v14610_v49  ;;  %10673 = verf.f32 %v4724_v28  ;;  %v4728_v8 = vmul.f32 0.70710677, %v14743_v20 }
 0x567   : > { %6319 = vmatmul.mubr.f32.vlgmr.msra.gmra.mrb[192].mxu1 %v5079_v35  ;;  %v10662_v43 = vpop.eup %10661  ;;  %v4963_v12 = vadd.f32 1.0, %v10660_v29  ;;  %v5087_v10 = vmul.f32 %v4959_v27, %v4575_v45  ;;  %v4579_v1 = vmul.f32 0.5, %v14688_v19  ;;  %10675 = verf.f32 %v4723_v48  ;;  %v7156_v35 = vld [vmem:[#allocation14 + $0x28] sm:$0xff]  ;;  %v7155_v29 = vld [vmem:[#allocation14 + $0x20] sm:$0xff] }
 0x568   : > { %6324 = vmatprep.mubr.f32.mxu1 %v5084_v23  ;;  %v4968_v31 = vadd.f32 1.0, %v10662_v43  ;;  %v5092_v58 = vmul.f32 %v4964_v44, %v4580_v33  ;;  %v4727_v17 = vmul.f32 0.70710677, %v14749_v54  ;;  %v14761_v14 = vadd.f32 %v16458_v56, %v14621_v9  ;;  %v7157_v44 = vld [vmem:[#allocation14 + $0x30] sm:$0xff]  ;;  %v16462_v45 = vld [vmem:[#allocation50_spill] sm:$0xff]  ;;  %v7162_v33 = vld [vmem:[#allocation14 + $0x58] sm:$0xff] }
 0x569   : > { %5811 = vmatmul.mubr.f32.gmra.mrb[130].mxu0 %v5083_v15  ;;  %v4584_v21 = vmul.f32 0.5, %v14694_v11  ;;  %v4732_v18 = vmul.f32 0.70710677, %v14754_v47  ;;  %v14767_v51 = vadd.f32 %v16459_v36, %v14610_v49  ;;  %10677 = verf.f32 %v4728_v8  ;;  %v7159_v56 = vld [vmem:[#allocation14 + $0x40] sm:$0xff] }
 0x56a   : > { %5816 = vmatprep.mubr.f32.mxu0 %v5088_v59  ;;  %v10664_v16 = vpop.eup %10663  ;;  %v5091_v39 = vmul.f32 %v4963_v12, %v4579_v1  ;;  %v4583_v7 = vmul.f32 0.5, %v14700_v55  ;;  %10679 = verf.f32 %v4727_v17  ;;  %v4731_v22 = vmul.f32 0.70710677, %v14761_v14  ;;  %v16461_v55 = vld [vmem:[#allocation51_spill] sm:$0xff] }
 0x56b   : > { %6325 = vmatmul.mubr.f32.gmra.mrb[194].mxu1 %v5083_v15  ;;  %v10666_v62 = vpop.eup %10665  ;;  %v4967_v19 = vadd.f32 1.0, %v10664_v16  ;;  %v5096_v37 = vmul.f32 %v4968_v31, %v4584_v21  ;;  %v14773_v60 = vadd.f32 %v16460_v46, %v14621_v9  ;;  %v4588_v13 = vmul.f32 0.5, %v14706_v30 }
 0x56c   : > { %6330 = vmatprep.mubr.f32.mxu1 %v5088_v59  ;;  %v10668_v34 = vpop.eup %10667  ;;  %v4972_v4 = vadd.f32 1.0, %v10666_v62  ;;  %10681 = verf.f32 %v4732_v18  ;;  %v4736_v6 = vmul.f32 0.70710677, %v14767_v51  ;;  %v14779_v23 = vadd.f32 %v16461_v55, %v14610_v49 }
 0x56d   : > { %5817 = vmatmul.mubr.f32.gmra.mrb[132].mxu0 %v5087_v10  ;;  %v10670_v11 = vpop.eup %10669  ;;  %v4971_v50 = vadd.f32 1.0, %v10668_v34  ;;  %v5095_v5 = vmul.f32 %v4967_v19, %v4583_v7  ;;  %v8978_v24 = vpack.c.bf16 %v7154_v3, %v7152_v61  ;;  %v8980_v27 = vpack.c.bf16 %v7153_v57, %v7151_v38  ;;  %v16464_v34 = vld [vmem:[#allocation52_spill] sm:$0xff]  ;;  %v16465_v3 = vld [vmem:[#allocation55_spill] sm:$0xff] }
 0x56e   : > { %5822 = vmatprep.mubr.f32.mxu0 %v5092_v58  ;;  %v4976_v0 = vadd.f32 1.0, %v10670_v11  ;;  %v5100_v28 = vmul.f32 %v4972_v4, %v4588_v13  ;;  %v8982_v15 = vpack.c.bf16 %v7158_v2, %v7156_v35  ;;  %v4587_v59 = vmul.f32 0.5, %v14712_v32  ;;  %v7166_v61 = vld [vmem:[#allocation14 + $0x78] sm:$0xff] }
 0x56f   : > { %6331 = vmatmul.mubr.f32.gmra.mrb[196].mxu1 %v5087_v10  ;;  %v10672_v41 = vpop.eup %10671  ;;  %10683 = verf.f32 %v4731_v22  ;;  %v4735_v43 = vmul.f32 0.70710677, %v14773_v60  ;;  %v14785_v48 = vadd.f32 %v16462_v45, %v14621_v9  ;;  %8979 = vmatprep.subr.bf16.mxu0 %v8978_v24  ;;  %v4592_v12 = vmul.f32 0.5, %v14719_v40  ;;  %v16463_v10 = vld [vmem:[#allocation53_spill] sm:$0xff]  ;;  %v7161_v40 = vld [vmem:[#allocation14 + $0x50] sm:$0xff] }
 0x570   : > { %6336 = vmatprep.mubr.f32.mxu1 %v5092_v58  ;;  %v10674_v30 = vpop.eup %10673  ;;  %v4975_v52 = vadd.f32 1.0, %v10672_v41  ;;  %10685 = verf.f32 %v4736_v6  ;;  %v4740_v32 = vmul.f32 0.70710677, %v14779_v23  ;;  %v14791_v16 = vadd.f32 %v16463_v10, %v14610_v49  ;;  %8981 = vmatpush1.bf16.msra.mxu0 %v8980_v27  ;;  %v16466_v41 = vld [vmem:[#allocation54_spill] sm:$0xff]  ;;  %v7170_v24 = vld [vmem:[#allocation14 + $0x98] sm:$0xff] }
 0x571   : > { %5823 = vmatmul.mubr.f32.gmra.mrb[134].mxu0 %v5091_v39  ;;  %v10676_v8 = vpop.eup %10675  ;;  %v5099_v31 = vmul.f32 %v4971_v50, %v4587_v59  ;;  %v8984_v58 = vpack.c.bf16 %v7157_v44, %v7155_v29  ;;  %v4980_v62 = vadd.f32 1.0, %v10674_v30  ;;  %v5104_v1 = vmul.f32 %v4976_v0, %v4592_v12  ;;  %8983 = vmatprep.subr.bf16.mxu0 %v8982_v15  ;;  %v7165_v50 = vld [vmem:[#allocation14 + $0x70] sm:$0xff]  ;;  %v7172_v10 = vld [vmem:[#allocation14 + $0xa8] sm:$0xff] }
 0x572   : > { %5828 = vmatprep.mubr.f32.mxu0 %v5096_v37  ;;  %v8986_v17 = vpack.c.bf16 %v7162_v33, %v7160_v63  ;;  %v4591_v18 = vmul.f32 0.5, %v14725_v53  ;;  %10687 = verf.f32 %v4735_v43  ;;  %v4739_v36 = vmul.f32 0.70710677, %v14785_v48  ;;  %v7169_v33 = vld [vmem:[#allocation14 + $0x90] sm:$0xff] }
 0x573   : > { %6337 = vmatmul.mubr.f32.gmra.mrb[198].mxu1 %v5091_v39  ;;  %v10678_v21 = vpop.eup %10677  ;;  %v14797_v19 = vadd.f32 %v16464_v34, %v14621_v9  ;;  %v7164_v39 = vld [vmem:[#allocation14 + $0x68] sm:$0xff]  ;;  %v4979_v4 = vadd.f32 1.0, %v10676_v8  ;;  %v14802_v38 = vadd.f32 %v16465_v3, %v14610_v49  ;;  %10689 = verf.f32 %v4740_v32  ;;  %v16468_v8 = vld [vmem:[#allocation56_spill] sm:$0xff] }
 0x574   : > { %6342 = vmatprep.mubr.f32.mxu1 %v5096_v37  ;;  %v4596_v37 = vmul.f32 0.5, %v14731_v26  ;;  %v10680_v53 = vpop.eup %10679  ;;  %v4744_v57 = vmul.f32 0.70710677, %v14791_v16  ;;  %v5103_v11 = vmul.f32 %v4975_v52, %v4591_v18  ;;  %8985 = vmatpush1.bf16.msra.mxu0 %v8984_v58  ;;  %v8988_v7 = vpack.c.bf16 %v7161_v40, %v7159_v56  ;;  %v7163_v26 = vld [vmem:[#allocation14 + $0x60] sm:$0xff] }
 0x575   : > { %5829 = vmatmul.mubr.f32.gmra.mrb[136].mxu0 %v5095_v5  ;;  %v4984_v46 = vadd.f32 1.0, %v10678_v21  ;;  %8987 = vmatprep.subr.bf16.mxu0 %v8986_v17  ;;  %v8990_v2 = vpack.c.bf16 %v7166_v61, %v7164_v39  ;;  %v4595_v13 = vmul.f32 0.5, %v14737_v42  ;;  %10691 = verf.f32 %v4739_v36  ;;  %v16467_v42 = vld [vmem:[#allocation57_spill] sm:$0xff]  ;;  %v16470_v3 = vld [vmem:[#allocation30_spill] sm:$0xff] }
 0x576   : > { %5834 = vmatprep.mubr.f32.mxu0 %v5100_v28  ;;  %v10682_v22 = vpop.eup %10681  ;;  %v5108_v35 = vmul.f32 %v4980_v62, %v4596_v37  ;;  %v4743_v6 = vmul.f32 0.70710677, %v14797_v19  ;;  %v14809_v55 = vadd.f32 %v16466_v41, %v14621_v9  ;;  %v4983_v27 = vadd.f32 1.0, %v10680_v53  ;;  %v7171_v39 = vld [vmem:[#allocation14 + $0xa0] sm:$0xff] }
 0x577   : > { %6343 = vmatmul.mubr.f32.gmra.mrb[200].mxu1 %v5095_v5  ;;  %v7168_v5 = vld [vmem:[#allocation14 + $0x88] sm:$0xff]  ;;  %v4600_v0 = vmul.f32 0.5, %v14743_v20  ;;  %10693 = verf.f32 %v4744_v57  ;;  %v14815_v29 = vadd.f32 %v16467_v42, %v14610_v49  ;;  %v5107_v44 = vmul.f32 %v4979_v4, %v4595_v13  ;;  %v7167_v20 = vld [vmem:[#allocation14 + $0x80] sm:$0xff] }
 0x578   : > { %6348 = vmatprep.mubr.f32.mxu1 %v5100_v28  ;;  %v4748_v28 = vmul.f32 0.70710677, %v14802_v38  ;;  %8989 = vmatpush1.bf16.msra.mxu0 %v8988_v7  ;;  %v8992_v30 = vpack.c.bf16 %v7165_v50, %v7163_v26  ;;  %v4988_v43 = vadd.f32 1.0, %v10682_v22  ;;  %v8994_v63 = vpack.c.bf16 %v7170_v24, %v7168_v5  ;;  %v7176_v57 = vld [vmem:[#allocation14 + $0xc8] sm:$0xff]  ;;  %v7175_v5 = vld [vmem:[#allocation14 + $0xc0] sm:$0xff] }
 0x579   : > { %5835 = vmatmul.mubr.f32.gmra.mrb[138].mxu0 %v5099_v31  ;;  %v10684_v15 = vpop.eup %10683  ;;  %v5112_v45 = vmul.f32 %v4984_v46, %v4600_v0  ;;  %8991 = vmatprep.subr.bf16.mxu0 %v8990_v2  ;;  %v4599_v52 = vmul.f32 0.5, %v14749_v54  ;;  %10695 = verf.f32 %v4743_v6  ;;  %v4747_v12 = vmul.f32 0.70710677, %v14809_v55  ;;  %v16469_v54 = vld [vmem:[#allocation31_spill] sm:$0xff]  ;;  %v16471_v46 = vld [vmem:[#allocation33_spill] sm:$0xff] }
 0x57a   : > { %5840 = vmatprep.mubr.f32.mxu0 %v5104_v1  ;;  %v10686_v59 = vpop.eup %10685  ;;  %v14821_v32 = vadd.f32 %v16468_v8, %v14621_v9  ;;  %v4987_v58 = vadd.f32 1.0, %v10684_v15  ;;  %v4604_v62 = vmul.f32 0.5, %v14754_v47  ;;  %10697 = verf.f32 %v4748_v28  ;;  %v7173_v47 = vld [vmem:[#allocation14 + $0xb0] sm:$0xff]  ;;  %v7180_v42 = vld [vmem:[#allocation14 + $0xe8] sm:$0xff] }
 0x57b   : > { %6349 = vmatmul.mubr.f32.gmra.mrb[202].mxu1 %v5099_v31  ;;  %v7174_v31 = vld [vmem:[#allocation14 + $0xb8] sm:$0xff]  ;;  %v4752_v17 = vmul.f32 0.70710677, %v14815_v29  ;;  %v14827_v56 = vadd.f32 %v16469_v54, %v14610_v49  ;;  %v5111_v40 = vmul.f32 %v4983_v27, %v4599_v52  ;;  %v8996_v21 = vpack.c.bf16 %v7169_v33, %v7167_v20  ;;  %v7184_v54 = vld [vmem:[#allocation14 + $0x108] sm:$0xff] }
 0x57c   : > { %6354 = vmatprep.mubr.f32.mxu1 %v5104_v1  ;;  %v10688_v1 = vpop.eup %10687  ;;  %8993 = vmatpush1.bf16.msra.mxu0 %v8992_v30  ;;  %v4992_v18 = vadd.f32 1.0, %v10686_v59  ;;  %v5116_v36 = vmul.f32 %v4988_v43, %v4604_v62  ;;  %v8998_v34 = vpack.c.bf16 %v7174_v31, %v7172_v10  ;;  %v4603_v4 = vmul.f32 0.5, %v14761_v14  ;;  %v16472_v28 = vld [vmem:[#allocation32_spill] sm:$0xff] }
 0x57d   : > { %5841 = vmatmul.mubr.f32.gmra.mrb[140].mxu0 %v5103_v11  ;;  %8995 = vmatprep.subr.bf16.mxu0 %v8994_v63  ;;  %v10690_v61 = vpop.eup %10689  ;;  %10699 = verf.f32 %v4747_v12  ;;  %v4751_v37 = vmul.f32 0.70710677, %v14821_v32  ;;  %v14833_v53 = vadd.f32 %v16470_v3, %v14621_v9  ;;  %v4991_v7 = vadd.f32 1.0, %v10688_v1  ;;  %v7181_v31 = vld [vmem:[#allocation14 + $0xf0] sm:$0xff]  ;;  %v16474_v1 = vld [vmem:[#allocation58_spill] sm:$0xff] }
 0x57e   : > { %5846 = vmatprep.mubr.f32.mxu0 %v5108_v35  ;;  %v4608_v22 = vmul.f32 0.5, %v14767_v51  ;;  %10701 = verf.f32 %v4752_v17  ;;  %v4756_v2 = vmul.f32 0.70710677, %v14827_v56  ;;  %v5115_v26 = vmul.f32 %v4987_v58, %v4603_v4  ;;  %v7177_v51 = vld [vmem:[#allocation14 + $0xd0] sm:$0xff] }
 0x57f   : > { %6355 = vmatmul.mubr.f32.gmra.mrb[204].mxu1 %v5103_v11  ;;  %v7178_v11 = vld [vmem:[#allocation14 + $0xd8] sm:$0xff]  ;;  %v10692_v14 = vpop.eup %10691  ;;  %v9000_v50 = vpack.c.bf16 %v7173_v47, %v7171_v39  ;;  %v4996_v13 = vadd.f32 1.0, %v10690_v61  ;;  %v4607_v27 = vmul.f32 0.5, %v14773_v60  ;;  %10703 = verf.f32 %v4751_v37  ;;  %v16473_v60 = vld [vmem:[#allocation42_spill] sm:$0xff] }
 0x580   : > { %6360 = vmatprep.mubr.f32.mxu1 %v5108_v35  ;;  %v14838_v35 = vadd.f32 %v16471_v46, %v14610_v49  ;;  %8997 = vmatpush1.bf16.msra.mxu0 %v8996_v21  ;;  %v5120_v6 = vmul.f32 %v4992_v18, %v4608_v22  ;;  %v9002_v41 = vpack.c.bf16 %v7178_v11, %v7176_v57  ;;  %v4755_v0 = vmul.f32 0.70710677, %v14833_v53  ;;  %v7183_v57 = vld [vmem:[#allocation14 + $0x100] sm:$0xff] }
 0x581   : > { %5847 = vmatmul.mubr.f32.gmra.mrb[142].mxu0 %v5107_v44  ;;  %8999 = vmatprep.subr.bf16.mxu0 %v8998_v34  ;;  %v10694_v24 = vpop.eup %10693  ;;  %v14845_v15 = vadd.f32 %v16472_v28, %v14621_v9  ;;  %v4995_v30 = vadd.f32 1.0, %v10692_v14  ;;  %v4612_v59 = vmul.f32 0.5, %v14779_v23  ;;  %10705 = verf.f32 %v4756_v2  ;;  %v7179_v23 = vld [vmem:[#allocation14 + $0xe0] sm:$0xff]  ;;  %v7188_v2 = vld [vmem:[#allocation14 + $0x128] sm:$0xff] }
 0x582   : > { %5852 = vmatprep.mubr.f32.mxu0 %v5112_v45  ;;  %v4760_v43 = vmul.f32 0.70710677, %v14838_v35  ;;  %v14851_v63 = vadd.f32 %v16473_v60, %v14610_v49  ;;  %v5119_v20 = vmul.f32 %v4991_v7, %v4607_v27  ;;  %v9004_v33 = vpack.c.bf16 %v7177_v51, %v7175_v5  ;;  %v16476_v46 = vld [vmem:[#allocation34_spill] sm:$0xff] }
 0x583   : > { %6361 = vmatmul.mubr.f32.gmra.mrb[206].mxu1 %v5107_v44  ;;  %v7182_v44 = vld [vmem:[#allocation14 + $0xf8] sm:$0xff]  ;;  %v5000_v12 = vadd.f32 1.0, %v10694_v24  ;;  %v5124_v8 = vmul.f32 %v4996_v13, %v4612_v59  ;;  %v4611_v58 = vmul.f32 0.5, %v14785_v48  ;;  %10707 = verf.f32 %v4755_v0  ;;  %v16475_v48 = vld [vmem:[#allocation35_spill] sm:$0xff] }
 0x584   : > { %6366 = vmatprep.mubr.f32.mxu1 %v5112_v45  ;;  %v10696_v45 = vpop.eup %10695  ;;  %9001 = vmatpush1.bf16.msra.mxu0 %v9000_v50  ;;  %v9006_v10 = vpack.c.bf16 %v7182_v44, %v7180_v42  ;;  %v4759_v62 = vmul.f32 0.70710677, %v14845_v15  ;;  %v14857_v17 = vadd.f32 %v16474_v1, %v14621_v9  ;;  %v4616_v18 = vmul.f32 0.5, %v14791_v16  ;;  %v7185_v16 = vld [vmem:[#allocation14 + $0x110] sm:$0xff]  ;;  %v7187_v42 = vld [vmem:[#allocation14 + $0x120] sm:$0xff]  ;;  %v7192_v60 = vld [vmem:[#allocation14 + $0x148] sm:$0xff] }
 0x585   : > { %5853 = vmatmul.mubr.f32.gmra.mrb[144].mxu0 %v5111_v40  ;;  %v10698_v52 = vpop.eup %10697  ;;  %9003 = vmatprep.subr.bf16.mxu0 %v9002_v41  ;;  %v4999_v21 = vadd.f32 1.0, %v10696_v45  ;;  %10709 = verf.f32 %v4760_v43  ;;  %v4764_v34 = vmul.f32 0.70710677, %v14851_v63  ;;  %v14863_v39 = vadd.f32 %v16475_v48, %v14610_v49  ;;  %v16478_v43 = vld [vmem:[#allocation36_spill] sm:$0xff]  ;;  %v7196_v48 = vld [vmem:[#allocation14 + $0x168] sm:$0xff] }
 0x586   : > { %5858 = vmatprep.mubr.f32.mxu0 %v5116_v36  ;;  %v5123_v47 = vmul.f32 %v4995_v30, %v4611_v58  ;;  %v9008_v61 = vpack.c.bf16 %v7181_v31, %v7179_v23  ;;  %v5004_v4 = vadd.f32 1.0, %v10698_v52  ;;  %v5128_v37 = vmul.f32 %v5000_v12, %v4616_v18 }
 0x587   : > { %6367 = vmatmul.mubr.f32.gmra.mrb[208].mxu1 %v5111_v40  ;;  %v7186_v40 = vld [vmem:[#allocation14 + $0x118] sm:$0xff]  ;;  %v4615_v7 = vmul.f32 0.5, %v14797_v19  ;;  %10711 = verf.f32 %v4759_v62  ;;  %v4763_v22 = vmul.f32 0.70710677, %v14857_v17  ;;  %v14869_v14 = vadd.f32 %v16476_v46, %v14621_v9 }
 0x588   : > { %6372 = vmatprep.mubr.f32.mxu1 %v5116_v36  ;;  %v10700_v36 = vpop.eup %10699  ;;  %9005 = vmatpush1.bf16.msra.mxu0 %v9004_v33  ;;  %v9010_v3 = vpack.c.bf16 %v7186_v40, %v7184_v54  ;;  %v4620_v13 = vmul.f32 0.5, %v14802_v38  ;;  %10713 = verf.f32 %v4764_v34  ;;  %v4768_v5 = vmul.f32 0.70710677, %v14863_v39  ;;  %v7189_v38 = vld [vmem:[#allocation14 + $0x130] sm:$0xff] }
 0x589   : > { %5859 = vmatmul.mubr.f32.gmra.mrb[146].mxu0 %v5115_v26  ;;  %9007 = vmatprep.subr.bf16.mxu0 %v9006_v10  ;;  %v10702_v11 = vpop.eup %10701  ;;  %v5003_v50 = vadd.f32 1.0, %v10700_v36  ;;  %v5127_v51 = vmul.f32 %v4999_v21, %v4615_v7  ;;  %v9012_v24 = vpack.c.bf16 %v7185_v16, %v7183_v57  ;;  %v4619_v30 = vmul.f32 0.5, %v14809_v55  ;;  %v16479_v55 = vld [vmem:[#allocation39_spill] sm:$0xff]  ;;  %v16480_v36 = vld [vmem:[#allocation38_spill] sm:$0xff] }
 0x58a   : > { %5864 = vmatprep.mubr.f32.mxu0 %v5120_v6  ;;  %v10704_v19 = vpop.eup %10703  ;;  %v5008_v27 = vadd.f32 1.0, %v10702_v11  ;;  %v5132_v0 = vmul.f32 %v5004_v4, %v4620_v13  ;;  %10715 = verf.f32 %v4763_v22  ;;  %v4767_v59 = vmul.f32 0.70710677, %v14869_v14  ;;  %v7193_v40 = vld [vmem:[#allocation14 + $0x150] sm:$0xff] }
 0x58b   : > { %6373 = vmatmul.mubr.f32.gmra.mrb[210].mxu1 %v5115_v26  ;;  %v7190_v26 = vld [vmem:[#allocation14 + $0x138] sm:$0xff]  ;;  %v10706_v44 = vpop.eup %10705  ;;  %v14881_v45 = vadd.f32 %v16478_v43, %v14621_v9  ;;  %v5007_v33 = vadd.f32 1.0, %v10704_v19  ;;  %v4624_v52 = vmul.f32 0.5, %v14815_v29  ;;  %10717 = verf.f32 %v4768_v5  ;;  %v7191_v29 = vld [vmem:[#allocation14 + $0x140] sm:$0xff]  ;;  %v7200_v5 = vld [vmem:[#allocation14 + $0x188] sm:$0xff] }
 0x58c   : > { %6378 = vmatprep.mubr.f32.mxu1 %v5120_v6  ;;  %v16477_v6 = vld [vmem:[#allocation37_spill] sm:$0xff]  ;;  %9009 = vmatpush1.bf16.msra.mxu0 %v9008_v61  ;;  %v9014_v28 = vpack.c.bf16 %v7190_v26, %v7188_v2  ;;  %v14887_v10 = vadd.f32 %v16479_v55, %v14610_v49  ;;  %v5131_v23 = vmul.f32 %v5003_v50, %v4619_v30  ;;  %v5012_v62 = vadd.f32 1.0, %v10706_v44  ;;  %v7204_v55 = vld [vmem:[#allocation14 + $0x1a8] sm:$0xff] }
 0x58d   : > { %5865 = vmatmul.mubr.f32.gmra.mrb[148].mxu0 %v5119_v20  ;;  %v14874_v41 = vadd.f32 %v16477_v6, %v14610_v49  ;;  %9011 = vmatprep.subr.bf16.mxu0 %v9010_v3  ;;  %v9016_v31 = vpack.c.bf16 %v7189_v38, %v7187_v42  ;;  %v5136_v1 = vmul.f32 %v5008_v27, %v4624_v52  ;;  %v4623_v21 = vmul.f32 0.5, %v14821_v32  ;;  %v16481_v32 = vld [vmem:[#allocation59_spill] sm:$0xff]  ;;  %v7195_v2 = vld [vmem:[#allocation14 + $0x160] sm:$0xff]  ;;  %v16482_v6 = vld [vmem:[#allocation40_spill] sm:$0xff] }
 0x58e   : > { %5870 = vmatprep.mubr.f32.mxu0 %v5124_v8  ;;  %10719 = verf.f32 %v4767_v59  ;;  %v4771_v18 = vmul.f32 0.70710677, %v14881_v45  ;;  %v14893_v34 = vadd.f32 %v16480_v36, %v14621_v9  ;;  %v4628_v4 = vmul.f32 0.5, %v14827_v56  ;;  %v7197_v56 = vld [vmem:[#allocation14 + $0x170] sm:$0xff] }
 0x58f   : > { %6379 = vmatmul.mubr.f32.gmra.mrb[212].mxu1 %v5119_v20  ;;  %v7194_v20 = vld [vmem:[#allocation14 + $0x158] sm:$0xff]  ;;  %v4772_v12 = vmul.f32 0.70710677, %v14874_v41  ;;  %v4776_v3 = vmul.f32 0.70710677, %v14887_v10  ;;  %v14899_v57 = vadd.f32 %v16481_v32, %v14610_v49  ;;  %v5135_v16 = vmul.f32 %v5007_v33, %v4623_v21 }
 0x590   : > { %6384 = vmatprep.mubr.f32.mxu1 %v5124_v8  ;;  %v10708_v8 = vpop.eup %10707  ;;  %9013 = vmatpush1.bf16.msra.mxu0 %v9012_v24  ;;  %v9018_v54 = vpack.c.bf16 %v7194_v20, %v7192_v60  ;;  %v9020_v11 = vpack.c.bf16 %v7193_v40, %v7191_v29  ;;  %v5140_v22 = vmul.f32 %v5012_v62, %v4628_v4  ;;  %v4627_v50 = vmul.f32 0.5, %v14833_v53  ;;  %v7199_v60 = vld [vmem:[#allocation14 + $0x180] sm:$0xff] }
 0x591   : > { %5871 = vmatmul.mubr.f32.gmra.mrb[150].mxu0 %v5123_v47  ;;  %v10710_v58 = vpop.eup %10709  ;;  %9015 = vmatprep.subr.bf16.mxu0 %v9014_v28  ;;  %v5011_v61 = vadd.f32 1.0, %v10708_v8  ;;  %10721 = verf.f32 %v4772_v12  ;;  %v4775_v13 = vmul.f32 0.70710677, %v14893_v34  ;;  %v14905_v19 = vadd.f32 %v16482_v6, %v14621_v9  ;;  %v16484_v12 = vld [vmem:[#allocation60_spill] sm:$0xff] }
 0x592   : > { %5876 = vmatprep.mubr.f32.mxu0 %v5128_v37  ;;  %v5016_v7 = vadd.f32 1.0, %v10710_v58  ;;  %10723 = verf.f32 %v4771_v18  ;;  %v4632_v27 = vmul.f32 0.5, %v14838_v35  ;;  %v4780_v42 = vmul.f32 0.70710677, %v14899_v57  ;;  %v7201_v35 = vld [vmem:[#allocation14 + $0x190] sm:$0xff] }
 0x593   : > { %6385 = vmatmul.mubr.f32.gmra.mrb[214].mxu1 %v5123_v47  ;;  %v7198_v47 = vld [vmem:[#allocation14 + $0x178] sm:$0xff]  ;;  %10725 = verf.f32 %v4776_v3  ;;  %v5139_v38 = vmul.f32 %v5011_v61, %v4627_v50  ;;  %v9024_v44 = vpack.c.bf16 %v7197_v56, %v7195_v2  ;;  %v4631_v33 = vmul.f32 0.5, %v14845_v15  ;;  %v16485_v15 = vld [vmem:[#allocation63_spill] sm:$0xff] }
 0x594   : > { %6390 = vmatprep.mubr.f32.mxu1 %v5128_v37  ;;  %v10712_v37 = vpop.eup %10711  ;;  %9017 = vmatpush1.bf16.msra.mxu0 %v9016_v31  ;;  %v9022_v46 = vpack.c.bf16 %v7198_v47, %v7196_v48  ;;  %v5144_v59 = vmul.f32 %v5016_v7, %v4632_v27  ;;  %10727 = verf.f32 %v4775_v13  ;;  %v4779_v52 = vmul.f32 0.70710677, %v14905_v19  ;;  %v7205_v47 = vld [vmem:[#allocation14 + $0x1b0] sm:$0xff] }
 0x595   : > { %5877 = vmatmul.mubr.f32.gmra.mrb[152].mxu0 %v5127_v51  ;;  %9019 = vmatprep.subr.bf16.mxu0 %v9018_v54  ;;  %v10714_v26 = vpop.eup %10713  ;;  %v5015_v24 = vadd.f32 1.0, %v10712_v37  ;;  %v14917_v8 = vadd.f32 %v16484_v12, %v14621_v9  ;;  %v4636_v58 = vmul.f32 0.5, %v14851_v63  ;;  %10729 = verf.f32 %v4780_v42  ;;  %v7203_v63 = vld [vmem:[#allocation14 + $0x1a0] sm:$0xff]  ;;  %v16488_v6 = vld [vmem:[#allocation64_spill] sm:$0xff] }
 0x596   : > { %5882 = vmatprep.mubr.f32.mxu0 %v5132_v0  ;;  %v10716_v53 = vpop.eup %10715  ;;  %v5020_v30 = vadd.f32 1.0, %v10714_v26  ;;  %v14923_v54 = vadd.f32 %v16485_v15, %v14610_v49  ;;  %v9028_v40 = vpack.c.bf16 %v7201_v35, %v7199_v60  ;;  %v4635_v61 = vmul.f32 0.5, %v14857_v17  ;;  %v16486_v37 = vld [vmem:[#allocation62_spill] sm:$0xff]  ;;  %v16491_v12 = vld [vmem:[#allocation69_spill] sm:$0xff] }
 0x597   : > { %6391 = vmatmul.mubr.f32.gmra.mrb[216].mxu1 %v5127_v51  ;;  %v7202_v51 = vld [vmem:[#allocation14 + $0x198] sm:$0xff]  ;;  %v10718_v20 = vpop.eup %10717  ;;  %v5019_v31 = vadd.f32 1.0, %v10716_v53  ;;  %v5143_v29 = vmul.f32 %v5015_v24, %v4631_v33  ;;  %10731 = verf.f32 %v4779_v52  ;;  %v4783_v4 = vmul.f32 0.70710677, %v14917_v8  ;;  %v16489_v53 = vld [vmem:[#allocation67_spill] sm:$0xff] }
 0x598   : > { %6396 = vmatprep.mubr.f32.mxu1 %v5132_v0  ;;  %v16483_v0 = vld [vmem:[#allocation61_spill] sm:$0xff]  ;;  %9021 = vmatpush1.bf16.msra.mxu0 %v9020_v11  ;;  %v9026_v43 = vpack.c.bf16 %v7202_v51, %v7200_v5  ;;  %v5024_v18 = vadd.f32 1.0, %v10718_v20  ;;  %v5148_v36 = vmul.f32 %v5020_v30, %v4636_v58  ;;  %v14929_v3 = vadd.f32 %v16486_v37, %v14621_v9 }
 0x599   : > { %5883 = vmatmul.mubr.f32.gmra.mrb[154].mxu0 %v5131_v23  ;;  %v14910_v28 = vadd.f32 %v16483_v0, %v14610_v49  ;;  %9023 = vmatprep.subr.bf16.mxu0 %v9022_v46  ;;  %v4788_v7 = vmul.f32 0.70710677, %v14923_v54  ;;  %v5147_v46 = vmul.f32 %v5019_v31, %v4635_v61  ;;  %v9032_v2 = vpack.c.bf16 %v7205_v47, %v7203_v63 }
 0x59a   : > { %5888 = vmatprep.mubr.f32.mxu0 %v5136_v1  ;;  %v4787_v13 = vmul.f32 0.70710677, %v14929_v3  ;;  %v14941_v5 = vadd.f32 %v16488_v6, %v14621_v9  ;;  %v4644_v24 = vmul.f32 0.5, %v14874_v41  ;;  %v4648_v20 = vmul.f32 0.5, %v14887_v10 }
 0x59b   : > { %6397 = vmatmul.mubr.f32.gmra.mrb[218].mxu1 %v5131_v23  ;;  %v7206_v23 = vld [vmem:[#allocation14 + $0x1b8] sm:$0xff]  ;;  %v4784_v62 = vmul.f32 0.70710677, %v14910_v28  ;;  %v4652_v15 = vmul.f32 0.5, %v14899_v57  ;;  %v4651_v57 = vmul.f32 0.5, %v14905_v19  ;;  %v4656_v37 = vmul.f32 0.5, %v14910_v28 }
 0x59c   : > { %6402 = vmatprep.mubr.f32.mxu1 %v5136_v1  ;;  %v10720_v1 = vpop.eup %10719  ;;  %9025 = vmatpush1.bf16.msra.mxu0 %v9024_v44  ;;  %v9030_v48 = vpack.c.bf16 %v7206_v23, %v7204_v55  ;;  %v4791_v41 = vmul.f32 0.70710677, %v14941_v5 }
 0x59d   : > { %5889 = vmatmul.mubr.f32.gmra.mrb[156].mxu0 %v5135_v16  ;;  %v10722_v21 = vpop.eup %10721  ;;  %9027 = vmatprep.subr.bf16.mxu0 %v9026_v43  ;;  %v5023_v32 = vadd.f32 1.0, %v10720_v1  ;;  %10733 = verf.f32 %v4784_v62  ;;  %v16490_v43 = vld [vmem:[#allocation66_spill] sm:$0xff]  ;;  %v4647_v62 = vmul.f32 0.5, %v14893_v34 }
 0x59e   : > { %5894 = vmatprep.mubr.f32.mxu0 %v5140_v22  ;;  %v10724_v11 = vpop.eup %10723  ;;  %v5028_v56 = vadd.f32 1.0, %v10722_v21  ;;  %10735 = verf.f32 %v4783_v4  ;;  %v14953_v60 = vadd.f32 %v16490_v43, %v14621_v9 }
 0x59f   : > { %6403 = vmatmul.mubr.f32.gmra.mrb[220].mxu1 %v5135_v16  ;;  %v4640_v16 = vmul.f32 0.5, %v14863_v39  ;;  %v10726_v50 = vpop.eup %10725  ;;  %v4639_v39 = vmul.f32 0.5, %v14869_v14  ;;  %v5027_v51 = vadd.f32 1.0, %v10724_v11  ;;  %10737 = verf.f32 %v4788_v7 }
 0x5a0   : > { %6408 = vmatprep.mubr.f32.mxu1 %v5140_v22  ;;  %v16487_v22 = vld [vmem:[#allocation65_spill] sm:$0xff]  ;;  %9029 = vmatpush1.bf16.msra.mxu0 %v9028_v40  ;;  %v10728_v27 = vpop.eup %10727  ;;  %v14947_v14 = vadd.f32 %v16489_v53, %v14610_v49  ;;  %v5156_v44 = vmul.f32 %v5028_v56, %v4644_v24  ;;  %10739 = verf.f32 %v4787_v13  ;;  %v4795_v10 = vmul.f32 0.70710677, %v14953_v60  ;;  %v16497_v53 = vld [vmem:[#allocation75_spill] sm:$0xff] }
 0x5a1   : > { %5895 = vmatmul.mubr.f32.gmra.mrb[158].mxu0 %v5139_v38  ;;  %v14935_v17 = vadd.f32 %v16487_v22, %v14610_v49  ;;  %v5152_v26 = vmul.f32 %v5024_v18, %v4640_v16  ;;  %9031 = vmatprep.subr.bf16.mxu0 %v9030_v48  ;;  %v5151_v42 = vmul.f32 %v5023_v32, %v4639_v39  ;;  %v10730_v30 = vpop.eup %10729  ;;  %v5031_v35 = vadd.f32 1.0, %v10728_v27  ;;  %v16494_v16 = vld [vmem:[#allocation70_spill] sm:$0xff] }
 0x5a2   : > { %5900 = vmatprep.mubr.f32.mxu0 %v5144_v59  ;;  %v10732_v33 = vpop.eup %10731  ;;  %v4796_v52 = vmul.f32 0.70710677, %v14947_v14  ;;  %v5036_v31 = vadd.f32 1.0, %v10730_v30  ;;  %v14978_v11 = vadd.f32 %v16494_v16, %v14621_v9  ;;  %v4660_v39 = vmul.f32 0.5, %v14923_v54 }
 0x5a3   : > { %6409 = vmatmul.mubr.f32.gmra.mrb[222].mxu1 %v5139_v38  ;;  %v4792_v0 = vmul.f32 0.70710677, %v14935_v17  ;;  %v5032_v38 = vadd.f32 1.0, %v10726_v50  ;;  %v5035_v1 = vadd.f32 1.0, %v10732_v33  ;;  %v5159_v48 = vmul.f32 %v5031_v35, %v4647_v62  ;;  %v16498_v35 = vld [vmem:[#allocation74_spill] sm:$0xff] }
 0x5a4   : > { %6414 = vmatprep.mubr.f32.mxu1 %v5144_v59  ;;  %9033 = vmatpush1.bf16.msra.mxu0 %v9032_v2  ;;  %v4643_v59 = vmul.f32 0.5, %v14881_v45  ;;  %v14959_v45 = vadd.f32 %v16491_v12, %v14610_v49  ;;  %v5164_v47 = vmul.f32 %v5036_v31, %v4652_v15  ;;  %v4655_v50 = vmul.f32 0.5, %v14917_v8  ;;  %v16499_v12 = vld [vmem:[#allocation77_spill] sm:$0xff]  ;;  %v16500_v15 = vld [vmem:[#allocation76_spill] sm:$0xff] }
 0x5a5   : > { %5901 = vmatmul.mubr.f32.gmra.mrb[160].mxu0 %v5143_v29  ;;  %10741 = verf.f32 %v4792_v0  ;;  %v5160_v58 = vmul.f32 %v5032_v38, %v4648_v20  ;;  %v5163_v2 = vmul.f32 %v5035_v1, %v4651_v57  ;;  %v4803_v6 = vmul.f32 0.70710677, %v14978_v11 }
 0x5a6   : > { %5906 = vmatprep.mubr.f32.mxu0 %v5148_v36  ;;  %v5155_v55 = vmul.f32 %v5027_v51, %v4643_v59  ;;  %10743 = verf.f32 %v4791_v41  ;;  %v4800_v18 = vmul.f32 0.70710677, %v14959_v45  ;;  %v16496_v51 = vld [vmem:[#allocation72_spill] sm:$0xff]  ;;  %v14995_v8 = vadd.f32 %v16497_v53, %v14610_v49 }
 0x5a7   : > { %6415 = vmatmul.mubr.f32.gmra.mrb[224].mxu1 %v5143_v29  ;;  %v10734_v23 = vpop.eup %10733  ;;  %v16492_v29 = vld [vmem:[#allocation68_spill] sm:$0xff]  ;;  %10745 = verf.f32 %v4796_v52  ;;  %v14990_v24 = vadd.f32 %v16496_v51, %v14621_v9  ;;  %v4659_v30 = vmul.f32 0.5, %v14929_v3  ;;  %v4664_v59 = vmul.f32 0.5, %v14935_v17 }
 0x5a8   : > { %6420 = vmatprep.mubr.f32.mxu1 %v5148_v36  ;;  %v14966_v40 = vadd.f32 %v16492_v29, %v14621_v9  ;;  %v10736_v21 = vpop.eup %10735  ;;  %v16493_v36 = vld [vmem:[#allocation71_spill] sm:$0xff]  ;;  %v5040_v63 = vadd.f32 1.0, %v10734_v23  ;;  %10747 = verf.f32 %v4795_v10  ;;  %v15002_v20 = vadd.f32 %v16498_v35, %v14621_v9 }
 0x5a9   : > { %5907 = vmatmul.mubr.f32.gmra.mrb[162].mxu0 %v5147_v46  ;;  %v14971_v34 = vadd.f32 %v16493_v36, %v14610_v49  ;;  %v10738_v61 = vpop.eup %10737  ;;  %v5039_v4 = vadd.f32 1.0, %v10736_v21  ;;  %10749 = verf.f32 %v4800_v18  ;;  %v4807_v43 = vmul.f32 0.70710677, %v14990_v24  ;;  %v16501_v18 = vld [vmem:[#allocation79_spill] sm:$0xff] }
 0x5aa   : > { %5912 = vmatprep.mubr.f32.mxu0 %v5152_v26  ;;  %v4799_v32 = vmul.f32 0.70710677, %v14966_v40  ;;  %v10740_v7 = vpop.eup %10739  ;;  %v5044_v56 = vadd.f32 1.0, %v10738_v61  ;;  %v5168_v28 = vmul.f32 %v5040_v63, %v4656_v37  ;;  %v4812_v52 = vmul.f32 0.70710677, %v14995_v8  ;;  %v16502_v37 = vld [vmem:[#allocation78_spill] sm:$0xff] }
 0x5ab   : > { %6421 = vmatmul.mubr.f32.gmra.mrb[226].mxu1 %v5147_v46  ;;  %v4804_v22 = vmul.f32 0.70710677, %v14971_v34  ;;  %v16495_v46 = vld [vmem:[#allocation73_spill] sm:$0xff]  ;;  %v5043_v13 = vadd.f32 1.0, %v10740_v7  ;;  %v5167_v54 = vmul.f32 %v5039_v4, %v4655_v50  ;;  %v15007_v3 = vadd.f32 %v16499_v12, %v14610_v49 }
 0x5ac   : > { %6426 = vmatprep.mubr.f32.mxu1 %v5152_v26  ;;  %v14983_v19 = vadd.f32 %v16495_v46, %v14610_v49  ;;  %10751 = verf.f32 %v4799_v32  ;;  %v5172_v38 = vmul.f32 %v5044_v56, %v4660_v39  ;;  %v4668_v62 = vmul.f32 0.5, %v14947_v14 }
 0x5ad   : > { %5913 = vmatmul.mubr.f32.gmra.mrb[164].mxu0 %v5151_v42  ;;  %10753 = verf.f32 %v4804_v22  ;;  %v5171_v17 = vmul.f32 %v5043_v13, %v4659_v30  ;;  %v4811_v1 = vmul.f32 0.70710677, %v15002_v20  ;;  %v15014_v29 = vadd.f32 %v16500_v15, %v14621_v9 }
 0x5ae   : > { %5918 = vmatprep.mubr.f32.mxu0 %v5156_v44  ;;  %v4808_v0 = vmul.f32 0.70710677, %v14983_v19  ;;  %10755 = verf.f32 %v4803_v6  ;;  %v4816_v21 = vmul.f32 0.70710677, %v15007_v3  ;;  %v15019_v36 = vadd.f32 %v16501_v18, %v14610_v49  ;;  %v7211_v18 = vld [vmem:[#allocation14 + $0x1e0] sm:$0xff] }
 0x5af   : > { %6427 = vmatmul.mubr.f32.gmra.mrb[228].mxu1 %v5151_v42  ;;  %v10742_v26 = vpop.eup %10741  ;;  %v4667_v61 = vmul.f32 0.5, %v14953_v60  ;;  %v4672_v57 = vmul.f32 0.5, %v14959_v45  ;;  %v4815_v4 = vmul.f32 0.70710677, %v15014_v29  ;;  %v15026_v32 = vadd.f32 %v16502_v37, %v14621_v9  ;;  %v5461_v37 = vld [vmem:[#allocation13] sm:$0xf] }
 0x5b0   : > { %6432 = vmatprep.mubr.f32.mxu1 %v5156_v44  ;;  %v10744_v27 = vpop.eup %10743  ;;  %v5048_v42 = vadd.f32 1.0, %v10742_v26  ;;  %10757 = verf.f32 %v4808_v0  ;;  %v4820_v16 = vmul.f32 0.70710677, %v15019_v36  ;;  %v4671_v45 = vmul.f32 0.5, %v14966_v40 }
 0x5b1   : > { %5919 = vmatmul.mubr.f32.gmra.mrb[166].mxu0 %v5155_v55  ;;  %v10746_v44 = vpop.eup %10745  ;;  %v5047_v41 = vadd.f32 1.0, %v10744_v27  ;;  %10759 = verf.f32 %v4807_v43  ;;  %v4676_v56 = vmul.f32 0.5, %v14971_v34  ;;  %v4819_v9 = vmul.f32 0.70710677, %v15026_v32 }
 0x5b2   : > { %5924 = vmatprep.mubr.f32.mxu0 %v5160_v58  ;;  %v10748_v33 = vpop.eup %10747  ;;  %v5176_v23 = vmul.f32 %v5048_v42, %v4664_v59  ;;  %10761 = verf.f32 %v4812_v52  ;;  %v4675_v51 = vmul.f32 0.5, %v14978_v11  ;;  %v4680_v40 = vmul.f32 0.5, %v14983_v19  ;;  %v7208_v42 = vld [vmem:[#allocation14 + $0x1c8] sm:$0xff] }
 0x5b3   : > { %6433 = vmatmul.mubr.f32.gmra.mrb[230].mxu1 %v5155_v55  ;;  %v5052_v55 = vadd.f32 1.0, %v10746_v44  ;;  %v10750_v31 = vpop.eup %10749  ;;  %v5051_v10 = vadd.f32 1.0, %v10748_v33  ;;  %10763 = verf.f32 %v4811_v1  ;;  %v7207_v44 = vld [vmem:[#allocation14 + $0x1c0] sm:$0xff]  ;;  %v4679_v59 = vmul.f32 0.5, %v14990_v24 }
 0x5b4   : > { %6438 = vmatprep.mubr.f32.mxu1 %v5160_v58  ;;  %v4663_v58 = vmul.f32 0.5, %v14941_v5  ;;  %10765 = verf.f32 %v4816_v21  ;;  %v4684_v19 = vmul.f32 0.5, %v14995_v8  ;;  %v4688_v24 = vmul.f32 0.5, %v15007_v3  ;;  %v7212_v21 = vld [vmem:[#allocation14 + $0x1e8] sm:$0xff] }
 0x5b5   : > { %5925 = vmatmul.mubr.f32.gmra.mrb[168].mxu0 %v5159_v48  ;;  %v5180_v63 = vmul.f32 %v5052_v55, %v4668_v62  ;;  %v5179_v7 = vmul.f32 %v5051_v10, %v4667_v61  ;;  %10767 = verf.f32 %v4815_v4  ;;  %v4687_v1 = vmul.f32 0.5, %v15014_v29 }
 0x5b6   : > { %5930 = vmatprep.mubr.f32.mxu0 %v5164_v47  ;;  %v5175_v5 = vmul.f32 %v5047_v41, %v4663_v58  ;;  %v10752_v14 = vpop.eup %10751  ;;  %10769 = verf.f32 %v4820_v16  ;;  %v7209_v41 = vld [vmem:[#allocation14 + $0x1d0] sm:$0xff]  ;;  %v4692_v15 = vmul.f32 0.5, %v15019_v36  ;;  %v4691_v61 = vmul.f32 0.5, %v15026_v32  ;;  %v7216_v36 = vld [vmem:[#allocation14 + $0x208] sm:$0xff] }
 0x5b7   : > { %6439 = vmatmul.mubr.f32.gmra.mrb[232].mxu1 %v5159_v48  ;;  %v5056_v48 = vadd.f32 1.0, %v10750_v31  ;;  %v5055_v49 = vadd.f32 1.0, %v10752_v14  ;;  %10771 = verf.f32 %v4819_v9  ;;  %v9036_v43 = vpack.c.bf16 %v7209_v41, %v7207_v44  ;;  %v16503_v16 = vld [vmem:[#allocation47_spill] sm:$0xff] }
 0x5b8   : > { %6444 = vmatprep.mubr.f32.mxu1 %v5164_v47  ;;  %v10754_v47 = vpop.eup %10753 }
 0x5b9   : > { %5931 = vmatmul.mubr.f32.gmra.mrb[170].mxu0 %v5163_v2  ;;  %v10756_v22 = vpop.eup %10755  ;;  %v5060_v60 = vadd.f32 1.0, %v10754_v47  ;;  %v5184_v46 = vmul.f32 %v5056_v48, %v4672_v57  ;;  %v5183_v26 = vmul.f32 %v5055_v49, %v4671_v45  ;;  %v7213_v48 = vld [vmem:[#allocation14 + $0x1f0] sm:$0xff]  ;;  %v7218_v57 = vld [vmem:[#allocation14 + $0x218] sm:$0xff] }
 0x5ba   : > { %5936 = vmatprep.mubr.f32.mxu0 %v5168_v28  ;;  %v9040_v47 = vpack.c.bf16 %v7213_v48, %v7211_v18  ;;  %v9042_v4 = vpack.c.bf16 %v7218_v57, %v7216_v36  ;;  %v7217_v48 = vld [vmem:[#allocation14 + $0x210] sm:$0xff] }
 0x5bb   : > { %6445 = vmatmul.mubr.f32.gmra.mrb[234].mxu1 %v5163_v2  ;;  %v10758_v2 = vpop.eup %10757  ;;  %v5188_v13 = vmul.f32 %v5060_v60, %v4676_v56 }
 0x5bc   : > { %6450 = vmatprep.mubr.f32.mxu1 %v5168_v28  ;;  %v5059_v28 = vadd.f32 1.0, %v10756_v22  ;;  %v10760_v50 = vpop.eup %10759  ;;  %v5064_v39 = vadd.f32 1.0, %v10758_v2  ;;  %v16504_v22 = vld [vmem:[#allocation45_spill] sm:$0xff] }
 0x5bd   : > { %5937 = vmatmul.mubr.f32.gmra.mrb[172].mxu0 %v5167_v54  ;;  %v10762_v6 = vpop.eup %10761  ;;  %v5063_v34 = vadd.f32 1.0, %v10760_v50  ;;  %v15045_v32 = vrot.slane %v5461_v37, %v16504_v22 }
 0x5be   : > { %5942 = vmatprep.mubr.f32.mxu0 %v5172_v38  ;;  %v5187_v27 = vmul.f32 %v5059_v28, %v4675_v51  ;;  %v10764_v0 = vpop.eup %10763  ;;  %v5068_v53 = vadd.f32 1.0, %v10762_v6 }
 0x5bf   : > { %6451 = vmatmul.mubr.f32.gmra.mrb[236].mxu1 %v5167_v54  ;;  %v5192_v54 = vmul.f32 %v5064_v39, %v4680_v40  ;;  %v10766_v30 = vpop.eup %10765  ;;  %v5067_v35 = vadd.f32 1.0, %v10764_v0  ;;  %v5191_v33 = vmul.f32 %v5063_v34, %v4679_v59 }
 0x5c0   : > { %6456 = vmatprep.mubr.f32.mxu1 %v5172_v38  ;;  %v7210_v38 = vld [vmem:[#allocation14 + $0x1d8] sm:$0xff]  ;;  %v10768_v52 = vpop.eup %10767  ;;  %v5072_v12 = vadd.f32 1.0, %v10766_v30 }
 0x5c1   : > { %5943 = vmatmul.mubr.f32.gmra.mrb[174].mxu0 %v5171_v17  ;;  %v9034_v11 = vpack.c.bf16 %v7210_v38, %v7208_v42  ;;  %v10770_v55 = vpop.eup %10769  ;;  %v5071_v8 = vadd.f32 1.0, %v10768_v52 }
 0x5c2   : > { %5948 = vmatprep.mubr.f32.mxu0 %v5176_v23  ;;  %v10772_v58 = vpop.eup %10771  ;;  %v5076_v62 = vadd.f32 1.0, %v10770_v55  ;;  %v5200_v10 = vmul.f32 %v5072_v12, %v4688_v24 }
 0x5c3   : > { %6457 = vmatmul.mubr.f32.gmra.mrb[238].mxu1 %v5171_v17  ;;  %9035 = vmatprep.subr.bf16.mxu0 %v9034_v11  ;;  %v5196_v17 = vmul.f32 %v5068_v53, %v4684_v19  ;;  %v5199_v3 = vmul.f32 %v5071_v8, %v4687_v1 }
 0x5c4   : > { %6462 = vmatprep.mubr.f32.mxu1 %v5176_v23  ;;  %9037 = vmatpush1.bf16.msra.mxu0 %v9036_v43  ;;  %v4683_v23 = vmul.f32 0.5, %v15002_v20  ;;  %v7214_v20 = vld [vmem:[#allocation14 + $0x1f8] sm:$0xff] }
 0x5c5   : > { %5949 = vmatmul.mubr.f32.gmra.mrb[176].mxu0 %v5175_v5  ;;  %v9038_v14 = vpack.c.bf16 %v7214_v20, %v7212_v21 }
 0x5c6   : > { %5954 = vmatprep.mubr.f32.mxu0 %v5180_v63  ;;  %v5195_v31 = vmul.f32 %v5067_v35, %v4683_v23 }
 0x5c7   : > { %6463 = vmatmul.mubr.f32.gmra.mrb[240].mxu1 %v5175_v5  ;;  %v5075_v5 = vadd.f32 1.0, %v10772_v58  ;;  %9039 = vmatprep.subr.bf16.mxu0 %v9038_v14  ;;  %v7215_v14 = vld [vmem:[#allocation14 + $0x200] sm:$0xff] }
 0x5c8   : > { %6468 = vmatprep.mubr.f32.mxu1 %v5180_v63  ;;  %v5204_v63 = vmul.f32 %v5076_v62, %v4692_v15  ;;  %9041 = vmatpush1.bf16.msra.mxu0 %v9040_v47 }
 0x5c9   : > { %5955 = vmatmul.mubr.f32.gmra.mrb[178].mxu0 %v5179_v7  ;;  %v5203_v29 = vmul.f32 %v5075_v5, %v4691_v61  ;;  %9043 = vmatprep.subr.bf16.mxu0 %v9042_v4  ;;  %v7220_v61 = vld [vmem:[#allocation14 + $0x228] sm:$0xff] }
 0x5ca   : > { %5960 = vmatprep.mubr.f32.mxu0 %v5184_v46 }
 0x5cb   : > { %6469 = vmatmul.mubr.f32.gmra.mrb[242].mxu1 %v5179_v7  ;;  %v15042_v7 = vrot.slane %v5461_v37, %v16503_v16 }
 0x5cc   : > { %6474 = vmatprep.mubr.f32.mxu1 %v5184_v46 }
 0x5cd   : > { %5961 = vmatmul.mubr.f32.gmra.mrb[180].mxu0 %v5183_v26 }
 0x5ce   : > { %5966 = vmatprep.mubr.f32.mxu0 %v5188_v13 }
 0x5cf   : > { %6475 = vmatmul.mubr.f32.gmra.mrb[244].mxu1 %v5183_v26 }
 0x5d0   : > { %6480 = vmatprep.mubr.f32.mxu1 %v5188_v13 }
 0x5d1   : > { %5967 = vmatmul.mubr.f32.gmra.mrb[182].mxu0 %v5187_v27 }
 0x5d2   : > { %5972 = vmatprep.mubr.f32.mxu0 %v5192_v54 }
 0x5d3   : > { %6481 = vmatmul.mubr.f32.gmra.mrb[246].mxu1 %v5187_v27 }
 0x5d4   : > { %6486 = vmatprep.mubr.f32.mxu1 %v5192_v54 }
 0x5d5   : > { %5973 = vmatmul.mubr.f32.gmra.mrb[184].mxu0 %v5191_v33 }
 0x5d6   : > { %5978 = vmatprep.mubr.f32.mxu0 %v5196_v17 }
 0x5d7   : > { %6487 = vmatmul.mubr.f32.gmra.mrb[248].mxu1 %v5191_v33 }
 0x5d8   : > { %6492 = vmatprep.mubr.f32.mxu1 %v5196_v17 }
 0x5d9   : > { %5979 = vmatmul.mubr.f32.gmra.mrb[186].mxu0 %v5195_v31 }
 0x5da   : > { %5984 = vmatprep.mubr.f32.mxu0 %v5200_v10 }
 0x5db   : > { %6493 = vmatmul.mubr.f32.gmra.mrb[250].mxu1 %v5195_v31 }
 0x5dc   : > { %6498 = vmatprep.mubr.f32.mxu1 %v5200_v10 }
 0x5dd   : > { %5985 = vmatmul.mubr.f32.gmra.mrb[188].mxu0 %v5199_v3 }
 0x5de   : > { %5990 = vmatprep.mubr.f32.mxu0 %v5204_v63 }
 0x5df   : > { %6499 = vmatmul.mubr.f32.gmra.mrb[252].mxu1 %v5199_v3 }
 0x5e0   : > { %6504 = vmatprep.mubr.f32.mxu1 %v5204_v63 }
 0x5e1   : > { %5991 = vmatmul.mubr.f32.gmra.mrb[190].mxu0 %v5203_v29 }
 0x5e3   : > { %6505 = vmatmul.mubr.f32.gmra.mrb[254].mxu1 %v5203_v29  ;;  %v7222_v29 = vld [vmem:[#allocation14 + $0x238] sm:$0xff] }
 0x638   : > { %v5806_v49 = vpop.f32.mrb[128].mxu0 }
 0x639   : > { %v5808_v46 = vpop.f32.mrb[129].mxu0  ;;  %v9426_v56 = vadd.f32 %v5806_v49, %v15045_v32 }
 0x63a   : > { %v15047_v60 = vpop.f32.mrb[192].mxu1  ;;  %v9427_v45 = vadd.f32 %v5808_v46, %v15042_v7  ;;  %v9044_v46 = vpack.c.bf16 %v7217_v48, %v7215_v14  ;;  %v7223_v14 = vld [vmem:[#allocation14 + $0x240] sm:$0xff]  ;;  %v7225_v48 = vld [vmem:[#allocation14 + $0x250] sm:$0xff] }
 0x63b   : > { %v15049_v2 = vpop.f32.mrb[193].mxu1  ;;  %v6639_v6 = vmul.f32 0.70710677, %v9426_v56  ;;  %v6511_v36 = vmul.f32 0.5, %v9426_v56  ;;  %v9046_v56 = vpack.c.bf16 %v7222_v29, %v7220_v61  ;;  %v7228_v61 = vld [vmem:[#allocation14 + $0x268] sm:$0xff]  ;;  %v7230_v29 = vld [vmem:[#allocation14 + $0x278] sm:$0xff] }
 0x63c   : > { %v5812_v9 = vpop.f32.mrb[130].mxu0  ;;  %v6640_v39 = vmul.f32 0.70710677, %v9427_v45  ;;  %v6512_v47 = vmul.f32 0.5, %v9427_v45 }
 0x63d   : > { %v5814_v26 = vpop.f32.mrb[131].mxu0  ;;  %v15065_v0 = vadd.f32 %v5812_v9, %v15045_v32 }
 0x63e   : > { %v15053_v28 = vpop.f32.mrb[194].mxu1  ;;  %v15060_v34 = vadd.f32 %v5814_v26, %v15042_v7  ;;  %10773 = verf.f32 %v6640_v39 }
 0x63f   : > { %v15055_v50 = vpop.f32.mrb[195].mxu1  ;;  %10775 = verf.f32 %v6639_v6  ;;  %v6643_v30 = vmul.f32 0.70710677, %v15065_v0 }
 0x640   : > { %v5818_v13 = vpop.f32.mrb[132].mxu0  ;;  %v6644_v44 = vmul.f32 0.70710677, %v15060_v34 }
 0x641   : > { %v5820_v40 = vpop.f32.mrb[133].mxu0  ;;  %v15077_v41 = vadd.f32 %v5818_v13, %v15045_v32 }
 0x642   : > { %v15057_v51 = vpop.f32.mrb[196].mxu1  ;;  %v15074_v59 = vadd.f32 %v5820_v40, %v15042_v7  ;;  %10777 = verf.f32 %v6644_v44  ;;  %v7219_v40 = vld [vmem:[#allocation14 + $0x220] sm:$0xff]  ;;  %v7226_v44 = vld [vmem:[#allocation14 + $0x258] sm:$0xff] }
 0x643   : > { %v15062_v27 = vpop.f32.mrb[197].mxu1  ;;  %10779 = verf.f32 %v6643_v30  ;;  %v6647_v12 = vmul.f32 0.70710677, %v15077_v41 }
 0x644   : > { %v5824_v53 = vpop.f32.mrb[134].mxu0  ;;  %v6648_v33 = vmul.f32 0.70710677, %v15074_v59 }
 0x645   : > { %v5826_v42 = vpop.f32.mrb[135].mxu0  ;;  %v15091_v8 = vadd.f32 %v5824_v53, %v15045_v32  ;;  %v7221_v53 = vld [vmem:[#allocation14 + $0x230] sm:$0xff] }
 0x646   : > { %v15067_v54 = vpop.f32.mrb[198].mxu1  ;;  %v15086_v17 = vadd.f32 %v5826_v42, %v15042_v7  ;;  %10781 = verf.f32 %v6648_v33  ;;  %v7224_v42 = vld [vmem:[#allocation14 + $0x248] sm:$0xff] }
 0x647   : > { %v15069_v38 = vpop.f32.mrb[199].mxu1  ;;  %10783 = verf.f32 %v6647_v12  ;;  %v6651_v5 = vmul.f32 0.70710677, %v15091_v8 }
 0x648   : > { %v5830_v11 = vpop.f32.mrb[136].mxu0  ;;  %v10774_v24 = vpop.eup %10773  ;;  %v6652_v1 = vmul.f32 0.70710677, %v15086_v17 }
 0x649   : > { %v5832_v43 = vpop.f32.mrb[137].mxu0  ;;  %v10776_v58 = vpop.eup %10775  ;;  %v6896_v10 = vadd.f32 1.0, %v10774_v24  ;;  %v15105_v3 = vadd.f32 %v5830_v11, %v15045_v32  ;;  %v9048_v24 = vpack.c.bf16 %v7221_v53, %v7219_v40  ;;  %v9054_v53 = vpack.c.bf16 %v7230_v29, %v7228_v61  ;;  %v7231_v61 = vld [vmem:[#allocation14 + $0x280] sm:$0xff] }
 0x64a   : > { %v15079_v19 = vpop.f32.mrb[200].mxu1  ;;  %v15099_v15 = vadd.f32 %v5832_v43, %v15042_v7  ;;  %v6895_v18 = vadd.f32 1.0, %v10776_v58  ;;  %10785 = verf.f32 %v6652_v1 }
 0x64b   : > { %v15081_v35 = vpop.f32.mrb[201].mxu1  ;;  %v7024_v49 = vmul.f32 %v6896_v10, %v6512_v47  ;;  %10787 = verf.f32 %v6651_v5  ;;  %v6655_v45 = vmul.f32 0.70710677, %v15105_v3  ;;  %v9050_v5 = vpack.c.bf16 %v7226_v44, %v7224_v42  ;;  %v7227_v42 = vld [vmem:[#allocation14 + $0x260] sm:$0xff]  ;;  %v7229_v44 = vld [vmem:[#allocation14 + $0x270] sm:$0xff] }
 0x64c   : > { %v5836_v52 = vpop.f32.mrb[138].mxu0  ;;  %v10778_v4 = vpop.eup %10777  ;;  %v6656_v37 = vmul.f32 0.70710677, %v15099_v15  ;;  %v7023_v13 = vmul.f32 %v6895_v18, %v6511_v36  ;;  %v6516_v18 = vmul.f32 0.5, %v15060_v34 }
 0x64d   : > { %v5838_v23 = vpop.f32.mrb[139].mxu0  ;;  %v10780_v39 = vpop.eup %10779  ;;  %7355 = vmatprep.mubr.f32.mxu0 %v7024_v49  ;;  %v6900_v30 = vadd.f32 1.0, %v10778_v4  ;;  %v15125_v12 = vadd.f32 %v5836_v52, %v15045_v32  ;;  %v6515_v52 = vmul.f32 0.5, %v15065_v0  ;;  %v9052_v0 = vpack.c.bf16 %v7225_v48, %v7223_v14 }
 0x64e   : > { %v15088_v55 = vpop.f32.mrb[202].mxu1  ;;  %v15120_v11 = vadd.f32 %v5838_v23, %v15042_v7  ;;  %7356 = vmatmul.mubr.f32.vlgmr.msra.gmra.mrb[192].mxu0 %v7023_v13  ;;  %v6899_v33 = vadd.f32 1.0, %v10780_v39  ;;  %10789 = verf.f32 %v6656_v37  ;;  %v6519_v14 = vmul.f32 0.5, %v15077_v41 }
 0x64f   : > { %v15093_v31 = vpop.f32.mrb[203].mxu1  ;;  %9045 = vmatpush1.bf16.msra.mxu0 %v9044_v46  ;;  %10791 = verf.f32 %v6655_v45  ;;  %v7028_v37 = vmul.f32 %v6900_v30, %v6516_v18  ;;  %v6659_v46 = vmul.f32 0.70710677, %v15125_v12 }
 0x650   : > { %v15095_v62 = vpop.f32.mrb[140].mxu0  ;;  %v10782_v1 = vpop.eup %10781  ;;  %9047 = vmatprep.subr.bf16.mxu0 %v9046_v56  ;;  %v6660_v36 = vmul.f32 0.70710677, %v15120_v11  ;;  %v7027_v39 = vmul.f32 %v6899_v33, %v6515_v52  ;;  %v6520_v33 = vmul.f32 0.5, %v15074_v59  ;;  %v9056_v52 = vpack.c.bf16 %v7229_v44, %v7227_v42  ;;  %v7236_v42 = vld [vmem:[#allocation14 + $0x2a8] sm:$0xff]  ;;  %v7238_v44 = vld [vmem:[#allocation14 + $0x2b8] sm:$0xff] }
 0x651   : > { %v5844_v20 = vpop.f32.mrb[141].mxu0  ;;  %v10784_v47 = vpop.eup %10783  ;;  %v6904_v34 = vadd.f32 1.0, %v10782_v1  ;;  %v15148_v40 = vadd.f32 %v15095_v62, %v15045_v32  ;;  %7361 = vmatprep.mubr.f32.mxu0 %v7028_v37  ;;  %v7234_v1 = vld [vmem:[#allocation14 + $0x298] sm:$0xff] }
 0x652   : > { %v15101_v21 = vpop.f32.mrb[204].mxu1  ;;  %v15137_v4 = vadd.f32 %v5844_v20, %v15042_v7  ;;  %v6903_v56 = vadd.f32 1.0, %v10784_v47  ;;  %7362 = vmatmul.mubr.f32.gmra.mrb[194].mxu0 %v7027_v39  ;;  %10793 = verf.f32 %v6660_v36  ;;  %v7233_v36 = vld [vmem:[#allocation14 + $0x290] sm:$0xff] }
 0x653   : > { %v15107_v63 = vpop.f32.mrb[205].mxu1  ;;  %9049 = vmatpush1.bf16.msra.mxu0 %v9048_v24  ;;  %v7232_v24 = vld [vmem:[#allocation14 + $0x288] sm:$0xff]  ;;  %10795 = verf.f32 %v6659_v46  ;;  %v7032_v48 = vmul.f32 %v6904_v34, %v6520_v33  ;;  %v6663_v59 = vmul.f32 0.70710677, %v15148_v40  ;;  %v6524_v33 = vmul.f32 0.5, %v15086_v17 }
 0x654   : > { %v15109_v57 = vpop.f32.mrb[142].mxu0  ;;  %9051 = vmatprep.subr.bf16.mxu0 %v9050_v5  ;;  %v10786_v30 = vpop.eup %10785  ;;  %v6664_v62 = vmul.f32 0.70710677, %v15137_v4  ;;  %v7031_v37 = vmul.f32 %v6903_v56, %v6519_v14  ;;  %v9058_v41 = vpack.c.bf16 %v7234_v1, %v7232_v24  ;;  %v6523_v24 = vmul.f32 0.5, %v15091_v8 }
 0x655   : > { %v15114_v26 = vpop.f32.mrb[143].mxu0  ;;  %v10788_v18 = vpop.eup %10787  ;;  %v6908_v29 = vadd.f32 1.0, %v10786_v30  ;;  %7367 = vmatprep.mubr.f32.mxu0 %v7032_v48  ;;  %v15171_v56 = vadd.f32 %v15109_v57, %v15045_v32  ;;  %v9060_v1 = vpack.c.bf16 %v7233_v36, %v7231_v61  ;;  %v9062_v17 = vpack.c.bf16 %v7238_v44, %v7236_v42  ;;  %v7237_v61 = vld [vmem:[#allocation14 + $0x2b0] sm:$0xff] }
 0x656   : > { %v15112_v9 = vpop.f32.mrb[206].mxu1  ;;  %v6907_v34 = vadd.f32 1.0, %v10788_v18  ;;  %10797 = verf.f32 %v6664_v62  ;;  %7368 = vmatmul.mubr.f32.gmra.mrb[196].mxu0 %v7031_v37  ;;  %v6527_v42 = vmul.f32 0.5, %v15105_v3 }
 0x657   : > { %v15117_v6 = vpop.f32.mrb[207].mxu1  ;;  %9053 = vmatpush1.bf16.msra.mxu0 %v9052_v0  ;;  %v15166_v0 = vadd.f32 %v15114_v26, %v15042_v7  ;;  %10799 = verf.f32 %v6663_v59  ;;  %v7036_v18 = vmul.f32 %v6908_v29, %v6524_v33  ;;  %v6528_v29 = vmul.f32 0.5, %v15099_v15 }
 0x658   : > { %v15122_v43 = vpop.f32.mrb[144].mxu0  ;;  %9055 = vmatprep.subr.bf16.mxu0 %v9054_v53  ;;  %v10790_v46 = vpop.eup %10789  ;;  %v7035_v22 = vmul.f32 %v6907_v34, %v6523_v24  ;;  %v6667_v59 = vmul.f32 0.70710677, %v15171_v56 }
 0x659   : > { %v15129_v10 = vpop.f32.mrb[145].mxu0  ;;  %v10792_v30 = vpop.eup %10791  ;;  %v6912_v26 = vadd.f32 1.0, %v10790_v46  ;;  %v6668_v57 = vmul.f32 0.70710677, %v15166_v0  ;;  %7373 = vmatprep.mubr.f32.mxu0 %v7036_v18  ;;  %v7242_v46 = vld [vmem:[#allocation14 + $0x2d8] sm:$0xff] }
 0x65a   : > { %v15127_v58 = vpop.f32.mrb[208].mxu1  ;;  %v6911_v62 = vadd.f32 1.0, %v10792_v30  ;;  %v15183_v37 = vadd.f32 %v15129_v10, %v15042_v7  ;;  %7374 = vmatmul.mubr.f32.gmra.mrb[198].mxu0 %v7035_v22  ;;  %v15198_v30 = vadd.f32 %v15122_v43, %v15045_v32  ;;  %v7244_v43 = vld [vmem:[#allocation14 + $0x2e8] sm:$0xff] }
 0x65b   : > { %16505 = vst [vmem:[#allocation43_spill] sm:$0xff] %v15127_v58  ;;  %v15132_v23 = vpop.f32.mrb[209].mxu1  ;;  %9057 = vmatpush1.bf16.msra.mxu0 %v9056_v52  ;;  %v7235_v52 = vld [vmem:[#allocation14 + $0x2a0] sm:$0xff]  ;;  %v7040_v15 = vmul.f32 %v6912_v26, %v6528_v29  ;;  %10801 = verf.f32 %v6668_v57 }
 0x65c   : > { %16506 = vst [vmem:[#allocation46_spill] sm:$0xff] %v15132_v23  ;;  %v15139_v49 = vpop.f32.mrb[146].mxu0  ;;  %9059 = vmatprep.subr.bf16.mxu0 %v9058_v41  ;;  %v7240_v41 = vld [vmem:[#allocation14 + $0x2c8] sm:$0xff]  ;;  %v10794_v34 = vpop.eup %10793  ;;  %v9064_v24 = vpack.c.bf16 %v7237_v61, %v7235_v52  ;;  %v7039_v3 = vmul.f32 %v6911_v62, %v6527_v42  ;;  %10803 = verf.f32 %v6667_v59  ;;  %v6671_v62 = vmul.f32 0.70710677, %v15198_v30 }
 0x65d   : > { %v15144_v45 = vpop.f32.mrb[147].mxu0  ;;  %v10796_v18 = vpop.eup %10795  ;;  %v9066_v22 = vpack.c.bf16 %v7242_v46, %v7240_v41  ;;  %7379 = vmatprep.mubr.f32.mxu0 %v7040_v15  ;;  %v6916_v26 = vadd.f32 1.0, %v10794_v34  ;;  %v7243_v41 = vld [vmem:[#allocation14 + $0x2e0] sm:$0xff]  ;;  %v7245_v46 = vld [vmem:[#allocation14 + $0x2f0] sm:$0xff]  ;;  %v6532_v42 = vmul.f32 0.5, %v15120_v11  ;;  %v15219_v34 = vadd.f32 %v15139_v49, %v15045_v32 }
 0x65e   : > { %v15142_v13 = vpop.f32.mrb[210].mxu1  ;;  %7380 = vmatmul.mubr.f32.gmra.mrb[200].mxu0 %v7039_v3  ;;  %v6915_v52 = vadd.f32 1.0, %v10796_v18  ;;  %v6531_v3 = vmul.f32 0.5, %v15125_v12 }
 0x65f   : > { %16507 = vst [vmem:[#allocation44_spill] sm:$0xff] %v15142_v13  ;;  %v15150_v20 = vpop.f32.mrb[211].mxu1  ;;  %9061 = vmatpush1.bf16.msra.mxu0 %v9060_v1 }
 0x660   : > { %16508 = vst [vmem:[#allocation49_spill] sm:$0xff] %v15150_v20  ;;  %v15155_v47 = vpop.f32.mrb[148].mxu0  ;;  %9063 = vmatprep.subr.bf16.mxu0 %v9062_v17  ;;  %v10798_v57 = vpop.eup %10797  ;;  %v15212_v17 = vadd.f32 %v15144_v45, %v15042_v7  ;;  %v7248_v45 = vld [vmem:[#allocation14 + $0x308] sm:$0xff] }
 0x661   : > { %v15160_v39 = vpop.f32.mrb[149].mxu0  ;;  %v10800_v18 = vpop.eup %10799 }
 0x662   : > { %v15157_v5 = vpop.f32.mrb[212].mxu1  ;;  %v6676_v11 = vmul.f32 0.70710677, %v15212_v17  ;;  %v15229_v49 = vadd.f32 %v15160_v39, %v15042_v7  ;;  %v7249_v39 = vld [vmem:[#allocation14 + $0x310] sm:$0xff] }
 0x663   : > { %16509 = vst [vmem:[#allocation48_spill] sm:$0xff] %v15157_v5  ;;  %v15162_v16 = vpop.f32.mrb[213].mxu1  ;;  %9065 = vmatpush1.bf16.msra.mxu0 %v9064_v24 }
 0x664   : > { %16510 = vst [vmem:[#allocation51_spill] sm:$0xff] %v15162_v16  ;;  %v15173_v53 = vpop.f32.mrb[150].mxu0  ;;  %v7246_v16 = vld [vmem:[#allocation14 + $0x2f8] sm:$0xff]  ;;  %9067 = vmatprep.subr.bf16.mxu0 %v9066_v22  ;;  %v6536_v22 = vmul.f32 0.5, %v15137_v4 }
 0x665   : > { %v15178_v48 = vpop.f32.mrb[151].mxu0  ;;  %v9070_v15 = vpack.c.bf16 %v7246_v16, %v7244_v43  ;;  %v7043_v16 = vmul.f32 %v6915_v52, %v6531_v3  ;;  %v6675_v43 = vmul.f32 0.70710677, %v15219_v34  ;;  %v15241_v52 = vadd.f32 %v15155_v47, %v15045_v32  ;;  %v7252_v3 = vld [vmem:[#allocation14 + $0x328] sm:$0xff] }
 0x666   : > { %v15176_v14 = vpop.f32.mrb[214].mxu1 }
 0x667   : > { %16511 = vst [vmem:[#allocation50_spill] sm:$0xff] %v15176_v14  ;;  %v15185_v8 = vpop.f32.mrb[215].mxu1  ;;  %v6672_v14 = vmul.f32 0.70710677, %v15183_v37  ;;  %v6679_v13 = vmul.f32 0.70710677, %v15241_v52 }
 0x668   : > { %16512 = vst [vmem:[#allocation53_spill] sm:$0xff] %v15185_v8  ;;  %v15189_v36 = vpop.f32.mrb[152].mxu0  ;;  %v7241_v8 = vld [vmem:[#allocation14 + $0x2d0] sm:$0xff] }
 0x669   : > { %v15194_v10 = vpop.f32.mrb[153].mxu0  ;;  %10805 = verf.f32 %v6672_v14 }
 0x66a   : > { %v15192_v44 = vpop.f32.mrb[216].mxu1  ;;  %10807 = verf.f32 %v6671_v62 }
 0x66b   : > { %16513 = vst [vmem:[#allocation52_spill] sm:$0xff] %v15192_v44  ;;  %v15200_v33 = vpop.f32.mrb[217].mxu1  ;;  %v7239_v44 = vld [vmem:[#allocation14 + $0x2c0] sm:$0xff]  ;;  %10809 = verf.f32 %v6676_v11 }
 0x66c   : > { %16514 = vst [vmem:[#allocation55_spill] sm:$0xff] %v15200_v33  ;;  %v15203_v5 = vpop.f32.mrb[154].mxu0  ;;  %v9068_v59 = vpack.c.bf16 %v7241_v8, %v7239_v44  ;;  %v6920_v33 = vadd.f32 1.0, %v10798_v57  ;;  %v9072_v44 = vpack.c.bf16 %v7245_v46, %v7243_v41  ;;  %v6919_v57 = vadd.f32 1.0, %v10800_v18  ;;  %v7247_v41 = vld [vmem:[#allocation14 + $0x300] sm:$0xff]  ;;  %v10802_v46 = vpop.eup %10801 }
 0x66d   : > { %v15207_v1 = vpop.f32.mrb[155].mxu0  ;;  %v6680_v18 = vmul.f32 0.70710677, %v15229_v49  ;;  %10811 = verf.f32 %v6675_v43  ;;  %v9076_v47 = vpack.c.bf16 %v7249_v39, %v7247_v41  ;;  %v6540_v43 = vmul.f32 0.5, %v15166_v0 }
 0x66e   : > { %v15205_v29 = vpop.f32.mrb[218].mxu1  ;;  %9069 = vmatpush1.bf16.msra.mxu0 %v9068_v59  ;;  %v6539_v41 = vmul.f32 0.5, %v15171_v56  ;;  %v6544_v56 = vmul.f32 0.5, %v15183_v37 }
 0x66f   : > { %16515 = vst [vmem:[#allocation54_spill] sm:$0xff] %v15205_v29  ;;  %v15214_v61 = vpop.f32.mrb[219].mxu1  ;;  %v7250_v29 = vld [vmem:[#allocation14 + $0x318] sm:$0xff]  ;;  %9071 = vmatprep.subr.bf16.mxu0 %v9070_v15  ;;  %v10804_v15 = vpop.eup %10803  ;;  %10813 = verf.f32 %v6680_v18  ;;  %v15287_v18 = vadd.f32 %v15189_v36, %v15045_v32 }
 0x670   : > { %16516 = vst [vmem:[#allocation57_spill] sm:$0xff] %v15214_v61  ;;  %v7044_v61 = vmul.f32 %v6916_v26, %v6532_v42  ;;  %v15222_v24 = vpop.f32.mrb[156].mxu0  ;;  %v9074_v26 = vpack.c.bf16 %v7250_v29, %v7248_v45  ;;  %v7048_v42 = vmul.f32 %v6920_v33, %v6536_v22  ;;  %v6535_v29 = vmul.f32 0.5, %v15148_v40 }
 0x671   : > { %v15231_v14 = vpop.f32.mrb[157].mxu0  ;;  %v6924_v33 = vadd.f32 1.0, %v10802_v46  ;;  %v15256_v40 = vadd.f32 %v15178_v48, %v15042_v7  ;;  %10815 = verf.f32 %v6679_v13 }
 0x672   : > { %v15224_v8 = vpop.f32.mrb[220].mxu1  ;;  %7385 = vmatprep.mubr.f32.mxu0 %v7044_v61  ;;  %v7254_v61 = vld [vmem:[#allocation14 + $0x338] sm:$0xff]  ;;  %9073 = vmatpush1.bf16.msra.mxu0 %v9072_v44 }
 0x673   : > { %16517 = vst [vmem:[#allocation56_spill] sm:$0xff] %v15224_v8  ;;  %v15233_v12 = vpop.f32.mrb[221].mxu1  ;;  %7386 = vmatmul.mubr.f32.gmra.mrb[202].mxu0 %v7043_v16  ;;  %9075 = vmatprep.subr.bf16.mxu0 %v9074_v26  ;;  %v7047_v16 = vmul.f32 %v6919_v57, %v6535_v29  ;;  %v10806_v8 = vpop.eup %10805  ;;  %v15265_v26 = vadd.f32 %v15173_v53, %v15045_v32  ;;  %v6684_v0 = vmul.f32 0.70710677, %v15256_v40 }
 0x674   : > { %16518 = vst [vmem:[#allocation31_spill] sm:$0xff] %v15233_v12  ;;  %v15237_v62 = vpop.f32.mrb[158].mxu0  ;;  %7391 = vmatprep.mubr.f32.mxu0 %v7048_v42  ;;  %v6923_v12 = vadd.f32 1.0, %v10804_v15  ;;  %v10808_v39 = vpop.eup %10807  ;;  %v6928_v48 = vadd.f32 1.0, %v10806_v8  ;;  %v7052_v46 = vmul.f32 %v6924_v33, %v6540_v43  ;;  %v6543_v33 = vmul.f32 0.5, %v15198_v30 }
 0x675   : > { %v15245_v4 = vpop.f32.mrb[159].mxu0  ;;  %v6683_v8 = vmul.f32 0.70710677, %v15265_v26  ;;  %v10810_v13 = vpop.eup %10809  ;;  %10817 = verf.f32 %v6684_v0  ;;  %v15302_v30 = vadd.f32 %v15207_v1, %v15042_v7 }
 0x676   : > { %v15243_v59 = vpop.f32.mrb[222].mxu1  ;;  %9077 = vmatpush1.bf16.msra.mxu0 %v9076_v47  ;;  %v7051_v53 = vmul.f32 %v6923_v12, %v6539_v41  ;;  %v6932_v41 = vadd.f32 1.0, %v10810_v13 }
 0x677   : > { %16519 = vst [vmem:[#allocation30_spill] sm:$0xff] %v15243_v59  ;;  %v15249_v45 = vpop.f32.mrb[223].mxu1  ;;  %v9078_v59 = vpack.c.bf16 %v7254_v61, %v7252_v3  ;;  %7392 = vmatmul.mubr.f32.gmra.mrb[204].mxu0 %v7047_v16  ;;  %v15275_v3 = vadd.f32 %v15194_v10, %v15042_v7  ;;  %v7056_v10 = vmul.f32 %v6928_v48, %v6544_v56  ;;  %v10812_v47 = vpop.eup %10811  ;;  %10819 = verf.f32 %v6683_v8 }
 0x678   : > { %16520 = vst [vmem:[#allocation33_spill] sm:$0xff] %v15249_v45  ;;  %v15251_v22 = vpop.f32.mrb[160].mxu0  ;;  %7397 = vmatprep.mubr.f32.mxu0 %v7052_v46  ;;  %v6931_v48 = vadd.f32 1.0, %v10812_v47  ;;  %v6548_v56 = vmul.f32 0.5, %v15212_v17  ;;  %v15309_v8 = vadd.f32 %v15203_v5, %v15045_v32  ;;  %v6692_v17 = vmul.f32 0.70710677, %v15302_v30 }
 0x679   : > { %v15260_v44 = vpop.f32.mrb[161].mxu0  ;;  %9079 = vmatprep.subr.bf16.mxu0 %v9078_v59  ;;  %v6927_v59 = vadd.f32 1.0, %v10808_v39  ;;  %v6688_v37 = vmul.f32 0.70710677, %v15275_v3  ;;  %v10814_v36 = vpop.eup %10813 }
 0x67a   : > { %v15258_v11 = vpop.f32.mrb[224].mxu1  ;;  %v7060_v1 = vmul.f32 %v6932_v41, %v6548_v56 }
 0x67b   : > { %16521 = vst [vmem:[#allocation32_spill] sm:$0xff] %v15258_v11  ;;  %v15267_v57 = vpop.f32.mrb[225].mxu1  ;;  %7398 = vmatmul.mubr.f32.gmra.mrb[206].mxu0 %v7051_v53  ;;  %v7055_v39 = vmul.f32 %v6927_v59, %v6543_v33  ;;  %v6687_v53 = vmul.f32 0.70710677, %v15287_v18  ;;  %10821 = verf.f32 %v6688_v37  ;;  %v10816_v47 = vpop.eup %10815  ;;  %v6936_v33 = vadd.f32 1.0, %v10814_v36 }
 0x67c   : > { %16522 = vst [vmem:[#allocation42_spill] sm:$0xff] %v15267_v57  ;;  %v15270_v42 = vpop.f32.mrb[162].mxu0  ;;  %7403 = vmatprep.mubr.f32.mxu0 %v7056_v10  ;;  %v6547_v10 = vmul.f32 0.5, %v15219_v34  ;;  %v15321_v37 = vadd.f32 %v15231_v14, %v15042_v7  ;;  %v6935_v36 = vadd.f32 1.0, %v10816_v47  ;;  %v15335_v14 = vadd.f32 %v15222_v24, %v15045_v32 }
 0x67d   : > { %v15279_v15 = vpop.f32.mrb[163].mxu0  ;;  %10823 = verf.f32 %v6687_v53 }
 0x67e   : > { %v15277_v61 = vpop.f32.mrb[226].mxu1  ;;  %v7059_v5 = vmul.f32 %v6931_v48, %v6547_v10  ;;  %10825 = verf.f32 %v6692_v17  ;;  %v6556_v17 = vmul.f32 0.5, %v15256_v40 }
 0x67f   : > { %16523 = vst [vmem:[#allocation58_spill] sm:$0xff] %v15277_v61  ;;  %v15283_v29 = vpop.f32.mrb[227].mxu1  ;;  %7404 = vmatmul.mubr.f32.gmra.mrb[208].mxu0 %v7055_v39  ;;  %v10818_v56 = vpop.eup %10817 }
 0x680   : > { %16524 = vst [vmem:[#allocation35_spill] sm:$0xff] %v15283_v29  ;;  %v15289_v12 = vpop.f32.mrb[164].mxu0  ;;  %7409 = vmatprep.mubr.f32.mxu0 %v7060_v1  ;;  %v6696_v1 = vmul.f32 0.70710677, %v15321_v37  ;;  %v6940_v47 = vadd.f32 1.0, %v10818_v56  ;;  %v6555_v56 = vmul.f32 0.5, %v15265_v26 }
 0x681   : > { %v15295_v43 = vpop.f32.mrb[165].mxu0  ;;  %v10820_v10 = vpop.eup %10819 }
 0x682   : > { %v15293_v16 = vpop.f32.mrb[228].mxu1  ;;  %v6939_v24 = vadd.f32 1.0, %v10820_v10 }
 0x683   : > { %16525 = vst [vmem:[#allocation34_spill] sm:$0xff] %v15293_v16  ;;  %v15297_v46 = vpop.f32.mrb[229].mxu1  ;;  %7410 = vmatmul.mubr.f32.gmra.mrb[210].mxu0 %v7059_v5 }
 0x684   : > { %16526 = vst [vmem:[#allocation37_spill] sm:$0xff] %v15297_v46  ;;  %v15304_v0 = vpop.f32.mrb[166].mxu0  ;;  %v6691_v46 = vmul.f32 0.70710677, %v15309_v8 }
 0x685   : > { %v15313_v13 = vpop.f32.mrb[167].mxu0  ;;  %v10822_v61 = vpop.eup %10821 }
 0x686   : > { %v15311_v59 = vpop.f32.mrb[230].mxu1  ;;  %10827 = verf.f32 %v6691_v46  ;;  %v15355_v46 = vadd.f32 %v15237_v62, %v15045_v32  ;;  %v6944_v10 = vadd.f32 1.0, %v10822_v61  ;;  %v7067_v62 = vmul.f32 %v6939_v24, %v6555_v56 }
 0x687   : > { %16527 = vst [vmem:[#allocation36_spill] sm:$0xff] %v15311_v59  ;;  %v15316_v16 = vpop.f32.mrb[231].mxu1  ;;  %v6552_v59 = vmul.f32 0.5, %v15229_v49  ;;  %v6551_v49 = vmul.f32 0.5, %v15241_v52  ;;  %v15348_v52 = vadd.f32 %v15245_v4, %v15042_v7  ;;  %10829 = verf.f32 %v6696_v1 }
 0x688   : > { %16528 = vst [vmem:[#allocation39_spill] sm:$0xff] %v15316_v16  ;;  %v15323_v39 = vpop.f32.mrb[168].mxu0  ;;  %v15367_v1 = vadd.f32 %v15260_v44, %v15042_v7  ;;  %v6699_v26 = vmul.f32 0.70710677, %v15355_v46  ;;  %v15381_v44 = vadd.f32 %v15251_v22, %v15045_v32 }
 0x689   : > { %v15329_v41 = vpop.f32.mrb[169].mxu0  ;;  %v7064_v48 = vmul.f32 %v6936_v33, %v6552_v59  ;;  %v7063_v5 = vmul.f32 %v6935_v36, %v6551_v49  ;;  %v6695_v59 = vmul.f32 0.70710677, %v15335_v14  ;;  %v7068_v49 = vmul.f32 %v6940_v47, %v6556_v17 }
 0x68a   : > { %v15327_v34 = vpop.f32.mrb[232].mxu1  ;;  %v6700_v40 = vmul.f32 0.70710677, %v15348_v52 }
 0x68b   : > { %16529 = vst [vmem:[#allocation38_spill] sm:$0xff] %v15327_v34  ;;  %v15331_v53 = vpop.f32.mrb[233].mxu1  ;;  %7415 = vmatprep.mubr.f32.mxu0 %v7064_v48  ;;  %v10824_v48 = vpop.eup %10823  ;;  %10831 = verf.f32 %v6695_v59 }
 0x68c   : > { %16530 = vst [vmem:[#allocation59_spill] sm:$0xff] %v15331_v53  ;;  %v15339_v16 = vpop.f32.mrb[170].mxu0  ;;  %7416 = vmatmul.mubr.f32.gmra.mrb[212].mxu0 %v7063_v5  ;;  %v6943_v47 = vadd.f32 1.0, %v10824_v48  ;;  %10833 = verf.f32 %v6700_v40 }
 0x68d   : > { %v15343_v53 = vpop.f32.mrb[171].mxu0  ;;  %7421 = vmatprep.mubr.f32.mxu0 %v7068_v49  ;;  %v6704_v49 = vmul.f32 0.70710677, %v15367_v1  ;;  %10835 = verf.f32 %v6699_v26  ;;  %v6564_v26 = vmul.f32 0.5, %v15302_v30  ;;  %v15413_v30 = vadd.f32 %v15295_v43, %v15042_v7 }
 0x68e   : > { %v15341_v34 = vpop.f32.mrb[234].mxu1 }
 0x68f   : > { %16531 = vst [vmem:[#allocation40_spill] sm:$0xff] %v15341_v34  ;;  %v15350_v33 = vpop.f32.mrb[235].mxu1  ;;  %10837 = verf.f32 %v6704_v49 }
 0x690   : > { %16532 = vst [vmem:[#allocation61_spill] sm:$0xff] %v15350_v33  ;;  %v15357_v36 = vpop.f32.mrb[172].mxu0  ;;  %v6560_v33 = vmul.f32 0.5, %v15275_v3  ;;  %7422 = vmatmul.mubr.f32.gmra.mrb[214].mxu0 %v7067_v62 }
 0x691   : > { %v15362_v4 = vpop.f32.mrb[173].mxu0 }
 0x692   : > { %v15360_v34 = vpop.f32.mrb[236].mxu1  ;;  %v7072_v24 = vmul.f32 %v6944_v10, %v6560_v33  ;;  %v6703_v33 = vmul.f32 0.70710677, %v15381_v44  ;;  %v15394_v10 = vadd.f32 %v15279_v15, %v15042_v7 }
 0x693   : > { %16533 = vst [vmem:[#allocation60_spill] sm:$0xff] %v15360_v34  ;;  %v15369_v5 = vpop.f32.mrb[237].mxu1  ;;  %v10826_v34 = vpop.eup %10825 }
 0x694   : > { %16534 = vst [vmem:[#allocation63_spill] sm:$0xff] %v15369_v5  ;;  %v15373_v61 = vpop.f32.mrb[174].mxu0  ;;  %v10828_v3 = vpop.eup %10827  ;;  %v6559_v5 = vmul.f32 0.5, %v15287_v18  ;;  %7427 = vmatprep.mubr.f32.mxu0 %v7072_v24  ;;  %v6948_v48 = vadd.f32 1.0, %v10826_v34  ;;  %v15403_v34 = vadd.f32 %v15270_v42, %v15045_v32  ;;  %10839 = verf.f32 %v6703_v33 }
 0x695   : > { %v15377_v59 = vpop.f32.mrb[175].mxu0  ;;  %v10830_v11 = vpop.eup %10829  ;;  %v6947_v22 = vadd.f32 1.0, %v10828_v3 }
 0x696   : > { %v15375_v17 = vpop.f32.mrb[238].mxu1  ;;  %v7071_v62 = vmul.f32 %v6943_v47, %v6559_v5  ;;  %v6563_v5 = vmul.f32 0.5, %v15309_v8  ;;  %v10832_v47 = vpop.eup %10831  ;;  %v6952_v24 = vadd.f32 1.0, %v10830_v11  ;;  %v7076_v3 = vmul.f32 %v6948_v48, %v6564_v26 }
 0x697   : > { %16535 = vst [vmem:[#allocation62_spill] sm:$0xff] %v15375_v17  ;;  %v15383_v56 = vpop.f32.mrb[239].mxu1  ;;  %v6568_v8 = vmul.f32 0.5, %v15321_v37  ;;  %v6707_v11 = vmul.f32 0.70710677, %v15403_v34  ;;  %v6951_v48 = vadd.f32 1.0, %v10832_v47  ;;  %v10834_v33 = vpop.eup %10833 }
 0x698   : > { %16536 = vst [vmem:[#allocation65_spill] sm:$0xff] %v15383_v56  ;;  %v15387_v17 = vpop.f32.mrb[176].mxu0  ;;  %7428 = vmatmul.mubr.f32.gmra.mrb[216].mxu0 %v7071_v62  ;;  %v7075_v49 = vmul.f32 %v6947_v22, %v6563_v5  ;;  %v6567_v37 = vmul.f32 0.5, %v15335_v14  ;;  %v6572_v14 = vmul.f32 0.5, %v15348_v52 }
 0x699   : > { %v15396_v18 = vpop.f32.mrb[177].mxu0  ;;  %7433 = vmatprep.mubr.f32.mxu0 %v7076_v3  ;;  %v7080_v43 = vmul.f32 %v6952_v24, %v6568_v8  ;;  %v6712_v3 = vmul.f32 0.70710677, %v15413_v30 }
 0x69a   : > { %v15389_v29 = vpop.f32.mrb[240].mxu1  ;;  %v7079_v56 = vmul.f32 %v6951_v48, %v6567_v37  ;;  %v6571_v48 = vmul.f32 0.5, %v15355_v46 }
 0x69b   : > { %16537 = vst [vmem:[#allocation64_spill] sm:$0xff] %v15389_v29  ;;  %v15398_v40 = vpop.f32.mrb[241].mxu1 }
 0x69c   : > { %16538 = vst [vmem:[#allocation67_spill] sm:$0xff] %v15398_v40  ;;  %v15406_v29 = vpop.f32.mrb[178].mxu0  ;;  %v6708_v40 = vmul.f32 0.70710677, %v15394_v10  ;;  %7434 = vmatmul.mubr.f32.gmra.mrb[218].mxu0 %v7075_v49  ;;  %v6956_v49 = vadd.f32 1.0, %v10834_v33 }
 0x69d   : > { %v15415_v42 = vpop.f32.mrb[179].mxu0  ;;  %7439 = vmatprep.mubr.f32.mxu0 %v7080_v43 }
 0x69e   : > { %v15408_v15 = vpop.f32.mrb[242].mxu1  ;;  %10841 = verf.f32 %v6708_v40  ;;  %v15445_v40 = vadd.f32 %v15313_v13, %v15042_v7  ;;  %v7084_v37 = vmul.f32 %v6956_v49, %v6572_v14 }
 0x69f   : > { %16539 = vst [vmem:[#allocation66_spill] sm:$0xff] %v15408_v15  ;;  %v15417_v62 = vpop.f32.mrb[243].mxu1  ;;  %v15425_v15 = vadd.f32 %v15289_v12, %v15045_v32  ;;  %10843 = verf.f32 %v6707_v11 }
 0x6a0   : > { %16540 = vst [vmem:[#allocation69_spill] sm:$0xff] %v15417_v62  ;;  %v15421_v26 = vpop.f32.mrb[180].mxu0  ;;  %v10836_v62 = vpop.eup %10835  ;;  %10845 = verf.f32 %v6712_v3  ;;  %7440 = vmatmul.mubr.f32.gmra.mrb[220].mxu0 %v7079_v56  ;;  %v6576_v56 = vmul.f32 0.5, %v15367_v1  ;;  %v6575_v1 = vmul.f32 0.5, %v15381_v44 }
 0x6a1   : > { %v15429_v5 = vpop.f32.mrb[181].mxu0  ;;  %v10838_v12 = vpop.eup %10837  ;;  %v6955_v24 = vadd.f32 1.0, %v10836_v62  ;;  %v6711_v8 = vmul.f32 0.70710677, %v15425_v15  ;;  %v15452_v62 = vadd.f32 %v15304_v0, %v15045_v32  ;;  %7445 = vmatprep.mubr.f32.mxu0 %v7084_v37 }
 0x6a2   : > { %v15427_v22 = vpop.f32.mrb[244].mxu1  ;;  %v10840_v33 = vpop.eup %10839  ;;  %v6960_v43 = vadd.f32 1.0, %v10838_v12  ;;  %v15467_v12 = vadd.f32 %v15329_v41, %v15042_v7  ;;  %v15482_v41 = vadd.f32 %v15343_v53, %v15042_v7  ;;  %v6579_v53 = vmul.f32 0.5, %v15403_v34 }
 0x6a3   : > { %16541 = vst [vmem:[#allocation68_spill] sm:$0xff] %v15427_v22  ;;  %v15433_v47 = vpop.f32.mrb[245].mxu1  ;;  %10847 = verf.f32 %v6711_v8  ;;  %v7083_v52 = vmul.f32 %v6955_v24, %v6571_v48  ;;  %v6959_v0 = vadd.f32 1.0, %v10840_v33  ;;  %v15474_v48 = vadd.f32 %v15323_v39, %v15045_v32 }
 0x6a4   : > { %16542 = vst [vmem:[#allocation71_spill] sm:$0xff] %v15433_v47  ;;  %v15435_v57 = vpop.f32.mrb[182].mxu0  ;;  %v6715_v47 = vmul.f32 0.70710677, %v15452_v62  ;;  %v7088_v24 = vmul.f32 %v6960_v43, %v6576_v56  ;;  %v6720_v39 = vmul.f32 0.70710677, %v15467_v12 }
 0x6a5   : > { %v15440_v45 = vpop.f32.mrb[183].mxu0  ;;  %7446 = vmatmul.mubr.f32.gmra.mrb[222].mxu0 %v7083_v52  ;;  %v7087_v43 = vmul.f32 %v6959_v0, %v6575_v1  ;;  %v15498_v0 = vadd.f32 %v15339_v16, %v15045_v32  ;;  %v6724_v1 = vmul.f32 0.70710677, %v15482_v41 }
 0x6a6   : > { %v15438_v22 = vpop.f32.mrb[246].mxu1  ;;  %7451 = vmatprep.mubr.f32.mxu0 %v7088_v24 }
 0x6a7   : > { %16543 = vst [vmem:[#allocation70_spill] sm:$0xff] %v15438_v22  ;;  %v15447_v11 = vpop.f32.mrb[247].mxu1 }
 0x6a8   : > { %16544 = vst [vmem:[#allocation73_spill] sm:$0xff] %v15447_v11  ;;  %v15454_v22 = vpop.f32.mrb[184].mxu0  ;;  %v6716_v11 = vmul.f32 0.70710677, %v15445_v40  ;;  %v10842_v49 = vpop.eup %10841 }
 0x6a9   : > { %v15458_v13 = vpop.f32.mrb[185].mxu0  ;;  %v10844_v14 = vpop.eup %10843  ;;  %v6964_v52 = vadd.f32 1.0, %v10842_v49  ;;  %7452 = vmatmul.mubr.f32.gmra.mrb[224].mxu0 %v7087_v43 }
 0x6aa   : > { %v15456_v3 = vpop.f32.mrb[248].mxu1  ;;  %10849 = verf.f32 %v6716_v11  ;;  %v10846_v44 = vpop.eup %10845  ;;  %v6719_v11 = vmul.f32 0.70710677, %v15474_v48 }
 0x6ab   : > { %16545 = vst [vmem:[#allocation72_spill] sm:$0xff] %v15456_v3  ;;  %v15462_v46 = vpop.f32.mrb[249].mxu1  ;;  %10851 = verf.f32 %v6715_v47  ;;  %v6963_v3 = vadd.f32 1.0, %v10844_v14  ;;  %v6968_v14 = vadd.f32 1.0, %v10846_v44  ;;  %v6723_v44 = vmul.f32 0.70710677, %v15498_v0 }
 0x6ac   : > { %16546 = vst [vmem:[#allocation75_spill] sm:$0xff] %v15462_v46  ;;  %v15469_v8 = vpop.f32.mrb[186].mxu0  ;;  %10853 = verf.f32 %v6720_v39 }
 0x6ad   : > { %v15478_v33 = vpop.f32.mrb[187].mxu0  ;;  %v10848_v24 = vpop.eup %10847  ;;  %10855 = verf.f32 %v6719_v11  ;;  %v15520_v11 = vadd.f32 %v15357_v36, %v15045_v32  ;;  %v6588_v36 = vmul.f32 0.5, %v15445_v40  ;;  %v7256_v40 = vld [vmem:[#allocation14 + $0x348] sm:$0xff] }
 0x6ae   : > { %v15476_v37 = vpop.f32.mrb[250].mxu1  ;;  %v6967_v16 = vadd.f32 1.0, %v10848_v24  ;;  %10857 = verf.f32 %v6724_v1 }
 0x6af   : > { %16547 = vst [vmem:[#allocation74_spill] sm:$0xff] %v15476_v37  ;;  %v15484_v56 = vpop.f32.mrb[251].mxu1  ;;  %v6580_v37 = vmul.f32 0.5, %v15394_v10  ;;  %v7091_v10 = vmul.f32 %v6963_v3, %v6579_v53  ;;  %v7253_v3 = vld [vmem:[#allocation14 + $0x330] sm:$0xff]  ;;  %v6583_v53 = vmul.f32 0.5, %v15425_v15  ;;  %10859 = verf.f32 %v6723_v44 }
 0x6b0   : > { %16548 = vst [vmem:[#allocation77_spill] sm:$0xff] %v15484_v56  ;;  %v15487_v46 = vpop.f32.mrb[188].mxu0  ;;  %v6587_v44 = vmul.f32 0.5, %v15452_v62  ;;  %v15539_v62 = vadd.f32 %v15396_v18, %v15042_v7 }
 0x6b1   : > { %v15493_v47 = vpop.f32.mrb[189].mxu0  ;;  %v7092_v56 = vmul.f32 %v6964_v52, %v6580_v37  ;;  %v7251_v52 = vld [vmem:[#allocation14 + $0x320] sm:$0xff]  ;;  %v7095_v24 = vmul.f32 %v6967_v16, %v6583_v53 }
 0x6b2   : > { %v15491_v49 = vpop.f32.mrb[252].mxu1 }
 0x6b3   : > { %16549 = vst [vmem:[#allocation76_spill] sm:$0xff] %v15491_v49  ;;  %v15501_v20 = vpop.f32.mrb[253].mxu1  ;;  %v6584_v49 = vmul.f32 0.5, %v15413_v30  ;;  %7457 = vmatprep.mubr.f32.mxu0 %v7092_v56  ;;  %v15516_v30 = vadd.f32 %v15362_v4, %v15042_v7  ;;  %v15529_v4 = vadd.f32 %v15373_v61, %v15045_v32 }
 0x6b4   : > { %v15503_v43 = vpop.f32.mrb[190].mxu0  ;;  %7458 = vmatmul.mubr.f32.gmra.mrb[226].mxu0 %v7091_v10  ;;  %v10850_v39 = vpop.eup %10849  ;;  %v9080_v10 = vpack.c.bf16 %v7253_v3, %v7251_v52 }
 0x6b5   : > { %v15508_v58 = vpop.f32.mrb[191].mxu0  ;;  %v7096_v37 = vmul.f32 %v6968_v14, %v6584_v49  ;;  %v10852_v56 = vpop.eup %10851  ;;  %v6972_v1 = vadd.f32 1.0, %v10850_v39  ;;  %v15524_v49 = vadd.f32 %v15377_v59, %v15042_v7  ;;  %v6728_v15 = vmul.f32 0.70710677, %v15516_v30 }
 0x6b6   : > { %v15506_v34 = vpop.f32.mrb[254].mxu1  ;;  %v6971_v14 = vadd.f32 1.0, %v10852_v56  ;;  %9081 = vmatpush1.bf16.msra.mxu0 %v9080_v10  ;;  %v10854_v16 = vpop.eup %10853  ;;  %v6731_v39 = vmul.f32 0.70710677, %v15529_v4  ;;  %v6592_v10 = vmul.f32 0.5, %v15467_v12  ;;  %v6596_v12 = vmul.f32 0.5, %v15482_v41 }
 0x6b7   : > { %16550 = vst [vmem:[#allocation79_spill] sm:$0xff] %v15506_v34  ;;  %v15511_v23 = vpop.f32.mrb[255].mxu1  ;;  %7463 = vmatprep.mubr.f32.mxu0 %v7096_v37  ;;  %v6727_v37 = vmul.f32 0.70710677, %v15520_v11  ;;  %v10856_v52 = vpop.eup %10855  ;;  %v6732_v59 = vmul.f32 0.70710677, %v15524_v49  ;;  %v7100_v3 = vmul.f32 %v6972_v1, %v6588_v36  ;;  %10861 = verf.f32 %v6728_v15 }
 0x6b8   : > { %16551 = vst [vmem:[#allocation78_spill] sm:$0xff] %v15511_v23  ;;  %7464 = vmatmul.mubr.f32.gmra.mrb[228].mxu0 %v7095_v24  ;;  %v7099_v53 = vmul.f32 %v6971_v14, %v6587_v44  ;;  %v10858_v56 = vpop.eup %10857  ;;  %v6976_v61 = vadd.f32 1.0, %v10854_v16  ;;  %v6975_v24 = vadd.f32 1.0, %v10856_v52  ;;  %v7258_v34 = vld [vmem:[#allocation14 + $0x358] sm:$0xff]  ;;  %v7255_v1 = vld [vmem:[#allocation14 + $0x340] sm:$0xff]  ;;  %v7257_v15 = vld [vmem:[#allocation14 + $0x350] sm:$0xff]  ;;  %v15550_v23 = vadd.f32 %v15415_v42, %v15042_v7 }
 0x6b9   : > { %10863 = verf.f32 %v6727_v37  ;;  %7469 = vmatprep.mubr.f32.mxu0 %v7100_v3  ;;  %v10860_v36 = vpop.eup %10859  ;;  %v6591_v14 = vmul.f32 0.5, %v15474_v48  ;;  %v6980_v44 = vadd.f32 1.0, %v10858_v56  ;;  %v15544_v37 = vadd.f32 %v15387_v17, %v15045_v32 }
 0x6ba   : > { %10865 = verf.f32 %v6732_v59  ;;  %v7104_v16 = vmul.f32 %v6976_v61, %v6592_v10  ;;  %v9082_v59 = vpack.c.bf16 %v7258_v34, %v7256_v40  ;;  %v9084_v3 = vpack.c.bf16 %v7257_v15, %v7255_v1  ;;  %v7260_v15 = vld [vmem:[#allocation14 + $0x368] sm:$0xff] }
 0x6bb   : > { %10867 = verf.f32 %v6731_v39  ;;  %v7103_v52 = vmul.f32 %v6975_v24, %v6591_v14  ;;  %v6979_v18 = vadd.f32 1.0, %v10860_v36  ;;  %v6735_v48 = vmul.f32 0.70710677, %v15544_v37 }
 0x6bc   : > { %7470 = vmatmul.mubr.f32.gmra.mrb[230].mxu0 %v7099_v53  ;;  %v6736_v53 = vmul.f32 0.70710677, %v15539_v62  ;;  %v15555_v17 = vadd.f32 %v15406_v29, %v15045_v32  ;;  %9083 = vmatprep.subr.bf16.mxu0 %v9082_v59  ;;  %v7108_v41 = vmul.f32 %v6980_v44, %v6596_v12  ;;  %v6595_v34 = vmul.f32 0.5, %v15498_v0  ;;  %v7262_v44 = vld [vmem:[#allocation14 + $0x378] sm:$0xff]  ;;  %v7261_v12 = vld [vmem:[#allocation14 + $0x370] sm:$0xff] }
 0x6bd   : > { %7475 = vmatprep.mubr.f32.mxu0 %v7104_v16  ;;  %9085 = vmatpush1.bf16.msra.mxu0 %v9084_v3  ;;  %v6740_v42 = vmul.f32 0.70710677, %v15550_v23  ;;  %v15562_v29 = vadd.f32 %v15429_v5, %v15042_v7  ;;  %v6599_v36 = vmul.f32 0.5, %v15520_v11  ;;  %v6600_v14 = vmul.f32 0.5, %v15516_v30  ;;  %v7259_v16 = vld [vmem:[#allocation14 + $0x360] sm:$0xff] }
 0x6be   : > { %10869 = verf.f32 %v6736_v53  ;;  %v7107_v61 = vmul.f32 %v6979_v18, %v6595_v34  ;;  %v6739_v24 = vmul.f32 0.70710677, %v15555_v17  ;;  %v15569_v5 = vadd.f32 %v15421_v26, %v15045_v32 }
 0x6bf   : > { %10871 = verf.f32 %v6735_v48  ;;  %v6744_v18 = vmul.f32 0.70710677, %v15562_v29  ;;  %v15574_v11 = vadd.f32 %v15440_v45, %v15042_v7  ;;  %v15578_v53 = vadd.f32 %v15435_v57, %v15045_v32 }
 0x6c0   : > { %7476 = vmatmul.mubr.f32.gmra.mrb[232].mxu0 %v7103_v52  ;;  %10873 = verf.f32 %v6740_v42  ;;  %v6604_v52 = vmul.f32 0.5, %v15524_v49  ;;  %v9086_v49 = vpack.c.bf16 %v7262_v44, %v7260_v15  ;;  %v15582_v26 = vadd.f32 %v15458_v13, %v15042_v7 }
 0x6c1   : > { %v10862_v39 = vpop.eup %10861  ;;  %7481 = vmatprep.mubr.f32.mxu0 %v7108_v41  ;;  %10875 = verf.f32 %v6739_v24  ;;  %v9088_v41 = vpack.c.bf16 %v7261_v12, %v7259_v16  ;;  %v6603_v34 = vmul.f32 0.5, %v15529_v4  ;;  %v6748_v42 = vmul.f32 0.70710677, %v15574_v11  ;;  %v7266_v12 = vld [vmem:[#allocation14 + $0x398] sm:$0xff] }
 0x6c2   : > { %v6984_v10 = vadd.f32 1.0, %v10862_v39  ;;  %v6743_v39 = vmul.f32 0.70710677, %v15569_v5  ;;  %9087 = vmatprep.subr.bf16.mxu0 %v9086_v49  ;;  %10877 = verf.f32 %v6744_v18  ;;  %v6752_v13 = vmul.f32 0.70710677, %v15582_v26 }
 0x6c3   : > { %v10864_v56 = vpop.eup %10863  ;;  %9089 = vmatpush1.bf16.msra.mxu0 %v9088_v41  ;;  %v15591_v4 = vadd.f32 %v15454_v22, %v15045_v32  ;;  %v6607_v44 = vmul.f32 0.5, %v15544_v37  ;;  %v15601_v22 = vadd.f32 %v15469_v8, %v15045_v32  ;;  %v6612_v41 = vmul.f32 0.5, %v15550_v23 }
 0x6c4   : > { %v10866_v40 = vpop.eup %10865  ;;  %7482 = vmatmul.mubr.f32.gmra.mrb[234].mxu0 %v7107_v61  ;;  %v6983_v0 = vadd.f32 1.0, %v10864_v56  ;;  %v7112_v30 = vmul.f32 %v6984_v10, %v6600_v14  ;;  %v6747_v61 = vmul.f32 0.70710677, %v15578_v53  ;;  %10879 = verf.f32 %v6743_v39  ;;  %v7264_v14 = vld [vmem:[#allocation14 + $0x388] sm:$0xff] }
 0x6c5   : > { %v10868_v1 = vpop.eup %10867  ;;  %v6988_v59 = vadd.f32 1.0, %v10866_v40  ;;  %v15595_v10 = vadd.f32 %v15478_v33, %v15042_v7  ;;  %10881 = verf.f32 %v6748_v42  ;;  %v7263_v33 = vld [vmem:[#allocation14 + $0x380] sm:$0xff]  ;;  %v9090_v8 = vpack.c.bf16 %v7266_v12, %v7264_v14 }
 0x6c6   : > { %v6987_v3 = vadd.f32 1.0, %v10868_v1  ;;  %v7111_v48 = vmul.f32 %v6983_v0, %v6599_v36  ;;  %7487 = vmatprep.mubr.f32.mxu0 %v7112_v30  ;;  %v6608_v36 = vmul.f32 0.5, %v15539_v62  ;;  %10883 = verf.f32 %v6747_v61  ;;  %v11169_v30 = vld [vmem:[#allocation13] sm:$0xf] }
 0x6c7   : > { %v7116_v45 = vmul.f32 %v6988_v59, %v6604_v52  ;;  %10885 = verf.f32 %v6752_v13  ;;  %v6756_v16 = vmul.f32 0.70710677, %v15595_v10  ;;  %v7265_v52 = vld [vmem:[#allocation14 + $0x390] sm:$0xff]  ;;  %v16552_v62 = vld [vmem:[#allocation41_spill] sm:$0xff]  ;;  %v6611_v39 = vmul.f32 0.5, %v15555_v17  ;;  %9091 = vmatprep.subr.bf16.mxu0 %v9090_v8 }
 0x6c8   : > { %7488 = vmatmul.mubr.f32.gmra.mrb[236].mxu0 %v7111_v48  ;;  %v10870_v56 = vpop.eup %10869  ;;  %v7115_v24 = vmul.f32 %v6987_v3, %v6603_v34  ;;  %v6751_v3 = vmul.f32 0.70710677, %v15591_v4  ;;  %v15606_v48 = vrot.slane %v11169_v30, %v16552_v62  ;;  %v9092_v34 = vpack.c.bf16 %v7265_v52, %v7263_v33  ;;  %v7270_v33 = vld [vmem:[#allocation14 + $0x3b8] sm:$0xff]  ;;  %v7267_v52 = vld [vmem:[#allocation14 + $0x3a0] sm:$0xff] }
 0x6c9   : > { %v10872_v57 = vpop.eup %10871  ;;  %7493 = vmatprep.mubr.f32.mxu0 %v7116_v45  ;;  %v6992_v40 = vadd.f32 1.0, %v10870_v56  ;;  %v6755_v45 = vmul.f32 0.70710677, %v15601_v22  ;;  %10887 = verf.f32 %v6756_v16  ;;  %v15613_v56 = vadd.f32 %v15493_v47, %v15042_v7 }
 0x6ca   : > { %v10874_v1 = vpop.eup %10873  ;;  %v6991_v0 = vadd.f32 1.0, %v10872_v57  ;;  %10889 = verf.f32 %v6751_v3  ;;  %v15617_v57 = vadd.f32 %v15487_v46, %v15045_v32  ;;  %v15621_v61 = vadd.f32 %v15049_v2, %v15606_v48  ;;  %9093 = vmatpush1.bf16.msra.mxu0 %v9092_v34  ;;  %v7271_v34 = vld [vmem:[#allocation14 + $0x3c0] sm:$0xff] }
 0x6cb   : > { %v10876_v15 = vpop.eup %10875  ;;  %v6996_v59 = vadd.f32 1.0, %v10874_v1  ;;  %v7120_v18 = vmul.f32 %v6992_v40, %v6608_v36  ;;  %v6760_v17 = vmul.f32 0.70710677, %v15613_v56  ;;  %v15625_v47 = vrot.slane %v11169_v30, %v13390_v25 }
 0x6cc   : > { %7494 = vmatmul.mubr.f32.gmra.mrb[238].mxu0 %v7115_v24  ;;  %v6995_v49 = vadd.f32 1.0, %v10876_v15  ;;  %v7119_v37 = vmul.f32 %v6991_v0, %v6607_v44  ;;  %v10878_v42 = vpop.eup %10877  ;;  %10891 = verf.f32 %v6755_v45  ;;  %v6759_v0 = vmul.f32 0.70710677, %v15617_v57  ;;  %v7268_v44 = vld [vmem:[#allocation14 + $0x3a8] sm:$0xff] }
 0x6cd   : > { %7499 = vmatprep.mubr.f32.mxu0 %v7120_v18  ;;  %v7124_v23 = vmul.f32 %v6996_v59, %v6612_v41  ;;  %v7000_v1 = vadd.f32 1.0, %v10878_v42  ;;  %10893 = verf.f32 %v6760_v17  ;;  %v15630_v2 = vadd.f32 %v15503_v43, %v15045_v32  ;;  %v7276_v17 = vld [vmem:[#allocation14 + $0x3e8] sm:$0xff] }
 0x6ce   : > { %v7123_v24 = vmul.f32 %v6995_v49, %v6611_v39  ;;  %v10880_v13 = vpop.eup %10879  ;;  %v15634_v15 = vadd.f32 %v15508_v58, %v15042_v7  ;;  %v6642_v25 = vmul.f32 0.70710677, %v15621_v61  ;;  %v15639_v16 = vadd.f32 %v15047_v60, %v15625_v47  ;;  %v7269_v7 = vld [vmem:[#allocation14 + $0x3b0] sm:$0xff]  ;;  %v7274_v49 = vld [vmem:[#allocation14 + $0x3d8] sm:$0xff] }
 0x6cf   : > { %v10882_v40 = vpop.eup %10881  ;;  %v6999_v14 = vadd.f32 1.0, %v10880_v13  ;;  %v15643_v12 = vadd.f32 %v15055_v50, %v15606_v48  ;;  %v6616_v32 = vmul.f32 0.5, %v15562_v29  ;;  %v6615_v58 = vmul.f32 0.5, %v15569_v5  ;;  %v7272_v50 = vld [vmem:[#allocation14 + $0x3c8] sm:$0xff]  ;;  %v7273_v39 = vld [vmem:[#allocation14 + $0x3d0] sm:$0xff] }
 0x6d0   : > { %7500 = vmatmul.mubr.f32.gmra.mrb[240].mxu0 %v7119_v37  ;;  %v10884_v46 = vpop.eup %10883  ;;  %v7004_v43 = vadd.f32 1.0, %v10882_v40  ;;  %v6620_v3 = vmul.f32 0.5, %v15574_v11  ;;  %v6764_v18 = vmul.f32 0.70710677, %v15634_v15  ;;  %10895 = verf.f32 %v6759_v0 }
 0x6d1   : > { %7505 = vmatprep.mubr.f32.mxu0 %v7124_v23  ;;  %v10886_v36 = vpop.eup %10885  ;;  %v7003_v59 = vadd.f32 1.0, %v10884_v46  ;;  %v6763_v60 = vmul.f32 0.70710677, %v15630_v2  ;;  %v7128_v62 = vmul.f32 %v7000_v1, %v6616_v32  ;;  %v7127_v29 = vmul.f32 %v6999_v14, %v6615_v58  ;;  %v7275_v32 = vld [vmem:[#allocation14 + $0x3e0] sm:$0xff] }
 0x6d2   : > { %v7008_v30 = vadd.f32 1.0, %v10886_v36  ;;  %10897 = verf.f32 %v6764_v18  ;;  %v9094_v41 = vpack.c.bf16 %v7270_v33, %v7268_v44  ;;  %v9096_v8 = vpack.c.bf16 %v7269_v7, %v7267_v52 }
 0x6d3   : > { %v10888_v37 = vpop.eup %10887  ;;  %v6641_v45 = vmul.f32 0.70710677, %v15639_v16  ;;  %v15653_v11 = vadd.f32 %v15053_v28, %v15625_v47  ;;  %v6624_v42 = vmul.f32 0.5, %v15582_v26  ;;  %v7132_v23 = vmul.f32 %v7004_v43, %v6620_v3 }
 0x6d4   : > { %7506 = vmatmul.mubr.f32.gmra.mrb[242].mxu0 %v7123_v24  ;;  %v10890_v5 = vpop.eup %10889  ;;  %v7278_v24 = vld [vmem:[#allocation14 + $0x3f8] sm:$0xff]  ;;  %10899 = verf.f32 %v6642_v25  ;;  %v6646_v13 = vmul.f32 0.70710677, %v15643_v12  ;;  %v6619_v40 = vmul.f32 0.5, %v15578_v53  ;;  %9095 = vmatprep.subr.bf16.mxu0 %v9094_v41  ;;  %v9098_v1 = vpack.c.bf16 %v7274_v49, %v7272_v50  ;;  %v7277_v53 = vld [vmem:[#allocation14 + $0x3f0] sm:$0xff] }
 0x6d5   : > { %7511 = vmatprep.mubr.f32.mxu0 %v7128_v62  ;;  %v7012_v46 = vadd.f32 1.0, %v10888_v37  ;;  %10901 = verf.f32 %v6763_v60  ;;  %9097 = vmatpush1.bf16.msra.mxu0 %v9096_v8  ;;  %v7136_v28 = vmul.f32 %v7008_v30, %v6624_v42  ;;  %v9100_v0 = vpack.c.bf16 %v7273_v39, %v7271_v34 }
 0x6d6   : > { %v10892_v36 = vpop.eup %10891  ;;  %v15660_v26 = vadd.f32 %v15062_v27, %v15606_v48  ;;  %v7007_v14 = vadd.f32 1.0, %v10890_v5  ;;  %v7131_v25 = vmul.f32 %v7003_v59, %v6619_v40  ;;  %9099 = vmatprep.subr.bf16.mxu0 %v9098_v1  ;;  %v9102_v44 = vpack.c.bf16 %v7278_v24, %v7276_v17 }
 0x6d7   : > { %v10894_v43 = vpop.eup %10893  ;;  %v6628_v33 = vmul.f32 0.5, %v15595_v10  ;;  %10903 = verf.f32 %v6641_v45  ;;  %v6645_v52 = vmul.f32 0.70710677, %v15653_v11  ;;  %v15666_v7 = vadd.f32 %v15057_v51, %v15625_v47 }
 0x6d8   : > { %7512 = vmatmul.mubr.f32.gmra.mrb[244].mxu0 %v7127_v29  ;;  %v6623_v58 = vmul.f32 0.5, %v15591_v4  ;;  %v15671_v27 = vadd.f32 %v15069_v38, %v15606_v48  ;;  %v7016_v59 = vadd.f32 1.0, %v10894_v43  ;;  %v9104_v18 = vpack.c.bf16 %v7277_v53, %v7275_v32 }
 0x6d9   : > { %7517 = vmatprep.mubr.f32.mxu0 %v7132_v23  ;;  %9101 = vmatpush1.bf16.msra.mxu0 %v9100_v0  ;;  %v7140_v3 = vmul.f32 %v7012_v46, %v6628_v33  ;;  %10905 = verf.f32 %v6646_v13  ;;  %v6650_v10 = vmul.f32 0.70710677, %v15660_v26  ;;  %v7011_v30 = vadd.f32 1.0, %v10892_v36 }
 0x6da   : > { %v7135_v60 = vmul.f32 %v7007_v14, %v6623_v58  ;;  %9103 = vmatprep.subr.bf16.mxu0 %v9102_v44  ;;  %v10896_v51 = vpop.eup %10895  ;;  %v6632_v62 = vmul.f32 0.5, %v15613_v56  ;;  %v6649_v50 = vmul.f32 0.70710677, %v15666_v7  ;;  %v15678_v38 = vadd.f32 %v15067_v54, %v15625_v47 }
 0x6db   : > { %v6627_v49 = vmul.f32 0.5, %v15601_v22  ;;  %10907 = verf.f32 %v6645_v52  ;;  %v6654_v37 = vmul.f32 0.70710677, %v15671_v27  ;;  %v15684_v56 = vadd.f32 %v15081_v35, %v15606_v48 }
 0x6dc   : > { %7518 = vmatmul.mubr.f32.gmra.mrb[246].mxu0 %v7131_v25  ;;  %v10898_v4 = vpop.eup %10897  ;;  %v7144_v41 = vmul.f32 %v7016_v59, %v6632_v62  ;;  %10909 = verf.f32 %v6650_v10  ;;  %v7015_v34 = vadd.f32 1.0, %v10896_v51  ;;  %v6636_v5 = vmul.f32 0.5, %v15634_v15  ;;  %v16553_v62 = vld [vmem:[#allocation46_spill] sm:$0xff] }
 0x6dd   : > { %7523 = vmatprep.mubr.f32.mxu0 %v7136_v28  ;;  %v7020_v29 = vadd.f32 1.0, %v10898_v4  ;;  %9105 = vmatpush1.bf16.msra.mxu0 %v9104_v18  ;;  %v7139_v39 = vmul.f32 %v7011_v30, %v6627_v49  ;;  %10911 = verf.f32 %v6649_v50  ;;  %v6653_v22 = vmul.f32 0.70710677, %v15678_v38 }
 0x6de   : > { %v10900_v8 = vpop.eup %10899  ;;  %v15690_v45 = vadd.f32 %v15079_v19, %v15625_v47  ;;  %v6631_v42 = vmul.f32 0.5, %v15617_v57  ;;  %10913 = verf.f32 %v6654_v37  ;;  %v6658_v17 = vmul.f32 0.70710677, %v15684_v56 }
 0x6df   : > { %v10902_v54 = vpop.eup %10901  ;;  %v7148_v23 = vmul.f32 %v7020_v29, %v6636_v5  ;;  %v15696_v24 = vadd.f32 %v15093_v31, %v15606_v48  ;;  %v6898_v40 = vadd.f32 1.0, %v10900_v8  ;;  %10915 = verf.f32 %v6653_v22  ;;  %v16555_v5 = vld [vmem:[#allocation49_spill] sm:$0xff] }
 0x6e0   : > { %7524 = vmatmul.mubr.f32.gmra.mrb[248].mxu0 %v7135_v60  ;;  %v7019_v15 = vadd.f32 1.0, %v10902_v54  ;;  %v7143_v13 = vmul.f32 %v7015_v34, %v6631_v42  ;;  %v6657_v19 = vmul.f32 0.70710677, %v15690_v45  ;;  %v15701_v57 = vadd.f32 %v15088_v55, %v15625_v47 }
 0x6e1   : > { %7529 = vmatprep.mubr.f32.mxu0 %v7140_v3  ;;  %v10904_v35 = vpop.eup %10903  ;;  %v6635_v46 = vmul.f32 0.5, %v15630_v2  ;;  %v6514_v0 = vmul.f32 0.5, %v15621_v61  ;;  %10917 = verf.f32 %v6658_v17  ;;  %v6662_v31 = vmul.f32 0.70710677, %v15696_v24 }
 0x6e2   : > { %v6897_v28 = vadd.f32 1.0, %v10904_v35  ;;  %v15708_v36 = vadd.f32 %v15107_v63, %v15606_v48  ;;  %v6513_v44 = vmul.f32 0.5, %v15639_v16  ;;  %10919 = verf.f32 %v6657_v19 }
 0x6e3   : > { %v10906_v1 = vpop.eup %10905  ;;  %v7147_v14 = vmul.f32 %v7019_v15, %v6635_v46  ;;  %v7026_v32 = vmul.f32 %v6898_v40, %v6514_v0  ;;  %v6661_v2 = vmul.f32 0.70710677, %v15701_v57  ;;  %v15714_v61 = vadd.f32 %v15101_v21, %v15625_v47 }
 0x6e4   : > { %7530 = vmatmul.mubr.f32.gmra.mrb[250].mxu0 %v7139_v39  ;;  %v6902_v55 = vadd.f32 1.0, %v10906_v1  ;;  %v7025_v43 = vmul.f32 %v6897_v28, %v6513_v44  ;;  %v6518_v33 = vmul.f32 0.5, %v15643_v12  ;;  %10921 = verf.f32 %v6662_v31  ;;  %v16557_v28 = vld [vmem:[#allocation51_spill] sm:$0xff] }
 0x6e5   : > { %7535 = vmatprep.mubr.f32.mxu0 %v7144_v41  ;;  %v10908_v25 = vpop.eup %10907  ;;  %v6666_v16 = vmul.f32 0.70710677, %v15708_v36  ;;  %v15720_v58 = vadd.f32 %v15117_v6, %v15606_v48  ;;  %v6517_v21 = vmul.f32 0.5, %v15653_v11  ;;  %10923 = verf.f32 %v6661_v2 }
 0x6e6   : > { %v10910_v53 = vpop.eup %10909  ;;  %v6901_v52 = vadd.f32 1.0, %v10908_v25  ;;  %v7030_v18 = vmul.f32 %v6902_v55, %v6518_v33  ;;  %v6665_v10 = vmul.f32 0.70710677, %v15714_v61  ;;  %v15726_v12 = vadd.f32 %v15112_v9, %v15625_v47 }
 0x6e7   : > { %v10912_v63 = vpop.eup %10911  ;;  %v6906_v3 = vadd.f32 1.0, %v10910_v53  ;;  %v6522_v60 = vmul.f32 0.5, %v15660_v26  ;;  %10925 = verf.f32 %v6666_v16  ;;  %v6670_v6 = vmul.f32 0.70710677, %v15720_v58  ;;  %v16554_v26 = vld [vmem:[#allocation43_spill] sm:$0xff] }
 0x6e8   : > { %7536 = vmatmul.mubr.f32.gmra.mrb[252].mxu0 %v7143_v13  ;;  %v10914_v59 = vpop.eup %10913  ;;  %v6905_v30 = vadd.f32 1.0, %v10912_v63  ;;  %v15732_v4 = vadd.f32 %v16553_v62, %v15606_v48  ;;  %v7029_v11 = vmul.f32 %v6901_v52, %v6517_v21  ;;  %v6521_v9 = vmul.f32 0.5, %v15666_v7  ;;  %v16559_v63 = vld [vmem:[#allocation53_spill] sm:$0xff]  ;;  %v16561_v62 = vld [vmem:[#allocation55_spill] sm:$0xff] }
 0x6e9   : > { %7541 = vmatprep.mubr.f32.mxu0 %v7148_v23  ;;  %v10916_v51 = vpop.eup %10915  ;;  %v6910_v50 = vadd.f32 1.0, %v10914_v59  ;;  %v7034_v49 = vmul.f32 %v6906_v3, %v6522_v60  ;;  %10927 = verf.f32 %v6665_v10  ;;  %v6669_v29 = vmul.f32 0.70710677, %v15726_v12 }
 0x6ea   : > { %v15738_v41 = vadd.f32 %v16554_v26, %v15625_v47  ;;  %v6909_v8 = vadd.f32 1.0, %v10916_v51  ;;  %v6526_v34 = vmul.f32 0.5, %v15671_v27  ;;  %10929 = verf.f32 %v6670_v6  ;;  %v16556_v27 = vld [vmem:[#allocation44_spill] sm:$0xff] }
 0x6eb   : > { %v10918_v37 = vpop.eup %10917  ;;  %v6674_v54 = vmul.f32 0.70710677, %v15732_v4  ;;  %v15744_v22 = vadd.f32 %v16555_v5, %v15606_v48  ;;  %v7033_v7 = vmul.f32 %v6905_v30, %v6521_v9  ;;  %v6525_v17 = vmul.f32 0.5, %v15678_v38  ;;  %v16563_v5 = vld [vmem:[#allocation57_spill] sm:$0xff] }
 0x6ec   : > { %7542 = vmatmul.mubr.f32.gmra.mrb[254].mxu0 %v7147_v14  ;;  %v10920_v39 = vpop.eup %10919  ;;  %v6914_v42 = vadd.f32 1.0, %v10918_v37  ;;  %v7038_v23 = vmul.f32 %v6910_v50, %v6526_v34  ;;  %10931 = verf.f32 %v6669_v29  ;;  %v6673_v15 = vmul.f32 0.70710677, %v15738_v41 }
 0x6ed   : > { %7612 = vmatprep.mubr.f32.mxu0 %v7026_v32  ;;  %v15750_v13 = vadd.f32 %v16556_v27, %v15625_v47  ;;  %v6913_v40 = vadd.f32 1.0, %v10920_v39  ;;  %v6530_v1 = vmul.f32 0.5, %v15684_v56  ;;  %10933 = verf.f32 %v6674_v54  ;;  %v16558_v56 = vld [vmem:[#allocation48_spill] sm:$0xff] }
 0x6ee   : > { %v10922_v35 = vpop.eup %10921  ;;  %v6678_v46 = vmul.f32 0.70710677, %v15744_v22  ;;  %v15756_v0 = vadd.f32 %v16557_v28, %v15606_v48  ;;  %v7037_v38 = vmul.f32 %v6909_v8, %v6525_v17  ;;  %v6529_v44 = vmul.f32 0.5, %v15690_v45  ;;  %v16565_v28 = vld [vmem:[#allocation31_spill] sm:$0xff] }
 0x6ef   : > { %v10924_v19 = vpop.eup %10923  ;;  %v6918_v31 = vadd.f32 1.0, %v10922_v35  ;;  %v7042_v14 = vmul.f32 %v6914_v42, %v6530_v1  ;;  %10935 = verf.f32 %v6673_v15  ;;  %v6677_v55 = vmul.f32 0.70710677, %v15750_v13 }
 0x6f0   : > { %7613 = vmatmul.mubr.f32.vlgmr.msra.gmra.mrb[192].mxu0 %v7025_v43  ;;  %v15762_v32 = vadd.f32 %v16558_v56, %v15625_v47  ;;  %v6917_v53 = vadd.f32 1.0, %v10924_v19  ;;  %v6534_v2 = vmul.f32 0.5, %v15696_v24  ;;  %10937 = verf.f32 %v6678_v46  ;;  %v16560_v24 = vld [vmem:[#allocation50_spill] sm:$0xff] }
 0x6f1   : > { %7618 = vmatprep.mubr.f32.mxu0 %v7030_v18  ;;  %v10926_v25 = vpop.eup %10925  ;;  %v6682_v33 = vmul.f32 0.70710677, %v15756_v0  ;;  %v15768_v52 = vadd.f32 %v16559_v63, %v15606_v48  ;;  %v7041_v45 = vmul.f32 %v6913_v40, %v6529_v44  ;;  %v6533_v18 = vmul.f32 0.5, %v15701_v57  ;;  %v16567_v63 = vld [vmem:[#allocation33_spill] sm:$0xff] }
 0x6f2   : > { %v6922_v16 = vadd.f32 1.0, %v10926_v25  ;;  %v7046_v59 = vmul.f32 %v6918_v31, %v6534_v2  ;;  %10939 = verf.f32 %v6677_v55  ;;  %v6681_v21 = vmul.f32 0.70710677, %v15762_v32 }
 0x6f3   : > { %v10928_v43 = vpop.eup %10927  ;;  %v15774_v10 = vadd.f32 %v16560_v24, %v15625_v47  ;;  %v6538_v60 = vmul.f32 0.5, %v15708_v36  ;;  %10941 = verf.f32 %v6682_v33  ;;  %v6686_v6 = vmul.f32 0.70710677, %v15768_v52  ;;  %v16562_v36 = vld [vmem:[#allocation52_spill] sm:$0xff] }
 0x6f4   : > { %7619 = vmatmul.mubr.f32.gmra.mrb[194].mxu0 %v7029_v11  ;;  %v10930_v3 = vpop.eup %10929  ;;  %v6921_v30 = vadd.f32 1.0, %v10928_v43  ;;  %v15780_v11 = vadd.f32 %v16561_v62, %v15606_v48  ;;  %v7045_v57 = vmul.f32 %v6917_v53, %v6533_v18  ;;  %v6537_v9 = vmul.f32 0.5, %v15714_v61  ;;  %v16569_v62 = vld [vmem:[#allocation42_spill] sm:$0xff] }
 0x6f5   : > { %7624 = vmatprep.mubr.f32.mxu0 %v7034_v49  ;;  %v6926_v50 = vadd.f32 1.0, %v10930_v3  ;;  %v7050_v49 = vmul.f32 %v6922_v16, %v6538_v60  ;;  %10943 = verf.f32 %v6681_v21  ;;  %v6685_v29 = vmul.f32 0.70710677, %v15774_v10 }
 0x6f6   : > { %v10932_v51 = vpop.eup %10931  ;;  %v15786_v26 = vadd.f32 %v16562_v36, %v15625_v47  ;;  %v6542_v34 = vmul.f32 0.5, %v15720_v58  ;;  %10945 = verf.f32 %v6686_v6  ;;  %v6690_v54 = vmul.f32 0.70710677, %v15780_v11  ;;  %v16564_v58 = vld [vmem:[#allocation54_spill] sm:$0xff] }
 0x6f7   : > { %v10934_v37 = vpop.eup %10933  ;;  %v6925_v8 = vadd.f32 1.0, %v10932_v51  ;;  %v7049_v61 = vmul.f32 %v6921_v30, %v6537_v9  ;;  %v6541_v17 = vmul.f32 0.5, %v15726_v12  ;;  %10947 = verf.f32 %v6685_v29 }
 0x6f8   : > { %7625 = vmatmul.mubr.f32.gmra.mrb[196].mxu0 %v7033_v7  ;;  %v15792_v7 = vadd.f32 %v16563_v5, %v15606_v48  ;;  %v6930_v42 = vadd.f32 1.0, %v10934_v37  ;;  %v6689_v15 = vmul.f32 0.70710677, %v15786_v26  ;;  %v15798_v27 = vadd.f32 %v16564_v58, %v15625_v47  ;;  %v16571_v5 = vld [vmem:[#allocation35_spill] sm:$0xff] }
 0x6f9   : > { %7630 = vmatprep.mubr.f32.mxu0 %v7038_v23  ;;  %v10936_v39 = vpop.eup %10935  ;;  %v7054_v23 = vmul.f32 %v6926_v50, %v6542_v34  ;;  %v6546_v1 = vmul.f32 0.5, %v15732_v4  ;;  %10949 = verf.f32 %v6690_v54  ;;  %v7053_v12 = vmul.f32 %v6925_v8, %v6541_v17  ;;  %v16566_v4 = vld [vmem:[#allocation56_spill] sm:$0xff] }
 0x6fa   : > { %v10938_v35 = vpop.eup %10937  ;;  %v6929_v40 = vadd.f32 1.0, %v10936_v39  ;;  %v6694_v46 = vmul.f32 0.70710677, %v15792_v7  ;;  %v6545_v44 = vmul.f32 0.5, %v15738_v41  ;;  %10951 = verf.f32 %v6689_v15 }
 0x6fb   : > { %v6934_v31 = vadd.f32 1.0, %v10938_v35  ;;  %v6693_v55 = vmul.f32 0.70710677, %v15798_v27  ;;  %v15810_v56 = vadd.f32 %v16566_v4, %v15625_v47  ;;  %v6550_v2 = vmul.f32 0.5, %v15744_v22  ;;  %v16568_v22 = vld [vmem:[#allocation30_spill] sm:$0xff] }
 0x6fc   : > { %7631 = vmatmul.mubr.f32.gmra.mrb[198].mxu0 %v7037_v38  ;;  %v10940_v19 = vpop.eup %10939  ;;  %v15804_v38 = vadd.f32 %v16565_v28, %v15606_v48  ;;  %10953 = verf.f32 %v6694_v46  ;;  %v7057_v41 = vmul.f32 %v6929_v40, %v6545_v44  ;;  %v6549_v18 = vmul.f32 0.5, %v15750_v13  ;;  %v16573_v28 = vld [vmem:[#allocation37_spill] sm:$0xff] }
 0x6fd   : > { %7636 = vmatprep.mubr.f32.mxu0 %v7042_v14  ;;  %v7058_v14 = vmul.f32 %v6930_v42, %v6546_v1  ;;  %v10942_v25 = vpop.eup %10941  ;;  %v6933_v53 = vadd.f32 1.0, %v10940_v19  ;;  %10955 = verf.f32 %v6693_v55  ;;  %v6697_v21 = vmul.f32 0.70710677, %v15810_v56 }
 0x6fe   : > { %v6698_v33 = vmul.f32 0.70710677, %v15804_v38  ;;  %v6938_v16 = vadd.f32 1.0, %v10942_v25  ;;  %v15822_v24 = vadd.f32 %v16568_v22, %v15625_v47  ;;  %v6554_v60 = vmul.f32 0.5, %v15756_v0  ;;  %v16570_v0 = vld [vmem:[#allocation32_spill] sm:$0xff] }
 0x6ff   : > { %v10944_v43 = vpop.eup %10943  ;;  %v7061_v13 = vmul.f32 %v6933_v53, %v6549_v18  ;;  %v6553_v9 = vmul.f32 0.5, %v15762_v32  ;;  %v15834_v36 = vadd.f32 %v16570_v0, %v15625_v47  ;;  %v6558_v34 = vmul.f32 0.5, %v15768_v52  ;;  %v16572_v52 = vld [vmem:[#allocation58_spill] sm:$0xff] }
 0x700   : > { %7637 = vmatmul.mubr.f32.gmra.mrb[200].mxu0 %v7041_v45  ;;  %v15816_v45 = vadd.f32 %v16567_v63, %v15606_v48  ;;  %v10946_v3 = vpop.eup %10945  ;;  %v6937_v30 = vadd.f32 1.0, %v10944_v43  ;;  %10957 = verf.f32 %v6698_v33  ;;  %v6701_v29 = vmul.f32 0.70710677, %v15822_v24  ;;  %v16575_v63 = vld [vmem:[#allocation39_spill] sm:$0xff] }
 0x701   : > { %7642 = vmatprep.mubr.f32.mxu0 %v7046_v59  ;;  %v7062_v59 = vmul.f32 %v6934_v31, %v6550_v2  ;;  %v10948_v51 = vpop.eup %10947  ;;  %v6942_v50 = vadd.f32 1.0, %v10946_v3  ;;  %10959 = verf.f32 %v6697_v21  ;;  %v6557_v17 = vmul.f32 0.5, %v15774_v10 }
 0x702   : > { %v6702_v6 = vmul.f32 0.70710677, %v15816_v45  ;;  %v6941_v8 = vadd.f32 1.0, %v10948_v51  ;;  %v7065_v32 = vmul.f32 %v6937_v30, %v6553_v9  ;;  %v6705_v15 = vmul.f32 0.70710677, %v15834_v36 }
 0x703   : > { %v10950_v37 = vpop.eup %10949  ;;  %v15846_v58 = vadd.f32 %v16572_v52, %v15625_v47  ;;  %v6562_v1 = vmul.f32 0.5, %v15780_v11  ;;  %v6561_v44 = vmul.f32 0.5, %v15786_v26  ;;  %v16574_v11 = vld [vmem:[#allocation34_spill] sm:$0xff]  ;;  %v6566_v2 = vmul.f32 0.5, %v15792_v7  ;;  %v16576_v7 = vld [vmem:[#allocation36_spill] sm:$0xff] }
 0x704   : > { %7643 = vmatmul.mubr.f32.gmra.mrb[202].mxu0 %v7045_v57  ;;  %v15828_v57 = vadd.f32 %v16569_v62, %v15606_v48  ;;  %v10952_v39 = vpop.eup %10951  ;;  %10961 = verf.f32 %v6702_v6  ;;  %v6946_v42 = vadd.f32 1.0, %v10950_v37  ;;  %v7069_v10 = vmul.f32 %v6941_v8, %v6557_v17  ;;  %v16577_v62 = vld [vmem:[#allocation59_spill] sm:$0xff] }
 0x705   : > { %7648 = vmatprep.mubr.f32.mxu0 %v7050_v49  ;;  %v7066_v49 = vmul.f32 %v6938_v16, %v6554_v60  ;;  %10963 = verf.f32 %v6701_v29  ;;  %v6945_v40 = vadd.f32 1.0, %v10952_v39  ;;  %v6709_v55 = vmul.f32 0.70710677, %v15846_v58 }
 0x706   : > { %v6706_v54 = vmul.f32 0.70710677, %v15828_v57  ;;  %v10954_v35 = vpop.eup %10953  ;;  %v15858_v4 = vadd.f32 %v16574_v11, %v15625_v47  ;;  %v6565_v18 = vmul.f32 0.5, %v15798_v27  ;;  %v15870_v22 = vadd.f32 %v16576_v7, %v15625_v47 }
 0x707   : > { %v10956_v19 = vpop.eup %10955  ;;  %v6950_v31 = vadd.f32 1.0, %v10954_v35  ;;  %v7073_v26 = vmul.f32 %v6945_v40, %v6561_v44  ;;  %v6570_v60 = vmul.f32 0.5, %v15804_v38  ;;  %v6569_v9 = vmul.f32 0.5, %v15810_v56  ;;  %v16578_v38 = vld [vmem:[#allocation38_spill] sm:$0xff] }
 0x708   : > { %7649 = vmatmul.mubr.f32.gmra.mrb[204].mxu0 %v7049_v61  ;;  %v15840_v61 = vadd.f32 %v16571_v5, %v15606_v48  ;;  %10965 = verf.f32 %v6706_v54  ;;  %v6949_v53 = vadd.f32 1.0, %v10956_v19  ;;  %v6713_v21 = vmul.f32 0.70710677, %v15858_v4  ;;  %v16579_v5 = vld [vmem:[#allocation61_spill] sm:$0xff] }
 0x709   : > { %7654 = vmatprep.mubr.f32.mxu0 %v7054_v23  ;;  %v7070_v23 = vmul.f32 %v6942_v50, %v6558_v34  ;;  %10967 = verf.f32 %v6705_v15  ;;  %v6717_v29 = vmul.f32 0.70710677, %v15870_v22  ;;  %v15882_v0 = vadd.f32 %v16578_v38, %v15625_v47 }
 0x70a   : > { %v6710_v46 = vmul.f32 0.70710677, %v15840_v61  ;;  %v10958_v25 = vpop.eup %10957  ;;  %v7077_v27 = vmul.f32 %v6949_v53, %v6565_v18  ;;  %v6574_v34 = vmul.f32 0.5, %v15816_v45  ;;  %v6573_v17 = vmul.f32 0.5, %v15822_v24  ;;  %v16580_v45 = vld [vmem:[#allocation40_spill] sm:$0xff] }
 0x70b   : > { %v10960_v43 = vpop.eup %10959  ;;  %v6954_v16 = vadd.f32 1.0, %v10958_v25  ;;  %v6721_v15 = vmul.f32 0.70710677, %v15882_v0  ;;  %v15894_v52 = vadd.f32 %v16580_v45, %v15625_v47  ;;  %v6577_v44 = vmul.f32 0.5, %v15834_v36 }
 0x70c   : > { %7655 = vmatmul.mubr.f32.gmra.mrb[206].mxu0 %v7053_v12  ;;  %v15852_v12 = vadd.f32 %v16573_v28, %v15606_v48  ;;  %10969 = verf.f32 %v6710_v46  ;;  %v6953_v30 = vadd.f32 1.0, %v10960_v43  ;;  %v16581_v28 = vld [vmem:[#allocation63_spill] sm:$0xff]  ;;  %v6581_v18 = vmul.f32 0.5, %v15846_v58 }
 0x70d   : > { %7660 = vmatprep.mubr.f32.mxu0 %v7058_v14  ;;  %v7074_v14 = vmul.f32 %v6946_v42, %v6562_v1  ;;  %10971 = verf.f32 %v6709_v55  ;;  %v6578_v1 = vmul.f32 0.5, %v15828_v57  ;;  %v6725_v55 = vmul.f32 0.70710677, %v15894_v52  ;;  %v16582_v57 = vld [vmem:[#allocation60_spill] sm:$0xff] }
 0x70e   : > { %v6714_v33 = vmul.f32 0.70710677, %v15852_v12  ;;  %v10962_v3 = vpop.eup %10961  ;;  %v7081_v56 = vmul.f32 %v6953_v30, %v6569_v9  ;;  %v15906_v11 = vadd.f32 %v16582_v57, %v15625_v47  ;;  %v6585_v9 = vmul.f32 0.5, %v15858_v4 }
 0x70f   : > { %v10964_v51 = vpop.eup %10963  ;;  %v6958_v50 = vadd.f32 1.0, %v10962_v3 }
 0x710   : > { %7661 = vmatmul.mubr.f32.gmra.mrb[208].mxu0 %v7057_v41  ;;  %v15864_v41 = vadd.f32 %v16575_v63, %v15606_v48  ;;  %10973 = verf.f32 %v6714_v33  ;;  %v6957_v8 = vadd.f32 1.0, %v10964_v51  ;;  %v16583_v63 = vld [vmem:[#allocation65_spill] sm:$0xff] }
 0x711   : > { %7666 = vmatprep.mubr.f32.mxu0 %v7062_v59  ;;  %v7078_v59 = vmul.f32 %v6950_v31, %v6566_v2  ;;  %10975 = verf.f32 %v6713_v21  ;;  %v6582_v2 = vmul.f32 0.5, %v15840_v61  ;;  %v6729_v21 = vmul.f32 0.70710677, %v15906_v11  ;;  %v16584_v61 = vld [vmem:[#allocation62_spill] sm:$0xff] }
 0x712   : > { %v6718_v6 = vmul.f32 0.70710677, %v15864_v41  ;;  %v10966_v37 = vpop.eup %10965  ;;  %v7085_v24 = vmul.f32 %v6957_v8, %v6573_v17  ;;  %v15918_v7 = vadd.f32 %v16584_v61, %v15625_v47  ;;  %v6589_v17 = vmul.f32 0.5, %v15870_v22 }
 0x713   : > { %v10968_v39 = vpop.eup %10967  ;;  %v6962_v42 = vadd.f32 1.0, %v10966_v37 }
 0x714   : > { %7667 = vmatmul.mubr.f32.gmra.mrb[210].mxu0 %v7061_v13  ;;  %v15876_v13 = vadd.f32 %v16577_v62, %v15606_v48  ;;  %10977 = verf.f32 %v6718_v6  ;;  %v6961_v40 = vadd.f32 1.0, %v10968_v39  ;;  %v16585_v62 = vld [vmem:[#allocation67_spill] sm:$0xff] }
 0x715   : > { %7672 = vmatprep.mubr.f32.mxu0 %v7066_v49  ;;  %v7082_v49 = vmul.f32 %v6954_v16, %v6570_v60  ;;  %10979 = verf.f32 %v6717_v29  ;;  %v6586_v60 = vmul.f32 0.5, %v15852_v12  ;;  %v6733_v29 = vmul.f32 0.70710677, %v15918_v7  ;;  %v16586_v12 = vld [vmem:[#allocation64_spill] sm:$0xff] }
 0x716   : > { %v6722_v54 = vmul.f32 0.70710677, %v15876_v13  ;;  %v10970_v35 = vpop.eup %10969  ;;  %v7089_v36 = vmul.f32 %v6961_v40, %v6577_v44  ;;  %v15930_v38 = vadd.f32 %v16586_v12, %v15625_v47  ;;  %v6593_v44 = vmul.f32 0.5, %v15882_v0 }
 0x717   : > { %v10972_v19 = vpop.eup %10971  ;;  %v6966_v31 = vadd.f32 1.0, %v10970_v35 }
 0x718   : > { %7673 = vmatmul.mubr.f32.gmra.mrb[212].mxu0 %v7065_v32  ;;  %v15888_v32 = vadd.f32 %v16579_v5, %v15606_v48  ;;  %10981 = verf.f32 %v6722_v54  ;;  %v6965_v53 = vadd.f32 1.0, %v10972_v19  ;;  %v16587_v5 = vld [vmem:[#allocation69_spill] sm:$0xff] }
 0x719   : > { %7678 = vmatprep.mubr.f32.mxu0 %v7070_v23  ;;  %v7086_v23 = vmul.f32 %v6958_v50, %v6574_v34  ;;  %10983 = verf.f32 %v6721_v15  ;;  %v6590_v34 = vmul.f32 0.5, %v15864_v41  ;;  %v6737_v15 = vmul.f32 0.70710677, %v15930_v38  ;;  %v16588_v41 = vld [vmem:[#allocation66_spill] sm:$0xff] }
 0x71a   : > { %v6726_v46 = vmul.f32 0.70710677, %v15888_v32  ;;  %v10974_v25 = vpop.eup %10973  ;;  %v7093_v58 = vmul.f32 %v6965_v53, %v6581_v18  ;;  %v15942_v45 = vadd.f32 %v16588_v41, %v15625_v47  ;;  %v6598_v57 = vmul.f32 0.5, %v15888_v32  ;;  %v16590_v53 = vld [vmem:[#allocation68_spill] sm:$0xff] }
 0x71b   : > { %v10976_v43 = vpop.eup %10975  ;;  %v6970_v16 = vadd.f32 1.0, %v10974_v25  ;;  %v6597_v18 = vmul.f32 0.5, %v15894_v52 }
 0x71c   : > { %7679 = vmatmul.mubr.f32.gmra.mrb[214].mxu0 %v7069_v10  ;;  %v15900_v10 = vadd.f32 %v16581_v28, %v15606_v48  ;;  %10985 = verf.f32 %v6726_v46  ;;  %v6969_v30 = vadd.f32 1.0, %v10976_v43  ;;  %v16589_v28 = vld [vmem:[#allocation71_spill] sm:$0xff] }
 0x71d   : > { %7684 = vmatprep.mubr.f32.mxu0 %v7074_v14  ;;  %v7090_v14 = vmul.f32 %v6962_v42, %v6578_v1  ;;  %10987 = verf.f32 %v6725_v55  ;;  %v6594_v1 = vmul.f32 0.5, %v15876_v13  ;;  %v6741_v55 = vmul.f32 0.70710677, %v15942_v45 }
 0x71e   : > { %v6730_v33 = vmul.f32 0.70710677, %v15900_v10  ;;  %v10978_v3 = vpop.eup %10977  ;;  %v7097_v4 = vmul.f32 %v6969_v30, %v6585_v9  ;;  %v16592_v30 = vld [vmem:[#allocation70_spill] sm:$0xff] }
 0x71f   : > { %v10980_v51 = vpop.eup %10979  ;;  %v6974_v50 = vadd.f32 1.0, %v10978_v3 }
 0x720   : > { %7685 = vmatmul.mubr.f32.gmra.mrb[216].mxu0 %v7073_v26  ;;  %v15912_v26 = vadd.f32 %v16583_v63, %v15606_v48  ;;  %10989 = verf.f32 %v6730_v33  ;;  %v6973_v8 = vadd.f32 1.0, %v10980_v51  ;;  %v16591_v63 = vld [vmem:[#allocation73_spill] sm:$0xff] }
 0x721   : > { %7690 = vmatprep.mubr.f32.mxu0 %v7078_v59  ;;  %v7094_v59 = vmul.f32 %v6966_v31, %v6582_v2  ;;  %10991 = verf.f32 %v6729_v21  ;;  %v15955_v2 = vadd.f32 %v16590_v53, %v15625_v47  ;;  %v6602_v21 = vmul.f32 0.5, %v15900_v10  ;;  %v16598_v53 = vld [vmem:[#allocation78_spill] sm:$0xff] }
 0x722   : > { %v6734_v6 = vmul.f32 0.70710677, %v15912_v26  ;;  %v10982_v37 = vpop.eup %10981  ;;  %v7101_v22 = vmul.f32 %v6973_v8, %v6589_v17  ;;  %v6601_v10 = vmul.f32 0.5, %v15906_v11  ;;  %v6606_v9 = vmul.f32 0.5, %v15912_v26  ;;  %v16594_v8 = vld [vmem:[#allocation72_spill] sm:$0xff] }
 0x723   : > { %v10984_v39 = vpop.eup %10983  ;;  %v6978_v42 = vadd.f32 1.0, %v10982_v37  ;;  %v6745_v61 = vmul.f32 0.70710677, %v15955_v2 }
 0x724   : > { %7691 = vmatmul.mubr.f32.gmra.mrb[218].mxu0 %v7077_v27  ;;  %v15924_v27 = vadd.f32 %v16585_v62, %v15606_v48  ;;  %10993 = verf.f32 %v6734_v6  ;;  %v6977_v40 = vadd.f32 1.0, %v10984_v39  ;;  %v16593_v62 = vld [vmem:[#allocation75_spill] sm:$0xff] }
 0x725   : > { %7696 = vmatprep.mubr.f32.mxu0 %v7082_v49  ;;  %v7098_v49 = vmul.f32 %v6970_v16, %v6586_v60  ;;  %10995 = verf.f32 %v6733_v29  ;;  %v15967_v60 = vadd.f32 %v16592_v30, %v15625_v47 }
 0x726   : > { %v6738_v54 = vmul.f32 0.70710677, %v15924_v27  ;;  %v10986_v35 = vpop.eup %10985  ;;  %v7105_v0 = vmul.f32 %v6977_v40, %v6593_v44  ;;  %v6610_v17 = vmul.f32 0.5, %v15924_v27  ;;  %v16596_v40 = vld [vmem:[#allocation74_spill] sm:$0xff] }
 0x727   : > { %v10988_v19 = vpop.eup %10987  ;;  %v6982_v31 = vadd.f32 1.0, %v10986_v35  ;;  %v6749_v12 = vmul.f32 0.70710677, %v15967_v60  ;;  %v6605_v35 = vmul.f32 0.5, %v15918_v7 }
 0x728   : > { %7697 = vmatmul.mubr.f32.gmra.mrb[220].mxu0 %v7081_v56  ;;  %v15936_v56 = vadd.f32 %v16587_v5, %v15606_v48  ;;  %10997 = verf.f32 %v6738_v54  ;;  %v6981_v13 = vadd.f32 1.0, %v10988_v19  ;;  %v16595_v5 = vld [vmem:[#allocation77_spill] sm:$0xff] }
 0x729   : > { %7702 = vmatprep.mubr.f32.mxu0 %v7086_v23  ;;  %v7102_v23 = vmul.f32 %v6974_v50, %v6590_v34  ;;  %10999 = verf.f32 %v6737_v15  ;;  %v15979_v34 = vadd.f32 %v16594_v8, %v15625_v47 }
 0x72a   : > { %v6742_v46 = vmul.f32 0.70710677, %v15936_v56  ;;  %v10990_v25 = vpop.eup %10989  ;;  %v7109_v52 = vmul.f32 %v6981_v13, %v6597_v18  ;;  %v16597_v13 = vld [vmem:[#allocation76_spill] sm:$0xff]  ;;  %v16599_v18 = vld [vmem:[#allocation79_spill] sm:$0xff] }
 0x72b   : > { %v10992_v43 = vpop.eup %10991  ;;  %v6986_v16 = vadd.f32 1.0, %v10990_v25  ;;  %v6753_v41 = vmul.f32 0.70710677, %v15979_v34  ;;  %v6614_v25 = vmul.f32 0.5, %v15936_v56 }
 0x72c   : > { %7703 = vmatmul.mubr.f32.gmra.mrb[222].mxu0 %v7085_v24  ;;  %v15948_v24 = vadd.f32 %v16589_v28, %v15606_v48  ;;  %11001 = verf.f32 %v6742_v46  ;;  %v6985_v32 = vadd.f32 1.0, %v10992_v43  ;;  %v15996_v28 = vadd.f32 %v15501_v20, %v15606_v48 }
 0x72d   : > { %7708 = vmatprep.mubr.f32.mxu0 %v7090_v14  ;;  %v7106_v14 = vmul.f32 %v6978_v42, %v6594_v1  ;;  %11003 = verf.f32 %v6741_v55  ;;  %v15991_v1 = vadd.f32 %v16596_v40, %v15625_v47  ;;  %v16008_v43 = vadd.f32 %v16598_v53, %v15606_v48 }
 0x72e   : > { %v6746_v33 = vmul.f32 0.70710677, %v15948_v24  ;;  %v10994_v3 = vpop.eup %10993  ;;  %v7113_v11 = vmul.f32 %v6985_v32, %v6601_v10  ;;  %v6762_v20 = vmul.f32 0.70710677, %v15996_v28  ;;  %v9552_v32 = vadd.f32 %v16599_v18, %v15625_v47 }
 0x72f   : > { %v10996_v51 = vpop.eup %10995  ;;  %v6990_v50 = vadd.f32 1.0, %v10994_v3  ;;  %v6757_v55 = vmul.f32 0.70710677, %v15991_v1 }
 0x730   : > { %7709 = vmatmul.mubr.f32.gmra.mrb[224].mxu0 %v7089_v36  ;;  %v15960_v36 = vadd.f32 %v16591_v63, %v15606_v48  ;;  %11005 = verf.f32 %v6746_v33  ;;  %v6989_v29 = vadd.f32 1.0, %v10996_v51 }
 0x731   : > { %7714 = vmatprep.mubr.f32.mxu0 %v7094_v59  ;;  %v7110_v59 = vmul.f32 %v6982_v31, %v6598_v57  ;;  %11007 = verf.f32 %v6745_v61  ;;  %v7118_v42 = vmul.f32 %v6990_v50, %v6606_v9  ;;  %v16003_v57 = vadd.f32 %v16597_v13, %v15625_v47  ;;  %v16601_v13 = vld [vmem:[#allocation47_spill] sm:$0xff] }
 0x732   : > { %v6750_v6 = vmul.f32 0.70710677, %v15960_v36  ;;  %v10998_v37 = vpop.eup %10997  ;;  %v7117_v7 = vmul.f32 %v6989_v29, %v6605_v35  ;;  %v6621_v29 = vmul.f32 0.5, %v15967_v60 }
 0x733   : > { %v11000_v39 = vpop.eup %10999  ;;  %v6994_v26 = vadd.f32 1.0, %v10998_v37  ;;  %v6761_v3 = vmul.f32 0.70710677, %v16003_v57 }
 0x734   : > { %7715 = vmatmul.mubr.f32.gmra.mrb[226].mxu0 %v7093_v58  ;;  %v15972_v58 = vadd.f32 %v16593_v62, %v15606_v48  ;;  %11009 = verf.f32 %v6750_v6  ;;  %v6993_v15 = vadd.f32 1.0, %v11000_v39 }
 0x735   : > { %7720 = vmatprep.mubr.f32.mxu0 %v7098_v49  ;;  %v7114_v49 = vmul.f32 %v6986_v16, %v6602_v21  ;;  %11011 = verf.f32 %v6749_v12  ;;  %v6613_v16 = vmul.f32 0.5, %v15942_v45  ;;  %v6617_v45 = vmul.f32 0.5, %v15955_v2 }
 0x736   : > { %v6754_v54 = vmul.f32 0.70710677, %v15972_v58  ;;  %v6626_v12 = vmul.f32 0.5, %v15972_v58 }
 0x738   : > { %7721 = vmatmul.mubr.f32.gmra.mrb[228].mxu0 %v7097_v4  ;;  %v15984_v4 = vadd.f32 %v16595_v5, %v15606_v48  ;;  %11013 = verf.f32 %v6754_v54  ;;  %v6766_v48 = vmul.f32 0.70710677, %v16008_v43 }
 0x739   : > { %7726 = vmatprep.mubr.f32.mxu0 %v7102_v23  ;;  %v11002_v23 = vpop.eup %11001  ;;  %11015 = verf.f32 %v6753_v41  ;;  %v6634_v41 = vmul.f32 0.5, %v15996_v28 }
 0x73a   : > { %v11004_v19 = vpop.eup %11003  ;;  %v6758_v46 = vmul.f32 0.70710677, %v15984_v4  ;;  %v6998_v27 = vadd.f32 1.0, %v11002_v23 }
 0x73b   : > { %v11006_v31 = vpop.eup %11005  ;;  %v6997_v44 = vadd.f32 1.0, %v11004_v19 }
 0x73c   : > { %7727 = vmatmul.mubr.f32.gmra.mrb[230].mxu0 %v7101_v22  ;;  %v7122_v22 = vmul.f32 %v6994_v26, %v6610_v17  ;;  %11017 = verf.f32 %v6758_v46  ;;  %v11008_v33 = vpop.eup %11007  ;;  %v7002_v56 = vadd.f32 1.0, %v11006_v31  ;;  %v7126_v63 = vmul.f32 %v6998_v27, %v6614_v25  ;;  %v7279_v25 = vld [vmem:[#allocation16] sm:$0x3] }
 0x73d   : > { %7732 = vmatprep.mubr.f32.mxu0 %v7106_v14  ;;  %v6609_v14 = vmul.f32 0.5, %v15930_v38  ;;  %11019 = verf.f32 %v6757_v55  ;;  %v7001_v21 = vadd.f32 1.0, %v11008_v33  ;;  %v7125_v61 = vmul.f32 %v6997_v44, %v6613_v16  ;;  %v16600_v44 = vld [vmem:[#allocation45_spill] sm:$0xff] }
 0x73e   : > { %11021 = verf.f32 %v6762_v20  ;;  %v6630_v26 = vmul.f32 0.5, %v15984_v4  ;;  %v6633_v4 = vmul.f32 0.5, %v16003_v57  ;;  %v6638_v27 = vmul.f32 0.5, %v16008_v43 }
 0x73f   : > { %v7121_v38 = vmul.f32 %v6993_v15, %v6609_v14  ;;  %11023 = verf.f32 %v6761_v3  ;;  %v7129_v47 = vmul.f32 %v7001_v21, %v6617_v45  ;;  %v6629_v15 = vmul.f32 0.5, %v15991_v1 }
 0x740   : > { %7733 = vmatmul.mubr.f32.gmra.mrb[232].mxu0 %v7105_v0  ;;  %v11010_v0 = vpop.eup %11009  ;;  %11025 = verf.f32 %v6766_v48  ;;  %v6637_v1 = vmul.f32 0.5, %v9552_v32  ;;  %v16028_v55 = vrot.slane %v7279_v25, %v16600_v44  ;;  %v16031_v20 = vrot.slane %v7279_v25, %v16601_v13 }
 0x741   : > { %7738 = vmatprep.mubr.f32.mxu0 %v7110_v59  ;;  %v6618_v59 = vmul.f32 0.5, %v15948_v24  ;;  %v11012_v30 = vpop.eup %11011  ;;  %v7006_v51 = vadd.f32 1.0, %v11010_v0  ;;  %v6622_v24 = vmul.f32 0.5, %v15960_v36 }
 0x742   : > { %v11014_v62 = vpop.eup %11013  ;;  %v7005_v50 = vadd.f32 1.0, %v11012_v30 }
 0x743   : > { %v7130_v6 = vmul.f32 %v7002_v56, %v6618_v59  ;;  %v7010_v37 = vadd.f32 1.0, %v11014_v62  ;;  %v7134_v10 = vmul.f32 %v7006_v51, %v6622_v24 }
 0x744   : > { %7739 = vmatmul.mubr.f32.gmra.mrb[234].mxu0 %v7109_v52  ;;  %v6765_v52 = vmul.f32 0.70710677, %v9552_v32  ;;  %v7133_v8 = vmul.f32 %v7005_v50, %v6621_v29 }
 0x745   : > { %7744 = vmatprep.mubr.f32.mxu0 %v7114_v49  ;;  %v11016_v49 = vpop.eup %11015  ;;  %v7138_v54 = vmul.f32 %v7010_v37, %v6626_v12 }
 0x746   : > { %v11018_v9 = vpop.eup %11017  ;;  %11027 = verf.f32 %v6765_v52  ;;  %v7009_v2 = vadd.f32 1.0, %v11016_v49 }
 0x747   : > { %v11020_v36 = vpop.eup %11019  ;;  %v7014_v39 = vadd.f32 1.0, %v11018_v9 }
 0x748   : > { %7745 = vmatmul.mubr.f32.gmra.mrb[236].mxu0 %v7113_v11  ;;  %v11022_v5 = vpop.eup %11021  ;;  %v6625_v11 = vmul.f32 0.5, %v15979_v34 }
 0x749   : > { %7750 = vmatprep.mubr.f32.mxu0 %v7118_v42  ;;  %v7013_v42 = vadd.f32 1.0, %v11020_v36  ;;  %v11024_v60 = vpop.eup %11023  ;;  %v7018_v35 = vadd.f32 1.0, %v11022_v5  ;;  %v7142_v17 = vmul.f32 %v7014_v39, %v6630_v26 }
 0x74a   : > { %v7137_v23 = vmul.f32 %v7009_v2, %v6625_v11  ;;  %v11026_v58 = vpop.eup %11025  ;;  %v7017_v40 = vadd.f32 1.0, %v11024_v60 }
 0x74b   : > { %v7141_v19 = vmul.f32 %v7013_v42, %v6629_v15  ;;  %v7022_v34 = vadd.f32 1.0, %v11026_v58 }
 0x74c   : > { %7751 = vmatmul.mubr.f32.gmra.mrb[238].mxu0 %v7117_v7  ;;  %v7146_v7 = vmul.f32 %v7018_v35, %v6634_v41  ;;  %v7145_v31 = vmul.f32 %v7017_v40, %v6633_v4 }
 0x74d   : > { %7756 = vmatprep.mubr.f32.mxu0 %v7122_v22  ;;  %v7150_v14 = vmul.f32 %v7022_v34, %v6638_v27 }
 0x750   : > { %7757 = vmatmul.mubr.f32.gmra.mrb[240].mxu0 %v7121_v38  ;;  %v11028_v46 = vpop.eup %11027 }
 0x751   : > { %7762 = vmatprep.mubr.f32.mxu0 %v7126_v63  ;;  %v7021_v22 = vadd.f32 1.0, %v11028_v46 }
 0x753   : > { %v7149_v28 = vmul.f32 %v7021_v22, %v6637_v1 }
 0x754   : > { %7763 = vmatmul.mubr.f32.gmra.mrb[242].mxu0 %v7125_v61 }
 0x755   : > { %7768 = vmatprep.mubr.f32.mxu0 %v7130_v6 }
 0x758   : > { %7769 = vmatmul.mubr.f32.gmra.mrb[244].mxu0 %v7129_v47 }
 0x759   : > { %7774 = vmatprep.mubr.f32.mxu0 %v7134_v10 }
 0x75c   : > { %7775 = vmatmul.mubr.f32.gmra.mrb[246].mxu0 %v7133_v8 }
 0x75d   : > { %7780 = vmatprep.mubr.f32.mxu0 %v7138_v54 }
 0x760   : > { %7781 = vmatmul.mubr.f32.gmra.mrb[248].mxu0 %v7137_v23 }
 0x761   : > { %7786 = vmatprep.mubr.f32.mxu0 %v7142_v17 }
 0x764   : > { %7787 = vmatmul.mubr.f32.gmra.mrb[250].mxu0 %v7141_v19 }
 0x765   : > { %7792 = vmatprep.mubr.f32.mxu0 %v7146_v7 }
 0x768   : > { %7793 = vmatmul.mubr.f32.gmra.mrb[252].mxu0 %v7145_v31 }
 0x769   : > { %7798 = vmatprep.mubr.f32.mxu0 %v7150_v14 }
 0x76c   : > { %7799 = vmatmul.mubr.f32.gmra.mrb[254].mxu0 %v7149_v28 }
 0x7c3   : > { %v7614_v57 = vpop.f32.mrb[192].mxu0 }
 0x7c4   : > { %v9554_v53 = vadd.f32 %v7614_v57, %v16028_v55  ;;  %v7616_v43 = vpop.f32.mrb[193].mxu0 }
 0x7c5   : > { %v9555_v38 = vadd.f32 %v7616_v43, %v16031_v20 }
 0x7c6   : > { %7805 = vst [vmem:[%s16035_s23] sm:$0xff] %v9554_v53 }
 0x7c7   : > { %7806 = vst [vmem:[%s16035_s23 + $0x8] sm:$0xff] %v9555_v38  ;;  %v7620_v33 = vpop.f32.mrb[194].mxu0 }
 0x7c8   : > { %v9556_v56 = vadd.f32 %v7620_v33, %v16028_v55  ;;  %v7622_v63 = vpop.f32.mrb[195].mxu0 }
 0x7c9   : > { %v9557_v0 = vadd.f32 %v7622_v63, %v16031_v20 }
 0x7ca   : > { %7807 = vst [vmem:[%s16035_s23 + $0x10] sm:$0xff] %v9556_v56 }
 0x7cb   : > { %7808 = vst [vmem:[%s16035_s23 + $0x18] sm:$0xff] %v9557_v0  ;;  %v7626_v16 = vpop.f32.mrb[196].mxu0 }
 0x7cc   : > { %v9558_v59 = vadd.f32 %v7626_v16, %v16028_v55  ;;  %v7628_v3 = vpop.f32.mrb[197].mxu0 }
 0x7cd   : > { %v9559_v18 = vadd.f32 %v7628_v3, %v16031_v20 }
 0x7ce   : > { %7809 = vst [vmem:[%s16035_s23 + $0x20] sm:$0xff] %v9558_v59 }
 0x7cf   : > { %7810 = vst [vmem:[%s16035_s23 + $0x28] sm:$0xff] %v9559_v18  ;;  %v7632_v32 = vpop.f32.mrb[198].mxu0 }
 0x7d0   : > { %v9560_v21 = vadd.f32 %v7632_v32, %v16028_v55  ;;  %v7634_v48 = vpop.f32.mrb[199].mxu0 }
 0x7d1   : > { %v9561_v61 = vadd.f32 %v7634_v48, %v16031_v20 }
 0x7d2   : > { %7811 = vst [vmem:[%s16035_s23 + $0x30] sm:$0xff] %v9560_v21 }
 0x7d3   : > { %7812 = vst [vmem:[%s16035_s23 + $0x38] sm:$0xff] %v9561_v61  ;;  %v7638_v30 = vpop.f32.mrb[200].mxu0 }
 0x7d4   : > { %v9562_v51 = vadd.f32 %v7638_v30, %v16028_v55  ;;  %v7640_v6 = vpop.f32.mrb[201].mxu0 }
 0x7d5   : > { %v9563_v62 = vadd.f32 %v7640_v6, %v16031_v20 }
 0x7d6   : > { %7813 = vst [vmem:[%s16035_s23 + $0x40] sm:$0xff] %v9562_v51 }
 0x7d7   : > { %7814 = vst [vmem:[%s16035_s23 + $0x48] sm:$0xff] %v9563_v62  ;;  %v7644_v45 = vpop.f32.mrb[202].mxu0 }
 0x7d8   : > { %v9564_v24 = vadd.f32 %v7644_v45, %v16028_v55  ;;  %v7646_v52 = vpop.f32.mrb[203].mxu0 }
 0x7d9   : > { %v9565_v50 = vadd.f32 %v7646_v52, %v16031_v20 }
 0x7da   : > { %7815 = vst [vmem:[%s16035_s23 + $0x50] sm:$0xff] %v9564_v24 }
 0x7db   : > { %7816 = vst [vmem:[%s16035_s23 + $0x58] sm:$0xff] %v9565_v50  ;;  %v7650_v47 = vpop.f32.mrb[204].mxu0 }
 0x7dc   : > { %v9566_v49 = vadd.f32 %v7650_v47, %v16028_v55  ;;  %v7652_v37 = vpop.f32.mrb[205].mxu0 }
 0x7dd   : > { %v9567_v10 = vadd.f32 %v7652_v37, %v16031_v20 }
 0x7de   : > { %7817 = vst [vmem:[%s16035_s23 + $0x60] sm:$0xff] %v9566_v49 }
 0x7df   : > { %7818 = vst [vmem:[%s16035_s23 + $0x68] sm:$0xff] %v9567_v10  ;;  %v7656_v9 = vpop.f32.mrb[206].mxu0 }
 0x7e0   : > { %v9568_v29 = vadd.f32 %v7656_v9, %v16028_v55  ;;  %v7658_v12 = vpop.f32.mrb[207].mxu0 }
 0x7e1   : > { %v9569_v2 = vadd.f32 %v7658_v12, %v16031_v20 }
 0x7e2   : > { %7819 = vst [vmem:[%s16035_s23 + $0x70] sm:$0xff] %v9568_v29 }
 0x7e3   : > { %7820 = vst [vmem:[%s16035_s23 + $0x78] sm:$0xff] %v9569_v2  ;;  %v7662_v8 = vpop.f32.mrb[208].mxu0 }
 0x7e4   : > { %v9570_v36 = vadd.f32 %v7662_v8, %v16028_v55  ;;  %v7664_v39 = vpop.f32.mrb[209].mxu0 }
 0x7e5   : > { %v9571_v54 = vadd.f32 %v7664_v39, %v16031_v20 }
 0x7e6   : > { %7821 = vst [vmem:[%s16035_s23 + $0x80] sm:$0xff] %v9570_v36 }
 0x7e7   : > { %7822 = vst [vmem:[%s16035_s23 + $0x88] sm:$0xff] %v9571_v54  ;;  %v7668_v5 = vpop.f32.mrb[210].mxu0 }
 0x7e8   : > { %v9572_v11 = vadd.f32 %v7668_v5, %v16028_v55  ;;  %v7670_v26 = vpop.f32.mrb[211].mxu0 }
 0x7e9   : > { %v9573_v42 = vadd.f32 %v7670_v26, %v16031_v20 }
 0x7ea   : > { %7823 = vst [vmem:[%s16035_s23 + $0x90] sm:$0xff] %v9572_v11 }
 0x7eb   : > { %7824 = vst [vmem:[%s16035_s23 + $0x98] sm:$0xff] %v9573_v42  ;;  %v7674_v23 = vpop.f32.mrb[212].mxu0 }
 0x7ec   : > { %v9574_v60 = vadd.f32 %v7674_v23, %v16028_v55  ;;  %v7676_v35 = vpop.f32.mrb[213].mxu0 }
 0x7ed   : > { %v9575_v17 = vadd.f32 %v7676_v35, %v16031_v20 }
 0x7ee   : > { %7825 = vst [vmem:[%s16035_s23 + $0xa0] sm:$0xff] %v9574_v60 }
 0x7ef   : > { %7826 = vst [vmem:[%s16035_s23 + $0xa8] sm:$0xff] %v9575_v17  ;;  %v7680_v58 = vpop.f32.mrb[214].mxu0 }
 0x7f0   : > { %v9576_v15 = vadd.f32 %v7680_v58, %v16028_v55  ;;  %v7682_v41 = vpop.f32.mrb[215].mxu0 }
 0x7f1   : > { %v9577_v40 = vadd.f32 %v7682_v41, %v16031_v20 }
 0x7f2   : > { %7827 = vst [vmem:[%s16035_s23 + $0xb0] sm:$0xff] %v9576_v15 }
 0x7f3   : > { %7828 = vst [vmem:[%s16035_s23 + $0xb8] sm:$0xff] %v9577_v40  ;;  %v7686_v19 = vpop.f32.mrb[216].mxu0 }
 0x7f4   : > { %v9578_v46 = vadd.f32 %v7686_v19, %v16028_v55  ;;  %v7688_v34 = vpop.f32.mrb[217].mxu0 }
 0x7f5   : > { %v9579_v7 = vadd.f32 %v7688_v34, %v16031_v20 }
 0x7f6   : > { %7829 = vst [vmem:[%s16035_s23 + $0xc0] sm:$0xff] %v9578_v46 }
 0x7f7   : > { %7830 = vst [vmem:[%s16035_s23 + $0xc8] sm:$0xff] %v9579_v7  ;;  %v7692_v4 = vpop.f32.mrb[218].mxu0 }
 0x7f8   : > { %v9580_v27 = vadd.f32 %v7692_v4, %v16028_v55  ;;  %v7694_v22 = vpop.f32.mrb[219].mxu0 }
 0x7f9   : > { %v9581_v31 = vadd.f32 %v7694_v22, %v16031_v20 }
 0x7fa   : > { %7831 = vst [vmem:[%s16035_s23 + $0xd0] sm:$0xff] %v9580_v27 }
 0x7fb   : > { %7832 = vst [vmem:[%s16035_s23 + $0xd8] sm:$0xff] %v9581_v31  ;;  %v7698_v14 = vpop.f32.mrb[220].mxu0 }
 0x7fc   : > { %v9582_v1 = vadd.f32 %v7698_v14, %v16028_v55  ;;  %v7700_v28 = vpop.f32.mrb[221].mxu0 }
 0x7fd   : > { %v9583_v25 = vadd.f32 %v7700_v28, %v16031_v20 }
 0x7fe   : > { %7833 = vst [vmem:[%s16035_s23 + $0xe0] sm:$0xff] %v9582_v1 }
 0x7ff   : > { %7834 = vst [vmem:[%s16035_s23 + $0xe8] sm:$0xff] %v9583_v25  ;;  %v7704_v44 = vpop.f32.mrb[222].mxu0 }
 0x800   : > { %v9584_v13 = vadd.f32 %v7704_v44, %v16028_v55  ;;  %v7706_v57 = vpop.f32.mrb[223].mxu0 }
 0x801   : > { %v9585_v53 = vadd.f32 %v7706_v57, %v16031_v20 }
 0x802   : > { %7835 = vst [vmem:[%s16035_s23 + $0xf0] sm:$0xff] %v9584_v13 }
 0x803   : > { %7836 = vst [vmem:[%s16035_s23 + $0xf8] sm:$0xff] %v9585_v53  ;;  %v7710_v43 = vpop.f32.mrb[224].mxu0 }
 0x804   : > { %v9586_v38 = vadd.f32 %v7710_v43, %v16028_v55  ;;  %v7712_v33 = vpop.f32.mrb[225].mxu0 }
 0x805   : > { %v9587_v56 = vadd.f32 %v7712_v33, %v16031_v20 }
 0x806   : > { %7837 = vst [vmem:[%s16035_s23 + $0x100] sm:$0xff] %v9586_v38 }
 0x807   : > { %7838 = vst [vmem:[%s16035_s23 + $0x108] sm:$0xff] %v9587_v56  ;;  %v7716_v63 = vpop.f32.mrb[226].mxu0 }
 0x808   : > { %v9588_v0 = vadd.f32 %v7716_v63, %v16028_v55  ;;  %v7718_v16 = vpop.f32.mrb[227].mxu0 }
 0x809   : > { %v9589_v59 = vadd.f32 %v7718_v16, %v16031_v20 }
 0x80a   : > { %7839 = vst [vmem:[%s16035_s23 + $0x110] sm:$0xff] %v9588_v0 }
 0x80b   : > { %7840 = vst [vmem:[%s16035_s23 + $0x118] sm:$0xff] %v9589_v59  ;;  %v7722_v3 = vpop.f32.mrb[228].mxu0 }
 0x80c   : > { %v9590_v18 = vadd.f32 %v7722_v3, %v16028_v55  ;;  %v7724_v32 = vpop.f32.mrb[229].mxu0 }
 0x80d   : > { %v9591_v21 = vadd.f32 %v7724_v32, %v16031_v20 }
 0x80e   : > { %7841 = vst [vmem:[%s16035_s23 + $0x120] sm:$0xff] %v9590_v18 }
 0x80f   : > { %7842 = vst [vmem:[%s16035_s23 + $0x128] sm:$0xff] %v9591_v21  ;;  %v7728_v48 = vpop.f32.mrb[230].mxu0 }
 0x810   : > { %v9592_v61 = vadd.f32 %v7728_v48, %v16028_v55  ;;  %v7730_v30 = vpop.f32.mrb[231].mxu0 }
 0x811   : > { %v9593_v51 = vadd.f32 %v7730_v30, %v16031_v20 }
 0x812   : > { %7843 = vst [vmem:[%s16035_s23 + $0x130] sm:$0xff] %v9592_v61 }
 0x813   : > { %7844 = vst [vmem:[%s16035_s23 + $0x138] sm:$0xff] %v9593_v51  ;;  %v7734_v6 = vpop.f32.mrb[232].mxu0 }
 0x814   : > { %v9594_v62 = vadd.f32 %v7734_v6, %v16028_v55  ;;  %v7736_v45 = vpop.f32.mrb[233].mxu0 }
 0x815   : > { %v9595_v24 = vadd.f32 %v7736_v45, %v16031_v20 }
 0x816   : > { %7845 = vst [vmem:[%s16035_s23 + $0x140] sm:$0xff] %v9594_v62 }
 0x817   : > { %7846 = vst [vmem:[%s16035_s23 + $0x148] sm:$0xff] %v9595_v24  ;;  %v7740_v52 = vpop.f32.mrb[234].mxu0 }
 0x818   : > { %v9596_v50 = vadd.f32 %v7740_v52, %v16028_v55  ;;  %v7742_v47 = vpop.f32.mrb[235].mxu0 }
 0x819   : > { %v9597_v49 = vadd.f32 %v7742_v47, %v16031_v20 }
 0x81a   : > { %7847 = vst [vmem:[%s16035_s23 + $0x150] sm:$0xff] %v9596_v50 }
 0x81b   : > { %7848 = vst [vmem:[%s16035_s23 + $0x158] sm:$0xff] %v9597_v49  ;;  %v7746_v37 = vpop.f32.mrb[236].mxu0 }
 0x81c   : > { %v9598_v10 = vadd.f32 %v7746_v37, %v16028_v55  ;;  %v7748_v9 = vpop.f32.mrb[237].mxu0 }
 0x81d   : > { %v9599_v29 = vadd.f32 %v7748_v9, %v16031_v20 }
 0x81e   : > { %7849 = vst [vmem:[%s16035_s23 + $0x160] sm:$0xff] %v9598_v10 }
 0x81f   : > { %7850 = vst [vmem:[%s16035_s23 + $0x168] sm:$0xff] %v9599_v29  ;;  %v7752_v12 = vpop.f32.mrb[238].mxu0 }
 0x820   : > { %v9600_v2 = vadd.f32 %v7752_v12, %v16028_v55  ;;  %v7754_v8 = vpop.f32.mrb[239].mxu0 }
 0x821   : > { %v9601_v36 = vadd.f32 %v7754_v8, %v16031_v20 }
 0x822   : > { %7851 = vst [vmem:[%s16035_s23 + $0x170] sm:$0xff] %v9600_v2 }
 0x823   : > { %7852 = vst [vmem:[%s16035_s23 + $0x178] sm:$0xff] %v9601_v36  ;;  %v7758_v39 = vpop.f32.mrb[240].mxu0 }
 0x824   : > { %v9602_v54 = vadd.f32 %v7758_v39, %v16028_v55  ;;  %v7760_v5 = vpop.f32.mrb[241].mxu0 }
 0x825   : > { %v9603_v11 = vadd.f32 %v7760_v5, %v16031_v20 }
 0x826   : > { %7853 = vst [vmem:[%s16035_s23 + $0x180] sm:$0xff] %v9602_v54 }
 0x827   : > { %7854 = vst [vmem:[%s16035_s23 + $0x188] sm:$0xff] %v9603_v11  ;;  %v7764_v26 = vpop.f32.mrb[242].mxu0 }
 0x828   : > { %v9604_v42 = vadd.f32 %v7764_v26, %v16028_v55  ;;  %v7766_v23 = vpop.f32.mrb[243].mxu0 }
 0x829   : > { %v9605_v60 = vadd.f32 %v7766_v23, %v16031_v20 }
 0x82a   : > { %7855 = vst [vmem:[%s16035_s23 + $0x190] sm:$0xff] %v9604_v42 }
 0x82b   : > { %7856 = vst [vmem:[%s16035_s23 + $0x198] sm:$0xff] %v9605_v60  ;;  %v7770_v35 = vpop.f32.mrb[244].mxu0 }
 0x82c   : > { %v9606_v17 = vadd.f32 %v7770_v35, %v16028_v55  ;;  %v7772_v58 = vpop.f32.mrb[245].mxu0 }
 0x82d   : > { %v9607_v15 = vadd.f32 %v7772_v58, %v16031_v20 }
 0x82e   : > { %7857 = vst [vmem:[%s16035_s23 + $0x1a0] sm:$0xff] %v9606_v17 }
 0x82f   : > { %7858 = vst [vmem:[%s16035_s23 + $0x1a8] sm:$0xff] %v9607_v15  ;;  %v7776_v41 = vpop.f32.mrb[246].mxu0 }
 0x830   : > { %v9608_v40 = vadd.f32 %v7776_v41, %v16028_v55  ;;  %v7778_v19 = vpop.f32.mrb[247].mxu0 }
 0x831   : > { %v9609_v46 = vadd.f32 %v7778_v19, %v16031_v20 }
 0x832   : > { %7859 = vst [vmem:[%s16035_s23 + $0x1b0] sm:$0xff] %v9608_v40 }
 0x833   : > { %7860 = vst [vmem:[%s16035_s23 + $0x1b8] sm:$0xff] %v9609_v46  ;;  %v7782_v34 = vpop.f32.mrb[248].mxu0 }
 0x834   : > { %v9610_v7 = vadd.f32 %v7782_v34, %v16028_v55  ;;  %v7784_v4 = vpop.f32.mrb[249].mxu0 }
 0x835   : > { %v9611_v27 = vadd.f32 %v7784_v4, %v16031_v20 }
 0x836   : > { %7861 = vst [vmem:[%s16035_s23 + $0x1c0] sm:$0xff] %v9610_v7 }
 0x837   : > { %7862 = vst [vmem:[%s16035_s23 + $0x1c8] sm:$0xff] %v9611_v27  ;;  %v7788_v22 = vpop.f32.mrb[250].mxu0 }
 0x838   : > { %v9612_v31 = vadd.f32 %v7788_v22, %v16028_v55  ;;  %v7790_v14 = vpop.f32.mrb[251].mxu0 }
 0x839   : > { %v9613_v1 = vadd.f32 %v7790_v14, %v16031_v20 }
 0x83a   : > { %7863 = vst [vmem:[%s16035_s23 + $0x1d0] sm:$0xff] %v9612_v31 }
 0x83b   : > { %7864 = vst [vmem:[%s16035_s23 + $0x1d8] sm:$0xff] %v9613_v1  ;;  %v7794_v28 = vpop.f32.mrb[252].mxu0 }
 0x83c   : > { %v9614_v25 = vadd.f32 %v7794_v28, %v16028_v55  ;;  %v7796_v44 = vpop.f32.mrb[253].mxu0 }
 0x83d   : > { %v9615_v13 = vadd.f32 %v7796_v44, %v16031_v20  ;;  %7876 = sbr.rel (!%p16603_p11) target bundleno = 2145 (0x861), region = 96 }
 0x83e   : > { %7865 = vst [vmem:[%s16035_s23 + $0x1e0] sm:$0xff] %v9614_v25 }
 0x83f   : > { %7866 = vst [vmem:[%s16035_s23 + $0x1e8] sm:$0xff] %v9615_v13  ;;  %v7800_v57 = vpop.f32.mrb[254].mxu0 }
 0x840   : > { %v9616_v53 = vadd.f32 %v7800_v57, %v16028_v55  ;;  %v7802_v43 = vpop.f32.mrb[255].mxu0 }
 0x841   : > { %v9617_v38 = vadd.f32 %v7802_v43, %v16031_v20 }
 0x842   : > { %7867 = vst [vmem:[%s16035_s23 + $0x1f0] sm:$0xff] %v9616_v53 }
 0x843   : > { %7868 = vst [vmem:[%s16035_s23 + $0x1f8] sm:$0xff] %v9617_v38 }
 0x844   : > { %s16617_s22 = smov (!%p7879_p13, %s7878_s22), 32 }
 0x845   : > { %s16167_s28 = sshll.u32 %s16617_s22, 8 }
 0x846   : > { %s7884_s9 = ssub.s32 8192, %s16167_s28 }
 0x847   : > { %7885 = vsyncadd %s7870_s17, %s7884_s9  ;;  %p8072_p0 = scmp.ne.s32.totalorder %s16167_s28, 0  ;;  %s8081_s1 = sshll.u32 %s16604_s16, 13 }
 0x848   : > { %s16605_s15 = sld [smem:[#allocation82_spill]]  ;;  %s7891_s18 = sshll.u32 %s16035_s23, 4  ;;  %s16180_s18 = int_to_ptr.vmem [resolvable:$true] %s7891_s18 }
 0x849   : > { %s11422_s27 = scalar_lea.vmem %s16180_s18, %s16167_s28  ;;  %s11521_s29 = smov [#allocation17]  }
 0x84a   : > { %p11423_p12 = scmp.ne.s32.totalorder %s16180_s18, %s11422_s27  ;;  %s11426_s25 = sshll.u32 %s11521_s29, 4  ;;  %s11427_s25 = int_to_ptr.vmem [resolvable:$false] %s11426_s25 }
 0x84b   : > { %s11428_s14 = scalar_lea.vmem %s11427_s25, 16384  ;;  %p11429_p8 = scmp.lt.s32.totalorder %s16180_s18, %s11427_s25 }
 0x84c   : > { %p11424_p7 = pnand %p11423_p12, %p8072_p0  ;;  %p11430_p9 = scmp.lt.s32.totalorder %s11428_s14, %s11422_s27 }
 0x84e   : > { %s16177_s21 = scalar_lea.hbm %s16605_s15, %s8081_s1  ;;  %p11425_p2 = pneg %p11424_p7 }
 0x84f   : > { %p11431_p10 = por %p11430_p9, %p11429_p8 }
 0x851   : > { %p11432_p1 = pnand %p11431_p10, %p11425_p2 }
 0x853   : > { %11435 = shalt.err (!%p11432_p1)
}
 0x854   : > { %s11436_s26 = scalar_lea.hbm %s16177_s21, %s16167_s28  ;;  %s11440_s13 = scalar_lea.hbm %s16605_s15, 9728 }
 0x855   : > { %p11437_p5 = scmp.ne.s32.totalorder %s16177_s21, %s11436_s26  ;;  %p11441_p11 = scmp.lt.u32.totalorder %s16177_s21, %s16605_s15 }
 0x856   : > { %p11442_p13 = scmp.lt.u32.totalorder %s11440_s13, %s11436_s26  ;;  %p11444_p7 = scmp.lt.u32.totalorder %s11436_s26, %s16177_s21 }
 0x857   : > { %p11438_p3 = pnand %p11437_p5, %p8072_p0 }
 0x858   : > { %p11443_p12 = por %p11442_p13, %p11441_p11 }
 0x859   : > { %p11439_p6 = pneg %p11438_p3 }
 0x85a   : > { %p11445_p2 = por %p11444_p7, %p11443_p12 }
 0x85c   : > { %p11446_p8 = pnand %p11445_p2, %p11439_p6 }
 0x85e   : > { %11449 = shalt.err (!%p11446_p8)
}
 0x85f   : > { %s11522_s22 = smov 256   ;;  %s11523_s9 = smov 16  }
 0x860   : > { %7897 = dma.vmem_to_hbm [thread:$0]  (%p8072_p0), %s16180_s18, %s16167_s28, %s16177_s21, %s7870_s17, %s11522_s22, %s11522_s22, %s11523_s9  }
 0x861 PF: > { %s16606_s1 = sld [smem:[#allocation24_spill]]  ;;  %s16607_s24 = sld [smem:[#allocation29_spill]] }
 0x867   : > { %s7906_s30 = sand.u32 1, %s16606_s1   ;;  %p16608_p9 = scmp.ne.s32.totalorder %s16607_s24, 0 }
 0x868   : > { %s7907_s27 = scalar_lea.sflag [#allocation4], %s7906_s30 }
 0x869   : > { %p10193_p10 = pnand %p8050_p4, %p16608_p9 }
 0x86b   : > { %11487 = dma.done.wait (!%p10193_p10), %s7907_s27, 8192  }
 0x86c   : > { %11489 = vsyncadd (!%p10193_p10), %s7907_s27, 4294959104  ;;  %s16609_s12 = sld [smem:[#allocation26_spill]]  ;;  %s16610_s29 = sld [smem:[#allocation27_spill]] }
 0x86d   : > { %s16611_s30 = smov %s11496_s10  ;;  %s16612_s10 = smov %s11500_s11 }
 0x872   : > { %p26_p1 = scmp.ge.s32.totalorder %s16609_s12, 4   ;;  %s16613_s11 = smov %s16610_s29 }
 0x874   :  { %28 = sbr.rel (!%p26_p1) target bundleno = 13 (0xd), region = 133 }
 0x87b   :  { %7912 = vsyncpa [#allocation3], 1 }
 0x87c   :  { %7914 = vsyncpa [#allocation3 + $0x1], 1 }
 0x87d   :  { %7915 = vsyncpa [#allocation6], 1 }
 0x87e   :  { %7916 = vsyncpa [#allocation9], 1 }
 0x87f   :  { %7917 = vsyncpa [#allocation12], 1 }
 0x880   :  { %7918 = vsyncpa [#allocation15], 1 }
 0x881   :  { %7919 = vsyncpa [#allocation4], 1 }
 0x882   :  { %7921 = vsyncpa [#allocation4 + $0x1], 1 }

</bundles_post_ra>
